<compile_context>
chip_gen: v7x
topology: tpu7x:2x2x1
jax: 0.10.0
libtpu: 0.0.40
codegen_flags: <defaults>
</compile_context>

<pallas_src>
import jax
import jax.numpy as jnp
from jax.experimental import pallas as pl
from jax.experimental.pallas import tpu as pltpu


# ----------------------------- Pallas kernels -----------------------------

def _make_matmul_bias_kernel(apply_relu: bool):
    def kernel(x_ref, w_ref, b_ref, o_ref):
        y = jnp.dot(x_ref[...], w_ref[...], preferred_element_type=jnp.float32)
        y = y + b_ref[...]
        if apply_relu:
            y = jnp.maximum(y, 0.0)
        o_ref[...] = y.astype(o_ref.dtype)
    return kernel


def _num_row_blocks(M, K, N):
    """Few, big row blocks (>=2 when M is large, so both v7x TensorCores get work);
    grow the grid only if a block would exceed a conservative VMEM budget."""
    def fits(tm):
        # bf16 x-block + f32 out-block (double buffered) + resident bf16 weights/bias.
        return 2 * (tm * K * 2 + tm * N * 4) + K * N * 2 + 4 * N < 8 * 1024 * 1024
    start = 2 if (M >= 256 and M % 16 == 0) else 1
    for g in range(start, M + 1):
        if M % g == 0 and (g == 1 or (M // g) % 8 == 0) and fits(M // g):
            return g
    return 1


def matmul_bias(x, w, b, *, relu):
    """(M,K) @ (K,N) + b [+ relu].  Operands in bf16, accumulate/epilogue in f32.
    Whole layer fits VMEM, so the grid is 1-2 row blocks (marked parallel)."""
    M, K = x.shape
    K2, N = w.shape
    assert K == K2 and b.shape == (N,)

    xb = x.astype(jnp.bfloat16)
    wb = w.astype(jnp.bfloat16)
    bf = b.astype(jnp.float32).reshape(1, N)

    g = _num_row_blocks(M, K, N)
    tm = M // g

    return pl.pallas_call(
        _make_matmul_bias_kernel(relu),
        out_shape=jax.ShapeDtypeStruct((M, N), jnp.float32),
        grid=(g,),
        in_specs=[
            pl.BlockSpec((tm, K), lambda i: (i, 0)),
            pl.BlockSpec((K, N), lambda i: (0, 0)),
            pl.BlockSpec((1, N), lambda i: (0, 0)),
        ],
        out_specs=pl.BlockSpec((tm, N), lambda i: (i, 0)),
        compiler_params=pltpu.CompilerParams(dimension_semantics=("parallel",)),
    )(xb, wb, bf)


def _pool_kernel(x_ref, o_ref):
    # x_ref: (N*H/2, 2, W/2, 2C) -- free row-major regrouping of the NHWC activation.
    #   x_ref[r, p, w2, q*C + c] == x[n, 2*h2 + p, 2*w2 + q, c]  with r = n*H/2 + h2
    # o_ref: (N*H/2, W/2, C)
    c = o_ref.shape[-1]
    a = x_ref[:, 0, :, :]                       # even output-rows' even h
    b = x_ref[:, 1, :, :]                       # odd h
    m = jnp.maximum(a, b)                       # (N*H/2, W/2, 2C)
    o_ref[...] = jnp.maximum(m[..., :c], m[..., c:])


def maxpool_2x2(x):
    """nn.MaxPool2d(2, 2) on an NHWC activation (H, W even) — single kernel,
    no XLA transpose, only a free reshape."""
    N, H, W, C = x.shape
    H2, W2 = H // 2, W // 2
    x4 = x.reshape(N * H2, 2, W2, 2 * C)        # pure row-major regrouping (free)
    pooled = pl.pallas_call(
        _pool_kernel,
        out_shape=jax.ShapeDtypeStruct((N * H2, W2, C), jnp.float32),
        grid=(1,),
        in_specs=[pl.BlockSpec((N * H2, 2, W2, 2 * C), lambda i: (0, 0, 0, 0))],
        out_specs=pl.BlockSpec((N * H2, W2, C), lambda i: (0, 0, 0)),
    )(x4)
    return pooled.reshape(N, H2, W2, C)


def _fc_stack_kernel(x_ref, w1_ref, b1_ref, w2_ref, b2_ref, w3_ref, b3_ref, o_ref):
    h = jnp.dot(x_ref[...], w1_ref[...], preferred_element_type=jnp.float32) + b1_ref[...]
    h = jnp.maximum(h, 0.0)
    h = jnp.dot(h.astype(w2_ref.dtype), w2_ref[...],
                preferred_element_type=jnp.float32) + b2_ref[...]
    h = jnp.maximum(h, 0.0)
    y = jnp.dot(h.astype(w3_ref.dtype), w3_ref[...],
                preferred_element_type=jnp.float32) + b3_ref[...]
    o_ref[...] = y.astype(o_ref.dtype)


def fc_stack(x, fc1, fc2, fc3):
    """fc3(relu(fc2(relu(fc1(x))))) fused into one pallas_call (weights < 1 MiB)."""
    (w1, b1), (w2, b2), (w3, b3) = fc1, fc2, fc3
    M = x.shape[0]
    args = (
        x.astype(jnp.bfloat16),
        w1.T.astype(jnp.bfloat16), b1.astype(jnp.float32).reshape(1, -1),
        w2.T.astype(jnp.bfloat16), b2.astype(jnp.float32).reshape(1, -1),
        w3.T.astype(jnp.bfloat16), b3.astype(jnp.float32).reshape(1, -1),
    )
    n_out = w3.shape[0]
    return pl.pallas_call(
        _fc_stack_kernel,
        out_shape=jax.ShapeDtypeStruct((M, n_out), jnp.float32),
        grid=(1,),
        in_specs=[pl.BlockSpec(a.shape, lambda i: (0, 0)) for a in args],
        out_specs=pl.BlockSpec((M, n_out), lambda i: (0, 0)),
    )(*args)


# ------------------- conv = im2col (glue) + Pallas matmul -------------------

def _im2col(x_nhwc, kh, kw):
    N, H, W, C = x_nhwc.shape
    Ho, Wo = H - kh + 1, W - kw + 1
    cols = []
    for i in range(kh):
        for j in range(kw):
            cols.append(x_nhwc[:, i:i + Ho, j:j + Wo, :])
    patches = jnp.concatenate(cols, axis=-1)                 # (N, Ho, Wo, kh*kw*C)
    return patches.reshape(N * Ho * Wo, kh * kw * C), (N, Ho, Wo)


def conv2d_relu(x_nhwc, w_oihw, b):
    """Valid (no padding, stride 1) conv + bias + relu; matmul runs in Pallas."""
    Cout, Cin, KH, KW = w_oihw.shape
    # weight OIHW -> (KH, KW, Cin, Cout) -> (KH*KW*Cin, Cout), matching im2col ordering.
    w_mat = jnp.transpose(w_oihw, (2, 3, 1, 0)).reshape(KH * KW * Cin, Cout)
    # cast before im2col so the materialized patches are bf16 (half the HBM bytes).
    patches, (N, Ho, Wo) = _im2col(x_nhwc.astype(jnp.bfloat16), KH, KW)
    y = matmul_bias(patches, w_mat, b, relu=True)            # (N*Ho*Wo, Cout) f32
    return y.reshape(N, Ho, Wo, Cout)


# ------------------------------ model ------------------------------

def init_params(key):
    def conv_p(k, cout, cin, ksz):
        k1, k2 = jax.random.split(k)
        fan_in = cin * ksz * ksz
        w = jax.random.normal(k1, (cout, cin, ksz, ksz), jnp.float32) / jnp.sqrt(fan_in)
        b = jax.random.normal(k2, (cout,), jnp.float32) * 0.01
        return w, b

    def lin_p(k, cout, cin):
        k1, k2 = jax.random.split(k)
        w = jax.random.normal(k1, (cout, cin), jnp.float32) / jnp.sqrt(cin)  # torch (out, in)
        b = jax.random.normal(k2, (cout,), jnp.float32) * 0.01
        return w, b

    keys = jax.random.split(key, 7)
    return {
        "conv1":   conv_p(keys[0], 32, 3, 5),
        "conv1_1": conv_p(keys[1], 32, 32, 5),
        "conv2":   conv_p(keys[2], 64, 32, 5),
        "conv2_1": conv_p(keys[3], 64, 64, 5),
        "fc1":     lin_p(keys[4], 512, 64 * 2 * 2),
        "fc2":     lin_p(keys[5], 128, 512),
        "fc3":     lin_p(keys[6], 10, 128),
    }


def cifar_net_forward(params, x_nchw):
    mean = jnp.array([0.5, 0.5, 0.5], jnp.float32)
    std = jnp.array([0.5, 0.5, 0.5], jnp.float32)

    # Fold (x - mean) / std into conv1's weights and bias (trace-time; no kernel):
    #   conv(w, (x - m)/s) + b == conv(w/s, x) + (b - sum(w * m/s))
    w1, b1 = params["conv1"]
    w1_f = w1 * (1.0 / std).reshape(1, 3, 1, 1)
    b1_f = b1 - jnp.sum(w1 * (mean / std).reshape(1, 3, 1, 1), axis=(1, 2, 3))

    x = jnp.transpose(x_nchw, (0, 2, 3, 1))                  # NCHW -> NHWC
    x = conv2d_relu(x, w1_f, b1_f)                           # (N, 28, 28, 32)
    x = conv2d_relu(x, *params["conv1_1"])                   # (N, 24, 24, 32)
    x = maxpool_2x2(x)                                       # (N, 12, 12, 32)
    x = conv2d_relu(x, *params["conv2"])                     # (N, 8, 8, 64)
    x = conv2d_relu(x, *params["conv2_1"])                   # (N, 4, 4, 64)
    x = maxpool_2x2(x)                                       # (N, 2, 2, 64)

    N = x.shape[0]
    # PyTorch reshape(-1, 64*2*2) flattens NCHW in (C, H, W) order.
    x = jnp.transpose(x, (0, 3, 1, 2)).reshape(N, 64 * 2 * 2)

    return fc_stack(x, params["fc1"], params["fc2"], params["fc3"])  # (N, 10)


if __name__ == "__main__":
    key = jax.random.PRNGKey(0)
    kx, kp = jax.random.split(key)
    # CIFAR-10 spatial size is required by the 64*2*2 flatten; small batch = 2.
    x = jax.random.uniform(kx, (2, 3, 32, 32), jnp.float32)
    params = init_params(kp)

    fwd = jax.jit(cifar_net_forward)
    out = jax.block_until_ready(fwd(params, x))

    assert out.shape == (2, 10), out.shape
    assert bool(jnp.all(jnp.isfinite(out)))
    print("KERNEL_OK")
</pallas_src>

<mosaic_0001>
module attributes {stable_mosaic.version = 11 : i64} {
  func.func @kernel(%arg0: i32, %arg1: memref<784x75xbf16, #tpu.memory_space<vmem>>, %arg2: memref<75x32xbf16, #tpu.memory_space<vmem>>, %arg3: memref<1x32xf32, #tpu.memory_space<vmem>>, %arg4: memref<784x32xf32, #tpu.memory_space<vmem>>) attributes {dimension_semantics = [#tpu.dimension_semantics<parallel>], iteration_bounds = array<i64: 2>, scalar_prefetch = 0 : i64, scratch_operands = 0 : i64, tpu.core_type = #tpu.core_type<tc>, window_params = [{transform_indices = @transform_0, window_bounds = array<i64: 784, 75>}, {pipeline_mode = #tpu.pipeline_mode<synchronous>, transform_indices = @transform_1, window_bounds = array<i64: 75, 32>}, {pipeline_mode = #tpu.pipeline_mode<synchronous>, transform_indices = @transform_2, window_bounds = array<i64: 1, 32>}, {transform_indices = @transform_3, window_bounds = array<i64: 784, 32>}]} {
    %c0 = arith.constant 0 : index
    %c0_0 = arith.constant 0 : index
    %0 = vector.load %arg1[%c0, %c0_0] : memref<784x75xbf16, #tpu.memory_space<vmem>>, vector<784x75xbf16>
    %c0_1 = arith.constant 0 : index
    %c0_2 = arith.constant 0 : index
    %1 = vector.load %arg2[%c0_1, %c0_2] : memref<75x32xbf16, #tpu.memory_space<vmem>>, vector<75x32xbf16>
    %cst = arith.constant dense<0.000000e+00> : vector<784x32xf32>
    %2 = tpu.matmul %0, %1, %cst {dimension_numbers = #tpu.dot_dimension_numbers<[1], [0], [0], [1], [0, 0, 1, 1], [], []>} : vector<784x75xbf16>, vector<75x32xbf16>, vector<784x32xf32> -> vector<784x32xf32>
    %c0_3 = arith.constant 0 : index
    %c0_4 = arith.constant 0 : index
    %3 = vector.load %arg3[%c0_3, %c0_4] : memref<1x32xf32, #tpu.memory_space<vmem>>, vector<1x32xf32>
    %4 = vector.broadcast %3 : vector<1x32xf32> to vector<784x32xf32>
    %5 = arith.addf %2, %4 : vector<784x32xf32>
    %cst_5 = arith.constant 0.000000e+00 : f32
    %6 = vector.broadcast %cst_5 : f32 to vector<784x32xf32>
    %7 = arith.maximumf %5, %6 : vector<784x32xf32>
    %c0_6 = arith.constant 0 : index
    %c0_7 = arith.constant 0 : index
    %8 = vector.load %arg4[%c0_6, %c0_7] : memref<784x32xf32, #tpu.memory_space<vmem>>, vector<784x32xf32>
    tpu.vector_store %arg4[%c0_6, %c0_7], %7 {strides = array<i32>} : memref<784x32xf32, #tpu.memory_space<vmem>>, vector<784x32xf32>,
    return
  }
  func.func @transform_0(%arg0: i32) -> (i32, i32) {
    %c0_i32 = arith.constant 0 : i32
    %c0_i32_0 = arith.constant 0 : i32
    return %arg0, %c0_i32 : i32, i32
  }
  func.func @transform_1(%arg0: i32) -> (i32, i32) {
    %c0_i32 = arith.constant 0 : i32
    %c0_i32_0 = arith.constant 0 : i32
    %c0_i32_1 = arith.constant 0 : i32
    return %c0_i32, %c0_i32_0 : i32, i32
  }
  func.func @transform_2(%arg0: i32) -> (i32, i32) {
    %c0_i32 = arith.constant 0 : i32
    %c0_i32_0 = arith.constant 0 : i32
    %c0_i32_1 = arith.constant 0 : i32
    return %c0_i32, %c0_i32_0 : i32, i32
  }
  func.func @transform_3(%arg0: i32) -> (i32, i32) {
    %c0_i32 = arith.constant 0 : i32
    %c0_i32_0 = arith.constant 0 : i32
    return %arg0, %c0_i32 : i32, i32
  }
}

module attributes {stable_mosaic.version = 11 : i64} {
  func.func @kernel(%arg0: i32, %arg1: memref<576x800xbf16, #tpu.memory_space<vmem>>, %arg2: memref<800x32xbf16, #tpu.memory_space<vmem>>, %arg3: memref<1x32xf32, #tpu.memory_space<vmem>>, %arg4: memref<576x32xf32, #tpu.memory_space<vmem>>) attributes {dimension_semantics = [#tpu.dimension_semantics<parallel>], iteration_bounds = array<i64: 2>, scalar_prefetch = 0 : i64, scratch_operands = 0 : i64, tpu.core_type = #tpu.core_type<tc>, window_params = [{transform_indices = @transform_0, window_bounds = array<i64: 576, 800>}, {pipeline_mode = #tpu.pipeline_mode<synchronous>, transform_indices = @transform_1, window_bounds = array<i64: 800, 32>}, {pipeline_mode = #tpu.pipeline_mode<synchronous>, transform_indices = @transform_2, window_bounds = array<i64: 1, 32>}, {transform_indices = @transform_3, window_bounds = array<i64: 576, 32>}]} {
    %c0 = arith.constant 0 : index
    %c0_0 = arith.constant 0 : index
    %0 = vector.load %arg1[%c0, %c0_0] : memref<576x800xbf16, #tpu.memory_space<vmem>>, vector<576x800xbf16>
    %c0_1 = arith.constant 0 : index
    %c0_2 = arith.constant 0 : index
    %1 = vector.load %arg2[%c0_1, %c0_2] : memref<800x32xbf16, #tpu.memory_space<vmem>>, vector<800x32xbf16>
    %cst = arith.constant dense<0.000000e+00> : vector<576x32xf32>
    %2 = tpu.matmul %0, %1, %cst {dimension_numbers = #tpu.dot_dimension_numbers<[1], [0], [0], [1], [0, 0, 1, 1], [], []>} : vector<576x800xbf16>, vector<800x32xbf16>, vector<576x32xf32> -> vector<576x32xf32>
    %c0_3 = arith.constant 0 : index
    %c0_4 = arith.constant 0 : index
    %3 = vector.load %arg3[%c0_3, %c0_4] : memref<1x32xf32, #tpu.memory_space<vmem>>, vector<1x32xf32>
    %4 = vector.broadcast %3 : vector<1x32xf32> to vector<576x32xf32>
    %5 = arith.addf %2, %4 : vector<576x32xf32>
    %cst_5 = arith.constant 0.000000e+00 : f32
    %6 = vector.broadcast %cst_5 : f32 to vector<576x32xf32>
    %7 = arith.maximumf %5, %6 : vector<576x32xf32>
    %c0_6 = arith.constant 0 : index
    %c0_7 = arith.constant 0 : index
    %8 = vector.load %arg4[%c0_6, %c0_7] : memref<576x32xf32, #tpu.memory_space<vmem>>, vector<576x32xf32>
    tpu.vector_store %arg4[%c0_6, %c0_7], %7 {strides = array<i32>} : memref<576x32xf32, #tpu.memory_space<vmem>>, vector<576x32xf32>,
    return
  }
  func.func @transform_0(%arg0: i32) -> (i32, i32) {
    %c0_i32 = arith.constant 0 : i32
    %c0_i32_0 = arith.constant 0 : i32
    return %arg0, %c0_i32 : i32, i32
  }
  func.func @transform_1(%arg0: i32) -> (i32, i32) {
    %c0_i32 = arith.constant 0 : i32
    %c0_i32_0 = arith.constant 0 : i32
    %c0_i32_1 = arith.constant 0 : i32
    return %c0_i32, %c0_i32_0 : i32, i32
  }
  func.func @transform_2(%arg0: i32) -> (i32, i32) {
    %c0_i32 = arith.constant 0 : i32
    %c0_i32_0 = arith.constant 0 : i32
    %c0_i32_1 = arith.constant 0 : i32
    return %c0_i32, %c0_i32_0 : i32, i32
  }
  func.func @transform_3(%arg0: i32) -> (i32, i32) {
    %c0_i32 = arith.constant 0 : i32
    %c0_i32_0 = arith.constant 0 : i32
    return %arg0, %c0_i32 : i32, i32
  }
}

module attributes {stable_mosaic.version = 11 : i64} {
  func.func @_pool_kernel(%arg0: i32, %arg1: memref<24x2x12x64xf32, #tpu.memory_space<vmem>>, %arg2: memref<24x12x32xf32, #tpu.memory_space<vmem>>) attributes {dimension_semantics = [#tpu.dimension_semantics<arbitrary>], iteration_bounds = array<i64: 1>, scalar_prefetch = 0 : i64, scratch_operands = 0 : i64, tpu.core_type = #tpu.core_type<tc>, window_params = [{pipeline_mode = #tpu.pipeline_mode<synchronous>, transform_indices = @transform_0, window_bounds = array<i64: 24, 2, 12, 64>}, {pipeline_mode = #tpu.pipeline_mode<synchronous>, transform_indices = @transform_1, window_bounds = array<i64: 24, 12, 32>}]} {
    %c0 = arith.constant 0 : index
    %c0_0 = arith.constant 0 : index
    %c0_1 = arith.constant 0 : index
    %c0_2 = arith.constant 0 : index
    %0 = vector.load %arg1[%c0, %c0_0, %c0_1, %c0_2] : memref<24x2x12x64xf32, #tpu.memory_space<vmem>>, vector<24x1x12x64xf32>
    %1 = vector.shape_cast %0 : vector<24x1x12x64xf32> to vector<24x12x64xf32>
    %c0_3 = arith.constant 0 : index
    %c1 = arith.constant 1 : index
    %c0_4 = arith.constant 0 : index
    %c0_5 = arith.constant 0 : index
    %2 = vector.load %arg1[%c0_3, %c1, %c0_4, %c0_5] : memref<24x2x12x64xf32, #tpu.memory_space<vmem>>, vector<24x1x12x64xf32>
    %3 = vector.shape_cast %2 : vector<24x1x12x64xf32> to vector<24x12x64xf32>
    %4 = arith.maximumf %1, %3 : vector<24x12x64xf32>
    %5 = vector.extract_strided_slice %4 {offsets = [0, 0, 0], sizes = [24, 12, 32], strides = [1, 1, 1]} : vector<24x12x64xf32> to vector<24x12x32xf32>
    %6 = vector.extract_strided_slice %4 {offsets = [0, 0, 32], sizes = [24, 12, 32], strides = [1, 1, 1]} : vector<24x12x64xf32> to vector<24x12x32xf32>
    %7 = arith.maximumf %5, %6 : vector<24x12x32xf32>
    %c0_6 = arith.constant 0 : index
    %c0_7 = arith.constant 0 : index
    %c0_8 = arith.constant 0 : index
    %8 = vector.load %arg2[%c0_6, %c0_7, %c0_8] : memref<24x12x32xf32, #tpu.memory_space<vmem>>, vector<24x12x32xf32>
    tpu.vector_store %arg2[%c0_6, %c0_7, %c0_8], %7 {strides = array<i32>} : memref<24x12x32xf32, #tpu.memory_space<vmem>>, vector<24x12x32xf32>,
    return
  }
  func.func @transform_0(%arg0: i32) -> (i32, i32, i32, i32) {
    %c0_i32 = arith.constant 0 : i32
    %c0_i32_0 = arith.constant 0 : i32
    %c0_i32_1 = arith.constant 0 : i32
    %c0_i32_2 = arith.constant 0 : i32
    %c0_i32_3 = arith.constant 0 : i32
    return %c0_i32, %c0_i32_0, %c0_i32_1, %c0_i32_2 : i32, i32, i32, i32
  }
  func.func @transform_1(%arg0: i32) -> (i32, i32, i32) {
    %c0_i32 = arith.constant 0 : i32
    %c0_i32_0 = arith.constant 0 : i32
    %c0_i32_1 = arith.constant 0 : i32
    %c0_i32_2 = arith.constant 0 : i32
    return %c0_i32, %c0_i32_0, %c0_i32_1 : i32, i32, i32
  }
}

module attributes {stable_mosaic.version = 11 : i64} {
  func.func @kernel(%arg0: i32, %arg1: memref<128x800xbf16, #tpu.memory_space<vmem>>, %arg2: memref<800x64xbf16, #tpu.memory_space<vmem>>, %arg3: memref<1x64xf32, #tpu.memory_space<vmem>>, %arg4: memref<128x64xf32, #tpu.memory_space<vmem>>) attributes {dimension_semantics = [#tpu.dimension_semantics<parallel>], iteration_bounds = array<i64: 1>, scalar_prefetch = 0 : i64, scratch_operands = 0 : i64, tpu.core_type = #tpu.core_type<tc>, window_params = [{transform_indices = @transform_0, window_bounds = array<i64: 128, 800>}, {pipeline_mode = #tpu.pipeline_mode<synchronous>, transform_indices = @transform_1, window_bounds = array<i64: 800, 64>}, {pipeline_mode = #tpu.pipeline_mode<synchronous>, transform_indices = @transform_2, window_bounds = array<i64: 1, 64>}, {transform_indices = @transform_3, window_bounds = array<i64: 128, 64>}]} {
    %c0 = arith.constant 0 : index
    %c0_0 = arith.constant 0 : index
    %0 = vector.load %arg1[%c0, %c0_0] : memref<128x800xbf16, #tpu.memory_space<vmem>>, vector<128x800xbf16>
    %c0_1 = arith.constant 0 : index
    %c0_2 = arith.constant 0 : index
    %1 = vector.load %arg2[%c0_1, %c0_2] : memref<800x64xbf16, #tpu.memory_space<vmem>>, vector<800x64xbf16>
    %cst = arith.constant dense<0.000000e+00> : vector<128x64xf32>
    %2 = tpu.matmul %0, %1, %cst {dimension_numbers = #tpu.dot_dimension_numbers<[1], [0], [0], [1], [0, 0, 1, 1], [], []>} : vector<128x800xbf16>, vector<800x64xbf16>, vector<128x64xf32> -> vector<128x64xf32>
    %c0_3 = arith.constant 0 : index
    %c0_4 = arith.constant 0 : index
    %3 = vector.load %arg3[%c0_3, %c0_4] : memref<1x64xf32, #tpu.memory_space<vmem>>, vector<1x64xf32>
    %4 = vector.broadcast %3 : vector<1x64xf32> to vector<128x64xf32>
    %5 = arith.addf %2, %4 : vector<128x64xf32>
    %cst_5 = arith.constant 0.000000e+00 : f32
    %6 = vector.broadcast %cst_5 : f32 to vector<128x64xf32>
    %7 = arith.maximumf %5, %6 : vector<128x64xf32>
    %c0_6 = arith.constant 0 : index
    %c0_7 = arith.constant 0 : index
    %8 = vector.load %arg4[%c0_6, %c0_7] : memref<128x64xf32, #tpu.memory_space<vmem>>, vector<128x64xf32>
    tpu.vector_store %arg4[%c0_6, %c0_7], %7 {strides = array<i32>} : memref<128x64xf32, #tpu.memory_space<vmem>>, vector<128x64xf32>,
    return
  }
  func.func @transform_0(%arg0: i32) -> (i32, i32) {
    %c0_i32 = arith.constant 0 : i32
    %c0_i32_0 = arith.constant 0 : i32
    return %arg0, %c0_i32 : i32, i32
  }
  func.func @transform_1(%arg0: i32) -> (i32, i32) {
    %c0_i32 = arith.constant 0 : i32
    %c0_i32_0 = arith.constant 0 : i32
    %c0_i32_1 = arith.constant 0 : i32
    return %c0_i32, %c0_i32_0 : i32, i32
  }
  func.func @transform_2(%arg0: i32) -> (i32, i32) {
    %c0_i32 = arith.constant 0 : i32
    %c0_i32_0 = arith.constant 0 : i32
    %c0_i32_1 = arith.constant 0 : i32
    return %c0_i32, %c0_i32_0 : i32, i32
  }
  func.func @transform_3(%arg0: i32) -> (i32, i32) {
    %c0_i32 = arith.constant 0 : i32
    %c0_i32_0 = arith.constant 0 : i32
    return %arg0, %c0_i32 : i32, i32
  }
}

module attributes {stable_mosaic.version = 11 : i64} {
  func.func @kernel(%arg0: i32, %arg1: memref<32x1600xbf16, #tpu.memory_space<vmem>>, %arg2: memref<1600x64xbf16, #tpu.memory_space<vmem>>, %arg3: memref<1x64xf32, #tpu.memory_space<vmem>>, %arg4: memref<32x64xf32, #tpu.memory_space<vmem>>) attributes {dimension_semantics = [#tpu.dimension_semantics<parallel>], iteration_bounds = array<i64: 1>, scalar_prefetch = 0 : i64, scratch_operands = 0 : i64, tpu.core_type = #tpu.core_type<tc>, window_params = [{transform_indices = @transform_0, window_bounds = array<i64: 32, 1600>}, {pipeline_mode = #tpu.pipeline_mode<synchronous>, transform_indices = @transform_1, window_bounds = array<i64: 1600, 64>}, {pipeline_mode = #tpu.pipeline_mode<synchronous>, transform_indices = @transform_2, window_bounds = array<i64: 1, 64>}, {transform_indices = @transform_3, window_bounds = array<i64: 32, 64>}]} {
    %c0 = arith.constant 0 : index
    %c0_0 = arith.constant 0 : index
    %0 = vector.load %arg1[%c0, %c0_0] : memref<32x1600xbf16, #tpu.memory_space<vmem>>, vector<32x1600xbf16>
    %c0_1 = arith.constant 0 : index
    %c0_2 = arith.constant 0 : index
    %1 = vector.load %arg2[%c0_1, %c0_2] : memref<1600x64xbf16, #tpu.memory_space<vmem>>, vector<1600x64xbf16>
    %cst = arith.constant dense<0.000000e+00> : vector<32x64xf32>
    %2 = tpu.matmul %0, %1, %cst {dimension_numbers = #tpu.dot_dimension_numbers<[1], [0], [0], [1], [0, 0, 1, 1], [], []>} : vector<32x1600xbf16>, vector<1600x64xbf16>, vector<32x64xf32> -> vector<32x64xf32>
    %c0_3 = arith.constant 0 : index
    %c0_4 = arith.constant 0 : index
    %3 = vector.load %arg3[%c0_3, %c0_4] : memref<1x64xf32, #tpu.memory_space<vmem>>, vector<1x64xf32>
    %4 = vector.broadcast %3 : vector<1x64xf32> to vector<32x64xf32>
    %5 = arith.addf %2, %4 : vector<32x64xf32>
    %cst_5 = arith.constant 0.000000e+00 : f32
    %6 = vector.broadcast %cst_5 : f32 to vector<32x64xf32>
    %7 = arith.maximumf %5, %6 : vector<32x64xf32>
    %c0_6 = arith.constant 0 : index
    %c0_7 = arith.constant 0 : index
    %8 = vector.load %arg4[%c0_6, %c0_7] : memref<32x64xf32, #tpu.memory_space<vmem>>, vector<32x64xf32>
    tpu.vector_store %arg4[%c0_6, %c0_7], %7 {strides = array<i32>} : memref<32x64xf32, #tpu.memory_space<vmem>>, vector<32x64xf32>,
    return
  }
  func.func @transform_0(%arg0: i32) -> (i32, i32) {
    %c0_i32 = arith.constant 0 : i32
    %c0_i32_0 = arith.constant 0 : i32
    return %arg0, %c0_i32 : i32, i32
  }
  func.func @transform_1(%arg0: i32) -> (i32, i32) {
    %c0_i32 = arith.constant 0 : i32
    %c0_i32_0 = arith.constant 0 : i32
    %c0_i32_1 = arith.constant 0 : i32
    return %c0_i32, %c0_i32_0 : i32, i32
  }
  func.func @transform_2(%arg0: i32) -> (i32, i32) {
    %c0_i32 = arith.constant 0 : i32
    %c0_i32_0 = arith.constant 0 : i32
    %c0_i32_1 = arith.constant 0 : i32
    return %c0_i32, %c0_i32_0 : i32, i32
  }
  func.func @transform_3(%arg0: i32) -> (i32, i32) {
    %c0_i32 = arith.constant 0 : i32
    %c0_i32_0 = arith.constant 0 : i32
    return %arg0, %c0_i32 : i32, i32
  }
}

module attributes {stable_mosaic.version = 11 : i64} {
  func.func @_pool_kernel(%arg0: i32, %arg1: memref<4x2x2x128xf32, #tpu.memory_space<vmem>>, %arg2: memref<4x2x64xf32, #tpu.memory_space<vmem>>) attributes {dimension_semantics = [#tpu.dimension_semantics<arbitrary>], iteration_bounds = array<i64: 1>, scalar_prefetch = 0 : i64, scratch_operands = 0 : i64, tpu.core_type = #tpu.core_type<tc>, window_params = [{pipeline_mode = #tpu.pipeline_mode<synchronous>, transform_indices = @transform_0, window_bounds = array<i64: 4, 2, 2, 128>}, {pipeline_mode = #tpu.pipeline_mode<synchronous>, transform_indices = @transform_1, window_bounds = array<i64: 4, 2, 64>}]} {
    %c0 = arith.constant 0 : index
    %c0_0 = arith.constant 0 : index
    %c0_1 = arith.constant 0 : index
    %c0_2 = arith.constant 0 : index
    %0 = vector.load %arg1[%c0, %c0_0, %c0_1, %c0_2] : memref<4x2x2x128xf32, #tpu.memory_space<vmem>>, vector<4x1x2x128xf32>
    %1 = vector.shape_cast %0 : vector<4x1x2x128xf32> to vector<4x2x128xf32>
    %c0_3 = arith.constant 0 : index
    %c1 = arith.constant 1 : index
    %c0_4 = arith.constant 0 : index
    %c0_5 = arith.constant 0 : index
    %2 = vector.load %arg1[%c0_3, %c1, %c0_4, %c0_5] : memref<4x2x2x128xf32, #tpu.memory_space<vmem>>, vector<4x1x2x128xf32>
    %3 = vector.shape_cast %2 : vector<4x1x2x128xf32> to vector<4x2x128xf32>
    %4 = arith.maximumf %1, %3 : vector<4x2x128xf32>
    %5 = vector.extract_strided_slice %4 {offsets = [0, 0, 0], sizes = [4, 2, 64], strides = [1, 1, 1]} : vector<4x2x128xf32> to vector<4x2x64xf32>
    %6 = vector.extract_strided_slice %4 {offsets = [0, 0, 64], sizes = [4, 2, 64], strides = [1, 1, 1]} : vector<4x2x128xf32> to vector<4x2x64xf32>
    %7 = arith.maximumf %5, %6 : vector<4x2x64xf32>
    %c0_6 = arith.constant 0 : index
    %c0_7 = arith.constant 0 : index
    %c0_8 = arith.constant 0 : index
    %8 = vector.load %arg2[%c0_6, %c0_7, %c0_8] : memref<4x2x64xf32, #tpu.memory_space<vmem>>, vector<4x2x64xf32>
    tpu.vector_store %arg2[%c0_6, %c0_7, %c0_8], %7 {strides = array<i32>} : memref<4x2x64xf32, #tpu.memory_space<vmem>>, vector<4x2x64xf32>,
    return
  }
  func.func @transform_0(%arg0: i32) -> (i32, i32, i32, i32) {
    %c0_i32 = arith.constant 0 : i32
    %c0_i32_0 = arith.constant 0 : i32
    %c0_i32_1 = arith.constant 0 : i32
    %c0_i32_2 = arith.constant 0 : i32
    %c0_i32_3 = arith.constant 0 : i32
    return %c0_i32, %c0_i32_0, %c0_i32_1, %c0_i32_2 : i32, i32, i32, i32
  }
  func.func @transform_1(%arg0: i32) -> (i32, i32, i32) {
    %c0_i32 = arith.constant 0 : i32
    %c0_i32_0 = arith.constant 0 : i32
    %c0_i32_1 = arith.constant 0 : i32
    %c0_i32_2 = arith.constant 0 : i32
    return %c0_i32, %c0_i32_0, %c0_i32_1 : i32, i32, i32
  }
}

module attributes {stable_mosaic.version = 11 : i64} {
  func.func @_fc_stack_kernel(%arg0: i32, %arg1: memref<2x256xbf16, #tpu.memory_space<vmem>>, %arg2: memref<256x512xbf16, #tpu.memory_space<vmem>>, %arg3: memref<1x512xf32, #tpu.memory_space<vmem>>, %arg4: memref<512x128xbf16, #tpu.memory_space<vmem>>, %arg5: memref<1x128xf32, #tpu.memory_space<vmem>>, %arg6: memref<128x10xbf16, #tpu.memory_space<vmem>>, %arg7: memref<1x10xf32, #tpu.memory_space<vmem>>, %arg8: memref<2x10xf32, #tpu.memory_space<vmem>>) attributes {dimension_semantics = [#tpu.dimension_semantics<arbitrary>], iteration_bounds = array<i64: 1>, scalar_prefetch = 0 : i64, scratch_operands = 0 : i64, tpu.core_type = #tpu.core_type<tc>, window_params = [{pipeline_mode = #tpu.pipeline_mode<synchronous>, transform_indices = @transform_0, window_bounds = array<i64: 2, 256>}, {pipeline_mode = #tpu.pipeline_mode<synchronous>, transform_indices = @transform_1, window_bounds = array<i64: 256, 512>}, {pipeline_mode = #tpu.pipeline_mode<synchronous>, transform_indices = @transform_2, window_bounds = array<i64: 1, 512>}, {pipeline_mode = #tpu.pipeline_mode<synchronous>, transform_indices = @transform_3, window_bounds = array<i64: 512, 128>}, {pipeline_mode = #tpu.pipeline_mode<synchronous>, transform_indices = @transform_4, window_bounds = array<i64: 1, 128>}, {pipeline_mode = #tpu.pipeline_mode<synchronous>, transform_indices = @transform_5, window_bounds = array<i64: 128, 10>}, {pipeline_mode = #tpu.pipeline_mode<synchronous>, transform_indices = @transform_6, window_bounds = array<i64: 1, 10>}, {pipeline_mode = #tpu.pipeline_mode<synchronous>, transform_indices = @transform_7, window_bounds = array<i64: 2, 10>}]} {
    %c0 = arith.constant 0 : index
    %c0_0 = arith.constant 0 : index
    %0 = vector.load %arg1[%c0, %c0_0] : memref<2x256xbf16, #tpu.memory_space<vmem>>, vector<2x256xbf16>
    %c0_1 = arith.constant 0 : index
    %c0_2 = arith.constant 0 : index
    %1 = vector.load %arg2[%c0_1, %c0_2] : memref<256x512xbf16, #tpu.memory_space<vmem>>, vector<256x512xbf16>
    %cst = arith.constant dense<0.000000e+00> : vector<2x512xf32>
    %2 = tpu.matmul %0, %1, %cst {dimension_numbers = #tpu.dot_dimension_numbers<[1], [0], [0], [1], [0, 0, 1, 1], [], []>} : vector<2x256xbf16>, vector<256x512xbf16>, vector<2x512xf32> -> vector<2x512xf32>
    %c0_3 = arith.constant 0 : index
    %c0_4 = arith.constant 0 : index
    %3 = vector.load %arg3[%c0_3, %c0_4] : memref<1x512xf32, #tpu.memory_space<vmem>>, vector<1x512xf32>
    %4 = vector.broadcast %3 : vector<1x512xf32> to vector<2x512xf32>
    %5 = arith.addf %2, %4 : vector<2x512xf32>
    %cst_5 = arith.constant 0.000000e+00 : f32
    %6 = vector.broadcast %cst_5 : f32 to vector<2x512xf32>
    %7 = arith.maximumf %5, %6 : vector<2x512xf32>
    %8 = arith.truncf %7 : vector<2x512xf32> to vector<2x512xbf16>
    %c0_6 = arith.constant 0 : index
    %c0_7 = arith.constant 0 : index
    %9 = vector.load %arg4[%c0_6, %c0_7] : memref<512x128xbf16, #tpu.memory_space<vmem>>, vector<512x128xbf16>
    %cst_8 = arith.constant dense<0.000000e+00> : vector<2x128xf32>
    %10 = tpu.matmul %8, %9, %cst_8 {dimension_numbers = #tpu.dot_dimension_numbers<[1], [0], [0], [1], [0, 0, 1, 1], [], []>} : vector<2x512xbf16>, vector<512x128xbf16>, vector<2x128xf32> -> vector<2x128xf32>
    %c0_9 = arith.constant 0 : index
    %c0_10 = arith.constant 0 : index
    %11 = vector.load %arg5[%c0_9, %c0_10] : memref<1x128xf32, #tpu.memory_space<vmem>>, vector<1x128xf32>
    %12 = vector.broadcast %11 : vector<1x128xf32> to vector<2x128xf32>
    %13 = arith.addf %10, %12 : vector<2x128xf32>
    %cst_11 = arith.constant 0.000000e+00 : f32
    %14 = vector.broadcast %cst_11 : f32 to vector<2x128xf32>
    %15 = arith.maximumf %13, %14 : vector<2x128xf32>
    %16 = arith.truncf %15 : vector<2x128xf32> to vector<2x128xbf16>
    %c0_12 = arith.constant 0 : index
    %c0_13 = arith.constant 0 : index
    %17 = vector.load %arg6[%c0_12, %c0_13] : memref<128x10xbf16, #tpu.memory_space<vmem>>, vector<128x10xbf16>
    %cst_14 = arith.constant dense<0.000000e+00> : vector<2x10xf32>
    %18 = tpu.matmul %16, %17, %cst_14 {dimension_numbers = #tpu.dot_dimension_numbers<[1], [0], [0], [1], [0, 0, 1, 1], [], []>} : vector<2x128xbf16>, vector<128x10xbf16>, vector<2x10xf32> -> vector<2x10xf32>
    %c0_15 = arith.constant 0 : index
    %c0_16 = arith.constant 0 : index
    %19 = vector.load %arg7[%c0_15, %c0_16] : memref<1x10xf32, #tpu.memory_space<vmem>>, vector<1x10xf32>
    %20 = vector.broadcast %19 : vector<1x10xf32> to vector<2x10xf32>
    %21 = arith.addf %18, %20 : vector<2x10xf32>
    %c0_17 = arith.constant 0 : index
    %c0_18 = arith.constant 0 : index
    %22 = vector.load %arg8[%c0_17, %c0_18] : memref<2x10xf32, #tpu.memory_space<vmem>>, vector<2x10xf32>
    tpu.vector_store %arg8[%c0_17, %c0_18], %21 {strides = array<i32>} : memref<2x10xf32, #tpu.memory_space<vmem>>, vector<2x10xf32>,
    return
  }
  func.func @transform_0(%arg0: i32) -> (i32, i32) {
    %c0_i32 = arith.constant 0 : i32
    %c0_i32_0 = arith.constant 0 : i32
    %c0_i32_1 = arith.constant 0 : i32
    return %c0_i32, %c0_i32_0 : i32, i32
  }
  func.func @transform_1(%arg0: i32) -> (i32, i32) {
    %c0_i32 = arith.constant 0 : i32
    %c0_i32_0 = arith.constant 0 : i32
    %c0_i32_1 = arith.constant 0 : i32
    return %c0_i32, %c0_i32_0 : i32, i32
  }
  func.func @transform_2(%arg0: i32) -> (i32, i32) {
    %c0_i32 = arith.constant 0 : i32
    %c0_i32_0 = arith.constant 0 : i32
    %c0_i32_1 = arith.constant 0 : i32
    return %c0_i32, %c0_i32_0 : i32, i32
  }
  func.func @transform_3(%arg0: i32) -> (i32, i32) {
    %c0_i32 = arith.constant 0 : i32
    %c0_i32_0 = arith.constant 0 : i32
    %c0_i32_1 = arith.constant 0 : i32
    return %c0_i32, %c0_i32_0 : i32, i32
  }
  func.func @transform_4(%arg0: i32) -> (i32, i32) {
    %c0_i32 = arith.constant 0 : i32
    %c0_i32_0 = arith.constant 0 : i32
    %c0_i32_1 = arith.constant 0 : i32
    return %c0_i32, %c0_i32_0 : i32, i32
  }
  func.func @transform_5(%arg0: i32) -> (i32, i32) {
    %c0_i32 = arith.constant 0 : i32
    %c0_i32_0 = arith.constant 0 : i32
    %c0_i32_1 = arith.constant 0 : i32
    return %c0_i32, %c0_i32_0 : i32, i32
  }
  func.func @transform_6(%arg0: i32) -> (i32, i32) {
    %c0_i32 = arith.constant 0 : i32
    %c0_i32_0 = arith.constant 0 : i32
    %c0_i32_1 = arith.constant 0 : i32
    return %c0_i32, %c0_i32_0 : i32, i32
  }
  func.func @transform_7(%arg0: i32) -> (i32, i32) {
    %c0_i32 = arith.constant 0 : i32
    %c0_i32_0 = arith.constant 0 : i32
    %c0_i32_1 = arith.constant 0 : i32
    return %c0_i32, %c0_i32_0 : i32, i32
  }
}

</mosaic_0001>

<bundles_post_ra>
// kernel: cifar_net_forward.7
= control target key start
LH: loop header
LB: loop body
LE: loop exit
PB: predicated region body
PF: predicated region fallthrough
CT: control target
= control target key end

     0   :  { %s1876_s12 = smov 0   ;;  %s2421_s0 = inlined_call_operand.vmem [shape: bf16[1568,75], index: 0, kind: input, shape index: {}]   ;;  %s2422_s1 = inlined_call_operand.vmem [shape: bf16[75,32], index: 1, kind: input, shape index: {}]   ;;  %s2423_s2 = inlined_call_operand.vmem [shape: f32[1,32], index: 2, kind: input, shape index: {}]   ;;  %s2424_s3 = inlined_call_operand.vmem [shape: f32[1568,32], index: 3, kind: output, shape index: {}]  }
   0x1 LB: > { %s1397_s13 = sadd.s32 4294967295, %s1851_s12   ;;  %p1401_p0 = scmp.ge.s32.totalorder %s1851_s12, 1  ;;  %s1851_s12 = sphi %s1876_s12, %s13_s12  }
   0x2   : > { %p138_p1 = scmp.lt.s32.totalorder %s1851_s12, 3 }
   0x4   : > { %p139_p2 = pnand %p1401_p0, %p138_p1 }
   0x5   : > { %v1791_v0 = vld [vmem:[%s2422_s1] sm:$0xff] (!%p139_p2)   ;;  %v1853_v1 = vmov (!%p139_p2), 0.0   ;;  %v1792_v2 = vld [vmem:[%s2422_s1 + $0x8] sm:$0xff] (!%p139_p2)   ;;  %vm712_vm0 = vcmask (!%p139_p2), 1044480   ;;  %s162_s18 = smul.u32 (!%p139_p2), 98, %s1397_s13  ;;  %v1793_v3 = vld [vmem:[%s2422_s1 + $0x10] sm:$0xff] (!%p139_p2)  }
   0x6   : > { %142 = sbr.rel (%p139_p2) target bundleno = 437 (0x1b5), region = 32  ;;  %1564 = vmatprep.subr.bf16.mxu0 (!%p139_p2), %v1853_v1  ;;  %1770 = vmatprep.subr.bf16.mxu1 (!%p139_p2), %v1853_v1  ;;  %vm713_vm1 = vcmask (!%p139_p2), 1045504   ;;  %v1854_v4 = vmov (!%p139_p2), 65535   ;;  %vm1855_vm2 = vmmov (!%p139_p2), 0   ;;  %v1794_v6 = vld [vmem:[%s2422_s1 + $0x18] sm:$0xff] (!%p139_p2)   ;;  %vm564_vm3 = vcmask (!%p139_p2), 613376  }
   0x7   : > { %1565 = vmatpush3.bf16.msra.mxu0 (!%p139_p2), %v1791_v0  ;;  %1775 = vmatpush3.bf16.msra.mxu1 (!%p139_p2), %v1791_v0  ;;  %p163_p3 = scmp.lt.s32.totalorder (!%p139_p2), %s162_s18, 195  ;;  %v714_v5 = vsel (!%p139_p2), %vm712_vm0, 4294967295, %v1854_v4  ;;  %v1795_v7 = vld [vmem:[%s2422_s1 + $0x20] sm:$0x3f] (!%p139_p2)   ;;  %vm1242_vm4 = vcmask (!%p139_p2), 261120  }
   0x8   : > { %1566 = vmatprep.subr.bf16.mxu0 (!%p139_p2), %v1853_v1  ;;  %1771 = vmatprep.subr.bf16.mxu1 (!%p139_p2), %v1853_v1  ;;  %v715_v8 = vsel (!%p139_p2), %vm713_vm1, %v714_v5, 0  ;;  %v2116_v59 = vld [vmem:[%s2423_s2] ss:$0 sm:$0xff] (!%p139_p2) }
   0x9   : > { %1574 = vmatprep.mubr.msk.bf16.mxu0 (!%p139_p2), %vm1855_vm2, %v1853_v1  ;;  %1674 = vmatprep.mubr.msk.bf16.mxu1 (!%p139_p2), %vm1855_vm2, %v1853_v1  ;;  %v717_v9 = vand.u32 (!%p139_p2), %v1795_v7, %v715_v8 }
   0xb   : > { %1567 = vmatpush3.bf16.msra.mxu0 (!%p139_p2), %v1792_v2  ;;  %1776 = vmatpush3.bf16.msra.mxu1 (!%p139_p2), %v1792_v2 }
   0xc   : > { %1568 = vmatprep.subr.bf16.mxu0 (!%p139_p2), %v1853_v1  ;;  %1772 = vmatprep.subr.bf16.mxu1 (!%p139_p2), %v1853_v1 }
   0xd   : > { %s2426_s18 = smov (!%p163_p3, %s162_s18), 195 }
   0xe   : > { %s1402_s25 = sshll.u32 %s2426_s18, 2  ;;  %s1403_s4 = sshll.u32 %s2426_s18, 3 }
   0xf   : > { %1569 = vmatpush3.bf16.msra.mxu0 %v1793_v3  ;;  %1777 = vmatpush3.bf16.msra.mxu1 %v1793_v3  ;;  %s1917_s28 = scalar_lea.vmem %s2421_s0, %s1402_s25  ;;  %s2124_s7 = scalar_lea.vmem %s2424_s3, %s1403_s4 }
  0x10   : > { %1570 = vmatprep.subr.bf16.mxu0 %v1853_v1  ;;  %1773 = vmatprep.subr.bf16.mxu1 %v1853_v1  ;;  %v1796_v10 = vld [vmem:[%s1917_s28] sm:$0xff]   ;;  %v1797_v11 = vld [vmem:[%s1917_s28 + $0xc8] sm:$0xff]   ;;  %v1799_v13 = vld [vmem:[%s1917_s28 + $0xd0] sm:$0xff]  }
  0x11   : > { %v1798_v12 = vld [vmem:[%s1917_s28 + $0x8] sm:$0xff]   ;;  %v1800_v14 = vld [vmem:[%s1917_s28 + $0x10] sm:$0xff]   ;;  %v1801_v15 = vld [vmem:[%s1917_s28 + $0xd8] sm:$0xff]  }
  0x12   : > { %v1802_v16 = vld [vmem:[%s1917_s28 + $0x18] sm:$0xff]   ;;  %v1803_v17 = vld [vmem:[%s1917_s28 + $0xe0] sm:$0xff]   ;;  %v1805_v19 = vld [vmem:[%s1917_s28 + $0xe8] sm:$0xff]  }
  0x13   : > { %1571 = vmatpush3.bf16.msra.mxu0 %v1794_v6  ;;  %1778 = vmatpush3.bf16.msra.mxu1 %v1794_v6  ;;  %v1804_v18 = vld [vmem:[%s1917_s28 + $0x20] sm:$0xff]   ;;  %v1806_v20 = vld [vmem:[%s1917_s28 + $0x28] sm:$0xff]   ;;  %v1807_v21 = vld [vmem:[%s1917_s28 + $0xf0] sm:$0xff]  }
  0x14   : > { %1572 = vmatprep.subr.bf16.mxu0 %v1853_v1  ;;  %1774 = vmatprep.subr.bf16.mxu1 %v1853_v1  ;;  %v1808_v22 = vld [vmem:[%s1917_s28 + $0x30] sm:$0xff]   ;;  %v1809_v23 = vld [vmem:[%s1917_s28 + $0xf8] sm:$0xff]   ;;  %v1811_v25 = vld [vmem:[%s1917_s28 + $0x100] sm:$0xff]  }
  0x15   : > { %v1810_v24 = vld [vmem:[%s1917_s28 + $0x38] sm:$0xff]   ;;  %v1812_v26 = vld [vmem:[%s1917_s28 + $0x40] sm:$0xff]   ;;  %v1813_v27 = vld [vmem:[%s1917_s28 + $0x108] sm:$0xff]  }
  0x16   : > { %v1814_v28 = vld [vmem:[%s1917_s28 + $0x48] sm:$0xff]   ;;  %v1815_v29 = vld [vmem:[%s1917_s28 + $0x110] sm:$0xff]   ;;  %v1817_v31 = vld [vmem:[%s1917_s28 + $0x118] sm:$0xff]  }
  0x17   : > { %1573 = vmatpush3.bf16.msra.mxu0 %v717_v9  ;;  %1779 = vmatpush3.bf16.msra.mxu1 %v717_v9  ;;  %v1816_v30 = vld [vmem:[%s1917_s28 + $0x50] sm:$0xff]   ;;  %v1818_v32 = vld [vmem:[%s1917_s28 + $0x58] sm:$0xff]   ;;  %v1819_v33 = vld [vmem:[%s1917_s28 + $0x120] sm:$0xff]  }
  0x18   : > { %v1820_v34 = vld [vmem:[%s1917_s28 + $0x60] sm:$0xff]   ;;  %v1821_v35 = vld [vmem:[%s1917_s28 + $0x128] sm:$0xff]   ;;  %v1823_v37 = vld [vmem:[%s1917_s28 + $0x130] sm:$0xff]  }
  0x19   : > { %v1822_v36 = vld [vmem:[%s1917_s28 + $0x68] sm:$0xff]   ;;  %v1824_v38 = vld [vmem:[%s1917_s28 + $0x70] sm:$0xff]   ;;  %v1825_v39 = vld [vmem:[%s1917_s28 + $0x138] sm:$0xff]  }
  0x1a   : > { %1575 = vmatmul.mubr.msk.bf16.vlgmr.msra.gmra.mrb[0].mxu0 %vm564_vm3, %v1796_v10  ;;  %1675 = vmatmul.mubr.msk.bf16.vlgmr.msra.gmra.mrb[0].mxu1 %vm564_vm3, %v1797_v11  ;;  %v1826_v40 = vld [vmem:[%s1917_s28 + $0x78] sm:$0xff]   ;;  %v1827_v41 = vld [vmem:[%s1917_s28 + $0x140] sm:$0xff]   ;;  %v1829_v43 = vld [vmem:[%s1917_s28 + $0x148] sm:$0xff]  }
  0x1b   : > { %1578 = vmatprep.mubr.msk.bf16.mxu0 %vm1855_vm2, %v1853_v1  ;;  %1678 = vmatprep.mubr.msk.bf16.mxu1 %vm1855_vm2, %v1853_v1  ;;  %v1828_v42 = vld [vmem:[%s1917_s28 + $0x80] sm:$0xff]   ;;  %v1830_v44 = vld [vmem:[%s1917_s28 + $0x88] sm:$0xff]   ;;  %v1831_v45 = vld [vmem:[%s1917_s28 + $0x150] sm:$0xff]  }
  0x1c   : > { %v1832_v46 = vld [vmem:[%s1917_s28 + $0x90] sm:$0xff]   ;;  %v1833_v47 = vld [vmem:[%s1917_s28 + $0x158] sm:$0xff]   ;;  %v1835_v49 = vld [vmem:[%s1917_s28 + $0x160] sm:$0xff]  }
  0x1d   : > { %v1834_v48 = vld [vmem:[%s1917_s28 + $0x98] sm:$0xff]   ;;  %v1836_v50 = vld [vmem:[%s1917_s28 + $0xa0] sm:$0xff]   ;;  %v1837_v51 = vld [vmem:[%s1917_s28 + $0x168] sm:$0xff]  }
  0x1e   : > { %v1838_v52 = vld [vmem:[%s1917_s28 + $0xa8] sm:$0xff]   ;;  %v1839_v53 = vld [vmem:[%s1917_s28 + $0x170] sm:$0xff]   ;;  %v1841_v55 = vld [vmem:[%s1917_s28 + $0x178] sm:$0xff]  }
  0x1f   : > { %v1840_v54 = vld [vmem:[%s1917_s28 + $0xb0] sm:$0xff]   ;;  %v1842_v56 = vld [vmem:[%s1917_s28 + $0xb8] sm:$0xff]   ;;  %v1843_v57 = vld [vmem:[%s1917_s28 + $0x180] sm:$0xff]  }
  0x20   : > { %v1844_v58 = vld [vmem:[%s1917_s28 + $0xc0] sm:$0xff]  }
  0x22   : > { %1579 = vmatmul.mubr.msk.bf16.gmra.mrb[4].mxu0 %vm564_vm3, %v1798_v12  ;;  %1679 = vmatmul.mubr.msk.bf16.gmra.mrb[4].mxu1 %vm564_vm3, %v1799_v13 }
  0x23   : > { %1582 = vmatprep.mubr.msk.bf16.mxu0 %vm1855_vm2, %v1853_v1  ;;  %1682 = vmatprep.mubr.msk.bf16.mxu1 %vm1855_vm2, %v1853_v1 }
  0x2a   : > { %1583 = vmatmul.mubr.msk.bf16.gmra.mrb[8].mxu0 %vm564_vm3, %v1800_v14  ;;  %1683 = vmatmul.mubr.msk.bf16.gmra.mrb[8].mxu1 %vm564_vm3, %v1801_v15 }
  0x2b   : > { %1586 = vmatprep.mubr.msk.bf16.mxu0 %vm1855_vm2, %v1853_v1  ;;  %1686 = vmatprep.mubr.msk.bf16.mxu1 %vm1855_vm2, %v1853_v1 }
  0x32   : > { %1587 = vmatmul.mubr.msk.bf16.gmra.mrb[12].mxu0 %vm564_vm3, %v1802_v16  ;;  %1687 = vmatmul.mubr.msk.bf16.gmra.mrb[12].mxu1 %vm564_vm3, %v1803_v17 }
  0x33   : > { %1590 = vmatprep.mubr.msk.bf16.mxu0 %vm1855_vm2, %v1853_v1  ;;  %1690 = vmatprep.mubr.msk.bf16.mxu1 %vm1855_vm2, %v1853_v1 }
  0x3a   : > { %1591 = vmatmul.mubr.msk.bf16.gmra.mrb[16].mxu0 %vm564_vm3, %v1804_v18  ;;  %1691 = vmatmul.mubr.msk.bf16.gmra.mrb[16].mxu1 %vm564_vm3, %v1805_v19 }
  0x3b   : > { %1594 = vmatprep.mubr.msk.bf16.mxu0 %vm1855_vm2, %v1853_v1  ;;  %1694 = vmatprep.mubr.msk.bf16.mxu1 %vm1855_vm2, %v1853_v1 }
  0x42   : > { %1595 = vmatmul.mubr.msk.bf16.gmra.mrb[20].mxu0 %vm564_vm3, %v1806_v20  ;;  %1695 = vmatmul.mubr.msk.bf16.gmra.mrb[20].mxu1 %vm564_vm3, %v1807_v21 }
  0x43   : > { %1598 = vmatprep.mubr.msk.bf16.mxu0 %vm1855_vm2, %v1853_v1  ;;  %1698 = vmatprep.mubr.msk.bf16.mxu1 %vm1855_vm2, %v1853_v1 }
  0x4a   : > { %1599 = vmatmul.mubr.msk.bf16.gmra.mrb[24].mxu0 %vm564_vm3, %v1808_v22  ;;  %1699 = vmatmul.mubr.msk.bf16.gmra.mrb[24].mxu1 %vm564_vm3, %v1809_v23 }
  0x4b   : > { %1602 = vmatprep.mubr.msk.bf16.mxu0 %vm1855_vm2, %v1853_v1  ;;  %1702 = vmatprep.mubr.msk.bf16.mxu1 %vm1855_vm2, %v1853_v1 }
  0x52   : > { %1603 = vmatmul.mubr.msk.bf16.gmra.mrb[28].mxu0 %vm564_vm3, %v1810_v24  ;;  %1703 = vmatmul.mubr.msk.bf16.gmra.mrb[28].mxu1 %vm564_vm3, %v1811_v25 }
  0x53   : > { %1606 = vmatprep.mubr.msk.bf16.mxu0 %vm1855_vm2, %v1853_v1  ;;  %1706 = vmatprep.mubr.msk.bf16.mxu1 %vm1855_vm2, %v1853_v1 }
  0x5a   : > { %1607 = vmatmul.mubr.msk.bf16.gmra.mrb[32].mxu0 %vm564_vm3, %v1812_v26  ;;  %1707 = vmatmul.mubr.msk.bf16.gmra.mrb[32].mxu1 %vm564_vm3, %v1813_v27 }
  0x5b   : > { %1610 = vmatprep.mubr.msk.bf16.mxu0 %vm1855_vm2, %v1853_v1  ;;  %1710 = vmatprep.mubr.msk.bf16.mxu1 %vm1855_vm2, %v1853_v1 }
  0x62   : > { %1611 = vmatmul.mubr.msk.bf16.gmra.mrb[36].mxu0 %vm564_vm3, %v1814_v28  ;;  %1711 = vmatmul.mubr.msk.bf16.gmra.mrb[36].mxu1 %vm564_vm3, %v1815_v29 }
  0x63   : > { %1614 = vmatprep.mubr.msk.bf16.mxu0 %vm1855_vm2, %v1853_v1  ;;  %1714 = vmatprep.mubr.msk.bf16.mxu1 %vm1855_vm2, %v1853_v1 }
  0x6a   : > { %1615 = vmatmul.mubr.msk.bf16.gmra.mrb[40].mxu0 %vm564_vm3, %v1816_v30  ;;  %1715 = vmatmul.mubr.msk.bf16.gmra.mrb[40].mxu1 %vm564_vm3, %v1817_v31 }
  0x6b   : > { %1618 = vmatprep.mubr.msk.bf16.mxu0 %vm1855_vm2, %v1853_v1  ;;  %1718 = vmatprep.mubr.msk.bf16.mxu1 %vm1855_vm2, %v1853_v1 }
  0x72   : > { %1619 = vmatmul.mubr.msk.bf16.gmra.mrb[44].mxu0 %vm564_vm3, %v1818_v32  ;;  %1719 = vmatmul.mubr.msk.bf16.gmra.mrb[44].mxu1 %vm564_vm3, %v1819_v33 }
  0x73   : > { %1622 = vmatprep.mubr.msk.bf16.mxu0 %vm1855_vm2, %v1853_v1  ;;  %1722 = vmatprep.mubr.msk.bf16.mxu1 %vm1855_vm2, %v1853_v1 }
  0x7a   : > { %1623 = vmatmul.mubr.msk.bf16.gmra.mrb[48].mxu0 %vm564_vm3, %v1820_v34  ;;  %1723 = vmatmul.mubr.msk.bf16.gmra.mrb[48].mxu1 %vm564_vm3, %v1821_v35 }
  0x7b   : > { %1626 = vmatprep.mubr.msk.bf16.mxu0 %vm1855_vm2, %v1853_v1  ;;  %1726 = vmatprep.mubr.msk.bf16.mxu1 %vm1855_vm2, %v1853_v1 }
  0x82   : > { %1627 = vmatmul.mubr.msk.bf16.gmra.mrb[52].mxu0 %vm564_vm3, %v1822_v36  ;;  %1727 = vmatmul.mubr.msk.bf16.gmra.mrb[52].mxu1 %vm564_vm3, %v1823_v37 }
  0x83   : > { %1630 = vmatprep.mubr.msk.bf16.mxu0 %vm1855_vm2, %v1853_v1  ;;  %1730 = vmatprep.mubr.msk.bf16.mxu1 %vm1855_vm2, %v1853_v1 }
  0x8a   : > { %1631 = vmatmul.mubr.msk.bf16.gmra.mrb[56].mxu0 %vm564_vm3, %v1824_v38  ;;  %1731 = vmatmul.mubr.msk.bf16.gmra.mrb[56].mxu1 %vm564_vm3, %v1825_v39 }
  0x8b   : > { %1634 = vmatprep.mubr.msk.bf16.mxu0 %vm1855_vm2, %v1853_v1  ;;  %1734 = vmatprep.mubr.msk.bf16.mxu1 %vm1855_vm2, %v1853_v1 }
  0x92   : > { %1635 = vmatmul.mubr.msk.bf16.gmra.mrb[60].mxu0 %vm564_vm3, %v1826_v40  ;;  %1735 = vmatmul.mubr.msk.bf16.gmra.mrb[60].mxu1 %vm564_vm3, %v1827_v41 }
  0x93   : > { %1638 = vmatprep.mubr.msk.bf16.mxu0 %vm1855_vm2, %v1853_v1  ;;  %1738 = vmatprep.mubr.msk.bf16.mxu1 %vm1855_vm2, %v1853_v1 }
  0x9a   : > { %1639 = vmatmul.mubr.msk.bf16.gmra.mrb[64].mxu0 %vm564_vm3, %v1828_v42  ;;  %1739 = vmatmul.mubr.msk.bf16.gmra.mrb[64].mxu1 %vm564_vm3, %v1829_v43 }
  0x9b   : > { %1642 = vmatprep.mubr.msk.bf16.mxu0 %vm1855_vm2, %v1853_v1  ;;  %1742 = vmatprep.mubr.msk.bf16.mxu1 %vm1855_vm2, %v1853_v1 }
  0xa2   : > { %1643 = vmatmul.mubr.msk.bf16.gmra.mrb[68].mxu0 %vm564_vm3, %v1830_v44  ;;  %1743 = vmatmul.mubr.msk.bf16.gmra.mrb[68].mxu1 %vm564_vm3, %v1831_v45 }
  0xa3   : > { %1646 = vmatprep.mubr.msk.bf16.mxu0 %vm1855_vm2, %v1853_v1  ;;  %1746 = vmatprep.mubr.msk.bf16.mxu1 %vm1855_vm2, %v1853_v1 }
  0xaa   : > { %1647 = vmatmul.mubr.msk.bf16.gmra.mrb[72].mxu0 %vm564_vm3, %v1832_v46  ;;  %1747 = vmatmul.mubr.msk.bf16.gmra.mrb[72].mxu1 %vm564_vm3, %v1833_v47 }
  0xab   : > { %1650 = vmatprep.mubr.msk.bf16.mxu0 %vm1855_vm2, %v1853_v1  ;;  %1750 = vmatprep.mubr.msk.bf16.mxu1 %vm1855_vm2, %v1853_v1 }
  0xb2   : > { %1651 = vmatmul.mubr.msk.bf16.gmra.mrb[76].mxu0 %vm564_vm3, %v1834_v48  ;;  %1751 = vmatmul.mubr.msk.bf16.gmra.mrb[76].mxu1 %vm564_vm3, %v1835_v49 }
  0xb3   : > { %1654 = vmatprep.mubr.msk.bf16.mxu0 %vm1855_vm2, %v1853_v1  ;;  %1754 = vmatprep.mubr.msk.bf16.mxu1 %vm1855_vm2, %v1853_v1 }
  0xba   : > { %1655 = vmatmul.mubr.msk.bf16.gmra.mrb[80].mxu0 %vm564_vm3, %v1836_v50  ;;  %1755 = vmatmul.mubr.msk.bf16.gmra.mrb[80].mxu1 %vm564_vm3, %v1837_v51 }
  0xbb   : > { %1658 = vmatprep.mubr.msk.bf16.mxu0 %vm1855_vm2, %v1853_v1  ;;  %1758 = vmatprep.mubr.msk.bf16.mxu1 %vm1855_vm2, %v1853_v1 }
  0xc2   : > { %1659 = vmatmul.mubr.msk.bf16.gmra.mrb[84].mxu0 %vm564_vm3, %v1838_v52  ;;  %1759 = vmatmul.mubr.msk.bf16.gmra.mrb[84].mxu1 %vm564_vm3, %v1839_v53 }
  0xc3   : > { %1662 = vmatprep.mubr.msk.bf16.mxu0 %vm1855_vm2, %v1853_v1  ;;  %1762 = vmatprep.mubr.msk.bf16.mxu1 %vm1855_vm2, %v1853_v1 }
  0xca   : > { %1663 = vmatmul.mubr.msk.bf16.gmra.mrb[88].mxu0 %vm564_vm3, %v1840_v54  ;;  %1763 = vmatmul.mubr.msk.bf16.gmra.mrb[88].mxu1 %vm564_vm3, %v1841_v55 }
  0xcb   : > { %1666 = vmatprep.mubr.msk.bf16.mxu0 %vm1855_vm2, %v1853_v1  ;;  %1766 = vmatprep.mubr.msk.bf16.mxu1 %vm1855_vm2, %v1853_v1 }
  0xd2   : > { %1667 = vmatmul.mubr.msk.bf16.gmra.mrb[92].mxu0 %vm564_vm3, %v1842_v56  ;;  %1767 = vmatmul.mubr.msk.bf16.gmra.mrb[92].mxu1 %vm564_vm3, %v1843_v57 }
  0xd3   : > { %1670 = vmatprep.mubr.msk.bf16.mxu0 %vm1855_vm2, %v1853_v1 }
  0xda   : > { %1671 = vmatmul.mubr.msk.bf16.gmra.mrb[96].mxu0 %vm564_vm3, %v1844_v58 }
  0xed   : > { %v753_v60 = vpop.f32.mrb[0].mxu0  ;;  %v953_v61 = vpop.f32.mrb[0].mxu1 }
  0xee   : > { %v754_v62 = vadd.f32 %v2116_v59, %v753_v60  ;;  %v1576_v63 = vpop.f32.mrb[1].mxu0  ;;  %v954_v0 = vadd.f32 %v2116_v59, %v953_v61  ;;  %v1676_v2 = vpop.f32.mrb[1].mxu1 }
  0xef   : > { %v756_v1 = vpop.f32.mrb[2].mxu0  ;;  %v956_v3 = vpop.f32.mrb[2].mxu1 }
  0xf0   : > { %v1144_v4 = vmax.f32 %v754_v62, 0.0  ;;  %v757_v5 = vadd.f32 %v2116_v59, %v756_v1  ;;  %v1577_v6 = vpop.f32.mrb[3].mxu0  ;;  %v1194_v7 = vmax.f32 %v954_v0, 0.0  ;;  %v957_v8 = vadd.f32 %v2116_v59, %v956_v3  ;;  %v1677_v9 = vpop.f32.mrb[3].mxu1 }
  0xf2   : > { %1243 = vst.msk [vmem:[%s2124_s7] sm:$0xff] %vm1242_vm4, %v1144_v4  ;;  %v1145_v10 = vmax.f32 %v757_v5, 0.0  ;;  %1293 = vst.msk [vmem:[%s2124_s7 + $0x190] sm:$0xff] %vm1242_vm4, %v1194_v7  ;;  %v1195_v11 = vmax.f32 %v957_v8, 0.0 }
  0xf4   : > { %1244 = vst.msk [vmem:[%s2124_s7 + $0x8] sm:$0xff] %vm1242_vm4, %v1145_v10  ;;  %1294 = vst.msk [vmem:[%s2124_s7 + $0x198] sm:$0xff] %vm1242_vm4, %v1195_v11 }
  0xf5   : > { %v761_v12 = vpop.f32.mrb[4].mxu0  ;;  %v961_v13 = vpop.f32.mrb[4].mxu1 }
  0xf6   : > { %v762_v14 = vadd.f32 %v2116_v59, %v761_v12  ;;  %v1580_v15 = vpop.f32.mrb[5].mxu0  ;;  %v962_v16 = vadd.f32 %v2116_v59, %v961_v13  ;;  %v1680_v17 = vpop.f32.mrb[5].mxu1 }
  0xf7   : > { %v764_v18 = vpop.f32.mrb[6].mxu0  ;;  %v964_v19 = vpop.f32.mrb[6].mxu1 }
  0xf8   : > { %v1146_v20 = vmax.f32 %v762_v14, 0.0  ;;  %v765_v21 = vadd.f32 %v2116_v59, %v764_v18  ;;  %v1581_v22 = vpop.f32.mrb[7].mxu0  ;;  %v1196_v23 = vmax.f32 %v962_v16, 0.0  ;;  %v965_v24 = vadd.f32 %v2116_v59, %v964_v19  ;;  %v1681_v25 = vpop.f32.mrb[7].mxu1 }
  0xfa   : > { %1245 = vst.msk [vmem:[%s2124_s7 + $0x10] sm:$0xff] %vm1242_vm4, %v1146_v20  ;;  %v1147_v26 = vmax.f32 %v765_v21, 0.0  ;;  %1295 = vst.msk [vmem:[%s2124_s7 + $0x1a0] sm:$0xff] %vm1242_vm4, %v1196_v23  ;;  %v1197_v27 = vmax.f32 %v965_v24, 0.0 }
  0xfc   : > { %1246 = vst.msk [vmem:[%s2124_s7 + $0x18] sm:$0xff] %vm1242_vm4, %v1147_v26  ;;  %1296 = vst.msk [vmem:[%s2124_s7 + $0x1a8] sm:$0xff] %vm1242_vm4, %v1197_v27 }
  0xfd   : > { %v769_v28 = vpop.f32.mrb[8].mxu0  ;;  %v969_v29 = vpop.f32.mrb[8].mxu1 }
  0xfe   : > { %v770_v30 = vadd.f32 %v2116_v59, %v769_v28  ;;  %v1584_v31 = vpop.f32.mrb[9].mxu0  ;;  %v970_v32 = vadd.f32 %v2116_v59, %v969_v29  ;;  %v1684_v33 = vpop.f32.mrb[9].mxu1 }
  0xff   : > { %v772_v34 = vpop.f32.mrb[10].mxu0  ;;  %v972_v35 = vpop.f32.mrb[10].mxu1 }
 0x100   : > { %v1148_v36 = vmax.f32 %v770_v30, 0.0  ;;  %v773_v37 = vadd.f32 %v2116_v59, %v772_v34  ;;  %v1585_v38 = vpop.f32.mrb[11].mxu0  ;;  %v1198_v39 = vmax.f32 %v970_v32, 0.0  ;;  %v973_v40 = vadd.f32 %v2116_v59, %v972_v35  ;;  %v1685_v41 = vpop.f32.mrb[11].mxu1 }
 0x102   : > { %1247 = vst.msk [vmem:[%s2124_s7 + $0x20] sm:$0xff] %vm1242_vm4, %v1148_v36  ;;  %v1149_v42 = vmax.f32 %v773_v37, 0.0  ;;  %1297 = vst.msk [vmem:[%s2124_s7 + $0x1b0] sm:$0xff] %vm1242_vm4, %v1198_v39  ;;  %v1199_v43 = vmax.f32 %v973_v40, 0.0 }
 0x104   : > { %1248 = vst.msk [vmem:[%s2124_s7 + $0x28] sm:$0xff] %vm1242_vm4, %v1149_v42  ;;  %1298 = vst.msk [vmem:[%s2124_s7 + $0x1b8] sm:$0xff] %vm1242_vm4, %v1199_v43 }
 0x105   : > { %v777_v44 = vpop.f32.mrb[12].mxu0  ;;  %v977_v45 = vpop.f32.mrb[12].mxu1 }
 0x106   : > { %v778_v46 = vadd.f32 %v2116_v59, %v777_v44  ;;  %v1588_v47 = vpop.f32.mrb[13].mxu0  ;;  %v978_v48 = vadd.f32 %v2116_v59, %v977_v45  ;;  %v1688_v49 = vpop.f32.mrb[13].mxu1 }
 0x107   : > { %v780_v50 = vpop.f32.mrb[14].mxu0  ;;  %v980_v51 = vpop.f32.mrb[14].mxu1 }
 0x108   : > { %v1150_v52 = vmax.f32 %v778_v46, 0.0  ;;  %v781_v53 = vadd.f32 %v2116_v59, %v780_v50  ;;  %v1589_v54 = vpop.f32.mrb[15].mxu0  ;;  %v1200_v55 = vmax.f32 %v978_v48, 0.0  ;;  %v981_v56 = vadd.f32 %v2116_v59, %v980_v51  ;;  %v1689_v57 = vpop.f32.mrb[15].mxu1 }
 0x10a   : > { %1249 = vst.msk [vmem:[%s2124_s7 + $0x30] sm:$0xff] %vm1242_vm4, %v1150_v52  ;;  %v1151_v58 = vmax.f32 %v781_v53, 0.0  ;;  %1299 = vst.msk [vmem:[%s2124_s7 + $0x1c0] sm:$0xff] %vm1242_vm4, %v1200_v55  ;;  %v1201_v60 = vmax.f32 %v981_v56, 0.0 }
 0x10c   : > { %1250 = vst.msk [vmem:[%s2124_s7 + $0x38] sm:$0xff] %vm1242_vm4, %v1151_v58  ;;  %1300 = vst.msk [vmem:[%s2124_s7 + $0x1c8] sm:$0xff] %vm1242_vm4, %v1201_v60 }
 0x10d   : > { %v785_v61 = vpop.f32.mrb[16].mxu0  ;;  %v985_v62 = vpop.f32.mrb[16].mxu1 }
 0x10e   : > { %v786_v63 = vadd.f32 %v2116_v59, %v785_v61  ;;  %v1592_v0 = vpop.f32.mrb[17].mxu0  ;;  %v986_v2 = vadd.f32 %v2116_v59, %v985_v62  ;;  %v1692_v1 = vpop.f32.mrb[17].mxu1 }
 0x10f   : > { %v788_v3 = vpop.f32.mrb[18].mxu0  ;;  %v988_v4 = vpop.f32.mrb[18].mxu1 }
 0x110   : > { %v1152_v5 = vmax.f32 %v786_v63, 0.0  ;;  %v789_v6 = vadd.f32 %v2116_v59, %v788_v3  ;;  %v1593_v7 = vpop.f32.mrb[19].mxu0  ;;  %v1202_v8 = vmax.f32 %v986_v2, 0.0  ;;  %v989_v9 = vadd.f32 %v2116_v59, %v988_v4  ;;  %v1693_v10 = vpop.f32.mrb[19].mxu1 }
 0x112   : > { %1251 = vst.msk [vmem:[%s2124_s7 + $0x40] sm:$0xff] %vm1242_vm4, %v1152_v5  ;;  %v1153_v11 = vmax.f32 %v789_v6, 0.0  ;;  %1301 = vst.msk [vmem:[%s2124_s7 + $0x1d0] sm:$0xff] %vm1242_vm4, %v1202_v8  ;;  %v1203_v12 = vmax.f32 %v989_v9, 0.0 }
 0x114   : > { %1252 = vst.msk [vmem:[%s2124_s7 + $0x48] sm:$0xff] %vm1242_vm4, %v1153_v11  ;;  %1302 = vst.msk [vmem:[%s2124_s7 + $0x1d8] sm:$0xff] %vm1242_vm4, %v1203_v12 }
 0x115   : > { %v793_v13 = vpop.f32.mrb[20].mxu0  ;;  %v993_v14 = vpop.f32.mrb[20].mxu1 }
 0x116   : > { %v794_v15 = vadd.f32 %v2116_v59, %v793_v13  ;;  %v1596_v16 = vpop.f32.mrb[21].mxu0  ;;  %v994_v17 = vadd.f32 %v2116_v59, %v993_v14  ;;  %v1696_v18 = vpop.f32.mrb[21].mxu1 }
 0x117   : > { %v796_v19 = vpop.f32.mrb[22].mxu0  ;;  %v996_v20 = vpop.f32.mrb[22].mxu1 }
 0x118   : > { %v1154_v21 = vmax.f32 %v794_v15, 0.0  ;;  %v797_v22 = vadd.f32 %v2116_v59, %v796_v19  ;;  %v1597_v23 = vpop.f32.mrb[23].mxu0  ;;  %v1204_v24 = vmax.f32 %v994_v17, 0.0  ;;  %v997_v25 = vadd.f32 %v2116_v59, %v996_v20  ;;  %v1697_v26 = vpop.f32.mrb[23].mxu1 }
 0x11a   : > { %1253 = vst.msk [vmem:[%s2124_s7 + $0x50] sm:$0xff] %vm1242_vm4, %v1154_v21  ;;  %v1155_v27 = vmax.f32 %v797_v22, 0.0  ;;  %1303 = vst.msk [vmem:[%s2124_s7 + $0x1e0] sm:$0xff] %vm1242_vm4, %v1204_v24  ;;  %v1205_v28 = vmax.f32 %v997_v25, 0.0 }
 0x11c   : > { %1254 = vst.msk [vmem:[%s2124_s7 + $0x58] sm:$0xff] %vm1242_vm4, %v1155_v27  ;;  %1304 = vst.msk [vmem:[%s2124_s7 + $0x1e8] sm:$0xff] %vm1242_vm4, %v1205_v28 }
 0x11d   : > { %v801_v29 = vpop.f32.mrb[24].mxu0  ;;  %v1001_v30 = vpop.f32.mrb[24].mxu1 }
 0x11e   : > { %v802_v31 = vadd.f32 %v2116_v59, %v801_v29  ;;  %v1600_v32 = vpop.f32.mrb[25].mxu0  ;;  %v1002_v33 = vadd.f32 %v2116_v59, %v1001_v30  ;;  %v1700_v34 = vpop.f32.mrb[25].mxu1 }
 0x11f   : > { %v804_v35 = vpop.f32.mrb[26].mxu0  ;;  %v1004_v36 = vpop.f32.mrb[26].mxu1 }
 0x120   : > { %v1156_v37 = vmax.f32 %v802_v31, 0.0  ;;  %v805_v38 = vadd.f32 %v2116_v59, %v804_v35  ;;  %v1601_v39 = vpop.f32.mrb[27].mxu0  ;;  %v1206_v40 = vmax.f32 %v1002_v33, 0.0  ;;  %v1005_v41 = vadd.f32 %v2116_v59, %v1004_v36  ;;  %v1701_v42 = vpop.f32.mrb[27].mxu1 }
 0x122   : > { %1255 = vst.msk [vmem:[%s2124_s7 + $0x60] sm:$0xff] %vm1242_vm4, %v1156_v37  ;;  %v1157_v43 = vmax.f32 %v805_v38, 0.0  ;;  %1305 = vst.msk [vmem:[%s2124_s7 + $0x1f0] sm:$0xff] %vm1242_vm4, %v1206_v40  ;;  %v1207_v44 = vmax.f32 %v1005_v41, 0.0 }
 0x124   : > { %1256 = vst.msk [vmem:[%s2124_s7 + $0x68] sm:$0xff] %vm1242_vm4, %v1157_v43  ;;  %1306 = vst.msk [vmem:[%s2124_s7 + $0x1f8] sm:$0xff] %vm1242_vm4, %v1207_v44 }
 0x125   : > { %v809_v45 = vpop.f32.mrb[28].mxu0  ;;  %v1009_v46 = vpop.f32.mrb[28].mxu1 }
 0x126   : > { %v810_v47 = vadd.f32 %v2116_v59, %v809_v45  ;;  %v1604_v48 = vpop.f32.mrb[29].mxu0  ;;  %v1010_v49 = vadd.f32 %v2116_v59, %v1009_v46  ;;  %v1704_v50 = vpop.f32.mrb[29].mxu1 }
 0x127   : > { %v812_v51 = vpop.f32.mrb[30].mxu0  ;;  %v1012_v52 = vpop.f32.mrb[30].mxu1 }
 0x128   : > { %v1158_v53 = vmax.f32 %v810_v47, 0.0  ;;  %v813_v54 = vadd.f32 %v2116_v59, %v812_v51  ;;  %v1605_v55 = vpop.f32.mrb[31].mxu0  ;;  %v1208_v56 = vmax.f32 %v1010_v49, 0.0  ;;  %v1013_v57 = vadd.f32 %v2116_v59, %v1012_v52  ;;  %v1705_v58 = vpop.f32.mrb[31].mxu1 }
 0x12a   : > { %1257 = vst.msk [vmem:[%s2124_s7 + $0x70] sm:$0xff] %vm1242_vm4, %v1158_v53  ;;  %v1159_v60 = vmax.f32 %v813_v54, 0.0  ;;  %1307 = vst.msk [vmem:[%s2124_s7 + $0x200] sm:$0xff] %vm1242_vm4, %v1208_v56  ;;  %v1209_v61 = vmax.f32 %v1013_v57, 0.0 }
 0x12c   : > { %1258 = vst.msk [vmem:[%s2124_s7 + $0x78] sm:$0xff] %vm1242_vm4, %v1159_v60  ;;  %1308 = vst.msk [vmem:[%s2124_s7 + $0x208] sm:$0xff] %vm1242_vm4, %v1209_v61 }
 0x12d   : > { %v817_v62 = vpop.f32.mrb[32].mxu0  ;;  %v1017_v63 = vpop.f32.mrb[32].mxu1 }
 0x12e   : > { %v818_v0 = vadd.f32 %v2116_v59, %v817_v62  ;;  %v1608_v2 = vpop.f32.mrb[33].mxu0  ;;  %v1018_v1 = vadd.f32 %v2116_v59, %v1017_v63  ;;  %v1708_v3 = vpop.f32.mrb[33].mxu1 }
 0x12f   : > { %v820_v4 = vpop.f32.mrb[34].mxu0  ;;  %v1020_v5 = vpop.f32.mrb[34].mxu1 }
 0x130   : > { %v1160_v6 = vmax.f32 %v818_v0, 0.0  ;;  %v821_v7 = vadd.f32 %v2116_v59, %v820_v4  ;;  %v1609_v8 = vpop.f32.mrb[35].mxu0  ;;  %v1210_v9 = vmax.f32 %v1018_v1, 0.0  ;;  %v1021_v10 = vadd.f32 %v2116_v59, %v1020_v5  ;;  %v1709_v11 = vpop.f32.mrb[35].mxu1 }
 0x132   : > { %1259 = vst.msk [vmem:[%s2124_s7 + $0x80] sm:$0xff] %vm1242_vm4, %v1160_v6  ;;  %v1161_v12 = vmax.f32 %v821_v7, 0.0  ;;  %1309 = vst.msk [vmem:[%s2124_s7 + $0x210] sm:$0xff] %vm1242_vm4, %v1210_v9  ;;  %v1211_v13 = vmax.f32 %v1021_v10, 0.0 }
 0x134   : > { %1260 = vst.msk [vmem:[%s2124_s7 + $0x88] sm:$0xff] %vm1242_vm4, %v1161_v12  ;;  %1310 = vst.msk [vmem:[%s2124_s7 + $0x218] sm:$0xff] %vm1242_vm4, %v1211_v13 }
 0x135   : > { %v825_v14 = vpop.f32.mrb[36].mxu0  ;;  %v1025_v15 = vpop.f32.mrb[36].mxu1 }
 0x136   : > { %v826_v16 = vadd.f32 %v2116_v59, %v825_v14  ;;  %v1612_v17 = vpop.f32.mrb[37].mxu0  ;;  %v1026_v18 = vadd.f32 %v2116_v59, %v1025_v15  ;;  %v1712_v19 = vpop.f32.mrb[37].mxu1 }
 0x137   : > { %v828_v20 = vpop.f32.mrb[38].mxu0  ;;  %v1028_v21 = vpop.f32.mrb[38].mxu1 }
 0x138   : > { %v1162_v22 = vmax.f32 %v826_v16, 0.0  ;;  %v829_v23 = vadd.f32 %v2116_v59, %v828_v20  ;;  %v1613_v24 = vpop.f32.mrb[39].mxu0  ;;  %v1212_v25 = vmax.f32 %v1026_v18, 0.0  ;;  %v1029_v26 = vadd.f32 %v2116_v59, %v1028_v21  ;;  %v1713_v27 = vpop.f32.mrb[39].mxu1 }
 0x13a   : > { %1261 = vst.msk [vmem:[%s2124_s7 + $0x90] sm:$0xff] %vm1242_vm4, %v1162_v22  ;;  %v1163_v28 = vmax.f32 %v829_v23, 0.0  ;;  %1311 = vst.msk [vmem:[%s2124_s7 + $0x220] sm:$0xff] %vm1242_vm4, %v1212_v25  ;;  %v1213_v29 = vmax.f32 %v1029_v26, 0.0 }
 0x13c   : > { %1262 = vst.msk [vmem:[%s2124_s7 + $0x98] sm:$0xff] %vm1242_vm4, %v1163_v28  ;;  %1312 = vst.msk [vmem:[%s2124_s7 + $0x228] sm:$0xff] %vm1242_vm4, %v1213_v29 }
 0x13d   : > { %v833_v30 = vpop.f32.mrb[40].mxu0  ;;  %v1033_v31 = vpop.f32.mrb[40].mxu1 }
 0x13e   : > { %v834_v32 = vadd.f32 %v2116_v59, %v833_v30  ;;  %v1616_v33 = vpop.f32.mrb[41].mxu0  ;;  %v1034_v34 = vadd.f32 %v2116_v59, %v1033_v31  ;;  %v1716_v35 = vpop.f32.mrb[41].mxu1 }
 0x13f   : > { %v836_v36 = vpop.f32.mrb[42].mxu0  ;;  %v1036_v37 = vpop.f32.mrb[42].mxu1 }
 0x140   : > { %v1164_v38 = vmax.f32 %v834_v32, 0.0  ;;  %v837_v39 = vadd.f32 %v2116_v59, %v836_v36  ;;  %v1617_v40 = vpop.f32.mrb[43].mxu0  ;;  %v1214_v41 = vmax.f32 %v1034_v34, 0.0  ;;  %v1037_v42 = vadd.f32 %v2116_v59, %v1036_v37  ;;  %v1717_v43 = vpop.f32.mrb[43].mxu1 }
 0x142   : > { %1263 = vst.msk [vmem:[%s2124_s7 + $0xa0] sm:$0xff] %vm1242_vm4, %v1164_v38  ;;  %v1165_v44 = vmax.f32 %v837_v39, 0.0  ;;  %1313 = vst.msk [vmem:[%s2124_s7 + $0x230] sm:$0xff] %vm1242_vm4, %v1214_v41  ;;  %v1215_v45 = vmax.f32 %v1037_v42, 0.0 }
 0x144   : > { %1264 = vst.msk [vmem:[%s2124_s7 + $0xa8] sm:$0xff] %vm1242_vm4, %v1165_v44  ;;  %1314 = vst.msk [vmem:[%s2124_s7 + $0x238] sm:$0xff] %vm1242_vm4, %v1215_v45 }
 0x145   : > { %v841_v46 = vpop.f32.mrb[44].mxu0  ;;  %v1041_v47 = vpop.f32.mrb[44].mxu1 }
 0x146   : > { %v842_v48 = vadd.f32 %v2116_v59, %v841_v46  ;;  %v1620_v49 = vpop.f32.mrb[45].mxu0  ;;  %v1042_v50 = vadd.f32 %v2116_v59, %v1041_v47  ;;  %v1720_v51 = vpop.f32.mrb[45].mxu1 }
 0x147   : > { %v844_v52 = vpop.f32.mrb[46].mxu0  ;;  %v1044_v53 = vpop.f32.mrb[46].mxu1 }
 0x148   : > { %v1166_v54 = vmax.f32 %v842_v48, 0.0  ;;  %v845_v55 = vadd.f32 %v2116_v59, %v844_v52  ;;  %v1621_v56 = vpop.f32.mrb[47].mxu0  ;;  %v1216_v57 = vmax.f32 %v1042_v50, 0.0  ;;  %v1045_v58 = vadd.f32 %v2116_v59, %v1044_v53  ;;  %v1721_v60 = vpop.f32.mrb[47].mxu1 }
 0x14a   : > { %1265 = vst.msk [vmem:[%s2124_s7 + $0xb0] sm:$0xff] %vm1242_vm4, %v1166_v54  ;;  %v1167_v61 = vmax.f32 %v845_v55, 0.0  ;;  %1315 = vst.msk [vmem:[%s2124_s7 + $0x240] sm:$0xff] %vm1242_vm4, %v1216_v57  ;;  %v1217_v62 = vmax.f32 %v1045_v58, 0.0 }
 0x14c   : > { %1266 = vst.msk [vmem:[%s2124_s7 + $0xb8] sm:$0xff] %vm1242_vm4, %v1167_v61  ;;  %1316 = vst.msk [vmem:[%s2124_s7 + $0x248] sm:$0xff] %vm1242_vm4, %v1217_v62 }
 0x14d   : > { %v849_v63 = vpop.f32.mrb[48].mxu0  ;;  %v1049_v0 = vpop.f32.mrb[48].mxu1 }
 0x14e   : > { %v850_v2 = vadd.f32 %v2116_v59, %v849_v63  ;;  %v1624_v1 = vpop.f32.mrb[49].mxu0  ;;  %v1050_v3 = vadd.f32 %v2116_v59, %v1049_v0  ;;  %v1724_v4 = vpop.f32.mrb[49].mxu1 }
 0x14f   : > { %v852_v5 = vpop.f32.mrb[50].mxu0  ;;  %v1052_v6 = vpop.f32.mrb[50].mxu1 }
 0x150   : > { %v1168_v7 = vmax.f32 %v850_v2, 0.0  ;;  %v853_v8 = vadd.f32 %v2116_v59, %v852_v5  ;;  %v1625_v9 = vpop.f32.mrb[51].mxu0  ;;  %v1218_v10 = vmax.f32 %v1050_v3, 0.0  ;;  %v1053_v11 = vadd.f32 %v2116_v59, %v1052_v6  ;;  %v1725_v12 = vpop.f32.mrb[51].mxu1 }
 0x152   : > { %1267 = vst.msk [vmem:[%s2124_s7 + $0xc0] sm:$0xff] %vm1242_vm4, %v1168_v7  ;;  %v1169_v13 = vmax.f32 %v853_v8, 0.0  ;;  %1317 = vst.msk [vmem:[%s2124_s7 + $0x250] sm:$0xff] %vm1242_vm4, %v1218_v10  ;;  %v1219_v14 = vmax.f32 %v1053_v11, 0.0 }
 0x154   : > { %1268 = vst.msk [vmem:[%s2124_s7 + $0xc8] sm:$0xff] %vm1242_vm4, %v1169_v13  ;;  %1318 = vst.msk [vmem:[%s2124_s7 + $0x258] sm:$0xff] %vm1242_vm4, %v1219_v14 }
 0x155   : > { %v857_v15 = vpop.f32.mrb[52].mxu0  ;;  %v1057_v16 = vpop.f32.mrb[52].mxu1 }
 0x156   : > { %v858_v17 = vadd.f32 %v2116_v59, %v857_v15  ;;  %v1628_v18 = vpop.f32.mrb[53].mxu0  ;;  %v1058_v19 = vadd.f32 %v2116_v59, %v1057_v16  ;;  %v1728_v20 = vpop.f32.mrb[53].mxu1 }
 0x157   : > { %v860_v21 = vpop.f32.mrb[54].mxu0  ;;  %v1060_v22 = vpop.f32.mrb[54].mxu1 }
 0x158   : > { %v1170_v23 = vmax.f32 %v858_v17, 0.0  ;;  %v861_v24 = vadd.f32 %v2116_v59, %v860_v21  ;;  %v1629_v25 = vpop.f32.mrb[55].mxu0  ;;  %v1220_v26 = vmax.f32 %v1058_v19, 0.0  ;;  %v1061_v27 = vadd.f32 %v2116_v59, %v1060_v22  ;;  %v1729_v28 = vpop.f32.mrb[55].mxu1 }
 0x15a   : > { %1269 = vst.msk [vmem:[%s2124_s7 + $0xd0] sm:$0xff] %vm1242_vm4, %v1170_v23  ;;  %v1171_v29 = vmax.f32 %v861_v24, 0.0  ;;  %1319 = vst.msk [vmem:[%s2124_s7 + $0x260] sm:$0xff] %vm1242_vm4, %v1220_v26  ;;  %v1221_v30 = vmax.f32 %v1061_v27, 0.0 }
 0x15c   : > { %1270 = vst.msk [vmem:[%s2124_s7 + $0xd8] sm:$0xff] %vm1242_vm4, %v1171_v29  ;;  %1320 = vst.msk [vmem:[%s2124_s7 + $0x268] sm:$0xff] %vm1242_vm4, %v1221_v30 }
 0x15d   : > { %v865_v31 = vpop.f32.mrb[56].mxu0  ;;  %v1065_v32 = vpop.f32.mrb[56].mxu1 }
 0x15e   : > { %v866_v33 = vadd.f32 %v2116_v59, %v865_v31  ;;  %v1632_v34 = vpop.f32.mrb[57].mxu0  ;;  %v1066_v35 = vadd.f32 %v2116_v59, %v1065_v32  ;;  %v1732_v36 = vpop.f32.mrb[57].mxu1 }
 0x15f   : > { %v868_v37 = vpop.f32.mrb[58].mxu0  ;;  %v1068_v38 = vpop.f32.mrb[58].mxu1 }
 0x160   : > { %v1172_v39 = vmax.f32 %v866_v33, 0.0  ;;  %v869_v40 = vadd.f32 %v2116_v59, %v868_v37  ;;  %v1633_v41 = vpop.f32.mrb[59].mxu0  ;;  %v1222_v42 = vmax.f32 %v1066_v35, 0.0  ;;  %v1069_v43 = vadd.f32 %v2116_v59, %v1068_v38  ;;  %v1733_v44 = vpop.f32.mrb[59].mxu1 }
 0x162   : > { %1271 = vst.msk [vmem:[%s2124_s7 + $0xe0] sm:$0xff] %vm1242_vm4, %v1172_v39  ;;  %v1173_v45 = vmax.f32 %v869_v40, 0.0  ;;  %1321 = vst.msk [vmem:[%s2124_s7 + $0x270] sm:$0xff] %vm1242_vm4, %v1222_v42  ;;  %v1223_v46 = vmax.f32 %v1069_v43, 0.0 }
 0x164   : > { %1272 = vst.msk [vmem:[%s2124_s7 + $0xe8] sm:$0xff] %vm1242_vm4, %v1173_v45  ;;  %1322 = vst.msk [vmem:[%s2124_s7 + $0x278] sm:$0xff] %vm1242_vm4, %v1223_v46 }
 0x165   : > { %v873_v47 = vpop.f32.mrb[60].mxu0  ;;  %v1073_v48 = vpop.f32.mrb[60].mxu1 }
 0x166   : > { %v874_v49 = vadd.f32 %v2116_v59, %v873_v47  ;;  %v1636_v50 = vpop.f32.mrb[61].mxu0  ;;  %v1074_v51 = vadd.f32 %v2116_v59, %v1073_v48  ;;  %v1736_v52 = vpop.f32.mrb[61].mxu1 }
 0x167   : > { %v876_v53 = vpop.f32.mrb[62].mxu0  ;;  %v1076_v54 = vpop.f32.mrb[62].mxu1 }
 0x168   : > { %v1174_v55 = vmax.f32 %v874_v49, 0.0  ;;  %v877_v56 = vadd.f32 %v2116_v59, %v876_v53  ;;  %v1637_v57 = vpop.f32.mrb[63].mxu0  ;;  %v1224_v58 = vmax.f32 %v1074_v51, 0.0  ;;  %v1077_v60 = vadd.f32 %v2116_v59, %v1076_v54  ;;  %v1737_v61 = vpop.f32.mrb[63].mxu1 }
 0x16a   : > { %1273 = vst.msk [vmem:[%s2124_s7 + $0xf0] sm:$0xff] %vm1242_vm4, %v1174_v55  ;;  %v1175_v62 = vmax.f32 %v877_v56, 0.0  ;;  %1323 = vst.msk [vmem:[%s2124_s7 + $0x280] sm:$0xff] %vm1242_vm4, %v1224_v58  ;;  %v1225_v63 = vmax.f32 %v1077_v60, 0.0 }
 0x16c   : > { %1274 = vst.msk [vmem:[%s2124_s7 + $0xf8] sm:$0xff] %vm1242_vm4, %v1175_v62  ;;  %1324 = vst.msk [vmem:[%s2124_s7 + $0x288] sm:$0xff] %vm1242_vm4, %v1225_v63 }
 0x16d   : > { %v881_v0 = vpop.f32.mrb[64].mxu0  ;;  %v1081_v2 = vpop.f32.mrb[64].mxu1 }
 0x16e   : > { %v882_v1 = vadd.f32 %v2116_v59, %v881_v0  ;;  %v1640_v3 = vpop.f32.mrb[65].mxu0  ;;  %v1082_v4 = vadd.f32 %v2116_v59, %v1081_v2  ;;  %v1740_v5 = vpop.f32.mrb[65].mxu1 }
 0x16f   : > { %v884_v6 = vpop.f32.mrb[66].mxu0  ;;  %v1084_v7 = vpop.f32.mrb[66].mxu1 }
 0x170   : > { %v1176_v8 = vmax.f32 %v882_v1, 0.0  ;;  %v885_v9 = vadd.f32 %v2116_v59, %v884_v6  ;;  %v1641_v10 = vpop.f32.mrb[67].mxu0  ;;  %v1226_v11 = vmax.f32 %v1082_v4, 0.0  ;;  %v1085_v12 = vadd.f32 %v2116_v59, %v1084_v7  ;;  %v1741_v13 = vpop.f32.mrb[67].mxu1 }
 0x172   : > { %1275 = vst.msk [vmem:[%s2124_s7 + $0x100] sm:$0xff] %vm1242_vm4, %v1176_v8  ;;  %v1177_v14 = vmax.f32 %v885_v9, 0.0  ;;  %1325 = vst.msk [vmem:[%s2124_s7 + $0x290] sm:$0xff] %vm1242_vm4, %v1226_v11  ;;  %v1227_v15 = vmax.f32 %v1085_v12, 0.0 }
 0x174   : > { %1276 = vst.msk [vmem:[%s2124_s7 + $0x108] sm:$0xff] %vm1242_vm4, %v1177_v14  ;;  %1326 = vst.msk [vmem:[%s2124_s7 + $0x298] sm:$0xff] %vm1242_vm4, %v1227_v15 }
 0x175   : > { %v889_v16 = vpop.f32.mrb[68].mxu0  ;;  %v1089_v17 = vpop.f32.mrb[68].mxu1 }
 0x176   : > { %v890_v18 = vadd.f32 %v2116_v59, %v889_v16  ;;  %v1644_v19 = vpop.f32.mrb[69].mxu0  ;;  %v1090_v20 = vadd.f32 %v2116_v59, %v1089_v17  ;;  %v1744_v21 = vpop.f32.mrb[69].mxu1 }
 0x177   : > { %v892_v22 = vpop.f32.mrb[70].mxu0  ;;  %v1092_v23 = vpop.f32.mrb[70].mxu1 }
 0x178   : > { %v1178_v24 = vmax.f32 %v890_v18, 0.0  ;;  %v893_v25 = vadd.f32 %v2116_v59, %v892_v22  ;;  %v1645_v26 = vpop.f32.mrb[71].mxu0  ;;  %v1228_v27 = vmax.f32 %v1090_v20, 0.0  ;;  %v1093_v28 = vadd.f32 %v2116_v59, %v1092_v23  ;;  %v1745_v29 = vpop.f32.mrb[71].mxu1 }
 0x17a   : > { %1277 = vst.msk [vmem:[%s2124_s7 + $0x110] sm:$0xff] %vm1242_vm4, %v1178_v24  ;;  %v1179_v30 = vmax.f32 %v893_v25, 0.0  ;;  %1327 = vst.msk [vmem:[%s2124_s7 + $0x2a0] sm:$0xff] %vm1242_vm4, %v1228_v27  ;;  %v1229_v31 = vmax.f32 %v1093_v28, 0.0 }
 0x17c   : > { %1278 = vst.msk [vmem:[%s2124_s7 + $0x118] sm:$0xff] %vm1242_vm4, %v1179_v30  ;;  %1328 = vst.msk [vmem:[%s2124_s7 + $0x2a8] sm:$0xff] %vm1242_vm4, %v1229_v31 }
 0x17d   : > { %v897_v32 = vpop.f32.mrb[72].mxu0  ;;  %v1097_v33 = vpop.f32.mrb[72].mxu1 }
 0x17e   : > { %v898_v34 = vadd.f32 %v2116_v59, %v897_v32  ;;  %v1648_v35 = vpop.f32.mrb[73].mxu0  ;;  %v1098_v36 = vadd.f32 %v2116_v59, %v1097_v33  ;;  %v1748_v37 = vpop.f32.mrb[73].mxu1 }
 0x17f   : > { %v900_v38 = vpop.f32.mrb[74].mxu0  ;;  %v1100_v39 = vpop.f32.mrb[74].mxu1 }
 0x180   : > { %v1180_v40 = vmax.f32 %v898_v34, 0.0  ;;  %v901_v41 = vadd.f32 %v2116_v59, %v900_v38  ;;  %v1649_v42 = vpop.f32.mrb[75].mxu0  ;;  %v1230_v43 = vmax.f32 %v1098_v36, 0.0  ;;  %v1101_v44 = vadd.f32 %v2116_v59, %v1100_v39  ;;  %v1749_v45 = vpop.f32.mrb[75].mxu1 }
 0x182   : > { %1279 = vst.msk [vmem:[%s2124_s7 + $0x120] sm:$0xff] %vm1242_vm4, %v1180_v40  ;;  %v1181_v46 = vmax.f32 %v901_v41, 0.0  ;;  %1329 = vst.msk [vmem:[%s2124_s7 + $0x2b0] sm:$0xff] %vm1242_vm4, %v1230_v43  ;;  %v1231_v47 = vmax.f32 %v1101_v44, 0.0 }
 0x184   : > { %1280 = vst.msk [vmem:[%s2124_s7 + $0x128] sm:$0xff] %vm1242_vm4, %v1181_v46  ;;  %1330 = vst.msk [vmem:[%s2124_s7 + $0x2b8] sm:$0xff] %vm1242_vm4, %v1231_v47 }
 0x185   : > { %v905_v48 = vpop.f32.mrb[76].mxu0  ;;  %v1105_v49 = vpop.f32.mrb[76].mxu1 }
 0x186   : > { %v906_v50 = vadd.f32 %v2116_v59, %v905_v48  ;;  %v1652_v51 = vpop.f32.mrb[77].mxu0  ;;  %v1106_v52 = vadd.f32 %v2116_v59, %v1105_v49  ;;  %v1752_v53 = vpop.f32.mrb[77].mxu1 }
 0x187   : > { %v908_v54 = vpop.f32.mrb[78].mxu0  ;;  %v1108_v55 = vpop.f32.mrb[78].mxu1 }
 0x188   : > { %v1182_v56 = vmax.f32 %v906_v50, 0.0  ;;  %v909_v57 = vadd.f32 %v2116_v59, %v908_v54  ;;  %v1653_v58 = vpop.f32.mrb[79].mxu0  ;;  %v1232_v60 = vmax.f32 %v1106_v52, 0.0  ;;  %v1109_v61 = vadd.f32 %v2116_v59, %v1108_v55  ;;  %v1753_v62 = vpop.f32.mrb[79].mxu1 }
 0x18a   : > { %1281 = vst.msk [vmem:[%s2124_s7 + $0x130] sm:$0xff] %vm1242_vm4, %v1182_v56  ;;  %v1183_v63 = vmax.f32 %v909_v57, 0.0  ;;  %1331 = vst.msk [vmem:[%s2124_s7 + $0x2c0] sm:$0xff] %vm1242_vm4, %v1232_v60  ;;  %v1233_v0 = vmax.f32 %v1109_v61, 0.0 }
 0x18c   : > { %1282 = vst.msk [vmem:[%s2124_s7 + $0x138] sm:$0xff] %vm1242_vm4, %v1183_v63  ;;  %1332 = vst.msk [vmem:[%s2124_s7 + $0x2c8] sm:$0xff] %vm1242_vm4, %v1233_v0 }
 0x18d   : > { %v913_v2 = vpop.f32.mrb[80].mxu0  ;;  %v1113_v1 = vpop.f32.mrb[80].mxu1 }
 0x18e   : > { %v914_v3 = vadd.f32 %v2116_v59, %v913_v2  ;;  %v1656_v4 = vpop.f32.mrb[81].mxu0  ;;  %v1114_v5 = vadd.f32 %v2116_v59, %v1113_v1  ;;  %v1756_v6 = vpop.f32.mrb[81].mxu1 }
 0x18f   : > { %v916_v7 = vpop.f32.mrb[82].mxu0  ;;  %v1116_v8 = vpop.f32.mrb[82].mxu1 }
 0x190   : > { %v1184_v9 = vmax.f32 %v914_v3, 0.0  ;;  %v917_v10 = vadd.f32 %v2116_v59, %v916_v7  ;;  %v1657_v11 = vpop.f32.mrb[83].mxu0  ;;  %v1234_v12 = vmax.f32 %v1114_v5, 0.0  ;;  %v1117_v13 = vadd.f32 %v2116_v59, %v1116_v8  ;;  %v1757_v14 = vpop.f32.mrb[83].mxu1 }
 0x192   : > { %1283 = vst.msk [vmem:[%s2124_s7 + $0x140] sm:$0xff] %vm1242_vm4, %v1184_v9  ;;  %v1185_v15 = vmax.f32 %v917_v10, 0.0  ;;  %1333 = vst.msk [vmem:[%s2124_s7 + $0x2d0] sm:$0xff] %vm1242_vm4, %v1234_v12  ;;  %v1235_v16 = vmax.f32 %v1117_v13, 0.0 }
 0x194   : > { %1284 = vst.msk [vmem:[%s2124_s7 + $0x148] sm:$0xff] %vm1242_vm4, %v1185_v15  ;;  %1334 = vst.msk [vmem:[%s2124_s7 + $0x2d8] sm:$0xff] %vm1242_vm4, %v1235_v16 }
 0x195   : > { %v921_v17 = vpop.f32.mrb[84].mxu0  ;;  %v1121_v18 = vpop.f32.mrb[84].mxu1 }
 0x196   : > { %v922_v19 = vadd.f32 %v2116_v59, %v921_v17  ;;  %v1660_v20 = vpop.f32.mrb[85].mxu0  ;;  %v1122_v21 = vadd.f32 %v2116_v59, %v1121_v18  ;;  %v1760_v22 = vpop.f32.mrb[85].mxu1 }
 0x197   : > { %v924_v23 = vpop.f32.mrb[86].mxu0  ;;  %v1124_v24 = vpop.f32.mrb[86].mxu1 }
 0x198   : > { %v1186_v25 = vmax.f32 %v922_v19, 0.0  ;;  %v925_v26 = vadd.f32 %v2116_v59, %v924_v23  ;;  %v1661_v27 = vpop.f32.mrb[87].mxu0  ;;  %v1236_v28 = vmax.f32 %v1122_v21, 0.0  ;;  %v1125_v29 = vadd.f32 %v2116_v59, %v1124_v24  ;;  %v1761_v30 = vpop.f32.mrb[87].mxu1 }
 0x19a   : > { %1285 = vst.msk [vmem:[%s2124_s7 + $0x150] sm:$0xff] %vm1242_vm4, %v1186_v25  ;;  %v1187_v31 = vmax.f32 %v925_v26, 0.0  ;;  %1335 = vst.msk [vmem:[%s2124_s7 + $0x2e0] sm:$0xff] %vm1242_vm4, %v1236_v28  ;;  %v1237_v32 = vmax.f32 %v1125_v29, 0.0 }
 0x19c   : > { %1286 = vst.msk [vmem:[%s2124_s7 + $0x158] sm:$0xff] %vm1242_vm4, %v1187_v31  ;;  %1336 = vst.msk [vmem:[%s2124_s7 + $0x2e8] sm:$0xff] %vm1242_vm4, %v1237_v32 }
 0x19d   : > { %v929_v33 = vpop.f32.mrb[88].mxu0  ;;  %v1129_v34 = vpop.f32.mrb[88].mxu1 }
 0x19e   : > { %v930_v35 = vadd.f32 %v2116_v59, %v929_v33  ;;  %v1664_v36 = vpop.f32.mrb[89].mxu0  ;;  %v1130_v37 = vadd.f32 %v2116_v59, %v1129_v34  ;;  %v1764_v38 = vpop.f32.mrb[89].mxu1 }
 0x19f   : > { %v932_v39 = vpop.f32.mrb[90].mxu0  ;;  %v1132_v40 = vpop.f32.mrb[90].mxu1 }
 0x1a0   : > { %v1188_v41 = vmax.f32 %v930_v35, 0.0  ;;  %v933_v42 = vadd.f32 %v2116_v59, %v932_v39  ;;  %v1665_v43 = vpop.f32.mrb[91].mxu0  ;;  %v1238_v44 = vmax.f32 %v1130_v37, 0.0  ;;  %v1133_v45 = vadd.f32 %v2116_v59, %v1132_v40  ;;  %v1765_v46 = vpop.f32.mrb[91].mxu1 }
 0x1a2   : > { %1287 = vst.msk [vmem:[%s2124_s7 + $0x160] sm:$0xff] %vm1242_vm4, %v1188_v41  ;;  %v1189_v47 = vmax.f32 %v933_v42, 0.0  ;;  %1337 = vst.msk [vmem:[%s2124_s7 + $0x2f0] sm:$0xff] %vm1242_vm4, %v1238_v44  ;;  %v1239_v48 = vmax.f32 %v1133_v45, 0.0 }
 0x1a4   : > { %1288 = vst.msk [vmem:[%s2124_s7 + $0x168] sm:$0xff] %vm1242_vm4, %v1189_v47  ;;  %1338 = vst.msk [vmem:[%s2124_s7 + $0x2f8] sm:$0xff] %vm1242_vm4, %v1239_v48 }
 0x1a5   : > { %v937_v49 = vpop.f32.mrb[92].mxu0  ;;  %v1137_v50 = vpop.f32.mrb[92].mxu1 }
 0x1a6   : > { %v938_v51 = vadd.f32 %v2116_v59, %v937_v49  ;;  %v1668_v52 = vpop.f32.mrb[93].mxu0  ;;  %v1138_v53 = vadd.f32 %v2116_v59, %v1137_v50  ;;  %v1768_v54 = vpop.f32.mrb[93].mxu1 }
 0x1a7   : > { %v940_v55 = vpop.f32.mrb[94].mxu0  ;;  %v1140_v56 = vpop.f32.mrb[94].mxu1 }
 0x1a8   : > { %v1190_v57 = vmax.f32 %v938_v51, 0.0  ;;  %v941_v58 = vadd.f32 %v2116_v59, %v940_v55  ;;  %v1669_v60 = vpop.f32.mrb[95].mxu0  ;;  %v1240_v61 = vmax.f32 %v1138_v53, 0.0  ;;  %v1141_v62 = vadd.f32 %v2116_v59, %v1140_v56  ;;  %v1769_v63 = vpop.f32.mrb[95].mxu1 }
 0x1aa   : > { %1289 = vst.msk [vmem:[%s2124_s7 + $0x170] sm:$0xff] %vm1242_vm4, %v1190_v57  ;;  %v1191_v0 = vmax.f32 %v941_v58, 0.0  ;;  %1339 = vst.msk [vmem:[%s2124_s7 + $0x300] sm:$0xff] %vm1242_vm4, %v1240_v61  ;;  %v1241_v2 = vmax.f32 %v1141_v62, 0.0 }
 0x1ac   : > { %1290 = vst.msk [vmem:[%s2124_s7 + $0x178] sm:$0xff] %vm1242_vm4, %v1191_v0  ;;  %1340 = vst.msk [vmem:[%s2124_s7 + $0x308] sm:$0xff] %vm1242_vm4, %v1241_v2 }
 0x1ad   : > { %v945_v1 = vpop.f32.mrb[96].mxu0 }
 0x1ae   : > { %v946_v3 = vadd.f32 %v2116_v59, %v945_v1  ;;  %v1672_v4 = vpop.f32.mrb[97].mxu0 }
 0x1af   : > { %v948_v5 = vpop.f32.mrb[98].mxu0 }
 0x1b0   : > { %v1192_v6 = vmax.f32 %v946_v3, 0.0  ;;  %v949_v7 = vadd.f32 %v2116_v59, %v948_v5  ;;  %v1673_v8 = vpop.f32.mrb[99].mxu0 }
 0x1b2   : > { %1291 = vst.msk [vmem:[%s2124_s7 + $0x180] sm:$0xff] %vm1242_vm4, %v1192_v6  ;;  %v1193_v9 = vmax.f32 %v949_v7, 0.0 }
 0x1b4   : > { %1292 = vst.msk [vmem:[%s2124_s7 + $0x188] sm:$0xff] %vm1242_vm4, %v1193_v9 }
 0x1b5 PF: > { %s13_s12 = sadd.s32 1, %s1851_s12  }
 0x1b6   : > { %p10_p4 = scmp.ge.s32.totalorder %s13_s12, 4  }
 0x1b8   :  { %12 = sbr.rel (!%p10_p4) target bundleno = 1 (0x1), region = 62 }

// kernel: cifar_net_forward.9
= control target key start
LH: loop header
LB: loop body
LE: loop exit
PB: predicated region body
PF: predicated region fallthrough
CT: control target
= control target key end

     0   :  { %s496_s22 = smov 96   ;;  %vm393_vm0 = vcmask 261120   ;;  %vm395_vm1 = vcmask 257024   ;;  %s1227_s0 = inlined_call_operand.vmem [shape: f32[24,2,12,64], index: 0, kind: input, shape index: {}]   ;;  %s1228_s1 = inlined_call_operand.vmem [shape: f32[24,12,32], index: 1, kind: output, shape index: {}]  }
   0x1   :  { %v10_v0 = vld [vmem:[%s1227_s0 + $0x20] sm:$0xff]  ;;  %v449_v1 = vld [vmem:[%s1227_s0 + $0x30] sm:$0xff]  ;;  %v11_v5 = vld [vmem:[%s1227_s0 + $0x28] sm:$0xf] }
   0x2   :  { %v8_v2 = vld [vmem:[%s1227_s0] sm:$0xff]  ;;  %v516_v3 = vmax.f32 %v10_v0, %v449_v1  ;;  %v447_v4 = vld [vmem:[%s1227_s0 + $0x10] sm:$0xff]  ;;  %v450_v6 = vld [vmem:[%s1227_s0 + $0x38] sm:$0xf] }
   0x3   :  { %v527_v7 = vmax.f32 %v8_v2, %v447_v4  ;;  %v9_v8 = vld [vmem:[%s1227_s0 + $0x8] sm:$0xf]  ;;  %v448_v9 = vld [vmem:[%s1227_s0 + $0x18] sm:$0xf]  ;;  %v537_v10 = vmax.f32 %v11_v5, %v450_v6  ;;  %v12_v14 = vld [vmem:[%s1227_s0 + $0x40] sm:$0xff] }
   0x4   :  { %205 = vrot.lane.b32.xlu1 %v516_v3, %s496_s22  ;;  %v541_v11 = vmax.f32 %v9_v8, %v448_v9  ;;  %v13_v12 = vld [vmem:[%s1227_s0 + $0x48] sm:$0xf]  ;;  %v452_v13 = vld [vmem:[%s1227_s0 + $0x58] sm:$0xf]  ;;  %v451_v15 = vld [vmem:[%s1227_s0 + $0x50] sm:$0xff] }
   0x5   :  { %201 = vrot.lane.b32.xlu0 %v527_v7, %s496_s22  ;;  %v557_v16 = vmax.f32 %v13_v12, %v452_v13  ;;  %v561_v17 = vmax.f32 %v12_v14, %v451_v15  ;;  %v15_v18 = vld [vmem:[%s1227_s0 + $0x68] sm:$0xf]  ;;  %v454_v19 = vld [vmem:[%s1227_s0 + $0x78] sm:$0xf]  ;;  %v14_v20 = vld [vmem:[%s1227_s0 + $0x60] sm:$0xff] }
   0x6   :  { %v453_v21 = vld [vmem:[%s1227_s0 + $0x70] sm:$0xff]  ;;  %v577_v22 = vmax.f32 %v15_v18, %v454_v19  ;;  %v17_v24 = vld [vmem:[%s1227_s0 + $0x88] sm:$0xf]  ;;  %v456_v25 = vld [vmem:[%s1227_s0 + $0x98] sm:$0xf] }
   0x7   :  { %v581_v23 = vmax.f32 %v14_v20, %v453_v21  ;;  %v16_v26 = vld [vmem:[%s1227_s0 + $0x80] sm:$0xff]  ;;  %v455_v27 = vld [vmem:[%s1227_s0 + $0x90] sm:$0xff]  ;;  %v597_v28 = vmax.f32 %v17_v24, %v456_v25  ;;  %v19_v30 = vld [vmem:[%s1227_s0 + $0xa8] sm:$0xf] }
   0x8   :  { %207 = vrot.lane.b32.xlu1 %v537_v10, %s496_s22  ;;  %v601_v29 = vmax.f32 %v16_v26, %v455_v27  ;;  %v458_v31 = vld [vmem:[%s1227_s0 + $0xb8] sm:$0xf]  ;;  %v18_v32 = vld [vmem:[%s1227_s0 + $0xa0] sm:$0xff]  ;;  %v457_v33 = vld [vmem:[%s1227_s0 + $0xb0] sm:$0xff] }
   0x9   :  { %203 = vrot.lane.b32.xlu0 %v541_v11, %s496_s22  ;;  %v617_v34 = vmax.f32 %v19_v30, %v458_v31  ;;  %v621_v35 = vmax.f32 %v18_v32, %v457_v33  ;;  %v21_v36 = vld [vmem:[%s1227_s0 + $0xc8] sm:$0xf]  ;;  %v460_v37 = vld [vmem:[%s1227_s0 + $0xd8] sm:$0xf]  ;;  %v20_v38 = vld [vmem:[%s1227_s0 + $0xc0] sm:$0xff] }
   0xa   :  { %v459_v39 = vld [vmem:[%s1227_s0 + $0xd0] sm:$0xff]  ;;  %v637_v40 = vmax.f32 %v21_v36, %v460_v37  ;;  %v23_v42 = vld [vmem:[%s1227_s0 + $0xe8] sm:$0xf]  ;;  %v462_v43 = vld [vmem:[%s1227_s0 + $0xf8] sm:$0xf] }
   0xb   :  { %v641_v41 = vmax.f32 %v20_v38, %v459_v39  ;;  %v22_v44 = vld [vmem:[%s1227_s0 + $0xe0] sm:$0xff]  ;;  %v461_v45 = vld [vmem:[%s1227_s0 + $0xf0] sm:$0xff]  ;;  %v657_v46 = vmax.f32 %v23_v42, %v462_v43  ;;  %v25_v48 = vld [vmem:[%s1227_s0 + $0x108] sm:$0xf] }
   0xc   :  { %211 = vrot.lane.b32.xlu1 %v557_v16, %s496_s22  ;;  %v661_v47 = vmax.f32 %v22_v44, %v461_v45  ;;  %v464_v49 = vld [vmem:[%s1227_s0 + $0x118] sm:$0xf]  ;;  %v24_v50 = vld [vmem:[%s1227_s0 + $0x100] sm:$0xff]  ;;  %v463_v51 = vld [vmem:[%s1227_s0 + $0x110] sm:$0xff] }
   0xd   :  { %209 = vrot.lane.b32.xlu0 %v561_v17, %s496_s22  ;;  %v677_v52 = vmax.f32 %v25_v48, %v464_v49  ;;  %v681_v53 = vmax.f32 %v24_v50, %v463_v51  ;;  %v27_v54 = vld [vmem:[%s1227_s0 + $0x128] sm:$0xf]  ;;  %v466_v55 = vld [vmem:[%s1227_s0 + $0x138] sm:$0xf]  ;;  %v26_v56 = vld [vmem:[%s1227_s0 + $0x120] sm:$0xff] }
   0xe   :  { %v465_v57 = vld [vmem:[%s1227_s0 + $0x130] sm:$0xff]  ;;  %v697_v58 = vmax.f32 %v27_v54, %v466_v55  ;;  %v29_v60 = vld [vmem:[%s1227_s0 + $0x148] sm:$0xf]  ;;  %v468_v61 = vld [vmem:[%s1227_s0 + $0x158] sm:$0xf] }
   0xf   :  { %v701_v59 = vmax.f32 %v26_v56, %v465_v57  ;;  %v28_v62 = vld [vmem:[%s1227_s0 + $0x140] sm:$0xff]  ;;  %v467_v63 = vld [vmem:[%s1227_s0 + $0x150] sm:$0xff]  ;;  %v717_v0 = vmax.f32 %v29_v60, %v468_v61  ;;  %v31_v2 = vld [vmem:[%s1227_s0 + $0x168] sm:$0xf] }
  0x10   :  { %215 = vrot.lane.b32.xlu1 %v577_v22, %s496_s22  ;;  %v721_v1 = vmax.f32 %v28_v62, %v467_v63  ;;  %v470_v4 = vld [vmem:[%s1227_s0 + $0x178] sm:$0xf]  ;;  %v30_v5 = vld [vmem:[%s1227_s0 + $0x160] sm:$0xff]  ;;  %v469_v6 = vld [vmem:[%s1227_s0 + $0x170] sm:$0xff] }
  0x11   :  { %213 = vrot.lane.b32.xlu0 %v581_v23, %s496_s22  ;;  %v737_v8 = vmax.f32 %v31_v2, %v470_v4  ;;  %v741_v9 = vmax.f32 %v30_v5, %v469_v6  ;;  %v33_v12 = vld [vmem:[%s1227_s0 + $0x188] sm:$0xf]  ;;  %v472_v13 = vld [vmem:[%s1227_s0 + $0x198] sm:$0xf]  ;;  %v32_v14 = vld [vmem:[%s1227_s0 + $0x180] sm:$0xff] }
  0x12   :  { %v471_v15 = vld [vmem:[%s1227_s0 + $0x190] sm:$0xff]  ;;  %v757_v18 = vmax.f32 %v33_v12, %v472_v13  ;;  %v35_v20 = vld [vmem:[%s1227_s0 + $0x1a8] sm:$0xf]  ;;  %v474_v21 = vld [vmem:[%s1227_s0 + $0x1b8] sm:$0xf] }
  0x13   :  { %v761_v19 = vmax.f32 %v32_v14, %v471_v15  ;;  %v34_v24 = vld [vmem:[%s1227_s0 + $0x1a0] sm:$0xff]  ;;  %v473_v25 = vld [vmem:[%s1227_s0 + $0x1b0] sm:$0xff]  ;;  %v777_v26 = vmax.f32 %v35_v20, %v474_v21  ;;  %v37_v30 = vld [vmem:[%s1227_s0 + $0x1c8] sm:$0xf] }
  0x14   :  { %219 = vrot.lane.b32.xlu1 %v597_v28, %s496_s22  ;;  %v781_v27 = vmax.f32 %v34_v24, %v473_v25  ;;  %v476_v31 = vld [vmem:[%s1227_s0 + $0x1d8] sm:$0xf]  ;;  %v36_v32 = vld [vmem:[%s1227_s0 + $0x1c0] sm:$0xff]  ;;  %v475_v33 = vld [vmem:[%s1227_s0 + $0x1d0] sm:$0xff] }
  0x15   :  { %217 = vrot.lane.b32.xlu0 %v601_v29, %s496_s22  ;;  %v797_v36 = vmax.f32 %v37_v30, %v476_v31  ;;  %v801_v37 = vmax.f32 %v36_v32, %v475_v33  ;;  %v39_v38 = vld [vmem:[%s1227_s0 + $0x1e8] sm:$0xf]  ;;  %v478_v39 = vld [vmem:[%s1227_s0 + $0x1f8] sm:$0xf]  ;;  %v38_v42 = vld [vmem:[%s1227_s0 + $0x1e0] sm:$0xff] }
  0x16   :  { %v477_v43 = vld [vmem:[%s1227_s0 + $0x1f0] sm:$0xff]  ;;  %v817_v44 = vmax.f32 %v39_v38, %v478_v39  ;;  %v41_v48 = vld [vmem:[%s1227_s0 + $0x208] sm:$0xf]  ;;  %v480_v49 = vld [vmem:[%s1227_s0 + $0x218] sm:$0xf] }
  0x17   :  { %v821_v45 = vmax.f32 %v38_v42, %v477_v43  ;;  %v40_v50 = vld [vmem:[%s1227_s0 + $0x200] sm:$0xff]  ;;  %v479_v51 = vld [vmem:[%s1227_s0 + $0x210] sm:$0xff]  ;;  %v837_v54 = vmax.f32 %v41_v48, %v480_v49  ;;  %v43_v56 = vld [vmem:[%s1227_s0 + $0x228] sm:$0xf] }
  0x18   :  { %223 = vrot.lane.b32.xlu1 %v617_v34, %s496_s22  ;;  %v841_v55 = vmax.f32 %v40_v50, %v479_v51  ;;  %v482_v57 = vld [vmem:[%s1227_s0 + $0x238] sm:$0xf]  ;;  %v42_v60 = vld [vmem:[%s1227_s0 + $0x220] sm:$0xff]  ;;  %v481_v61 = vld [vmem:[%s1227_s0 + $0x230] sm:$0xff] }
  0x19   :  { %221 = vrot.lane.b32.xlu0 %v621_v35, %s496_s22  ;;  %v857_v62 = vmax.f32 %v43_v56, %v482_v57  ;;  %v861_v63 = vmax.f32 %v42_v60, %v481_v61  ;;  %v45_v2 = vld [vmem:[%s1227_s0 + $0x248] sm:$0xf]  ;;  %v484_v4 = vld [vmem:[%s1227_s0 + $0x258] sm:$0xf]  ;;  %v44_v5 = vld [vmem:[%s1227_s0 + $0x240] sm:$0xff] }
  0x1a   :  { %v483_v6 = vld [vmem:[%s1227_s0 + $0x250] sm:$0xff]  ;;  %v877_v12 = vmax.f32 %v45_v2, %v484_v4  ;;  %v47_v14 = vld [vmem:[%s1227_s0 + $0x268] sm:$0xf]  ;;  %v486_v15 = vld [vmem:[%s1227_s0 + $0x278] sm:$0xf] }
  0x1b   :  { %v881_v13 = vmax.f32 %v44_v5, %v483_v6  ;;  %v46_v20 = vld [vmem:[%s1227_s0 + $0x260] sm:$0xff]  ;;  %v485_v21 = vld [vmem:[%s1227_s0 + $0x270] sm:$0xff]  ;;  %v897_v24 = vmax.f32 %v47_v14, %v486_v15  ;;  %v49_v30 = vld [vmem:[%s1227_s0 + $0x288] sm:$0xf] }
  0x1c   :  { %227 = vrot.lane.b32.xlu1 %v637_v40, %s496_s22  ;;  %v901_v25 = vmax.f32 %v46_v20, %v485_v21  ;;  %v488_v31 = vld [vmem:[%s1227_s0 + $0x298] sm:$0xf]  ;;  %v48_v32 = vld [vmem:[%s1227_s0 + $0x280] sm:$0xff]  ;;  %v487_v33 = vld [vmem:[%s1227_s0 + $0x290] sm:$0xff] }
  0x1d   :  { %225 = vrot.lane.b32.xlu0 %v641_v41, %s496_s22  ;;  %v917_v38 = vmax.f32 %v49_v30, %v488_v31  ;;  %v921_v39 = vmax.f32 %v48_v32, %v487_v33  ;;  %v51_v42 = vld [vmem:[%s1227_s0 + $0x2a8] sm:$0xf]  ;;  %v490_v43 = vld [vmem:[%s1227_s0 + $0x2b8] sm:$0xf]  ;;  %v50_v48 = vld [vmem:[%s1227_s0 + $0x2a0] sm:$0xff] }
  0x1e   :  { %v489_v49 = vld [vmem:[%s1227_s0 + $0x2b0] sm:$0xff]  ;;  %v937_v50 = vmax.f32 %v51_v42, %v490_v43  ;;  %v53_v56 = vld [vmem:[%s1227_s0 + $0x2c8] sm:$0xf]  ;;  %v492_v57 = vld [vmem:[%s1227_s0 + $0x2d8] sm:$0xf] }
  0x1f   :  { %v941_v51 = vmax.f32 %v50_v48, %v489_v49  ;;  %v52_v60 = vld [vmem:[%s1227_s0 + $0x2c0] sm:$0xff]  ;;  %v491_v61 = vld [vmem:[%s1227_s0 + $0x2d0] sm:$0xff]  ;;  %v957_v2 = vmax.f32 %v53_v56, %v492_v57  ;;  %v55_v5 = vld [vmem:[%s1227_s0 + $0x2e8] sm:$0xf] }
  0x20   :  { %231 = vrot.lane.b32.xlu1 %v657_v46, %s496_s22  ;;  %v961_v4 = vmax.f32 %v52_v60, %v491_v61  ;;  %v494_v6 = vld [vmem:[%s1227_s0 + $0x2f8] sm:$0xf]  ;;  %v54_v14 = vld [vmem:[%s1227_s0 + $0x2e0] sm:$0xff]  ;;  %v493_v15 = vld [vmem:[%s1227_s0 + $0x2f0] sm:$0xff] }
  0x21   :  { %229 = vrot.lane.b32.xlu0 %v661_v47, %s496_s22  ;;  %v977_v20 = vmax.f32 %v55_v5, %v494_v6  ;;  %v981_v21 = vmax.f32 %v54_v14, %v493_v15 }
  0x24   :  { %235 = vrot.lane.b32.xlu1 %v677_v52, %s496_s22 }
  0x25   :  { %233 = vrot.lane.b32.xlu0 %v681_v53, %s496_s22 }
  0x28   :  { %239 = vrot.lane.b32.xlu1 %v697_v58, %s496_s22 }
  0x29   :  { %237 = vrot.lane.b32.xlu0 %v701_v59, %s496_s22 }
  0x2c   :  { %243 = vrot.lane.b32.xlu1 %v717_v0, %s496_s22 }
  0x2d   :  { %241 = vrot.lane.b32.xlu0 %v721_v1, %s496_s22 }
  0x30   :  { %247 = vrot.lane.b32.xlu1 %v737_v8, %s496_s22 }
  0x31   :  { %245 = vrot.lane.b32.xlu0 %v741_v9, %s496_s22 }
  0x34   :  { %251 = vrot.lane.b32.xlu1 %v757_v18, %s496_s22 }
  0x35   :  { %249 = vrot.lane.b32.xlu0 %v761_v19, %s496_s22 }
  0x38   :  { %255 = vrot.lane.b32.xlu1 %v777_v26, %s496_s22 }
  0x39   :  { %253 = vrot.lane.b32.xlu0 %v781_v27, %s496_s22 }
  0x3c   :  { %259 = vrot.lane.b32.xlu1 %v797_v36, %s496_s22 }
  0x3d   :  { %257 = vrot.lane.b32.xlu0 %v801_v37, %s496_s22 }
  0x40   :  { %263 = vrot.lane.b32.xlu1 %v817_v44, %s496_s22 }
  0x41   :  { %261 = vrot.lane.b32.xlu0 %v821_v45, %s496_s22 }
  0x44   :  { %267 = vrot.lane.b32.xlu1 %v837_v54, %s496_s22 }
  0x45   :  { %265 = vrot.lane.b32.xlu0 %v841_v55, %s496_s22 }
  0x48   :  { %271 = vrot.lane.b32.xlu1 %v857_v62, %s496_s22 }
  0x49   :  { %269 = vrot.lane.b32.xlu0 %v861_v63, %s496_s22 }
  0x4c   :  { %275 = vrot.lane.b32.xlu1 %v877_v12, %s496_s22 }
  0x4d   :  { %273 = vrot.lane.b32.xlu0 %v881_v13, %s496_s22 }
  0x50   :  { %279 = vrot.lane.b32.xlu1 %v897_v24, %s496_s22 }
  0x51   :  { %277 = vrot.lane.b32.xlu0 %v901_v25, %s496_s22 }
  0x54   :  { %283 = vrot.lane.b32.xlu1 %v917_v38, %s496_s22 }
  0x55   :  { %281 = vrot.lane.b32.xlu0 %v921_v39, %s496_s22 }
  0x58   :  { %287 = vrot.lane.b32.xlu1 %v937_v50, %s496_s22 }
  0x59   :  { %285 = vrot.lane.b32.xlu0 %v941_v51, %s496_s22 }
  0x5c   :  { %291 = vrot.lane.b32.xlu1 %v957_v2, %s496_s22 }
  0x5d   :  { %289 = vrot.lane.b32.xlu0 %v961_v4, %s496_s22 }
  0x60   :  { %295 = vrot.lane.b32.xlu1 %v977_v20, %s496_s22 }
  0x61   :  { %293 = vrot.lane.b32.xlu0 %v981_v21, %s496_s22 }
  0x76   :  { %v206_v30 = vpop.permute.xlu1 %205 }
  0x77   :  { %v347_v31 = vmax.f32 %v516_v3, %v206_v30  ;;  %v202_v32 = vpop.permute.xlu0 %201 }
  0x78   :  { %v345_v33 = vmax.f32 %v527_v7, %v202_v32 }
  0x79   :  { %397 = vst.msk [vmem:[%s1228_s1 + $0x10] sm:$0xff] %vm393_vm0, %v347_v31 }
  0x7a   :  { %394 = vst.msk [vmem:[%s1228_s1] sm:$0xff] %vm393_vm0, %v345_v33  ;;  %v208_v42 = vpop.permute.xlu1 %207 }
  0x7b   :  { %v348_v43 = vmax.f32 %v537_v10, %v208_v42  ;;  %v204_v48 = vpop.permute.xlu0 %203 }
  0x7c   :  { %v346_v3 = vmax.f32 %v541_v11, %v204_v48 }
  0x7d   :  { %398 = vst.msk [vmem:[%s1228_s1 + $0x18] sm:$0xf] %vm395_vm1, %v348_v43 }
  0x7e   :  { %396 = vst.msk [vmem:[%s1228_s1 + $0x8] sm:$0xf] %vm395_vm1, %v346_v3  ;;  %v212_v7 = vpop.permute.xlu1 %211 }
  0x7f   :  { %v350_v49 = vmax.f32 %v557_v16, %v212_v7  ;;  %v210_v56 = vpop.permute.xlu0 %209 }
  0x80   :  { %v349_v57 = vmax.f32 %v561_v17, %v210_v56 }
  0x81   :  { %400 = vst.msk [vmem:[%s1228_s1 + $0x28] sm:$0xf] %vm395_vm1, %v350_v49 }
  0x82   :  { %399 = vst.msk [vmem:[%s1228_s1 + $0x20] sm:$0xff] %vm393_vm0, %v349_v57  ;;  %v216_v10 = vpop.permute.xlu1 %215 }
  0x83   :  { %v352_v11 = vmax.f32 %v577_v22, %v216_v10  ;;  %v214_v60 = vpop.permute.xlu0 %213 }
  0x84   :  { %v351_v61 = vmax.f32 %v581_v23, %v214_v60 }
  0x85   :  { %402 = vst.msk [vmem:[%s1228_s1 + $0x38] sm:$0xf] %vm395_vm1, %v352_v11 }
  0x86   :  { %401 = vst.msk [vmem:[%s1228_s1 + $0x30] sm:$0xff] %vm393_vm0, %v351_v61  ;;  %v220_v16 = vpop.permute.xlu1 %219 }
  0x87   :  { %v354_v17 = vmax.f32 %v597_v28, %v220_v16  ;;  %v218_v5 = vpop.permute.xlu0 %217 }
  0x88   :  { %v353_v6 = vmax.f32 %v601_v29, %v218_v5 }
  0x89   :  { %404 = vst.msk [vmem:[%s1228_s1 + $0x48] sm:$0xf] %vm395_vm1, %v354_v17 }
  0x8a   :  { %403 = vst.msk [vmem:[%s1228_s1 + $0x40] sm:$0xff] %vm393_vm0, %v353_v6  ;;  %v224_v22 = vpop.permute.xlu1 %223 }
  0x8b   :  { %v356_v23 = vmax.f32 %v617_v34, %v224_v22  ;;  %v222_v14 = vpop.permute.xlu0 %221 }
  0x8c   :  { %v355_v15 = vmax.f32 %v621_v35, %v222_v14 }
  0x8d   :  { %406 = vst.msk [vmem:[%s1228_s1 + $0x58] sm:$0xf] %vm395_vm1, %v356_v23 }
  0x8e   :  { %405 = vst.msk [vmem:[%s1228_s1 + $0x50] sm:$0xff] %vm393_vm0, %v355_v15  ;;  %v228_v28 = vpop.permute.xlu1 %227 }
  0x8f   :  { %v358_v29 = vmax.f32 %v637_v40, %v228_v28  ;;  %v226_v30 = vpop.permute.xlu0 %225 }
  0x90   :  { %v357_v31 = vmax.f32 %v641_v41, %v226_v30 }
  0x91   :  { %408 = vst.msk [vmem:[%s1228_s1 + $0x68] sm:$0xf] %vm395_vm1, %v358_v29 }
  0x92   :  { %407 = vst.msk [vmem:[%s1228_s1 + $0x60] sm:$0xff] %vm393_vm0, %v357_v31  ;;  %v232_v34 = vpop.permute.xlu1 %231 }
  0x93   :  { %v360_v35 = vmax.f32 %v657_v46, %v232_v34  ;;  %v230_v32 = vpop.permute.xlu0 %229 }
  0x94   :  { %v359_v33 = vmax.f32 %v661_v47, %v230_v32 }
  0x95   :  { %410 = vst.msk [vmem:[%s1228_s1 + $0x78] sm:$0xf] %vm395_vm1, %v360_v35 }
  0x96   :  { %409 = vst.msk [vmem:[%s1228_s1 + $0x70] sm:$0xff] %vm393_vm0, %v359_v33  ;;  %v236_v40 = vpop.permute.xlu1 %235 }
  0x97   :  { %v362_v41 = vmax.f32 %v677_v52, %v236_v40  ;;  %v234_v42 = vpop.permute.xlu0 %233 }
  0x98   :  { %v361_v43 = vmax.f32 %v681_v53, %v234_v42 }
  0x99   :  { %412 = vst.msk [vmem:[%s1228_s1 + $0x88] sm:$0xf] %vm395_vm1, %v362_v41 }
  0x9a   :  { %411 = vst.msk [vmem:[%s1228_s1 + $0x80] sm:$0xff] %vm393_vm0, %v361_v43  ;;  %v240_v46 = vpop.permute.xlu1 %239 }
  0x9b   :  { %v364_v47 = vmax.f32 %v697_v58, %v240_v46  ;;  %v238_v48 = vpop.permute.xlu0 %237 }
  0x9c   :  { %v363_v3 = vmax.f32 %v701_v59, %v238_v48 }
  0x9d   :  { %414 = vst.msk [vmem:[%s1228_s1 + $0x98] sm:$0xf] %vm395_vm1, %v364_v47 }
  0x9e   :  { %413 = vst.msk [vmem:[%s1228_s1 + $0x90] sm:$0xff] %vm393_vm0, %v363_v3  ;;  %v244_v52 = vpop.permute.xlu1 %243 }
  0x9f   :  { %v366_v53 = vmax.f32 %v717_v0, %v244_v52  ;;  %v242_v7 = vpop.permute.xlu0 %241 }
  0xa0   :  { %v365_v49 = vmax.f32 %v721_v1, %v242_v7 }
  0xa1   :  { %416 = vst.msk [vmem:[%s1228_s1 + $0xa8] sm:$0xf] %vm395_vm1, %v366_v53 }
  0xa2   :  { %415 = vst.msk [vmem:[%s1228_s1 + $0xa0] sm:$0xff] %vm393_vm0, %v365_v49  ;;  %v248_v58 = vpop.permute.xlu1 %247 }
  0xa3   :  { %v368_v59 = vmax.f32 %v737_v8, %v248_v58  ;;  %v246_v56 = vpop.permute.xlu0 %245 }
  0xa4   :  { %v367_v57 = vmax.f32 %v741_v9, %v246_v56 }
  0xa5   :  { %418 = vst.msk [vmem:[%s1228_s1 + $0xb8] sm:$0xf] %vm395_vm1, %v368_v59 }
  0xa6   :  { %417 = vst.msk [vmem:[%s1228_s1 + $0xb0] sm:$0xff] %vm393_vm0, %v367_v57  ;;  %v252_v0 = vpop.permute.xlu1 %251 }
  0xa7   :  { %v370_v1 = vmax.f32 %v757_v18, %v252_v0  ;;  %v250_v10 = vpop.permute.xlu0 %249 }
  0xa8   :  { %v369_v11 = vmax.f32 %v761_v19, %v250_v10 }
  0xa9   :  { %420 = vst.msk [vmem:[%s1228_s1 + $0xc8] sm:$0xf] %vm395_vm1, %v370_v1 }
  0xaa   :  { %419 = vst.msk [vmem:[%s1228_s1 + $0xc0] sm:$0xff] %vm393_vm0, %v369_v11  ;;  %v256_v8 = vpop.permute.xlu1 %255 }
  0xab   :  { %v372_v9 = vmax.f32 %v777_v26, %v256_v8  ;;  %v254_v60 = vpop.permute.xlu0 %253 }
  0xac   :  { %v371_v61 = vmax.f32 %v781_v27, %v254_v60 }
  0xad   :  { %422 = vst.msk [vmem:[%s1228_s1 + $0xd8] sm:$0xf] %vm395_vm1, %v372_v9 }
  0xae   :  { %421 = vst.msk [vmem:[%s1228_s1 + $0xd0] sm:$0xff] %vm393_vm0, %v371_v61  ;;  %v260_v18 = vpop.permute.xlu1 %259 }
  0xaf   :  { %v374_v19 = vmax.f32 %v797_v36, %v260_v18  ;;  %v258_v16 = vpop.permute.xlu0 %257 }
  0xb0   :  { %v373_v17 = vmax.f32 %v801_v37, %v258_v16 }
  0xb1   :  { %424 = vst.msk [vmem:[%s1228_s1 + $0xe8] sm:$0xf] %vm395_vm1, %v374_v19 }
  0xb2   :  { %423 = vst.msk [vmem:[%s1228_s1 + $0xe0] sm:$0xff] %vm393_vm0, %v373_v17  ;;  %v264_v26 = vpop.permute.xlu1 %263 }
  0xb3   :  { %v376_v27 = vmax.f32 %v817_v44, %v264_v26  ;;  %v262_v5 = vpop.permute.xlu0 %261 }
  0xb4   :  { %v375_v6 = vmax.f32 %v821_v45, %v262_v5 }
  0xb5   :  { %426 = vst.msk [vmem:[%s1228_s1 + $0xf8] sm:$0xf] %vm395_vm1, %v376_v27 }
  0xb6   :  { %425 = vst.msk [vmem:[%s1228_s1 + $0xf0] sm:$0xff] %vm393_vm0, %v375_v6  ;;  %v268_v36 = vpop.permute.xlu1 %267 }
  0xb7   :  { %v378_v37 = vmax.f32 %v837_v54, %v268_v36  ;;  %v266_v22 = vpop.permute.xlu0 %265 }
  0xb8   :  { %v377_v23 = vmax.f32 %v841_v55, %v266_v22 }
  0xb9   :  { %428 = vst.msk [vmem:[%s1228_s1 + $0x108] sm:$0xf] %vm395_vm1, %v378_v37 }
  0xba   :  { %427 = vst.msk [vmem:[%s1228_s1 + $0x100] sm:$0xff] %vm393_vm0, %v377_v23  ;;  %v272_v44 = vpop.permute.xlu1 %271 }
  0xbb   :  { %v380_v45 = vmax.f32 %v857_v62, %v272_v44  ;;  %v270_v14 = vpop.permute.xlu0 %269 }
  0xbc   :  { %v379_v15 = vmax.f32 %v861_v63, %v270_v14 }
  0xbd   :  { %430 = vst.msk [vmem:[%s1228_s1 + $0x118] sm:$0xf] %vm395_vm1, %v380_v45 }
  0xbe   :  { %429 = vst.msk [vmem:[%s1228_s1 + $0x110] sm:$0xff] %vm393_vm0, %v379_v15  ;;  %v276_v54 = vpop.permute.xlu1 %275 }
  0xbf   :  { %v382_v55 = vmax.f32 %v877_v12, %v276_v54  ;;  %v274_v28 = vpop.permute.xlu0 %273 }
  0xc0   :  { %v381_v29 = vmax.f32 %v881_v13, %v274_v28 }
  0xc1   :  { %432 = vst.msk [vmem:[%s1228_s1 + $0x128] sm:$0xf] %vm395_vm1, %v382_v55 }
  0xc2   :  { %431 = vst.msk [vmem:[%s1228_s1 + $0x120] sm:$0xff] %vm393_vm0, %v381_v29  ;;  %v280_v62 = vpop.permute.xlu1 %279 }
  0xc3   :  { %v384_v63 = vmax.f32 %v897_v24, %v280_v62  ;;  %v278_v30 = vpop.permute.xlu0 %277 }
  0xc4   :  { %v383_v31 = vmax.f32 %v901_v25, %v278_v30 }
  0xc5   :  { %434 = vst.msk [vmem:[%s1228_s1 + $0x138] sm:$0xf] %vm395_vm1, %v384_v63 }
  0xc6   :  { %433 = vst.msk [vmem:[%s1228_s1 + $0x130] sm:$0xff] %vm393_vm0, %v383_v31  ;;  %v284_v12 = vpop.permute.xlu1 %283 }
  0xc7   :  { %v386_v13 = vmax.f32 %v917_v38, %v284_v12  ;;  %v282_v34 = vpop.permute.xlu0 %281 }
  0xc8   :  { %v385_v35 = vmax.f32 %v921_v39, %v282_v34 }
  0xc9   :  { %436 = vst.msk [vmem:[%s1228_s1 + $0x148] sm:$0xf] %vm395_vm1, %v386_v13 }
  0xca   :  { %435 = vst.msk [vmem:[%s1228_s1 + $0x140] sm:$0xff] %vm393_vm0, %v385_v35  ;;  %v288_v24 = vpop.permute.xlu1 %287 }
  0xcb   :  { %v388_v25 = vmax.f32 %v937_v50, %v288_v24  ;;  %v286_v32 = vpop.permute.xlu0 %285 }
  0xcc   :  { %v387_v33 = vmax.f32 %v941_v51, %v286_v32 }
  0xcd   :  { %438 = vst.msk [vmem:[%s1228_s1 + $0x158] sm:$0xf] %vm395_vm1, %v388_v25 }
  0xce   :  { %437 = vst.msk [vmem:[%s1228_s1 + $0x150] sm:$0xff] %vm393_vm0, %v387_v33  ;;  %v292_v38 = vpop.permute.xlu1 %291 }
  0xcf   :  { %v390_v39 = vmax.f32 %v957_v2, %v292_v38  ;;  %v290_v40 = vpop.permute.xlu0 %289 }
  0xd0   :  { %v389_v41 = vmax.f32 %v961_v4, %v290_v40 }
  0xd1   :  { %440 = vst.msk [vmem:[%s1228_s1 + $0x168] sm:$0xf] %vm395_vm1, %v390_v39 }
  0xd2   :  { %439 = vst.msk [vmem:[%s1228_s1 + $0x160] sm:$0xff] %vm393_vm0, %v389_v41  ;;  %v296_v50 = vpop.permute.xlu1 %295 }
  0xd3   :  { %v392_v51 = vmax.f32 %v977_v20, %v296_v50  ;;  %v294_v42 = vpop.permute.xlu0 %293 }
  0xd4   :  { %v391_v43 = vmax.f32 %v981_v21, %v294_v42 }
  0xd5   :  { %442 = vst.msk [vmem:[%s1228_s1 + $0x178] sm:$0xf] %vm395_vm1, %v392_v51 }
  0xd6   :  { %441 = vst.msk [vmem:[%s1228_s1 + $0x170] sm:$0xff] %vm393_vm0, %v391_v43 }

// kernel: cifar_net_forward.8
= control target key start
LH: loop header
LB: loop body
LE: loop exit
PB: predicated region body
PF: predicated region fallthrough
CT: control target
= control target key end

     0   :  { %s4958_s12 = smov 0   ;;  %s6183_s0 = inlined_call_operand.vmem [shape: bf16[1152,800], index: 0, kind: input, shape index: {}]   ;;  %s6184_s1 = inlined_call_operand.vmem [shape: bf16[800,32], index: 1, kind: input, shape index: {}]   ;;  %s6185_s2 = inlined_call_operand.vmem [shape: f32[1,32], index: 2, kind: input, shape index: {}]   ;;  %s6186_s3 = inlined_call_operand.vmem [shape: f32[1152,32], index: 3, kind: output, shape index: {}]  }
   0x1 LB: > { %s3726_s13 = sadd.s32 4294967295, %s4935_s12   ;;  %p3730_p0 = scmp.ge.s32.totalorder %s4935_s12, 1  ;;  %s4935_s12 = sphi %s4958_s12, %s13_s12  }
   0x2   : > { %p139_p1 = scmp.lt.s32.totalorder %s4935_s12, 3 }
   0x4   : > { %p140_p2 = pnand %p3730_p0, %p139_p1 }
   0x6   : > { %143 = sbr.rel (%p140_p2) target bundleno = 795 (0x31b), region = 32 }
   0xd   : > { %v4518_v0 = vld [vmem:[%s6184_s1] sm:$0xff]   ;;  %v4937_v1 = vmov 0   ;;  %v4520_v3 = vld [vmem:[%s6184_s1 + $0x8] sm:$0xff]   ;;  %v4522_v5 = vld [vmem:[%s6184_s1 + $0x10] sm:$0xff]   ;;  %s164_s5 = smul.u32 72, %s3726_s13  ;;  %vm2133_vm0 = vcmask 261120  }
   0xe   : > { %2242 = vmatprep.subr.bf16.mxu1 %v4937_v1  ;;  %2563 = vmatprep.subr.bf16.mxu0 %v4937_v1  ;;  %v4974_v2 = vld [vmem:[%s6184_s1 + $0x80] sm:$0xff]   ;;  %v4984_v4 = vld [vmem:[%s6184_s1 + $0x88] sm:$0xff]   ;;  %v4995_v6 = vld [vmem:[%s6184_s1 + $0x90] sm:$0xff]  }
   0xf   : > { %2243 = vmatpush1.bf16.msra.mxu1 %v4518_v0  ;;  %2564 = vmatpush1.bf16.msra.mxu0 %v4974_v2  ;;  %v4524_v7 = vld [vmem:[%s6184_s1 + $0x18] sm:$0xff]   ;;  %v4526_v9 = vld [vmem:[%s6184_s1 + $0x20] sm:$0xff]   ;;  %v4528_v11 = vld [vmem:[%s6184_s1 + $0x28] sm:$0xff]   ;;  %p165_p3 = scmp.lt.s32.totalorder %s164_s5, 143 }
  0x10   : > { %2244 = vmatprep.subr.bf16.mxu1 %v4937_v1  ;;  %2565 = vmatprep.subr.bf16.mxu0 %v4937_v1  ;;  %v5006_v8 = vld [vmem:[%s6184_s1 + $0x98] sm:$0xff]   ;;  %v5019_v10 = vld [vmem:[%s6184_s1 + $0xa0] sm:$0xff]   ;;  %v5030_v12 = vld [vmem:[%s6184_s1 + $0xa8] sm:$0xff]  }
  0x11   : > { %v4530_v13 = vld [vmem:[%s6184_s1 + $0x30] sm:$0xff]   ;;  %s6232_s5 = smov (!%p165_p3, %s164_s5), 143  ;;  %v4532_v15 = vld [vmem:[%s6184_s1 + $0x38] sm:$0xff]   ;;  %v4534_v17 = vld [vmem:[%s6184_s1 + $0x40] sm:$0xff]  }
  0x12   : > { %v5043_v14 = vld [vmem:[%s6184_s1 + $0xb0] sm:$0xff]   ;;  %s4508_s19 = smul.u32 28, %s6232_s5  ;;  %v5055_v16 = vld [vmem:[%s6184_s1 + $0xb8] sm:$0xff]   ;;  %v5071_v18 = vld [vmem:[%s6184_s1 + $0xc0] sm:$0xff]  }
  0x13   : > { %2245 = vmatpush1.bf16.msra.mxu1 %v4520_v3  ;;  %2566 = vmatpush1.bf16.msra.mxu0 %v4984_v4  ;;  %v4536_v20 = vld [vmem:[%s6184_s1 + $0x48] sm:$0xff]   ;;  %v4538_v23 = vld [vmem:[%s6184_s1 + $0x50] sm:$0xff]   ;;  %v4540_v25 = vld [vmem:[%s6184_s1 + $0x58] sm:$0xff]  }
  0x14   : > { %2246 = vmatprep.subr.bf16.mxu1 %v4937_v1  ;;  %2567 = vmatprep.subr.bf16.mxu0 %v4937_v1  ;;  %s5064_s26 = scalar_lea.vmem %s6183_s0, %s4508_s19  ;;  %v5084_v22 = vld [vmem:[%s6184_s1 + $0xc8] sm:$0xff]   ;;  %v5095_v24 = vld [vmem:[%s6184_s1 + $0xd0] sm:$0xff]   ;;  %v5106_v26 = vld [vmem:[%s6184_s1 + $0xd8] sm:$0xff]  }
  0x15   : > { %v4552_v19 = vld [vmem:[%s5064_s26 + $0x4] ss:$28 sps:$4 sm:$0xff]   ;;  %v4555_v21 = vld [vmem:[%s5064_s26 + $0xc] ss:$28 sps:$4 sm:$0xff]   ;;  %v4546_v31 = vld [vmem:[%s6184_s1 + $0x70] sm:$0xff]  }
  0x16   : > { %2274 = vmatprep.mubr.bf16.mxu1 %v4552_v19  ;;  %2595 = vmatprep.mubr.bf16.mxu0 %v4555_v21  ;;  %v4542_v27 = vld [vmem:[%s6184_s1 + $0x60] sm:$0xff]   ;;  %v4544_v29 = vld [vmem:[%s6184_s1 + $0x68] sm:$0xff]   ;;  %v5139_v32 = vld [vmem:[%s6184_s1 + $0xf0] sm:$0xff]  }
  0x17   : > { %2247 = vmatpush1.bf16.msra.mxu1 %v4522_v5  ;;  %2568 = vmatpush1.bf16.msra.mxu0 %v4995_v6  ;;  %v5117_v28 = vld [vmem:[%s6184_s1 + $0xe0] sm:$0xff]   ;;  %v5128_v30 = vld [vmem:[%s6184_s1 + $0xe8] sm:$0xff]   ;;  %v4548_v33 = vld [vmem:[%s6184_s1 + $0x78] sm:$0xff]  }
  0x18   : > { %2248 = vmatprep.subr.bf16.mxu1 %v4937_v1  ;;  %2569 = vmatprep.subr.bf16.mxu0 %v4937_v1  ;;  %v5150_v34 = vld [vmem:[%s6184_s1 + $0xf8] sm:$0xff]   ;;  %v4553_v36 = vld [vmem:[%s5064_s26 + $0x8] ss:$28 sps:$4 sm:$0xff]   ;;  %v4563_v43 = vld [vmem:[%s5064_s26 + $0x74] ss:$28 sps:$4 sm:$0xff]  }
  0x19   : > { %v4550_v35 = vld [vmem:[%s5064_s26] ss:$28 sps:$4 sm:$0xff]   ;;  %v4567_v40 = vld [vmem:[%s6184_s1 + $0x108] sm:$0xff]   ;;  %v4561_v41 = vld [vmem:[%s5064_s26 + $0x38] ss:$28 sps:$4 sm:$0xff]  }
  0x1a   : > { %v4556_v37 = vld [vmem:[%s6184_s1 + $0x100] sm:$0xff]   ;;  %v4557_v38 = vld [vmem:[%s5064_s26 + $0x3c] ss:$28 sps:$4 sm:$0xff]   ;;  %v4576_v45 = vld [vmem:[%s6184_s1 + $0x110] sm:$0xff]  }
  0x1b   : > { %2249 = vmatpush1.bf16.msra.mxu1 %v4524_v7  ;;  %2570 = vmatpush1.bf16.msra.mxu0 %v5006_v8  ;;  %v4559_v39 = vld [vmem:[%s5064_s26 + $0x44] ss:$28 sps:$4 sm:$0xff]   ;;  %v4565_v44 = vld [vmem:[%s5064_s26 + $0x7c] ss:$28 sps:$4 sm:$0xff]   ;;  %v4568_v47 = vld [vmem:[%s5064_s26 + $0x70] ss:$28 sps:$4 sm:$0xff]  }
  0x1c   : > { %2250 = vmatprep.subr.bf16.mxu1 %v4937_v1  ;;  %2571 = vmatprep.subr.bf16.mxu0 %v4937_v1  ;;  %v4562_v42 = vld [vmem:[%s5064_s26 + $0x40] ss:$28 sps:$4 sm:$0xff]   ;;  %v4569_v48 = vld [vmem:[%s5064_s26 + $0x78] ss:$28 sps:$4 sm:$0xff]   ;;  %v4570_v49 = vld [vmem:[%s5064_s26 + $0xac] ss:$28 sps:$4 sm:$0xff]  }
  0x1d   : > { %v4589_v46 = vld [vmem:[%s6184_s1 + $0x118] sm:$0xff]   ;;  %v4572_v50 = vld [vmem:[%s5064_s26 + $0xb4] ss:$28 sps:$4 sm:$0xff]   ;;  %v4600_v51 = vld [vmem:[%s6184_s1 + $0x120] sm:$0xff]  }
  0x1e   : > { %v4609_v52 = vld [vmem:[%s6184_s1 + $0x128] sm:$0xff]   ;;  %v4577_v55 = vld [vmem:[%s5064_s26 + $0xe4] ss:$28 sps:$4 sm:$0xff]   ;;  %v4622_v57 = vld [vmem:[%s6184_s1 + $0x130] sm:$0xff]  }
  0x1f   : > { %2251 = vmatpush1.bf16.msra.mxu1 %v4526_v9  ;;  %2572 = vmatpush1.bf16.msra.mxu0 %v5019_v10  ;;  %v4574_v53 = vld [vmem:[%s5064_s26 + $0xa8] ss:$28 sps:$4 sm:$0xff]   ;;  %v4575_v54 = vld [vmem:[%s5064_s26 + $0xb0] ss:$28 sps:$4 sm:$0xff]   ;;  %v4635_v58 = vld [vmem:[%s6184_s1 + $0x138] sm:$0xff]  }
  0x20   : > { %2252 = vmatprep.subr.bf16.mxu1 %v4937_v1  ;;  %2573 = vmatprep.subr.bf16.mxu0 %v4937_v1  ;;  %v4579_v56 = vld [vmem:[%s5064_s26 + $0xec] ss:$28 sps:$4 sm:$0xff]   ;;  %v4581_v59 = vld [vmem:[%s5064_s26 + $0xe0] ss:$28 sps:$4 sm:$0xff]   ;;  %v4587_v0 = vld [vmem:[%s5064_s26 + $0x118] ss:$28 sps:$4 sm:$0xff]  }
  0x21   : > { %v4582_v60 = vld [vmem:[%s5064_s26 + $0xe8] ss:$28 sps:$4 sm:$0xff]   ;;  %v4583_v61 = vld [vmem:[%s5064_s26 + $0x11c] ss:$28 sps:$4 sm:$0xff]   ;;  %v4594_v7 = vld [vmem:[%s5064_s26 + $0x150] ss:$28 sps:$4 sm:$0xff]  }
  0x22   : > { %v4585_v62 = vld [vmem:[%s5064_s26 + $0x124] ss:$28 sps:$4 sm:$0xff]   ;;  %v4592_v5 = vld [vmem:[%s5064_s26 + $0x15c] ss:$28 sps:$4 sm:$0xff]  }
  0x23   : > { %2253 = vmatpush1.bf16.msra.mxu1 %v4528_v11  ;;  %2574 = vmatpush1.bf16.msra.mxu0 %v5030_v12  ;;  %v4642_v63 = vld [vmem:[%s6184_s1 + $0x140] sm:$0xff]   ;;  %v4595_v9 = vld [vmem:[%s5064_s26 + $0x158] ss:$28 sps:$4 sm:$0xff]  }
  0x24   : > { %2254 = vmatprep.subr.bf16.mxu1 %v4937_v1  ;;  %2575 = vmatprep.subr.bf16.mxu0 %v4937_v1  ;;  %v4588_v3 = vld [vmem:[%s5064_s26 + $0x120] ss:$28 sps:$4 sm:$0xff]   ;;  %v4598_v11 = vld [vmem:[%s5064_s26 + $0x194] ss:$28 sps:$4 sm:$0xff]  }
  0x25   : > { %v4607_v19 = vld [vmem:[%s5064_s26 + $0x1c0] ss:$28 sps:$4 sm:$0xff]  }
  0x26   : > { %v4610_v21 = vld [vmem:[%s5064_s26 + $0x1fc] ss:$28 sps:$4 sm:$0xff]  }
  0x27   : > { %2255 = vmatpush1.bf16.msra.mxu1 %v4530_v13  ;;  %2576 = vmatpush1.bf16.msra.mxu0 %v5043_v14  ;;  %v4601_v13 = vld [vmem:[%s5064_s26 + $0x188] ss:$28 sps:$4 sm:$0xff]  }
  0x28   : > { %2256 = vmatprep.subr.bf16.mxu1 %v4937_v1  ;;  %2577 = vmatprep.subr.bf16.mxu0 %v4937_v1 }
  0x2b   : > { %2257 = vmatpush1.bf16.msra.mxu1 %v4532_v15  ;;  %2578 = vmatpush1.bf16.msra.mxu0 %v5055_v16  ;;  %v4602_v15 = vld [vmem:[%s5064_s26 + $0x190] ss:$28 sps:$4 sm:$0xff]  }
  0x2c   : > { %2258 = vmatprep.subr.bf16.mxu1 %v4937_v1  ;;  %2579 = vmatprep.subr.bf16.mxu0 %v4937_v1 }
  0x2f   : > { %2259 = vmatpush1.bf16.msra.mxu1 %v4534_v17  ;;  %2580 = vmatpush1.bf16.msra.mxu0 %v5071_v18  ;;  %v4605_v17 = vld [vmem:[%s5064_s26 + $0x1cc] ss:$28 sps:$4 sm:$0xff]  }
  0x30   : > { %2260 = vmatprep.subr.bf16.mxu1 %v4937_v1  ;;  %2581 = vmatprep.subr.bf16.mxu0 %v4937_v1 }
  0x33   : > { %2261 = vmatpush1.bf16.msra.mxu1 %v4536_v20  ;;  %2582 = vmatpush1.bf16.msra.mxu0 %v5084_v22  ;;  %v4608_v20 = vld [vmem:[%s5064_s26 + $0x1c8] ss:$28 sps:$4 sm:$0xff]  }
  0x34   : > { %2262 = vmatprep.subr.bf16.mxu1 %v4937_v1  ;;  %2583 = vmatprep.subr.bf16.mxu0 %v4937_v1 }
  0x37   : > { %2263 = vmatpush1.bf16.msra.mxu1 %v4538_v23  ;;  %2584 = vmatpush1.bf16.msra.mxu0 %v5095_v24  ;;  %v4614_v23 = vld [vmem:[%s5064_s26 + $0x1f8] ss:$28 sps:$4 sm:$0xff]  }
  0x38   : > { %2264 = vmatprep.subr.bf16.mxu1 %v4937_v1  ;;  %2585 = vmatprep.subr.bf16.mxu0 %v4937_v1 }
  0x3b   : > { %2265 = vmatpush1.bf16.msra.mxu1 %v4540_v25  ;;  %2586 = vmatpush1.bf16.msra.mxu0 %v5106_v26  ;;  %v4616_v25 = vld [vmem:[%s5064_s26 + $0x234] ss:$28 sps:$4 sm:$0xff]  }
  0x3c   : > { %2266 = vmatprep.subr.bf16.mxu1 %v4937_v1  ;;  %2587 = vmatprep.subr.bf16.mxu0 %v4937_v1 }
  0x3f   : > { %2267 = vmatpush1.bf16.msra.mxu1 %v4542_v27  ;;  %2588 = vmatpush1.bf16.msra.mxu0 %v5117_v28  ;;  %v4620_v27 = vld [vmem:[%s5064_s26 + $0x230] ss:$28 sps:$4 sm:$0xff]  }
  0x40   : > { %2268 = vmatprep.subr.bf16.mxu1 %v4937_v1  ;;  %2589 = vmatprep.subr.bf16.mxu0 %v4937_v1 }
  0x43   : > { %2269 = vmatpush1.bf16.msra.mxu1 %v4544_v29  ;;  %2590 = vmatpush1.bf16.msra.mxu0 %v5128_v30  ;;  %v4623_v29 = vld [vmem:[%s5064_s26 + $0x26c] ss:$28 sps:$4 sm:$0xff]  }
  0x44   : > { %2270 = vmatprep.subr.bf16.mxu1 %v4937_v1  ;;  %2591 = vmatprep.subr.bf16.mxu0 %v4937_v1 }
  0x47   : > { %2271 = vmatpush1.bf16.msra.mxu1 %v4546_v31  ;;  %2592 = vmatpush1.bf16.msra.mxu0 %v5139_v32  ;;  %v4627_v31 = vld [vmem:[%s5064_s26 + $0x268] ss:$28 sps:$4 sm:$0xff]  }
  0x48   : > { %2272 = vmatprep.subr.bf16.mxu1 %v4937_v1  ;;  %2593 = vmatprep.subr.bf16.mxu0 %v4937_v1 }
  0x4b   : > { %2273 = vmatpush1.bf16.msra.mxu1 %v4548_v33  ;;  %2594 = vmatpush1.bf16.msra.mxu0 %v5150_v34  ;;  %v4629_v33 = vld [vmem:[%s5064_s26 + $0x2a4] ss:$28 sps:$4 sm:$0xff]  }
  0x4c   : > { %4188 = vmatprep.subr.bf16.mxu1 %v4937_v1  ;;  %2884 = vmatprep.subr.bf16.mxu0 %v4937_v1 }
  0x4e   : > { %2275 = vmatmul.mubr.bf16.vlgmr.msra.gmra.mrb[0].mxu1 %v4550_v35  ;;  %2596 = vmatmul.mubr.bf16.vlgmr.msra.gmra.mrb[0].mxu0 %v4553_v36  ;;  %v4633_v35 = vld [vmem:[%s5064_s26 + $0x2a0] ss:$28 sps:$4 sm:$0xff]   ;;  %v4634_v36 = vld [vmem:[%s5064_s26 + $0x2a8] ss:$28 sps:$4 sm:$0xff]  }
  0x4f   : > { %4204 = vmatpush1.bf16.msra.mxu1 %v4974_v2  ;;  %2885 = vmatpush1.bf16.msra.mxu0 %v4556_v37  ;;  %v4655_v2 = vld [vmem:[%s6184_s1 + $0x148] sm:$0xff]   ;;  %v4636_v37 = vld [vmem:[%s5064_s26 + $0x2dc] ss:$28 sps:$4 sm:$0xff]  }
  0x50   : > { %2282 = vmatprep.mubr.bf16.mxu1 %v4557_v38  ;;  %2603 = vmatprep.mubr.bf16.mxu0 %v4559_v39  ;;  %v4638_v38 = vld [vmem:[%s5064_s26 + $0x2e4] ss:$28 sps:$4 sm:$0xff]   ;;  %v4640_v39 = vld [vmem:[%s5064_s26 + $0x2d8] ss:$28 sps:$4 sm:$0xff]  }
  0x51   : > { %2886 = vmatprep.subr.bf16.mxu0 %v4937_v1  ;;  %4189 = vmatprep.subr.bf16.mxu1 %v4937_v1 }
  0x53   : > { %4205 = vmatpush1.bf16.msra.mxu1 %v4984_v4  ;;  %2887 = vmatpush1.bf16.msra.mxu0 %v4567_v40  ;;  %v4590_v4 = vld [vmem:[%s5064_s26 + $0x154] ss:$28 sps:$4 sm:$0xff]   ;;  %v4641_v40 = vld [vmem:[%s5064_s26 + $0x2e0] ss:$28 sps:$4 sm:$0xff]  }
  0x54   : > { %4190 = vmatprep.subr.bf16.mxu1 %v4937_v1  ;;  %2888 = vmatprep.subr.bf16.mxu0 %v4937_v1 }
  0x56   : > { %2283 = vmatmul.mubr.bf16.gmra.mrb[4].mxu1 %v4561_v41  ;;  %2604 = vmatmul.mubr.bf16.gmra.mrb[4].mxu0 %v4562_v42  ;;  %v4643_v41 = vld [vmem:[%s5064_s26 + $0x314] ss:$28 sps:$4 sm:$0xff]   ;;  %v4645_v42 = vld [vmem:[%s5064_s26 + $0x31c] ss:$28 sps:$4 sm:$0xff]  }
  0x57   : > { %2290 = vmatprep.mubr.bf16.mxu1 %v4563_v43  ;;  %2611 = vmatprep.mubr.bf16.mxu0 %v4565_v44  ;;  %v4647_v43 = vld [vmem:[%s5064_s26 + $0x310] ss:$28 sps:$4 sm:$0xff]   ;;  %v4648_v44 = vld [vmem:[%s5064_s26 + $0x318] ss:$28 sps:$4 sm:$0xff]  }
  0x58   : > { %2889 = vmatpush1.bf16.msra.mxu0 %v4576_v45  ;;  %4206 = vmatpush1.bf16.msra.mxu1 %v4995_v6  ;;  %v4668_v6 = vld [vmem:[%s6184_s1 + $0x150] sm:$0xff]   ;;  %v4649_v45 = vld [vmem:[%s5064_s26 + $0x34c] ss:$28 sps:$4 sm:$0xff]  }
  0x59   : > { %2890 = vmatprep.subr.bf16.mxu0 %v4937_v1  ;;  %4191 = vmatprep.subr.bf16.mxu1 %v4937_v1 }
  0x5c   : > { %2891 = vmatpush1.bf16.msra.mxu0 %v4589_v46  ;;  %4207 = vmatpush1.bf16.msra.mxu1 %v5006_v8  ;;  %v4675_v8 = vld [vmem:[%s6184_s1 + $0x158] sm:$0xff]   ;;  %v4651_v46 = vld [vmem:[%s5064_s26 + $0x354] ss:$28 sps:$4 sm:$0xff]  }
  0x5d   : > { %2892 = vmatprep.subr.bf16.mxu0 %v4937_v1  ;;  %4192 = vmatprep.subr.bf16.mxu1 %v4937_v1 }
  0x5e   : > { %2291 = vmatmul.mubr.bf16.gmra.mrb[8].mxu1 %v4568_v47  ;;  %2612 = vmatmul.mubr.bf16.gmra.mrb[8].mxu0 %v4569_v48  ;;  %v4653_v47 = vld [vmem:[%s5064_s26 + $0x348] ss:$28 sps:$4 sm:$0xff]   ;;  %v4654_v48 = vld [vmem:[%s5064_s26 + $0x350] ss:$28 sps:$4 sm:$0xff]  }
  0x5f   : > { %2298 = vmatprep.mubr.bf16.mxu1 %v4570_v49  ;;  %2619 = vmatprep.mubr.bf16.mxu0 %v4572_v50  ;;  %v4656_v49 = vld [vmem:[%s5064_s26 + $0x384] ss:$28 sps:$4 sm:$0xff]   ;;  %v4658_v50 = vld [vmem:[%s5064_s26 + $0x38c] ss:$28 sps:$4 sm:$0xff]  }
  0x60   : > { %2893 = vmatpush1.bf16.msra.mxu0 %v4600_v51  ;;  %4208 = vmatpush1.bf16.msra.mxu1 %v5019_v10  ;;  %v4596_v10 = vld [vmem:[%s5064_s26 + $0x18c] ss:$28 sps:$4 sm:$0xff]   ;;  %v4660_v51 = vld [vmem:[%s5064_s26 + $0x380] ss:$28 sps:$4 sm:$0xff]  }
  0x61   : > { %2894 = vmatprep.subr.bf16.mxu0 %v4937_v1  ;;  %4193 = vmatprep.subr.bf16.mxu1 %v4937_v1 }
  0x64   : > { %2895 = vmatpush1.bf16.msra.mxu0 %v4609_v52  ;;  %4209 = vmatpush1.bf16.msra.mxu1 %v5030_v12  ;;  %v4688_v12 = vld [vmem:[%s6184_s1 + $0x160] sm:$0xff]  }
  0x65   : > { %2896 = vmatprep.subr.bf16.mxu0 %v4937_v1  ;;  %4194 = vmatprep.subr.bf16.mxu1 %v4937_v1  ;;  %v4661_v52 = vld [vmem:[%s5064_s26 + $0x388] ss:$28 sps:$4 sm:$0xff]  }
  0x66   : > { %2299 = vmatmul.mubr.bf16.gmra.mrb[12].mxu1 %v4574_v53  ;;  %2620 = vmatmul.mubr.bf16.gmra.mrb[12].mxu0 %v4575_v54  ;;  %v4662_v53 = vld [vmem:[%s5064_s26 + $0x3bc] ss:$28 sps:$4 sm:$0xff]   ;;  %v4664_v54 = vld [vmem:[%s5064_s26 + $0x3c4] ss:$28 sps:$4 sm:$0xff]  }
  0x67   : > { %2306 = vmatprep.mubr.bf16.mxu1 %v4577_v55  ;;  %2627 = vmatprep.mubr.bf16.mxu0 %v4579_v56  ;;  %v4666_v55 = vld [vmem:[%s5064_s26 + $0x3b8] ss:$28 sps:$4 sm:$0xff]   ;;  %v4667_v56 = vld [vmem:[%s5064_s26 + $0x3c0] ss:$28 sps:$4 sm:$0xff]  }
  0x68   : > { %2897 = vmatpush1.bf16.msra.mxu0 %v4622_v57  ;;  %4210 = vmatpush1.bf16.msra.mxu1 %v5043_v14  ;;  %v4701_v14 = vld [vmem:[%s6184_s1 + $0x168] sm:$0xff]   ;;  %v4669_v57 = vld [vmem:[%s5064_s26 + $0x3f4] ss:$28 sps:$4 sm:$0xff]  }
  0x69   : > { %2898 = vmatprep.subr.bf16.mxu0 %v4937_v1  ;;  %4195 = vmatprep.subr.bf16.mxu1 %v4937_v1 }
  0x6c   : > { %2899 = vmatpush1.bf16.msra.mxu0 %v4635_v58  ;;  %4211 = vmatpush1.bf16.msra.mxu1 %v5055_v16  ;;  %v4603_v16 = vld [vmem:[%s5064_s26 + $0x1c4] ss:$28 sps:$4 sm:$0xff]   ;;  %v4671_v58 = vld [vmem:[%s5064_s26 + $0x3fc] ss:$28 sps:$4 sm:$0xff]  }
  0x6d   : > { %2900 = vmatprep.subr.bf16.mxu0 %v4937_v1  ;;  %4196 = vmatprep.subr.bf16.mxu1 %v4937_v1 }
  0x6e   : > { %2307 = vmatmul.mubr.bf16.gmra.mrb[16].mxu1 %v4581_v59  ;;  %2628 = vmatmul.mubr.bf16.gmra.mrb[16].mxu0 %v4582_v60  ;;  %v4673_v59 = vld [vmem:[%s5064_s26 + $0x3f0] ss:$28 sps:$4 sm:$0xff]   ;;  %v4674_v60 = vld [vmem:[%s5064_s26 + $0x3f8] ss:$28 sps:$4 sm:$0xff]  }
  0x6f   : > { %2314 = vmatprep.mubr.bf16.mxu1 %v4583_v61  ;;  %2635 = vmatprep.mubr.bf16.mxu0 %v4585_v62  ;;  %v4676_v61 = vld [vmem:[%s5064_s26 + $0x42c] ss:$28 sps:$4 sm:$0xff]   ;;  %v4678_v62 = vld [vmem:[%s5064_s26 + $0x434] ss:$28 sps:$4 sm:$0xff]  }
  0x70   : > { %2901 = vmatpush1.bf16.msra.mxu0 %v4642_v63  ;;  %4212 = vmatpush1.bf16.msra.mxu1 %v5071_v18  ;;  %v4708_v18 = vld [vmem:[%s6184_s1 + $0x170] sm:$0xff]   ;;  %v4680_v63 = vld [vmem:[%s5064_s26 + $0x428] ss:$28 sps:$4 sm:$0xff]  }
  0x71   : > { %2902 = vmatprep.subr.bf16.mxu0 %v4937_v1  ;;  %4197 = vmatprep.subr.bf16.mxu1 %v4937_v1 }
  0x74   : > { %2903 = vmatpush1.bf16.msra.mxu0 %v4655_v2  ;;  %4213 = vmatpush1.bf16.msra.mxu1 %v5084_v22  ;;  %v4612_v22 = vld [vmem:[%s5064_s26 + $0x204] ss:$28 sps:$4 sm:$0xff]  }
  0x75   : > { %2904 = vmatprep.subr.bf16.mxu0 %v4937_v1  ;;  %4198 = vmatprep.subr.bf16.mxu1 %v4937_v1  ;;  %v4682_v2 = vld [vmem:[%s5064_s26 + $0x464] ss:$28 sps:$4 sm:$0xff]  }
  0x76   : > { %2315 = vmatmul.mubr.bf16.gmra.mrb[20].mxu1 %v4587_v0  ;;  %2636 = vmatmul.mubr.bf16.gmra.mrb[20].mxu0 %v4588_v3  ;;  %v4681_v0 = vld [vmem:[%s5064_s26 + $0x430] ss:$28 sps:$4 sm:$0xff]  }
  0x77   : > { %2322 = vmatprep.mubr.bf16.mxu1 %v4590_v4  ;;  %2643 = vmatprep.mubr.bf16.mxu0 %v4592_v5  ;;  %v4684_v3 = vld [vmem:[%s5064_s26 + $0x46c] ss:$28 sps:$4 sm:$0xff]   ;;  %v4686_v4 = vld [vmem:[%s5064_s26 + $0x460] ss:$28 sps:$4 sm:$0xff]  }
  0x78   : > { %2905 = vmatpush1.bf16.msra.mxu0 %v4668_v6  ;;  %4214 = vmatpush1.bf16.msra.mxu1 %v5095_v24  ;;  %v4615_v24 = vld [vmem:[%s5064_s26 + $0x200] ss:$28 sps:$4 sm:$0xff]   ;;  %v4687_v5 = vld [vmem:[%s5064_s26 + $0x468] ss:$28 sps:$4 sm:$0xff]  }
  0x79   : > { %2906 = vmatprep.subr.bf16.mxu0 %v4937_v1  ;;  %4199 = vmatprep.subr.bf16.mxu1 %v4937_v1  ;;  %v4689_v6 = vld [vmem:[%s5064_s26 + $0x49c] ss:$28 sps:$4 sm:$0xff]  }
  0x7c   : > { %2907 = vmatpush1.bf16.msra.mxu0 %v4675_v8  ;;  %4215 = vmatpush1.bf16.msra.mxu1 %v5106_v26  ;;  %v4618_v26 = vld [vmem:[%s5064_s26 + $0x23c] ss:$28 sps:$4 sm:$0xff]   ;;  %v5337_v8 = vld [vmem:[%s6184_s1 + $0x180] sm:$0xff]  }
  0x7d   : > { %2908 = vmatprep.subr.bf16.mxu0 %v4937_v1  ;;  %4200 = vmatprep.subr.bf16.mxu1 %v4937_v1 }
  0x7e   : > { %2323 = vmatmul.mubr.bf16.gmra.mrb[24].mxu1 %v4594_v7  ;;  %2644 = vmatmul.mubr.bf16.gmra.mrb[24].mxu0 %v4595_v9  ;;  %v4691_v7 = vld [vmem:[%s5064_s26 + $0x4a4] ss:$28 sps:$4 sm:$0xff]   ;;  %v4693_v9 = vld [vmem:[%s5064_s26 + $0x498] ss:$28 sps:$4 sm:$0xff]  }
  0x7f   : > { %2330 = vmatprep.mubr.bf16.mxu1 %v4596_v10  ;;  %2651 = vmatprep.mubr.bf16.mxu0 %v4598_v11  ;;  %v4694_v10 = vld [vmem:[%s5064_s26 + $0x4a0] ss:$28 sps:$4 sm:$0xff]   ;;  %v4695_v11 = vld [vmem:[%s5064_s26 + $0x4d4] ss:$28 sps:$4 sm:$0xff]  }
  0x80   : > { %2909 = vmatpush1.bf16.msra.mxu0 %v4688_v12  ;;  %4216 = vmatpush1.bf16.msra.mxu1 %v5117_v28  ;;  %v4621_v28 = vld [vmem:[%s5064_s26 + $0x238] ss:$28 sps:$4 sm:$0xff]  }
  0x81   : > { %2910 = vmatprep.subr.bf16.mxu0 %v4937_v1  ;;  %4201 = vmatprep.subr.bf16.mxu1 %v4937_v1  ;;  %v4697_v12 = vld [vmem:[%s5064_s26 + $0x4dc] ss:$28 sps:$4 sm:$0xff]  }
  0x84   : > { %2911 = vmatpush1.bf16.msra.mxu0 %v4701_v14  ;;  %4217 = vmatpush1.bf16.msra.mxu1 %v5128_v30  ;;  %v4625_v30 = vld [vmem:[%s5064_s26 + $0x274] ss:$28 sps:$4 sm:$0xff]  }
  0x85   : > { %2912 = vmatprep.subr.bf16.mxu0 %v4937_v1  ;;  %4202 = vmatprep.subr.bf16.mxu1 %v4937_v1  ;;  %v4700_v14 = vld [vmem:[%s5064_s26 + $0x4d8] ss:$28 sps:$4 sm:$0xff]  }
  0x86   : > { %2331 = vmatmul.mubr.bf16.gmra.mrb[28].mxu1 %v4601_v13  ;;  %2652 = vmatmul.mubr.bf16.gmra.mrb[28].mxu0 %v4602_v15  ;;  %v4699_v13 = vld [vmem:[%s5064_s26 + $0x4d0] ss:$28 sps:$4 sm:$0xff]  }
  0x87   : > { %2338 = vmatprep.mubr.bf16.mxu1 %v4603_v16  ;;  %2659 = vmatprep.mubr.bf16.mxu0 %v4605_v17  ;;  %v4702_v15 = vld [vmem:[%s5064_s26 + $0x50c] ss:$28 sps:$4 sm:$0xff]   ;;  %v4704_v16 = vld [vmem:[%s5064_s26 + $0x514] ss:$28 sps:$4 sm:$0xff]  }
  0x88   : > { %2913 = vmatpush1.bf16.msra.mxu0 %v4708_v18  ;;  %4218 = vmatpush1.bf16.msra.mxu1 %v5139_v32  ;;  %v4628_v32 = vld [vmem:[%s5064_s26 + $0x270] ss:$28 sps:$4 sm:$0xff]   ;;  %v4706_v17 = vld [vmem:[%s5064_s26 + $0x508] ss:$28 sps:$4 sm:$0xff]  }
  0x89   : > { %2914 = vmatprep.subr.bf16.mxu0 %v4937_v1  ;;  %4203 = vmatprep.subr.bf16.mxu1 %v4937_v1  ;;  %v4721_v1 = vld [vmem:[%s6184_s1 + $0x178] sm:$0xff]   ;;  %v4707_v18 = vld [vmem:[%s5064_s26 + $0x510] ss:$28 sps:$4 sm:$0xff]  }
  0x8c   : > { %4219 = vmatpush1.bf16.msra.mxu1 %v5150_v34  ;;  %2915 = vmatpush1.bf16.msra.mxu0 %v4721_v1  ;;  %v4631_v34 = vld [vmem:[%s5064_s26 + $0x2ac] ss:$28 sps:$4 sm:$0xff]   ;;  %v4722_v1 = vld [vmem:[%s5064_s26 + $0x5b4] ss:$28 sps:$4 sm:$0xff]  }
  0x8d   : > { %4112 = vmatprep.subr.bf16.mxu1 %v5337_v8 }
  0x8e   : > { %2339 = vmatmul.mubr.bf16.gmra.mrb[32].mxu1 %v4607_v19  ;;  %2660 = vmatmul.mubr.bf16.gmra.mrb[32].mxu0 %v4608_v20  ;;  %v4709_v19 = vld [vmem:[%s5064_s26 + $0x544] ss:$28 sps:$4 sm:$0xff]   ;;  %v4711_v20 = vld [vmem:[%s5064_s26 + $0x54c] ss:$28 sps:$4 sm:$0xff]  }
  0x8f   : > { %2346 = vmatprep.mubr.bf16.mxu1 %v4610_v21  ;;  %2667 = vmatprep.mubr.bf16.mxu0 %v4612_v22  ;;  %v4713_v21 = vld [vmem:[%s5064_s26 + $0x540] ss:$28 sps:$4 sm:$0xff]   ;;  %v4714_v22 = vld [vmem:[%s5064_s26 + $0x548] ss:$28 sps:$4 sm:$0xff]  }
  0x96   : > { %2347 = vmatmul.mubr.bf16.gmra.mrb[36].mxu1 %v4614_v23  ;;  %2668 = vmatmul.mubr.bf16.gmra.mrb[36].mxu0 %v4615_v24  ;;  %v4715_v23 = vld [vmem:[%s5064_s26 + $0x57c] ss:$28 sps:$4 sm:$0xff]   ;;  %v4717_v24 = vld [vmem:[%s5064_s26 + $0x584] ss:$28 sps:$4 sm:$0xff]  }
  0x97   : > { %2354 = vmatprep.mubr.bf16.mxu1 %v4616_v25  ;;  %2675 = vmatprep.mubr.bf16.mxu0 %v4618_v26  ;;  %v4719_v25 = vld [vmem:[%s5064_s26 + $0x578] ss:$28 sps:$4 sm:$0xff]   ;;  %v4720_v26 = vld [vmem:[%s5064_s26 + $0x580] ss:$28 sps:$4 sm:$0xff]  }
  0x9e   : > { %2355 = vmatmul.mubr.bf16.gmra.mrb[40].mxu1 %v4620_v27  ;;  %2676 = vmatmul.mubr.bf16.gmra.mrb[40].mxu0 %v4621_v28  ;;  %v4724_v27 = vld [vmem:[%s5064_s26 + $0x5bc] ss:$28 sps:$4 sm:$0xff]   ;;  %v4726_v28 = vld [vmem:[%s5064_s26 + $0x5b0] ss:$28 sps:$4 sm:$0xff]  }
  0x9f   : > { %2362 = vmatprep.mubr.bf16.mxu1 %v4623_v29  ;;  %2683 = vmatprep.mubr.bf16.mxu0 %v4625_v30  ;;  %v4727_v29 = vld [vmem:[%s5064_s26 + $0x5b8] ss:$28 sps:$4 sm:$0xff]   ;;  %v4728_v30 = vld [vmem:[%s5064_s26 + $0x5ec] ss:$28 sps:$4 sm:$0xff]  }
  0xa6   : > { %2363 = vmatmul.mubr.bf16.gmra.mrb[44].mxu1 %v4627_v31  ;;  %2684 = vmatmul.mubr.bf16.gmra.mrb[44].mxu0 %v4628_v32  ;;  %v4732_v31 = vld [vmem:[%s5064_s26 + $0x14] ss:$28 sps:$4 sm:$0xff]  }
  0xa7   : > { %2370 = vmatprep.mubr.bf16.mxu1 %v4629_v33  ;;  %2691 = vmatprep.mubr.bf16.mxu0 %v4631_v34  ;;  %v4733_v34 = vld [vmem:[%s5064_s26 + $0x5e8] ss:$28 sps:$4 sm:$0xff]  }
  0xae   : > { %2371 = vmatmul.mubr.bf16.gmra.mrb[48].mxu1 %v4633_v35  ;;  %2692 = vmatmul.mubr.bf16.gmra.mrb[48].mxu0 %v4634_v36  ;;  %v4730_v36 = vld [vmem:[%s5064_s26 + $0x10] ss:$28 sps:$4 sm:$0xff]  }
  0xaf   : > { %2378 = vmatprep.mubr.bf16.mxu1 %v4636_v37  ;;  %2699 = vmatprep.mubr.bf16.mxu0 %v4638_v38  ;;  %v4734_v37 = vld [vmem:[%s5064_s26 + $0x624] ss:$28 sps:$4 sm:$0xff]  }
  0xb6   : > { %2379 = vmatmul.mubr.bf16.gmra.mrb[52].mxu1 %v4640_v39  ;;  %2700 = vmatmul.mubr.bf16.gmra.mrb[52].mxu0 %v4641_v40  ;;  %v4736_v39 = vld [vmem:[%s5064_s26 + $0x4c] ss:$28 sps:$4 sm:$0xff]  }
  0xb7   : > { %2386 = vmatprep.mubr.bf16.mxu1 %v4643_v41  ;;  %2707 = vmatprep.mubr.bf16.mxu0 %v4645_v42  ;;  %v4738_v42 = vld [vmem:[%s5064_s26 + $0x620] ss:$28 sps:$4 sm:$0xff]  }
  0xbe   : > { %2387 = vmatmul.mubr.bf16.gmra.mrb[56].mxu1 %v4647_v43  ;;  %2708 = vmatmul.mubr.bf16.gmra.mrb[56].mxu0 %v4648_v44  ;;  %v4739_v44 = vld [vmem:[%s5064_s26 + $0x48] ss:$28 sps:$4 sm:$0xff]  }
  0xbf   : > { %2394 = vmatprep.mubr.bf16.mxu1 %v4649_v45  ;;  %2715 = vmatprep.mubr.bf16.mxu0 %v4651_v46  ;;  %v4740_v45 = vld [vmem:[%s5064_s26 + $0x65c] ss:$28 sps:$4 sm:$0xff]  }
  0xc6   : > { %2395 = vmatmul.mubr.bf16.gmra.mrb[60].mxu1 %v4653_v47  ;;  %2716 = vmatmul.mubr.bf16.gmra.mrb[60].mxu0 %v4654_v48  ;;  %v4742_v47 = vld [vmem:[%s5064_s26 + $0x84] ss:$28 sps:$4 sm:$0xff]  }
  0xc7   : > { %2402 = vmatprep.mubr.bf16.mxu1 %v4656_v49  ;;  %2723 = vmatprep.mubr.bf16.mxu0 %v4658_v50  ;;  %v4744_v50 = vld [vmem:[%s5064_s26 + $0x658] ss:$28 sps:$4 sm:$0xff]  }
  0xce   : > { %2403 = vmatmul.mubr.bf16.gmra.mrb[64].mxu1 %v4660_v51  ;;  %2724 = vmatmul.mubr.bf16.gmra.mrb[64].mxu0 %v4661_v52  ;;  %v4745_v52 = vld [vmem:[%s5064_s26 + $0x80] ss:$28 sps:$4 sm:$0xff]  }
  0xcf   : > { %2410 = vmatprep.mubr.bf16.mxu1 %v4662_v53  ;;  %2731 = vmatprep.mubr.bf16.mxu0 %v4664_v54  ;;  %v4746_v53 = vld [vmem:[%s5064_s26 + $0x694] ss:$28 sps:$4 sm:$0xff]  }
  0xd6   : > { %2411 = vmatmul.mubr.bf16.gmra.mrb[68].mxu1 %v4666_v55  ;;  %2732 = vmatmul.mubr.bf16.gmra.mrb[68].mxu0 %v4667_v56  ;;  %v4748_v55 = vld [vmem:[%s5064_s26 + $0xbc] ss:$28 sps:$4 sm:$0xff]  }
  0xd7   : > { %2418 = vmatprep.mubr.bf16.mxu1 %v4669_v57  ;;  %2739 = vmatprep.mubr.bf16.mxu0 %v4671_v58  ;;  %v4750_v58 = vld [vmem:[%s5064_s26 + $0x690] ss:$28 sps:$4 sm:$0xff]  }
  0xde   : > { %2419 = vmatmul.mubr.bf16.gmra.mrb[72].mxu1 %v4673_v59  ;;  %2740 = vmatmul.mubr.bf16.gmra.mrb[72].mxu0 %v4674_v60  ;;  %v4751_v60 = vld [vmem:[%s5064_s26 + $0xb8] ss:$28 sps:$4 sm:$0xff]  }
  0xdf   : > { %2426 = vmatprep.mubr.bf16.mxu1 %v4676_v61  ;;  %2747 = vmatprep.mubr.bf16.mxu0 %v4678_v62  ;;  %v4752_v61 = vld [vmem:[%s5064_s26 + $0x6cc] ss:$28 sps:$4 sm:$0xff]  }
  0xe6   : > { %2427 = vmatmul.mubr.bf16.gmra.mrb[76].mxu1 %v4680_v63  ;;  %2748 = vmatmul.mubr.bf16.gmra.mrb[76].mxu0 %v4681_v0  ;;  %v4754_v63 = vld [vmem:[%s5064_s26 + $0xf4] ss:$28 sps:$4 sm:$0xff]  }
  0xe7   : > { %2434 = vmatprep.mubr.bf16.mxu1 %v4682_v2  ;;  %2755 = vmatprep.mubr.bf16.mxu0 %v4684_v3  ;;  %v4756_v3 = vld [vmem:[%s5064_s26 + $0x6c8] ss:$28 sps:$4 sm:$0xff]  }
  0xee   : > { %2435 = vmatmul.mubr.bf16.gmra.mrb[80].mxu1 %v4686_v4  ;;  %2756 = vmatmul.mubr.bf16.gmra.mrb[80].mxu0 %v4687_v5  ;;  %v4757_v5 = vld [vmem:[%s5064_s26 + $0xf0] ss:$28 sps:$4 sm:$0xff]  }
  0xef   : > { %2442 = vmatprep.mubr.bf16.mxu1 %v4689_v6  ;;  %2763 = vmatprep.mubr.bf16.mxu0 %v4691_v7  ;;  %v4758_v6 = vld [vmem:[%s5064_s26 + $0x704] ss:$28 sps:$4 sm:$0xff]  }
  0xf6   : > { %2443 = vmatmul.mubr.bf16.gmra.mrb[84].mxu1 %v4693_v9  ;;  %2764 = vmatmul.mubr.bf16.gmra.mrb[84].mxu0 %v4694_v10  ;;  %v4760_v9 = vld [vmem:[%s5064_s26 + $0x12c] ss:$28 sps:$4 sm:$0xff]  }
  0xf7   : > { %2450 = vmatprep.mubr.bf16.mxu1 %v4695_v11  ;;  %2771 = vmatprep.mubr.bf16.mxu0 %v4697_v12  ;;  %v4762_v12 = vld [vmem:[%s5064_s26 + $0x700] ss:$28 sps:$4 sm:$0xff]  }
  0xfe   : > { %2451 = vmatmul.mubr.bf16.gmra.mrb[88].mxu1 %v4699_v13  ;;  %2772 = vmatmul.mubr.bf16.gmra.mrb[88].mxu0 %v4700_v14  ;;  %v4763_v14 = vld [vmem:[%s5064_s26 + $0x128] ss:$28 sps:$4 sm:$0xff]  }
  0xff   : > { %2458 = vmatprep.mubr.bf16.mxu1 %v4702_v15  ;;  %2779 = vmatprep.mubr.bf16.mxu0 %v4704_v16  ;;  %v4764_v15 = vld [vmem:[%s5064_s26 + $0x73c] ss:$28 sps:$4 sm:$0xff]  }
 0x106   : > { %2459 = vmatmul.mubr.bf16.gmra.mrb[92].mxu1 %v4706_v17  ;;  %2780 = vmatmul.mubr.bf16.gmra.mrb[92].mxu0 %v4707_v18  ;;  %v4766_v17 = vld [vmem:[%s5064_s26 + $0x164] ss:$28 sps:$4 sm:$0xff]  }
 0x107   : > { %2466 = vmatprep.mubr.bf16.mxu1 %v4709_v19  ;;  %2787 = vmatprep.mubr.bf16.mxu0 %v4711_v20  ;;  %v4768_v20 = vld [vmem:[%s5064_s26 + $0x738] ss:$28 sps:$4 sm:$0xff]  }
 0x10e   : > { %2467 = vmatmul.mubr.bf16.gmra.mrb[96].mxu1 %v4713_v21  ;;  %2788 = vmatmul.mubr.bf16.gmra.mrb[96].mxu0 %v4714_v22  ;;  %v4769_v22 = vld [vmem:[%s5064_s26 + $0x160] ss:$28 sps:$4 sm:$0xff]  }
 0x10f   : > { %2474 = vmatprep.mubr.bf16.mxu1 %v4715_v23  ;;  %2795 = vmatprep.mubr.bf16.mxu0 %v4717_v24  ;;  %v4770_v23 = vld [vmem:[%s5064_s26 + $0x774] ss:$28 sps:$4 sm:$0xff]  }
 0x116   : > { %2475 = vmatmul.mubr.bf16.gmra.mrb[100].mxu1 %v4719_v25  ;;  %2796 = vmatmul.mubr.bf16.gmra.mrb[100].mxu0 %v4720_v26  ;;  %v4772_v25 = vld [vmem:[%s5064_s26 + $0x19c] ss:$28 sps:$4 sm:$0xff]  }
 0x117   : > { %2482 = vmatprep.mubr.bf16.mxu1 %v4722_v1  ;;  %2803 = vmatprep.mubr.bf16.mxu0 %v4724_v27  ;;  %v4774_v27 = vld [vmem:[%s5064_s26 + $0x770] ss:$28 sps:$4 sm:$0xff]  }
 0x11e   : > { %2483 = vmatmul.mubr.bf16.gmra.mrb[104].mxu1 %v4726_v28  ;;  %2804 = vmatmul.mubr.bf16.gmra.mrb[104].mxu0 %v4727_v29  ;;  %v4775_v29 = vld [vmem:[%s5064_s26 + $0x198] ss:$28 sps:$4 sm:$0xff]  }
 0x11f   : > { %2490 = vmatprep.mubr.bf16.mxu1 %v4728_v30  ;;  %2916 = vmatprep.mubr.bf16.mxu0 %v4732_v31  ;;  %v4776_v30 = vld [vmem:[%s5064_s26 + $0x7ac] ss:$28 sps:$4 sm:$0xff]  }
 0x121   : > { %v5364_v32 = vpop.f32.mrb[0].mxu1 }
 0x122   : > { %v2278_v33 = vpop.f32.mrb[1].mxu1 }
 0x123   : > { %v5367_v35 = vpop.f32.mrb[2].mxu1  ;;  %v4778_v33 = vld [vmem:[%s5064_s26 + $0x1d4] ss:$28 sps:$4 sm:$0xff]  }
 0x124   : > { %v2281_v38 = vpop.f32.mrb[3].mxu1 }
 0x126   : > { %2491 = vmatmul.mubr.bf16.gmra.mrb[108].mxu1 %v4733_v34  ;;  %2917 = vmatmul.mubr.bf16.vlgmr.msra.gmra.mrb[0].mxu0 %v4730_v36 }
 0x127   : > { %2498 = vmatprep.mubr.bf16.mxu1 %v4734_v37  ;;  %2924 = vmatprep.mubr.bf16.mxu0 %v4736_v39  ;;  %v4780_v37 = vld [vmem:[%s5064_s26 + $0x7a8] ss:$28 sps:$4 sm:$0xff]   ;;  %v4781_v39 = vld [vmem:[%s5064_s26 + $0x1d0] ss:$28 sps:$4 sm:$0xff]  }
 0x129   : > { %v5372_v40 = vpop.f32.mrb[4].mxu1 }
 0x12a   : > { %v2286_v41 = vpop.f32.mrb[5].mxu1 }
 0x12b   : > { %v5375_v43 = vpop.f32.mrb[6].mxu1  ;;  %v4784_v41 = vld [vmem:[%s5064_s26 + $0x5f4] ss:$28 sps:$4 sm:$0xff]  }
 0x12c   : > { %v2289_v46 = vpop.f32.mrb[7].mxu1 }
 0x12e   : > { %2499 = vmatmul.mubr.bf16.gmra.mrb[112].mxu1 %v4738_v42  ;;  %2925 = vmatmul.mubr.bf16.gmra.mrb[4].mxu0 %v4739_v44  ;;  %v4785_v44 = vld [vmem:[%s5064_s26 + $0x20c] ss:$28 sps:$4 sm:$0xff]  }
 0x12f   : > { %2506 = vmatprep.mubr.bf16.mxu1 %v4740_v45  ;;  %2932 = vmatprep.mubr.bf16.mxu0 %v4742_v47  ;;  %v4782_v47 = vld [vmem:[%s5064_s26 + $0x5f0] ss:$28 sps:$4 sm:$0xff]  }
 0x131   : > { %v5380_v48 = vpop.f32.mrb[8].mxu1 }
 0x132   : > { %v2294_v49 = vpop.f32.mrb[9].mxu1 }
 0x133   : > { %v5383_v51 = vpop.f32.mrb[10].mxu1 }
 0x134   : > { %v2297_v54 = vpop.f32.mrb[11].mxu1 }
 0x135   : > { %v4791_v54 = vld [vmem:[%s5064_s26 + $0x244] ss:$28 sps:$4 sm:$0xff]  }
 0x136   : > { %2507 = vmatmul.mubr.bf16.gmra.mrb[116].mxu1 %v4744_v50  ;;  %2933 = vmatmul.mubr.bf16.gmra.mrb[8].mxu0 %v4745_v52  ;;  %v4787_v50 = vld [vmem:[%s5064_s26 + $0x208] ss:$28 sps:$4 sm:$0xff]  }
 0x137   : > { %2514 = vmatprep.mubr.bf16.mxu1 %v4746_v53  ;;  %2940 = vmatprep.mubr.bf16.mxu0 %v4748_v55  ;;  %v4789_v53 = vld [vmem:[%s5064_s26 + $0x62c] ss:$28 sps:$4 sm:$0xff]  }
 0x138   : > { %v4813_v55 = vld [vmem:[%s6184_s1 + $0x188] sm:$0xff]  }
 0x139   : > { %v5388_v56 = vpop.f32.mrb[12].mxu1 }
 0x13a   : > { %v2302_v57 = vpop.f32.mrb[13].mxu1 }
 0x13b   : > { %v5391_v59 = vpop.f32.mrb[14].mxu1 }
 0x13c   : > { %v2305_v62 = vpop.f32.mrb[15].mxu1 }
 0x13d   : > { %v4794_v62 = vld [vmem:[%s5064_s26 + $0x240] ss:$28 sps:$4 sm:$0xff]  }
 0x13e   : > { %2515 = vmatmul.mubr.bf16.gmra.mrb[120].mxu1 %v4750_v58  ;;  %2941 = vmatmul.mubr.bf16.gmra.mrb[12].mxu0 %v4751_v60  ;;  %v4793_v60 = vld [vmem:[%s5064_s26 + $0x628] ss:$28 sps:$4 sm:$0xff]  }
 0x13f   : > { %2522 = vmatprep.mubr.bf16.mxu1 %v4752_v61  ;;  %2948 = vmatprep.mubr.bf16.mxu0 %v4754_v63  ;;  %v4795_v63 = vld [vmem:[%s5064_s26 + $0x664] ss:$28 sps:$4 sm:$0xff]  }
 0x141   : > { %v5396_v0 = vpop.f32.mrb[16].mxu1 }
 0x142   : > { %v2310_v2 = vpop.f32.mrb[17].mxu1 }
 0x143   : > { %v5399_v4 = vpop.f32.mrb[18].mxu1 }
 0x144   : > { %v2313_v7 = vpop.f32.mrb[19].mxu1 }
 0x146   : > { %2523 = vmatmul.mubr.bf16.gmra.mrb[124].mxu1 %v4756_v3  ;;  %2949 = vmatmul.mubr.bf16.gmra.mrb[16].mxu0 %v4757_v5  ;;  %v4797_v3 = vld [vmem:[%s5064_s26 + $0x27c] ss:$28 sps:$4 sm:$0xff]  }
 0x147   : > { %2530 = vmatprep.mubr.bf16.mxu1 %v4758_v6  ;;  %2956 = vmatprep.mubr.bf16.mxu0 %v4760_v9  ;;  %v4799_v6 = vld [vmem:[%s5064_s26 + $0x660] ss:$28 sps:$4 sm:$0xff]   ;;  %v4800_v9 = vld [vmem:[%s5064_s26 + $0x278] ss:$28 sps:$4 sm:$0xff]  }
 0x149   : > { %v5404_v10 = vpop.f32.mrb[20].mxu1 }
 0x14a   : > { %v2318_v11 = vpop.f32.mrb[21].mxu1 }
 0x14b   : > { %v5407_v13 = vpop.f32.mrb[22].mxu1  ;;  %v4801_v11 = vld [vmem:[%s5064_s26 + $0x69c] ss:$28 sps:$4 sm:$0xff]  }
 0x14c   : > { %v2321_v16 = vpop.f32.mrb[23].mxu1 }
 0x14e   : > { %2531 = vmatmul.mubr.bf16.gmra.mrb[128].mxu1 %v4762_v12  ;;  %2957 = vmatmul.mubr.bf16.gmra.mrb[20].mxu0 %v4763_v14  ;;  %v4803_v14 = vld [vmem:[%s5064_s26 + $0x2b4] ss:$28 sps:$4 sm:$0xff]  }
 0x14f   : > { %2538 = vmatprep.mubr.bf16.mxu1 %v4764_v15  ;;  %2964 = vmatprep.mubr.bf16.mxu0 %v4766_v17  ;;  %v4805_v17 = vld [vmem:[%s5064_s26 + $0x698] ss:$28 sps:$4 sm:$0xff]  }
 0x151   : > { %v5412_v18 = vpop.f32.mrb[24].mxu1 }
 0x152   : > { %v2326_v19 = vpop.f32.mrb[25].mxu1 }
 0x153   : > { %v5415_v21 = vpop.f32.mrb[26].mxu1 }
 0x154   : > { %v2329_v24 = vpop.f32.mrb[27].mxu1 }
 0x155   : > { %v4809_v24 = vld [vmem:[%s5064_s26 + $0x2ec] ss:$28 sps:$4 sm:$0xff]  }
 0x156   : > { %2539 = vmatmul.mubr.bf16.gmra.mrb[132].mxu1 %v4768_v20  ;;  %2965 = vmatmul.mubr.bf16.gmra.mrb[24].mxu0 %v4769_v22  ;;  %v4806_v20 = vld [vmem:[%s5064_s26 + $0x2b0] ss:$28 sps:$4 sm:$0xff]  }
 0x157   : > { %2546 = vmatprep.mubr.bf16.mxu1 %v4770_v23  ;;  %2972 = vmatprep.mubr.bf16.mxu0 %v4772_v25  ;;  %v4807_v22 = vld [vmem:[%s5064_s26 + $0x6d4] ss:$28 sps:$4 sm:$0xff]  }
 0x159   : > { %v5420_v26 = vpop.f32.mrb[28].mxu1 }
 0x15a   : > { %v2334_v1 = vpop.f32.mrb[29].mxu1 }
 0x15b   : > { %v5423_v28 = vpop.f32.mrb[30].mxu1 }
 0x15c   : > { %v2337_v31 = vpop.f32.mrb[31].mxu1 }
 0x15d   : > { %v4814_v31 = vld [vmem:[%s5064_s26 + $0x70c] ss:$28 sps:$4 sm:$0xff]  }
 0x15e   : > { %2547 = vmatmul.mubr.bf16.gmra.mrb[136].mxu1 %v4774_v27  ;;  %2973 = vmatmul.mubr.bf16.gmra.mrb[28].mxu0 %v4775_v29  ;;  %v4811_v27 = vld [vmem:[%s5064_s26 + $0x6d0] ss:$28 sps:$4 sm:$0xff]  }
 0x15f   : > { %2554 = vmatprep.mubr.bf16.mxu1 %v4776_v30  ;;  %2980 = vmatprep.mubr.bf16.mxu0 %v4778_v33  ;;  %v4812_v30 = vld [vmem:[%s5064_s26 + $0x2e8] ss:$28 sps:$4 sm:$0xff]  }
 0x161   : > { %v5428_v34 = vpop.f32.mrb[32].mxu1 }
 0x162   : > { %v2342_v36 = vpop.f32.mrb[33].mxu1 }
 0x163   : > { %v5431_v38 = vpop.f32.mrb[34].mxu1  ;;  %v4816_v36 = vld [vmem:[%s5064_s26 + $0x324] ss:$28 sps:$4 sm:$0xff]  }
 0x164   : > { %v2345_v42 = vpop.f32.mrb[35].mxu1 }
 0x166   : > { %2555 = vmatmul.mubr.bf16.gmra.mrb[140].mxu1 %v4780_v37  ;;  %2981 = vmatmul.mubr.bf16.gmra.mrb[32].mxu0 %v4781_v39 }
 0x167   : > { %2811 = vmatprep.mubr.bf16.mxu1 %v4784_v41  ;;  %2988 = vmatprep.mubr.bf16.mxu0 %v4785_v44  ;;  %v4818_v41 = vld [vmem:[%s5064_s26 + $0x708] ss:$28 sps:$4 sm:$0xff]   ;;  %v4819_v44 = vld [vmem:[%s5064_s26 + $0x320] ss:$28 sps:$4 sm:$0xff]  }
 0x169   : > { %v5436_v45 = vpop.f32.mrb[36].mxu1 }
 0x16a   : > { %v2350_v46 = vpop.f32.mrb[37].mxu1 }
 0x16b   : > { %v5439_v49 = vpop.f32.mrb[38].mxu1  ;;  %v4820_v46 = vld [vmem:[%s5064_s26 + $0x744] ss:$28 sps:$4 sm:$0xff]  }
 0x16c   : > { %v2353_v52 = vpop.f32.mrb[39].mxu1 }
 0x16e   : > { %2812 = vmatmul.mubr.bf16.vlgmr.msra.gmra.mrb[108].mxu1 %v4782_v47  ;;  %2989 = vmatmul.mubr.bf16.gmra.mrb[36].mxu0 %v4787_v50  ;;  %v4822_v50 = vld [vmem:[%s5064_s26 + $0x35c] ss:$28 sps:$4 sm:$0xff]  }
 0x16f   : > { %4113 = vmatpush3.bf16.msra.mxu1 %v5337_v8  ;;  %2819 = vmatprep.mubr.bf16.mxu1 %v4789_v53 }
 0x170   : > { %2996 = vmatprep.mubr.bf16.mxu0 %v4791_v54  ;;  %4114 = vmatprep.subr.bf16.mxu1 %v4813_v55  ;;  %v4824_v54 = vld [vmem:[%s5064_s26 + $0x740] ss:$28 sps:$4 sm:$0xff]  }
 0x171   : > { %v5448_v57 = vpop.f32.mrb[40].mxu1 }
 0x172   : > { %v2358_v58 = vpop.f32.mrb[41].mxu1 }
 0x173   : > { %v5451_v61 = vpop.f32.mrb[42].mxu1  ;;  %4115 = vmatpush3.bf16.msra.mxu1 %v4813_v55  ;;  %v4825_v58 = vld [vmem:[%s5064_s26 + $0x358] ss:$28 sps:$4 sm:$0xff]  }
 0x174   : > { %v2361_v2 = vpop.f32.mrb[43].mxu1 }
 0x176   : > { %2820 = vmatmul.mubr.bf16.gmra.mrb[112].mxu1 %v4793_v60  ;;  %2997 = vmatmul.mubr.bf16.gmra.mrb[40].mxu0 %v4794_v62  ;;  %v4826_v60 = vld [vmem:[%s5064_s26 + $0x77c] ss:$28 sps:$4 sm:$0xff]  }
 0x177   : > { %2827 = vmatprep.mubr.bf16.mxu1 %v4795_v63  ;;  %3004 = vmatprep.mubr.bf16.mxu0 %v4797_v3  ;;  %v4828_v63 = vld [vmem:[%s5064_s26 + $0x394] ss:$28 sps:$4 sm:$0xff]  }
 0x179   : > { %v5456_v8 = vpop.f32.mrb[44].mxu1 }
 0x17a   : > { %v2366_v5 = vpop.f32.mrb[45].mxu1 }
 0x17b   : > { %v5459_v7 = vpop.f32.mrb[46].mxu1  ;;  %v4830_v5 = vld [vmem:[%s5064_s26 + $0x778] ss:$28 sps:$4 sm:$0xff]  }
 0x17c   : > { %v2369_v12 = vpop.f32.mrb[47].mxu1 }
 0x17e   : > { %2828 = vmatmul.mubr.bf16.gmra.mrb[116].mxu1 %v4799_v6  ;;  %3005 = vmatmul.mubr.bf16.gmra.mrb[44].mxu0 %v4800_v9  ;;  %v4831_v9 = vld [vmem:[%s5064_s26 + $0x390] ss:$28 sps:$4 sm:$0xff]  }
 0x17f   : > { %2835 = vmatprep.mubr.bf16.mxu1 %v4801_v11  ;;  %3012 = vmatprep.mubr.bf16.mxu0 %v4803_v14  ;;  %v4832_v11 = vld [vmem:[%s5064_s26 + $0x7b4] ss:$28 sps:$4 sm:$0xff]   ;;  %v4834_v14 = vld [vmem:[%s5064_s26 + $0x3cc] ss:$28 sps:$4 sm:$0xff]  }
 0x181   : > { %v5464_v15 = vpop.f32.mrb[48].mxu1 }
 0x182   : > { %v2374_v16 = vpop.f32.mrb[49].mxu1 }
 0x183   : > { %v5467_v19 = vpop.f32.mrb[50].mxu1 }
 0x184   : > { %v2377_v23 = vpop.f32.mrb[51].mxu1 }
 0x185   : > { %v4837_v23 = vld [vmem:[%s5064_s26 + $0x3c8] ss:$28 sps:$4 sm:$0xff]  }
 0x186   : > { %2836 = vmatmul.mubr.bf16.gmra.mrb[120].mxu1 %v4805_v17  ;;  %3013 = vmatmul.mubr.bf16.gmra.mrb[48].mxu0 %v4806_v20  ;;  %v4836_v20 = vld [vmem:[%s5064_s26 + $0x7b0] ss:$28 sps:$4 sm:$0xff]  }
 0x187   : > { %2843 = vmatprep.mubr.bf16.mxu1 %v4807_v22  ;;  %3020 = vmatprep.mubr.bf16.mxu0 %v4809_v24  ;;  %v4840_v24 = vld [vmem:[%s5064_s26 + $0x18] ss:$28 sps:$4 sm:$0xff]  }
 0x189   : > { %v5472_v25 = vpop.f32.mrb[52].mxu1 }
 0x18a   : > { %v2382_v1 = vpop.f32.mrb[53].mxu1 }
 0x18b   : > { %v5475_v29 = vpop.f32.mrb[54].mxu1 }
 0x18c   : > { %v2385_v33 = vpop.f32.mrb[55].mxu1 }
 0x18d   : > { %v4842_v33 = vld [vmem:[%s5064_s26 + $0x50] ss:$28 sps:$4 sm:$0xff]  }
 0x18e   : > { %2844 = vmatmul.mubr.bf16.gmra.mrb[124].mxu1 %v4811_v27  ;;  %3021 = vmatmul.mubr.bf16.gmra.mrb[52].mxu0 %v4812_v30  ;;  %v4838_v27 = vld [vmem:[%s5064_s26 + $0x404] ss:$28 sps:$4 sm:$0xff]  }
 0x18f   : > { %2851 = vmatprep.mubr.bf16.mxu1 %v4814_v31  ;;  %3028 = vmatprep.mubr.bf16.mxu0 %v4816_v36 }
 0x191   : > { %v5480_v37 = vpop.f32.mrb[56].mxu1 }
 0x192   : > { %v2390_v39 = vpop.f32.mrb[57].mxu1 }
 0x193   : > { %v5483_v42 = vpop.f32.mrb[58].mxu1  ;;  %v4841_v39 = vld [vmem:[%s5064_s26 + $0x400] ss:$28 sps:$4 sm:$0xff]  }
 0x194   : > { %v2393_v47 = vpop.f32.mrb[59].mxu1 }
 0x196   : > { %2852 = vmatmul.mubr.bf16.gmra.mrb[128].mxu1 %v4818_v41  ;;  %3029 = vmatmul.mubr.bf16.gmra.mrb[56].mxu0 %v4819_v44  ;;  %v4845_v41 = vld [vmem:[%s5064_s26 + $0x88] ss:$28 sps:$4 sm:$0xff]  }
 0x197   : > { %2859 = vmatprep.mubr.bf16.mxu1 %v4820_v46  ;;  %3036 = vmatprep.mubr.bf16.mxu0 %v4822_v50  ;;  %v4843_v46 = vld [vmem:[%s5064_s26 + $0x43c] ss:$28 sps:$4 sm:$0xff]  }
 0x199   : > { %v5488_v52 = vpop.f32.mrb[60].mxu1 }
 0x19a   : > { %v2398_v53 = vpop.f32.mrb[61].mxu1 }
 0x19b   : > { %v5491_v55 = vpop.f32.mrb[62].mxu1  ;;  %v4847_v53 = vld [vmem:[%s5064_s26 + $0xc0] ss:$28 sps:$4 sm:$0xff]  }
 0x19c   : > { %v2401_v62 = vpop.f32.mrb[63].mxu1 }
 0x19e   : > { %2860 = vmatmul.mubr.bf16.gmra.mrb[132].mxu1 %v4824_v54  ;;  %3037 = vmatmul.mubr.bf16.gmra.mrb[60].mxu0 %v4825_v58  ;;  %v4846_v58 = vld [vmem:[%s5064_s26 + $0x438] ss:$28 sps:$4 sm:$0xff]  }
 0x19f   : > { %2867 = vmatprep.mubr.bf16.mxu1 %v4826_v60  ;;  %3044 = vmatprep.mubr.bf16.mxu0 %v4828_v63  ;;  %v4850_v60 = vld [vmem:[%s5064_s26 + $0xf8] ss:$28 sps:$4 sm:$0xff]  }
 0x1a0   : > { %v4848_v63 = vld [vmem:[%s5064_s26 + $0x474] ss:$28 sps:$4 sm:$0xff]  }
 0x1a1   : > { %v5496_v2 = vpop.f32.mrb[64].mxu1 }
 0x1a2   : > { %v2406_v3 = vpop.f32.mrb[65].mxu1 }
 0x1a3   : > { %v5499_v6 = vpop.f32.mrb[66].mxu1 }
 0x1a4   : > { %v2409_v12 = vpop.f32.mrb[67].mxu1 }
 0x1a5   : > { %v4851_v12 = vld [vmem:[%s5064_s26 + $0x470] ss:$28 sps:$4 sm:$0xff]  }
 0x1a6   : > { %2868 = vmatmul.mubr.bf16.gmra.mrb[136].mxu1 %v4830_v5  ;;  %3045 = vmatmul.mubr.bf16.gmra.mrb[64].mxu0 %v4831_v9  ;;  %v4852_v9 = vld [vmem:[%s5064_s26 + $0x130] ss:$28 sps:$4 sm:$0xff]  }
 0x1a7   : > { %2875 = vmatprep.mubr.bf16.mxu1 %v4832_v11  ;;  %3052 = vmatprep.mubr.bf16.mxu0 %v4834_v14  ;;  %v4855_v14 = vld [vmem:[%s5064_s26 + $0x168] ss:$28 sps:$4 sm:$0xff]  }
 0x1a9   : > { %v5504_v16 = vpop.f32.mrb[68].mxu1 }
 0x1aa   : > { %v2414_v17 = vpop.f32.mrb[69].mxu1 }
 0x1ab   : > { %v5507_v22 = vpop.f32.mrb[70].mxu1 }
 0x1ac   : > { %v2417_v1 = vpop.f32.mrb[71].mxu1 }
 0x1ad   : > { %v4857_v1 = vld [vmem:[%s5064_s26 + $0x1a0] ss:$28 sps:$4 sm:$0xff]  }
 0x1ae   : > { %2876 = vmatmul.mubr.bf16.gmra.mrb[140].mxu1 %v4836_v20  ;;  %3053 = vmatmul.mubr.bf16.gmra.mrb[68].mxu0 %v4837_v23  ;;  %v4853_v20 = vld [vmem:[%s5064_s26 + $0x4ac] ss:$28 sps:$4 sm:$0xff]  }
 0x1af   : > { %4116 = vmatprep.mubr.msk.bf16.mxu1 %vm2133_vm0, %v4840_v24  ;;  %3060 = vmatprep.mubr.bf16.mxu0 %v4838_v27 }
 0x1b1   : > { %v5513_v30 = vpop.f32.mrb[72].mxu1 }
 0x1b2   : > { %v2422_v31 = vpop.f32.mrb[73].mxu1 }
 0x1b3   : > { %v5516_v36 = vpop.f32.mrb[74].mxu1  ;;  %v4856_v31 = vld [vmem:[%s5064_s26 + $0x4a8] ss:$28 sps:$4 sm:$0xff]  }
 0x1b4   : > { %v2425_v44 = vpop.f32.mrb[75].mxu1 }
 0x1b6   : > { %4117 = vmatmul.mubr.msk.bf16.vlgmr.msra.gmra.mrb[144].mxu1 %vm2133_vm0, %v4842_v33  ;;  %3061 = vmatmul.mubr.bf16.gmra.mrb[72].mxu0 %v4841_v39  ;;  %v4860_v33 = vld [vmem:[%s5064_s26 + $0x1d8] ss:$28 sps:$4 sm:$0xff]  }
 0x1b7   : > { %4120 = vmatprep.mubr.msk.bf16.mxu1 %vm2133_vm0, %v4845_v41  ;;  %3068 = vmatprep.mubr.bf16.mxu0 %v4843_v46  ;;  %v4858_v41 = vld [vmem:[%s5064_s26 + $0x4e4] ss:$28 sps:$4 sm:$0xff]  }
 0x1b9   : > { %v5523_v47 = vpop.f32.mrb[76].mxu1 }
 0x1ba   : > { %v2430_v50 = vpop.f32.mrb[77].mxu1 }
 0x1bb   : > { %v5526_v54 = vpop.f32.mrb[78].mxu1  ;;  %v4862_v50 = vld [vmem:[%s5064_s26 + $0x210] ss:$28 sps:$4 sm:$0xff]  }
 0x1bc   : > { %v2433_v62 = vpop.f32.mrb[79].mxu1 }
 0x1be   : > { %4121 = vmatmul.mubr.msk.bf16.gmra.mrb[148].mxu1 %vm2133_vm0, %v4847_v53  ;;  %3069 = vmatmul.mubr.bf16.gmra.mrb[76].mxu0 %v4846_v58  ;;  %v4861_v58 = vld [vmem:[%s5064_s26 + $0x4e0] ss:$28 sps:$4 sm:$0xff]  }
 0x1bf   : > { %4124 = vmatprep.mubr.msk.bf16.mxu1 %vm2133_vm0, %v4850_v60  ;;  %3076 = vmatprep.mubr.bf16.mxu0 %v4848_v63  ;;  %v4865_v60 = vld [vmem:[%s5064_s26 + $0x248] ss:$28 sps:$4 sm:$0xff]   ;;  %v4863_v63 = vld [vmem:[%s5064_s26 + $0x51c] ss:$28 sps:$4 sm:$0xff]  }
 0x1c1   : > { %v5533_v3 = vpop.f32.mrb[80].mxu1 }
 0x1c2   : > { %v2438_v5 = vpop.f32.mrb[81].mxu1 }
 0x1c3   : > { %v5536_v11 = vpop.f32.mrb[82].mxu1 }
 0x1c4   : > { %v2441_v17 = vpop.f32.mrb[83].mxu1 }
 0x1c5   : > { %v4866_v17 = vld [vmem:[%s5064_s26 + $0x518] ss:$28 sps:$4 sm:$0xff]  }
 0x1c6   : > { %4125 = vmatmul.mubr.msk.bf16.gmra.mrb[152].mxu1 %vm2133_vm0, %v4852_v9  ;;  %3077 = vmatmul.mubr.bf16.gmra.mrb[80].mxu0 %v4851_v12  ;;  %v4867_v12 = vld [vmem:[%s5064_s26 + $0x280] ss:$28 sps:$4 sm:$0xff]  }
 0x1c7   : > { %4128 = vmatprep.mubr.msk.bf16.mxu1 %vm2133_vm0, %v4855_v14  ;;  %3084 = vmatprep.mubr.bf16.mxu0 %v4853_v20  ;;  %v4870_v20 = vld [vmem:[%s5064_s26 + $0x2b8] ss:$28 sps:$4 sm:$0xff]  }
 0x1c9   : > { %v5543_v23 = vpop.f32.mrb[84].mxu1 }
 0x1ca   : > { %v2446_v24 = vpop.f32.mrb[85].mxu1 }
 0x1cb   : > { %v5546_v27 = vpop.f32.mrb[86].mxu1 }
 0x1cc   : > { %v2449_v39 = vpop.f32.mrb[87].mxu1 }
 0x1cd   : > { %v4872_v39 = vld [vmem:[%s5064_s26 + $0x2f0] ss:$28 sps:$4 sm:$0xff]  }
 0x1ce   : > { %4129 = vmatmul.mubr.msk.bf16.gmra.mrb[156].mxu1 %vm2133_vm0, %v4857_v1  ;;  %3085 = vmatmul.mubr.bf16.gmra.mrb[84].mxu0 %v4856_v31  ;;  %v4868_v1 = vld [vmem:[%s5064_s26 + $0x554] ss:$28 sps:$4 sm:$0xff]  }
 0x1cf   : > { %4132 = vmatprep.mubr.msk.bf16.mxu1 %vm2133_vm0, %v4860_v33  ;;  %3092 = vmatprep.mubr.bf16.mxu0 %v4858_v41 }
 0x1d1   : > { %v5553_v44 = vpop.f32.mrb[88].mxu1 }
 0x1d2   : > { %v2454_v46 = vpop.f32.mrb[89].mxu1 }
 0x1d3   : > { %v5556_v53 = vpop.f32.mrb[90].mxu1  ;;  %v4871_v46 = vld [vmem:[%s5064_s26 + $0x550] ss:$28 sps:$4 sm:$0xff]  }
 0x1d4   : > { %v2457_v62 = vpop.f32.mrb[91].mxu1 }
 0x1d6   : > { %4133 = vmatmul.mubr.msk.bf16.gmra.mrb[160].mxu1 %vm2133_vm0, %v4862_v50  ;;  %3093 = vmatmul.mubr.bf16.gmra.mrb[88].mxu0 %v4861_v58  ;;  %v4875_v50 = vld [vmem:[%s5064_s26 + $0x328] ss:$28 sps:$4 sm:$0xff]  }
 0x1d7   : > { %4136 = vmatprep.mubr.msk.bf16.mxu1 %vm2133_vm0, %v4865_v60  ;;  %3100 = vmatprep.mubr.bf16.mxu0 %v4863_v63  ;;  %v4873_v60 = vld [vmem:[%s5064_s26 + $0x58c] ss:$28 sps:$4 sm:$0xff]  }
 0x1d9   : > { %v5563_v5 = vpop.f32.mrb[92].mxu1 }
 0x1da   : > { %v2462_v9 = vpop.f32.mrb[93].mxu1 }
 0x1db   : > { %v5566_v14 = vpop.f32.mrb[94].mxu1  ;;  %v4877_v9 = vld [vmem:[%s5064_s26 + $0x360] ss:$28 sps:$4 sm:$0xff]  }
 0x1dc   : > { %v2465_v24 = vpop.f32.mrb[95].mxu1 }
 0x1de   : > { %4137 = vmatmul.mubr.msk.bf16.gmra.mrb[164].mxu1 %vm2133_vm0, %v4867_v12  ;;  %3101 = vmatmul.mubr.bf16.gmra.mrb[92].mxu0 %v4866_v17  ;;  %v4876_v17 = vld [vmem:[%s5064_s26 + $0x588] ss:$28 sps:$4 sm:$0xff]  }
 0x1df   : > { %4140 = vmatprep.mubr.msk.bf16.mxu1 %vm2133_vm0, %v4870_v20  ;;  %3108 = vmatprep.mubr.bf16.mxu0 %v4868_v1  ;;  %v4880_v20 = vld [vmem:[%s5064_s26 + $0x398] ss:$28 sps:$4 sm:$0xff]   ;;  %v4878_v1 = vld [vmem:[%s5064_s26 + $0x5c4] ss:$28 sps:$4 sm:$0xff]  }
 0x1e1   : > { %v5573_v31 = vpop.f32.mrb[96].mxu1 }
 0x1e2   : > { %v2470_v33 = vpop.f32.mrb[97].mxu1 }
 0x1e3   : > { %v5576_v41 = vpop.f32.mrb[98].mxu1 }
 0x1e4   : > { %v2473_v58 = vpop.f32.mrb[99].mxu1 }
 0x1e5   : > { %v4881_v58 = vld [vmem:[%s5064_s26 + $0x5c0] ss:$28 sps:$4 sm:$0xff]  }
 0x1e6   : > { %4141 = vmatmul.mubr.msk.bf16.gmra.mrb[168].mxu1 %vm2133_vm0, %v4872_v39  ;;  %3109 = vmatmul.mubr.bf16.gmra.mrb[96].mxu0 %v4871_v46  ;;  %v4882_v46 = vld [vmem:[%s5064_s26 + $0x3d0] ss:$28 sps:$4 sm:$0xff]  }
 0x1e7   : > { %4144 = vmatprep.mubr.msk.bf16.mxu1 %vm2133_vm0, %v4875_v50  ;;  %3116 = vmatprep.mubr.bf16.mxu0 %v4873_v60  ;;  %v4885_v60 = vld [vmem:[%s5064_s26 + $0x408] ss:$28 sps:$4 sm:$0xff]  }
 0x1e9   : > { %v5583_v62 = vpop.f32.mrb[100].mxu1 }
 0x1ea   : > { %6187 = vst [vmem:[#allocation2_spill] sm:$0xff] %v5583_v62  ;;  %v2478_v63 = vpop.f32.mrb[101].mxu1 }
 0x1eb   : > { %v5586_v12 = vpop.f32.mrb[102].mxu1 }
 0x1ec   : > { %6188 = vst [vmem:[#allocation3_spill] sm:$0xff] %v5586_v12  ;;  %v2481_v24 = vpop.f32.mrb[103].mxu1  ;;  %v4890_v12 = vld [vmem:[%s5064_s26 + $0x478] ss:$28 sps:$4 sm:$0xff]  }
 0x1ed   : > { %v4883_v24 = vld [vmem:[%s5064_s26 + $0x5fc] ss:$28 sps:$4 sm:$0xff]  }
 0x1ee   : > { %4145 = vmatmul.mubr.msk.bf16.gmra.mrb[172].mxu1 %vm2133_vm0, %v4877_v9  ;;  %3117 = vmatmul.mubr.bf16.gmra.mrb[100].mxu0 %v4876_v17  ;;  %v5604_v9 = vld [vmem:[%s6185_s2] ss:$0 sm:$0xff] }
 0x1ef   : > { %4148 = vmatprep.mubr.msk.bf16.mxu1 %vm2133_vm0, %v4880_v20  ;;  %3124 = vmatprep.mubr.bf16.mxu0 %v4878_v1  ;;  %v2277_v17 = vadd.f32 %v5604_v9, %v5364_v32  ;;  %v4887_v1 = vld [vmem:[%s5064_s26 + $0x440] ss:$28 sps:$4 sm:$0xff]   ;;  %v2285_v32 = vadd.f32 %v5604_v9, %v5372_v40  ;;  %v2293_v40 = vadd.f32 %v5604_v9, %v5380_v48 }
 0x1f0   : > { %v2301_v48 = vadd.f32 %v5604_v9, %v5388_v56  ;;  %v2309_v56 = vadd.f32 %v5604_v9, %v5396_v0  ;;  %v2317_v0 = vadd.f32 %v5604_v9, %v5404_v10  ;;  %v2325_v10 = vadd.f32 %v5604_v9, %v5412_v18 }
 0x1f1   : > { %v5593_v33 = vpop.f32.mrb[104].mxu1  ;;  %v2333_v18 = vadd.f32 %v5604_v9, %v5420_v26  ;;  %v2341_v26 = vadd.f32 %v5604_v9, %v5428_v34 }
 0x1f2   : > { %6189 = vst [vmem:[#allocation4_spill] sm:$0xff] %v5593_v33  ;;  %v2486_v39 = vpop.f32.mrb[105].mxu1  ;;  %v4886_v33 = vld [vmem:[%s5064_s26 + $0x5f8] ss:$28 sps:$4 sm:$0xff]  }
 0x1f3   : > { %v5596_v50 = vpop.f32.mrb[106].mxu1  ;;  %v2280_v39 = vadd.f32 %v5604_v9, %v5367_v35 }
 0x1f4   : > { %6190 = vst [vmem:[#allocation5_spill] sm:$0xff] %v5596_v50  ;;  %v2489_v63 = vpop.f32.mrb[107].mxu1 }
 0x1f6   : > { %4149 = vmatmul.mubr.msk.bf16.gmra.mrb[176].mxu1 %vm2133_vm0, %v4882_v46  ;;  %3125 = vmatmul.mubr.bf16.gmra.mrb[104].mxu0 %v4881_v58  ;;  %v4888_v58 = vld [vmem:[%s5064_s26 + $0x634] ss:$28 sps:$4 sm:$0xff]  }
 0x1f7   : > { %4152 = vmatprep.mubr.msk.bf16.mxu1 %vm2133_vm0, %v4885_v60  ;;  %3132 = vmatprep.mubr.bf16.mxu0 %v4883_v24 }
 0x1f9   : > { %v2918_v20 = vpop.f32.mrb[0].mxu0 }
 0x1fa   : > { %v5613_v63 = vadd.f32 %v2918_v20, %v2277_v17  ;;  %v2920_v50 = vpop.f32.mrb[1].mxu0  ;;  %v2288_v17 = vadd.f32 %v5604_v9, %v5375_v43 }
 0x1fb   : > { %v2921_v46 = vpop.f32.mrb[2].mxu0  ;;  %v4892_v50 = vld [vmem:[%s5064_s26 + $0x4b0] ss:$28 sps:$4 sm:$0xff]  }
 0x1fc   : > { %v5618_v60 = vadd.f32 %v2921_v46, %v2280_v39  ;;  %v2923_v24 = vpop.f32.mrb[3].mxu0  ;;  %v4891_v46 = vld [vmem:[%s5064_s26 + $0x630] ss:$28 sps:$4 sm:$0xff]  }
 0x1fd   : > { %v4895_v24 = vld [vmem:[%s5064_s26 + $0x4e8] ss:$28 sps:$4 sm:$0xff]  }
 0x1fe   : > { %4153 = vmatmul.mubr.msk.bf16.gmra.mrb[180].mxu1 %vm2133_vm0, %v4887_v1  ;;  %3133 = vmatmul.mubr.bf16.gmra.mrb[108].mxu0 %v4886_v33  ;;  %v4893_v1 = vld [vmem:[%s5064_s26 + $0x66c] ss:$28 sps:$4 sm:$0xff]  }
 0x1ff   : > { %4156 = vmatprep.mubr.msk.bf16.mxu1 %vm2133_vm0, %v4890_v12  ;;  %3140 = vmatprep.mubr.bf16.mxu0 %v4888_v58 }
 0x201   : > { %v2926_v35 = vpop.f32.mrb[4].mxu0 }
 0x202   : > { %v5627_v20 = vadd.f32 %v2926_v35, %v2285_v32  ;;  %v2928_v39 = vpop.f32.mrb[5].mxu0  ;;  %v4897_v32 = vld [vmem:[%s5064_s26 + $0x520] ss:$28 sps:$4 sm:$0xff]   ;;  %v2296_v35 = vadd.f32 %v5604_v9, %v5383_v51 }
 0x203   : > { %v2929_v33 = vpop.f32.mrb[6].mxu0 }
 0x204   : > { %v5632_v12 = vadd.f32 %v2929_v33, %v2288_v17  ;;  %v2931_v58 = vpop.f32.mrb[7].mxu0  ;;  %v4896_v33 = vld [vmem:[%s5064_s26 + $0x668] ss:$28 sps:$4 sm:$0xff]  }
 0x205   : > { %v4900_v58 = vld [vmem:[%s5064_s26 + $0x558] ss:$28 sps:$4 sm:$0xff]  }
 0x206   : > { %4157 = vmatmul.mubr.msk.bf16.gmra.mrb[184].mxu1 %vm2133_vm0, %v4892_v50  ;;  %3141 = vmatmul.mubr.bf16.gmra.mrb[112].mxu0 %v4891_v46  ;;  %v4898_v46 = vld [vmem:[%s5064_s26 + $0x6a4] ss:$28 sps:$4 sm:$0xff]  }
 0x207   : > { %4160 = vmatprep.mubr.msk.bf16.mxu1 %vm2133_vm0, %v4895_v24  ;;  %3148 = vmatprep.mubr.bf16.mxu0 %v4893_v1 }
 0x209   : > { %v2934_v43 = vpop.f32.mrb[8].mxu0 }
 0x20a   : > { %v5641_v39 = vadd.f32 %v2934_v43, %v2293_v40  ;;  %v2936_v17 = vpop.f32.mrb[9].mxu0  ;;  %v4902_v40 = vld [vmem:[%s5064_s26 + $0x590] ss:$28 sps:$4 sm:$0xff]   ;;  %v2304_v43 = vadd.f32 %v5604_v9, %v5391_v59 }
 0x20b   : > { %v2937_v50 = vpop.f32.mrb[10].mxu0 }
 0x20c   : > { %v5646_v24 = vadd.f32 %v2937_v50, %v2296_v35  ;;  %v2939_v1 = vpop.f32.mrb[11].mxu0  ;;  %v4901_v50 = vld [vmem:[%s5064_s26 + $0x6a0] ss:$28 sps:$4 sm:$0xff]  }
 0x20d   : > { %v4905_v1 = vld [vmem:[%s5064_s26 + $0x5c8] ss:$28 sps:$4 sm:$0xff]  }
 0x20e   : > { %4161 = vmatmul.mubr.msk.bf16.gmra.mrb[188].mxu1 %vm2133_vm0, %v4897_v32  ;;  %3149 = vmatmul.mubr.bf16.gmra.mrb[116].mxu0 %v4896_v33  ;;  %v4903_v33 = vld [vmem:[%s5064_s26 + $0x6dc] ss:$28 sps:$4 sm:$0xff]  }
 0x20f   : > { %4164 = vmatprep.mubr.msk.bf16.mxu1 %vm2133_vm0, %v4900_v58  ;;  %3156 = vmatprep.mubr.bf16.mxu0 %v4898_v46 }
 0x211   : > { %v2942_v51 = vpop.f32.mrb[12].mxu0 }
 0x212   : > { %v5655_v17 = vadd.f32 %v2942_v51, %v2301_v48  ;;  %v2944_v35 = vpop.f32.mrb[13].mxu0  ;;  %v4907_v48 = vld [vmem:[%s5064_s26 + $0x600] ss:$28 sps:$4 sm:$0xff]   ;;  %v2312_v51 = vadd.f32 %v5604_v9, %v5399_v4 }
 0x213   : > { %v2945_v32 = vpop.f32.mrb[14].mxu0 }
 0x214   : > { %v5660_v58 = vadd.f32 %v2945_v32, %v2304_v43  ;;  %v2947_v46 = vpop.f32.mrb[15].mxu0  ;;  %v4906_v32 = vld [vmem:[%s5064_s26 + $0x6d8] ss:$28 sps:$4 sm:$0xff]  }
 0x215   : > { %v4910_v46 = vld [vmem:[%s5064_s26 + $0x638] ss:$28 sps:$4 sm:$0xff]  }
 0x216   : > { %4165 = vmatmul.mubr.msk.bf16.gmra.mrb[192].mxu1 %vm2133_vm0, %v4902_v40  ;;  %3157 = vmatmul.mubr.bf16.gmra.mrb[120].mxu0 %v4901_v50  ;;  %v4908_v50 = vld [vmem:[%s5064_s26 + $0x714] ss:$28 sps:$4 sm:$0xff]  }
 0x217   : > { %4168 = vmatprep.mubr.msk.bf16.mxu1 %vm2133_vm0, %v4905_v1  ;;  %3164 = vmatprep.mubr.bf16.mxu0 %v4903_v33 }
 0x219   : > { %v2950_v59 = vpop.f32.mrb[16].mxu0 }
 0x21a   : > { %v5669_v35 = vadd.f32 %v2950_v59, %v2309_v56  ;;  %v2952_v43 = vpop.f32.mrb[17].mxu0  ;;  %v4912_v56 = vld [vmem:[%s5064_s26 + $0x670] ss:$28 sps:$4 sm:$0xff]   ;;  %v2320_v59 = vadd.f32 %v5604_v9, %v5407_v13 }
 0x21b   : > { %v2953_v40 = vpop.f32.mrb[18].mxu0 }
 0x21c   : > { %v5674_v1 = vadd.f32 %v2953_v40, %v2312_v51  ;;  %v2955_v33 = vpop.f32.mrb[19].mxu0  ;;  %v4911_v40 = vld [vmem:[%s5064_s26 + $0x710] ss:$28 sps:$4 sm:$0xff]  }
 0x21d   : > { %v4915_v33 = vld [vmem:[%s5064_s26 + $0x6a8] ss:$28 sps:$4 sm:$0xff]  }
 0x21e   : > { %4169 = vmatmul.mubr.msk.bf16.gmra.mrb[196].mxu1 %vm2133_vm0, %v4907_v48  ;;  %3165 = vmatmul.mubr.bf16.gmra.mrb[124].mxu0 %v4906_v32  ;;  %v4913_v32 = vld [vmem:[%s5064_s26 + $0x74c] ss:$28 sps:$4 sm:$0xff]  }
 0x21f   : > { %4172 = vmatprep.mubr.msk.bf16.mxu1 %vm2133_vm0, %v4910_v46  ;;  %3172 = vmatprep.mubr.bf16.mxu0 %v4908_v50 }
 0x221   : > { %v2958_v4 = vpop.f32.mrb[20].mxu0 }
 0x222   : > { %v5683_v43 = vadd.f32 %v2958_v4, %v2317_v0  ;;  %v2960_v51 = vpop.f32.mrb[21].mxu0  ;;  %v4917_v0 = vld [vmem:[%s5064_s26 + $0x6e0] ss:$28 sps:$4 sm:$0xff]   ;;  %v2328_v4 = vadd.f32 %v5604_v9, %v5415_v21 }
 0x223   : > { %v2961_v48 = vpop.f32.mrb[22].mxu0 }
 0x224   : > { %v5688_v46 = vadd.f32 %v2961_v48, %v2320_v59  ;;  %v2963_v50 = vpop.f32.mrb[23].mxu0  ;;  %v4916_v48 = vld [vmem:[%s5064_s26 + $0x748] ss:$28 sps:$4 sm:$0xff]  }
 0x225   : > { %v4920_v50 = vld [vmem:[%s5064_s26 + $0x718] ss:$28 sps:$4 sm:$0xff]  }
 0x226   : > { %4173 = vmatmul.mubr.msk.bf16.gmra.mrb[200].mxu1 %vm2133_vm0, %v4912_v56  ;;  %3173 = vmatmul.mubr.bf16.gmra.mrb[128].mxu0 %v4911_v40  ;;  %v4918_v40 = vld [vmem:[%s5064_s26 + $0x784] ss:$28 sps:$4 sm:$0xff]  }
 0x227   : > { %4176 = vmatprep.mubr.msk.bf16.mxu1 %vm2133_vm0, %v4915_v33  ;;  %3180 = vmatprep.mubr.bf16.mxu0 %v4913_v32 }
 0x229   : > { %v2966_v13 = vpop.f32.mrb[24].mxu0 }
 0x22a   : > { %v5697_v51 = vadd.f32 %v2966_v13, %v2325_v10  ;;  %v2968_v59 = vpop.f32.mrb[25].mxu0  ;;  %v4922_v10 = vld [vmem:[%s5064_s26 + $0x750] ss:$28 sps:$4 sm:$0xff]   ;;  %v2336_v13 = vadd.f32 %v5604_v9, %v5423_v28 }
 0x22b   : > { %v2969_v56 = vpop.f32.mrb[26].mxu0 }
 0x22c   : > { %v5702_v33 = vadd.f32 %v2969_v56, %v2328_v4  ;;  %v2971_v32 = vpop.f32.mrb[27].mxu0  ;;  %v4921_v56 = vld [vmem:[%s5064_s26 + $0x780] ss:$28 sps:$4 sm:$0xff]  }
 0x22d   : > { %v4925_v32 = vld [vmem:[%s5064_s26 + $0x788] ss:$28 sps:$4 sm:$0xff]  }
 0x22e   : > { %4177 = vmatmul.mubr.msk.bf16.gmra.mrb[204].mxu1 %vm2133_vm0, %v4917_v0  ;;  %3181 = vmatmul.mubr.bf16.gmra.mrb[132].mxu0 %v4916_v48  ;;  %v4923_v48 = vld [vmem:[%s5064_s26 + $0x7bc] ss:$28 sps:$4 sm:$0xff]  }
 0x22f   : > { %4180 = vmatprep.mubr.msk.bf16.mxu1 %vm2133_vm0, %v4920_v50  ;;  %3188 = vmatprep.mubr.bf16.mxu0 %v4918_v40  ;;  %v4927_v40 = vld [vmem:[%s5064_s26 + $0x7c0] ss:$28 sps:$4 sm:$0xff]  }
 0x231   : > { %v2974_v21 = vpop.f32.mrb[28].mxu0 }
 0x232   : > { %v5711_v59 = vadd.f32 %v2974_v21, %v2333_v18  ;;  %v2976_v4 = vpop.f32.mrb[29].mxu0  ;;  %v2344_v18 = vadd.f32 %v5604_v9, %v5431_v38  ;;  %v2352_v38 = vadd.f32 %v5604_v9, %v5439_v49  ;;  %v2360_v49 = vadd.f32 %v5604_v9, %v5451_v61 }
 0x233   : > { %v2977_v0 = vpop.f32.mrb[30].mxu0  ;;  %v2368_v61 = vadd.f32 %v5604_v9, %v5459_v7  ;;  %v2376_v7 = vadd.f32 %v5604_v9, %v5467_v19  ;;  %v2384_v19 = vadd.f32 %v5604_v9, %v5475_v29  ;;  %v2392_v29 = vadd.f32 %v5604_v9, %v5483_v42 }
 0x234   : > { %v5716_v62 = vadd.f32 %v2977_v0, %v2336_v13  ;;  %v2979_v50 = vpop.f32.mrb[31].mxu0  ;;  %v4926_v13 = vld [vmem:[%s5064_s26 + $0x7b8] ss:$28 sps:$4 sm:$0xff]   ;;  %v2400_v42 = vadd.f32 %v5604_v9, %v5491_v55  ;;  %v2408_v55 = vadd.f32 %v5604_v9, %v5499_v6  ;;  %v2416_v6 = vadd.f32 %v5604_v9, %v5507_v22  ;;  %s3732_s26 = sshll.u32 %s6232_s5, 3 }
 0x235   : > { %v2424_v22 = vadd.f32 %v5604_v9, %v5516_v36  ;;  %s5850_s24 = scalar_lea.vmem %s6186_s3, %s3732_s26 }
 0x236   : > { %4181 = vmatmul.mubr.msk.bf16.gmra.mrb[208].mxu1 %vm2133_vm0, %v4922_v10  ;;  %3189 = vmatmul.mubr.bf16.gmra.mrb[136].mxu0 %v4921_v56  ;;  %v2349_v56 = vadd.f32 %v5604_v9, %v5436_v45  ;;  %v2357_v45 = vadd.f32 %v5604_v9, %v5448_v57  ;;  %v2365_v57 = vadd.f32 %v5604_v9, %v5456_v8 }
 0x237   : > { %4184 = vmatprep.mubr.msk.bf16.mxu1 %vm2133_vm0, %v4925_v32  ;;  %3196 = vmatprep.mubr.bf16.mxu0 %v4923_v48  ;;  %v2373_v8 = vadd.f32 %v5604_v9, %v5464_v15  ;;  %v2381_v15 = vadd.f32 %v5604_v9, %v5472_v25  ;;  %v2389_v25 = vadd.f32 %v5604_v9, %v5480_v37 }
 0x238   : > { %v2397_v37 = vadd.f32 %v5604_v9, %v5488_v52  ;;  %v2405_v52 = vadd.f32 %v5604_v9, %v5496_v2  ;;  %v2413_v2 = vadd.f32 %v5604_v9, %v5504_v16  ;;  %v2421_v16 = vadd.f32 %v5604_v9, %v5513_v30 }
 0x239   : > { %v2982_v28 = vpop.f32.mrb[32].mxu0 }
 0x23a   : > { %v5725_v21 = vadd.f32 %v2982_v28, %v2341_v26  ;;  %v2984_v4 = vpop.f32.mrb[33].mxu0 }
 0x23b   : > { %v2985_v0 = vpop.f32.mrb[34].mxu0 }
 0x23c   : > { %v5728_v50 = vadd.f32 %v2985_v0, %v2344_v18  ;;  %v2987_v10 = vpop.f32.mrb[35].mxu0 }
 0x23e   : > { %4185 = vmatmul.mubr.msk.bf16.gmra.mrb[212].mxu1 %vm2133_vm0, %v4927_v40  ;;  %3197 = vmatmul.mubr.bf16.gmra.mrb[140].mxu0 %v4926_v13 }
 0x241   : > { %v5733_v34 = vpop.f32.mrb[108].mxu1  ;;  %v2990_v32 = vpop.f32.mrb[36].mxu0 }
 0x242   : > { %6191 = vst [vmem:[#allocation6_spill] sm:$0xff] %v5733_v34  ;;  %v2815_v48 = vpop.f32.mrb[109].mxu1  ;;  %v5737_v26 = vadd.f32 %v2990_v32, %v2349_v56  ;;  %v2992_v28 = vpop.f32.mrb[37].mxu0 }
 0x243   : > { %v5739_v4 = vpop.f32.mrb[110].mxu1  ;;  %v2993_v18 = vpop.f32.mrb[38].mxu0 }
 0x244   : > { %6192 = vst [vmem:[#allocation7_spill] sm:$0xff] %v5739_v4  ;;  %v2818_v0 = vpop.f32.mrb[111].mxu1  ;;  %v5741_v10 = vadd.f32 %v2993_v18, %v2352_v38  ;;  %v2995_v40 = vpop.f32.mrb[39].mxu0 }
 0x249   : > { %v5745_v13 = vpop.f32.mrb[112].mxu1  ;;  %v2998_v34 = vpop.f32.mrb[40].mxu0 }
 0x24a   : > { %6193 = vst [vmem:[#allocation8_spill] sm:$0xff] %v5745_v13  ;;  %v2823_v48 = vpop.f32.mrb[113].mxu1  ;;  %v5749_v56 = vadd.f32 %v2998_v34, %v2357_v45  ;;  %v3000_v32 = vpop.f32.mrb[41].mxu0 }
 0x24b   : > { %v5751_v28 = vpop.f32.mrb[114].mxu1  ;;  %v3001_v4 = vpop.f32.mrb[42].mxu0 }
 0x24c   : > { %6194 = vst [vmem:[#allocation9_spill] sm:$0xff] %v5751_v28  ;;  %v2826_v0 = vpop.f32.mrb[115].mxu1  ;;  %v5753_v38 = vadd.f32 %v3001_v4, %v2360_v49  ;;  %v3003_v18 = vpop.f32.mrb[43].mxu0 }
 0x251   : > { %v5757_v40 = vpop.f32.mrb[116].mxu1  ;;  %v3006_v13 = vpop.f32.mrb[44].mxu0 }
 0x252   : > { %6195 = vst [vmem:[#allocation10_spill] sm:$0xff] %v5757_v40  ;;  %v2831_v48 = vpop.f32.mrb[117].mxu1  ;;  %v5761_v34 = vadd.f32 %v3006_v13, %v2365_v57  ;;  %v3008_v45 = vpop.f32.mrb[45].mxu0 }
 0x253   : > { %v5763_v32 = vpop.f32.mrb[118].mxu1  ;;  %v3009_v28 = vpop.f32.mrb[46].mxu0 }
 0x254   : > { %6196 = vst [vmem:[#allocation11_spill] sm:$0xff] %v5763_v32  ;;  %v2834_v0 = vpop.f32.mrb[119].mxu1  ;;  %v5765_v4 = vadd.f32 %v3009_v28, %v2368_v61  ;;  %v3011_v49 = vpop.f32.mrb[47].mxu0 }
 0x259   : > { %v5769_v18 = vpop.f32.mrb[120].mxu1  ;;  %v3014_v40 = vpop.f32.mrb[48].mxu0 }
 0x25a   : > { %6197 = vst [vmem:[#allocation12_spill] sm:$0xff] %v5769_v18  ;;  %v2839_v48 = vpop.f32.mrb[121].mxu1  ;;  %v5773_v13 = vadd.f32 %v3014_v40, %v2373_v8  ;;  %v3016_v57 = vpop.f32.mrb[49].mxu0 }
 0x25b   : > { %v5775_v45 = vpop.f32.mrb[122].mxu1  ;;  %v3017_v32 = vpop.f32.mrb[50].mxu0 }
 0x25c   : > { %6198 = vst [vmem:[#allocation13_spill] sm:$0xff] %v5775_v45  ;;  %v2842_v0 = vpop.f32.mrb[123].mxu1  ;;  %v5777_v28 = vadd.f32 %v3017_v32, %v2376_v7  ;;  %v3019_v61 = vpop.f32.mrb[51].mxu0 }
 0x261   : > { %v5781_v49 = vpop.f32.mrb[124].mxu1  ;;  %v3022_v18 = vpop.f32.mrb[52].mxu0 }
 0x262   : > { %6199 = vst [vmem:[#allocation14_spill] sm:$0xff] %v5781_v49  ;;  %v2847_v48 = vpop.f32.mrb[125].mxu1  ;;  %v5785_v40 = vadd.f32 %v3022_v18, %v2381_v15  ;;  %v3024_v8 = vpop.f32.mrb[53].mxu0 }
 0x263   : > { %v5787_v57 = vpop.f32.mrb[126].mxu1  ;;  %v3025_v45 = vpop.f32.mrb[54].mxu0 }
 0x264   : > { %6200 = vst [vmem:[#allocation15_spill] sm:$0xff] %v5787_v57  ;;  %v2850_v0 = vpop.f32.mrb[127].mxu1  ;;  %v5789_v32 = vadd.f32 %v3025_v45, %v2384_v19  ;;  %v3027_v7 = vpop.f32.mrb[55].mxu0 }
 0x269   : > { %v5793_v61 = vpop.f32.mrb[128].mxu1  ;;  %v3030_v49 = vpop.f32.mrb[56].mxu0 }
 0x26a   : > { %6201 = vst [vmem:[#allocation16_spill] sm:$0xff] %v5793_v61  ;;  %v2855_v48 = vpop.f32.mrb[129].mxu1  ;;  %v5797_v18 = vadd.f32 %v3030_v49, %v2389_v25  ;;  %v3032_v15 = vpop.f32.mrb[57].mxu0 }
 0x26b   : > { %v5799_v8 = vpop.f32.mrb[130].mxu1  ;;  %v3033_v57 = vpop.f32.mrb[58].mxu0 }
 0x26c   : > { %6202 = vst [vmem:[#allocation17_spill] sm:$0xff] %v5799_v8  ;;  %v2858_v0 = vpop.f32.mrb[131].mxu1  ;;  %v5801_v45 = vadd.f32 %v3033_v57, %v2392_v29  ;;  %v3035_v19 = vpop.f32.mrb[59].mxu0 }
 0x271   : > { %v5805_v7 = vpop.f32.mrb[132].mxu1  ;;  %v3038_v61 = vpop.f32.mrb[60].mxu0 }
 0x272   : > { %6203 = vst [vmem:[#allocation18_spill] sm:$0xff] %v5805_v7  ;;  %v2863_v48 = vpop.f32.mrb[133].mxu1  ;;  %v5809_v49 = vadd.f32 %v3038_v61, %v2397_v37  ;;  %v3040_v25 = vpop.f32.mrb[61].mxu0 }
 0x273   : > { %v5811_v15 = vpop.f32.mrb[134].mxu1  ;;  %v3041_v8 = vpop.f32.mrb[62].mxu0 }
 0x274   : > { %6204 = vst [vmem:[#allocation19_spill] sm:$0xff] %v5811_v15  ;;  %v2866_v0 = vpop.f32.mrb[135].mxu1  ;;  %v5813_v57 = vadd.f32 %v3041_v8, %v2400_v42  ;;  %v3043_v29 = vpop.f32.mrb[63].mxu0 }
 0x279   : > { %v5817_v19 = vpop.f32.mrb[136].mxu1  ;;  %v3046_v7 = vpop.f32.mrb[64].mxu0 }
 0x27a   : > { %6205 = vst [vmem:[#allocation20_spill] sm:$0xff] %v5817_v19  ;;  %v2871_v48 = vpop.f32.mrb[137].mxu1  ;;  %v5821_v61 = vadd.f32 %v3046_v7, %v2405_v52  ;;  %v3048_v37 = vpop.f32.mrb[65].mxu0 }
 0x27b   : > { %v5823_v25 = vpop.f32.mrb[138].mxu1  ;;  %v3049_v15 = vpop.f32.mrb[66].mxu0 }
 0x27c   : > { %6206 = vst [vmem:[#allocation21_spill] sm:$0xff] %v5823_v25  ;;  %v2874_v8 = vpop.f32.mrb[139].mxu1  ;;  %v5825_v42 = vadd.f32 %v3049_v15, %v2408_v55  ;;  %v3051_v0 = vpop.f32.mrb[67].mxu0 }
 0x27e   : > { %6207 = vst [vmem:[#allocation22_spill] sm:$0xff] %v5825_v42 }
 0x281   : > { %v5829_v29 = vpop.f32.mrb[140].mxu1  ;;  %v3054_v48 = vpop.f32.mrb[68].mxu0 }
 0x282   : > { %6208 = vst [vmem:[#allocation23_spill] sm:$0xff] %v5829_v29  ;;  %v2879_v19 = vpop.f32.mrb[141].mxu1  ;;  %v5833_v7 = vadd.f32 %v3054_v48, %v2413_v2  ;;  %v3056_v52 = vpop.f32.mrb[69].mxu0 }
 0x283   : > { %v5835_v37 = vpop.f32.mrb[142].mxu1  ;;  %v3057_v25 = vpop.f32.mrb[70].mxu0 }
 0x284   : > { %v2882_v8 = vpop.f32.mrb[143].mxu1  ;;  %v5837_v15 = vadd.f32 %v3057_v25, %v2416_v6  ;;  %v3059_v55 = vpop.f32.mrb[71].mxu0 }
 0x289   : > { %v4118_v0 = vpop.f32.mrb[144].mxu1  ;;  %v3062_v29 = vpop.f32.mrb[72].mxu0 }
 0x28a   : > { %v3248_v19 = vadd.f32 %v5627_v20, %v4118_v0  ;;  %v3239_v42 = vpop.f32.mrb[145].mxu1  ;;  %v5845_v2 = vadd.f32 %v3062_v29, %v2421_v16  ;;  %v3064_v25 = vpop.f32.mrb[73].mxu0 }
 0x28b   : > { %v3240_v30 = vadd.f32 %v5613_v63, %v3239_v42  ;;  %v4119_v48 = vpop.f32.mrb[146].mxu1  ;;  %v3065_v6 = vpop.f32.mrb[74].mxu0  ;;  %v2429_v63 = vadd.f32 %v5604_v9, %v5523_v47 }
 0x28c   : > { %v3528_v20 = vmax.f32 %v3248_v19, 0.0  ;;  %v3251_v52 = vadd.f32 %v5632_v12, %v4119_v48  ;;  %v3242_v36 = vpop.f32.mrb[147].mxu1  ;;  %v5854_v8 = vadd.f32 %v3065_v6, %v2424_v22  ;;  %v3067_v55 = vpop.f32.mrb[75].mxu0 }
 0x28d   : > { %v3526_v29 = vmax.f32 %v3240_v30, 0.0  ;;  %v3243_v16 = vadd.f32 %v5618_v60, %v3242_v36  ;;  %v2432_v60 = vadd.f32 %v5604_v9, %v5526_v54 }
 0x28e   : > { %3600 = vst.msk [vmem:[%s5850_s24 + $0x10] sm:$0xff] %vm2133_vm0, %v3528_v20  ;;  %v3529_v0 = vmax.f32 %v3251_v52, 0.0 }
 0x28f   : > { %3598 = vst.msk [vmem:[%s5850_s24] sm:$0xff] %vm2133_vm0, %v3526_v29  ;;  %v3527_v25 = vmax.f32 %v3243_v16, 0.0 }
 0x290   : > { %3601 = vst.msk [vmem:[%s5850_s24 + $0x18] sm:$0xff] %vm2133_vm0, %v3529_v0 }
 0x291   : > { %3599 = vst.msk [vmem:[%s5850_s24 + $0x8] sm:$0xff] %vm2133_vm0, %v3527_v25  ;;  %v4122_v12 = vpop.f32.mrb[148].mxu1  ;;  %v3070_v42 = vpop.f32.mrb[76].mxu0 }
 0x292   : > { %v3264_v19 = vadd.f32 %v5655_v17, %v4122_v12  ;;  %v3255_v22 = vpop.f32.mrb[149].mxu1  ;;  %v5870_v30 = vadd.f32 %v3070_v42, %v2429_v63  ;;  %v3072_v48 = vpop.f32.mrb[77].mxu0 }
 0x293   : > { %v3256_v20 = vadd.f32 %v5641_v39, %v3255_v22  ;;  %v4123_v47 = vpop.f32.mrb[150].mxu1  ;;  %v3073_v52 = vpop.f32.mrb[78].mxu0  ;;  %v2437_v39 = vadd.f32 %v5604_v9, %v5533_v3 }
 0x294   : > { %v3532_v6 = vmax.f32 %v3264_v19, 0.0  ;;  %v3267_v36 = vadd.f32 %v5660_v58, %v4123_v47  ;;  %v3258_v29 = vpop.f32.mrb[151].mxu1  ;;  %v5874_v17 = vadd.f32 %v3073_v52, %v2432_v60  ;;  %v3075_v16 = vpop.f32.mrb[79].mxu0 }
 0x295   : > { %v3530_v55 = vmax.f32 %v3256_v20, 0.0  ;;  %v3259_v0 = vadd.f32 %v5646_v24, %v3258_v29  ;;  %v2440_v24 = vadd.f32 %v5604_v9, %v5536_v11 }
 0x296   : > { %3604 = vst.msk [vmem:[%s5850_s24 + $0x30] sm:$0xff] %vm2133_vm0, %v3532_v6  ;;  %v3533_v54 = vmax.f32 %v3267_v36, 0.0 }
 0x297   : > { %3602 = vst.msk [vmem:[%s5850_s24 + $0x20] sm:$0xff] %vm2133_vm0, %v3530_v55  ;;  %v3531_v25 = vmax.f32 %v3259_v0, 0.0 }
 0x298   : > { %3605 = vst.msk [vmem:[%s5850_s24 + $0x38] sm:$0xff] %vm2133_vm0, %v3533_v54 }
 0x299   : > { %3603 = vst.msk [vmem:[%s5850_s24 + $0x28] sm:$0xff] %vm2133_vm0, %v3531_v25  ;;  %v4126_v58 = vpop.f32.mrb[152].mxu1  ;;  %v3078_v63 = vpop.f32.mrb[80].mxu0 }
 0x29a   : > { %v3280_v12 = vadd.f32 %v5683_v43, %v4126_v58  ;;  %v3271_v42 = vpop.f32.mrb[153].mxu1  ;;  %v5890_v19 = vadd.f32 %v3078_v63, %v2437_v39  ;;  %v3080_v22 = vpop.f32.mrb[81].mxu0 }
 0x29b   : > { %v3272_v60 = vadd.f32 %v5669_v35, %v3271_v42  ;;  %v4127_v3 = vpop.f32.mrb[154].mxu1  ;;  %v3081_v20 = vpop.f32.mrb[82].mxu0  ;;  %v2445_v35 = vadd.f32 %v5604_v9, %v5543_v23 }
 0x29c   : > { %v3536_v48 = vmax.f32 %v3280_v12, 0.0  ;;  %v3283_v47 = vadd.f32 %v5688_v46, %v4127_v3  ;;  %v3274_v6 = vpop.f32.mrb[155].mxu1  ;;  %v5894_v43 = vadd.f32 %v3081_v20, %v2440_v24  ;;  %v3083_v36 = vpop.f32.mrb[83].mxu0 }
 0x29d   : > { %v3534_v52 = vmax.f32 %v3272_v60, 0.0  ;;  %v3275_v29 = vadd.f32 %v5674_v1, %v3274_v6  ;;  %v2448_v1 = vadd.f32 %v5604_v9, %v5546_v27 }
 0x29e   : > { %3608 = vst.msk [vmem:[%s5850_s24 + $0x50] sm:$0xff] %vm2133_vm0, %v3536_v48  ;;  %v3537_v11 = vmax.f32 %v3283_v47, 0.0 }
 0x29f   : > { %3606 = vst.msk [vmem:[%s5850_s24 + $0x40] sm:$0xff] %vm2133_vm0, %v3534_v52  ;;  %v3535_v55 = vmax.f32 %v3275_v29, 0.0 }
 0x2a0   : > { %3609 = vst.msk [vmem:[%s5850_s24 + $0x58] sm:$0xff] %vm2133_vm0, %v3537_v11 }
 0x2a1   : > { %3607 = vst.msk [vmem:[%s5850_s24 + $0x48] sm:$0xff] %vm2133_vm0, %v3535_v55  ;;  %v4130_v46 = vpop.f32.mrb[156].mxu1  ;;  %v3086_v16 = vpop.f32.mrb[84].mxu0 }
 0x2a2   : > { %v3296_v0 = vadd.f32 %v5711_v59, %v4130_v46  ;;  %v3287_v54 = vpop.f32.mrb[157].mxu1  ;;  %v5910_v25 = vadd.f32 %v3086_v16, %v2445_v35  ;;  %v3088_v39 = vpop.f32.mrb[85].mxu0 }
 0x2a3   : > { %v3288_v58 = vadd.f32 %v5697_v51, %v3287_v54  ;;  %v4131_v23 = vpop.f32.mrb[158].mxu1  ;;  %v3089_v12 = vpop.f32.mrb[86].mxu0  ;;  %v2453_v51 = vadd.f32 %v5604_v9, %v5553_v44 }
 0x2a4   : > { %v3540_v63 = vmax.f32 %v3296_v0, 0.0  ;;  %v3299_v42 = vadd.f32 %v5716_v62, %v4131_v23  ;;  %v3290_v24 = vpop.f32.mrb[159].mxu1  ;;  %v5914_v59 = vadd.f32 %v3089_v12, %v2448_v1  ;;  %v3091_v60 = vpop.f32.mrb[87].mxu0 }
 0x2a5   : > { %v3538_v22 = vmax.f32 %v3288_v58, 0.0  ;;  %v3291_v3 = vadd.f32 %v5702_v33, %v3290_v24  ;;  %v2456_v33 = vadd.f32 %v5604_v9, %v5556_v53 }
 0x2a6   : > { %3612 = vst.msk [vmem:[%s5850_s24 + $0x70] sm:$0xff] %vm2133_vm0, %v3540_v63  ;;  %v3541_v27 = vmax.f32 %v3299_v42, 0.0 }
 0x2a7   : > { %3610 = vst.msk [vmem:[%s5850_s24 + $0x60] sm:$0xff] %vm2133_vm0, %v3538_v22  ;;  %v3539_v48 = vmax.f32 %v3291_v3, 0.0 }
 0x2a8   : > { %3613 = vst.msk [vmem:[%s5850_s24 + $0x78] sm:$0xff] %vm2133_vm0, %v3541_v27 }
 0x2a9   : > { %3611 = vst.msk [vmem:[%s5850_s24 + $0x68] sm:$0xff] %vm2133_vm0, %v3539_v48  ;;  %v4134_v62 = vpop.f32.mrb[160].mxu1  ;;  %v3094_v20 = vpop.f32.mrb[88].mxu0 }
 0x2aa   : > { %v3312_v47 = vadd.f32 %v5737_v26, %v4134_v62  ;;  %v3303_v6 = vpop.f32.mrb[161].mxu1  ;;  %v5930_v52 = vadd.f32 %v3094_v20, %v2453_v51  ;;  %v3096_v36 = vpop.f32.mrb[89].mxu0 }
 0x2ab   : > { %v3304_v29 = vadd.f32 %v5725_v21, %v3303_v6  ;;  %v4135_v44 = vpop.f32.mrb[162].mxu1  ;;  %v3097_v55 = vpop.f32.mrb[90].mxu0  ;;  %v2461_v21 = vadd.f32 %v5604_v9, %v5563_v5 }
 0x2ac   : > { %v3544_v11 = vmax.f32 %v3312_v47, 0.0  ;;  %v3315_v35 = vadd.f32 %v5741_v10, %v4135_v44  ;;  %v3306_v46 = vpop.f32.mrb[163].mxu1  ;;  %v5934_v26 = vadd.f32 %v3097_v55, %v2456_v33  ;;  %v3099_v0 = vpop.f32.mrb[91].mxu0 }
 0x2ad   : > { %v3542_v16 = vmax.f32 %v3304_v29, 0.0  ;;  %v3307_v54 = vadd.f32 %v5728_v50, %v3306_v46  ;;  %v2464_v50 = vadd.f32 %v5604_v9, %v5566_v14 }
 0x2ae   : > { %3616 = vst.msk [vmem:[%s5850_s24 + $0x90] sm:$0xff] %vm2133_vm0, %v3544_v11  ;;  %v3545_v53 = vmax.f32 %v3315_v35, 0.0 }
 0x2af   : > { %3614 = vst.msk [vmem:[%s5850_s24 + $0x80] sm:$0xff] %vm2133_vm0, %v3542_v16  ;;  %v3543_v1 = vmax.f32 %v3307_v54, 0.0 }
 0x2b0   : > { %3617 = vst.msk [vmem:[%s5850_s24 + $0x98] sm:$0xff] %vm2133_vm0, %v3545_v53 }
 0x2b1   : > { %3615 = vst.msk [vmem:[%s5850_s24 + $0x88] sm:$0xff] %vm2133_vm0, %v3543_v1  ;;  %v4138_v10 = vpop.f32.mrb[164].mxu1  ;;  %v3102_v39 = vpop.f32.mrb[92].mxu0 }
 0x2b2   : > { %v3328_v58 = vadd.f32 %v5761_v34, %v4138_v10  ;;  %v3319_v23 = vpop.f32.mrb[165].mxu1  ;;  %v5950_v63 = vadd.f32 %v3102_v39, %v2461_v21  ;;  %v3104_v12 = vpop.f32.mrb[93].mxu0 }
 0x2b3   : > { %v3320_v42 = vadd.f32 %v5749_v56, %v3319_v23  ;;  %v4139_v5 = vpop.f32.mrb[166].mxu1  ;;  %v3105_v22 = vpop.f32.mrb[94].mxu0  ;;  %v2469_v56 = vadd.f32 %v5604_v9, %v5573_v31 }
 0x2b4   : > { %v3548_v24 = vmax.f32 %v3328_v58, 0.0  ;;  %v3331_v60 = vadd.f32 %v5765_v4, %v4139_v5  ;;  %v3322_v3 = vpop.f32.mrb[167].mxu1  ;;  %v5954_v34 = vadd.f32 %v3105_v22, %v2464_v50  ;;  %v3107_v48 = vpop.f32.mrb[95].mxu0 }
 0x2b5   : > { %v3546_v27 = vmax.f32 %v3320_v42, 0.0  ;;  %v3323_v51 = vadd.f32 %v5753_v38, %v3322_v3  ;;  %v2472_v38 = vadd.f32 %v5604_v9, %v5576_v41 }
 0x2b6   : > { %3620 = vst.msk [vmem:[%s5850_s24 + $0xb0] sm:$0xff] %vm2133_vm0, %v3548_v24  ;;  %v3549_v14 = vmax.f32 %v3331_v60, 0.0 }
 0x2b7   : > { %3618 = vst.msk [vmem:[%s5850_s24 + $0xa0] sm:$0xff] %vm2133_vm0, %v3546_v27  ;;  %v3547_v62 = vmax.f32 %v3323_v51, 0.0 }
 0x2b8   : > { %3621 = vst.msk [vmem:[%s5850_s24 + $0xb8] sm:$0xff] %vm2133_vm0, %v3549_v14 }
 0x2b9   : > { %3619 = vst.msk [vmem:[%s5850_s24 + $0xa8] sm:$0xff] %vm2133_vm0, %v3547_v62  ;;  %v4142_v4 = vpop.f32.mrb[168].mxu1  ;;  %v3110_v20 = vpop.f32.mrb[96].mxu0 }
 0x2ba   : > { %v3344_v47 = vadd.f32 %v5785_v40, %v4142_v4  ;;  %v3335_v6 = vpop.f32.mrb[169].mxu1  ;;  %v5970_v33 = vadd.f32 %v3110_v20, %v2469_v56  ;;  %v3112_v36 = vpop.f32.mrb[97].mxu0 }
 0x2bb   : > { %v3336_v29 = vadd.f32 %v5773_v13, %v3335_v6  ;;  %v4143_v31 = vpop.f32.mrb[170].mxu1  ;;  %v3113_v11 = vpop.f32.mrb[98].mxu0  ;;  %v6209_v13 = vld [vmem:[#allocation2_spill] sm:$0xff] }
 0x2bc   : > { %v3552_v44 = vmax.f32 %v3344_v47, 0.0  ;;  %v3347_v55 = vadd.f32 %v5789_v32, %v4143_v31  ;;  %v3338_v35 = vpop.f32.mrb[171].mxu1  ;;  %v5974_v40 = vadd.f32 %v3113_v11, %v2472_v38  ;;  %v3115_v16 = vpop.f32.mrb[99].mxu0  ;;  %v2477_v53 = vadd.f32 %v5604_v9, %v6209_v13 }
 0x2bd   : > { %v3550_v46 = vmax.f32 %v3336_v29, 0.0  ;;  %v3339_v0 = vadd.f32 %v5777_v28, %v3338_v35  ;;  %v6210_v28 = vld [vmem:[#allocation3_spill] sm:$0xff] }
 0x2be   : > { %3624 = vst.msk [vmem:[%s5850_s24 + $0xd0] sm:$0xff] %vm2133_vm0, %v3552_v44  ;;  %v3553_v41 = vmax.f32 %v3347_v55, 0.0  ;;  %v2480_v39 = vadd.f32 %v5604_v9, %v6210_v28 }
 0x2bf   : > { %3622 = vst.msk [vmem:[%s5850_s24 + $0xc0] sm:$0xff] %vm2133_vm0, %v3550_v46  ;;  %v3551_v54 = vmax.f32 %v3339_v0, 0.0  ;;  %v6213_v46 = vld [vmem:[#allocation22_spill] sm:$0xff] }
 0x2c0   : > { %3625 = vst.msk [vmem:[%s5850_s24 + $0xd8] sm:$0xff] %vm2133_vm0, %v3553_v41 }
 0x2c1   : > { %3623 = vst.msk [vmem:[%s5850_s24 + $0xc8] sm:$0xff] %vm2133_vm0, %v3551_v54  ;;  %v4146_v32 = vpop.f32.mrb[172].mxu1  ;;  %v3118_v1 = vpop.f32.mrb[100].mxu0 }
 0x2c2   : > { %v3360_v21 = vadd.f32 %v5809_v49, %v4146_v32  ;;  %v3351_v10 = vpop.f32.mrb[173].mxu1  ;;  %v5990_v58 = vadd.f32 %v3118_v1, %v2477_v53  ;;  %v3120_v23 = vpop.f32.mrb[101].mxu0  ;;  %v6215_v1 = vld [vmem:[#allocation7_spill] sm:$0xff] }
 0x2c3   : > { %v3352_v50 = vadd.f32 %v5797_v18, %v3351_v10  ;;  %v4147_v12 = vpop.f32.mrb[174].mxu1  ;;  %v3121_v5 = vpop.f32.mrb[102].mxu0  ;;  %v6211_v18 = vld [vmem:[#allocation4_spill] sm:$0xff] }
 0x2c4   : > { %v3556_v42 = vmax.f32 %v3360_v21, 0.0  ;;  %v3363_v24 = vadd.f32 %v5813_v57, %v4147_v12  ;;  %v3354_v22 = vpop.f32.mrb[175].mxu1  ;;  %v5994_v49 = vadd.f32 %v3121_v5, %v2480_v39  ;;  %v3123_v3 = vpop.f32.mrb[103].mxu0  ;;  %v2485_v14 = vadd.f32 %v5604_v9, %v6211_v18 }
 0x2c5   : > { %v3554_v60 = vmax.f32 %v3352_v50, 0.0  ;;  %v3355_v27 = vadd.f32 %v5801_v45, %v3354_v22  ;;  %v6212_v45 = vld [vmem:[#allocation5_spill] sm:$0xff]  ;;  %v4330_v21 = vadd.f32 %v5604_v9, %v6215_v1 }
 0x2c6   : > { %3628 = vst.msk [vmem:[%s5850_s24 + $0xf0] sm:$0xff] %vm2133_vm0, %v3556_v42  ;;  %v3557_v48 = vmax.f32 %v3363_v24, 0.0  ;;  %v2488_v20 = vadd.f32 %v5604_v9, %v6212_v45 }
 0x2c7   : > { %3626 = vst.msk [vmem:[%s5850_s24 + $0xe0] sm:$0xff] %vm2133_vm0, %v3554_v60  ;;  %v3555_v51 = vmax.f32 %v3355_v27, 0.0 }
 0x2c8   : > { %3629 = vst.msk [vmem:[%s5850_s24 + $0xf8] sm:$0xff] %vm2133_vm0, %v3557_v48 }
 0x2c9   : > { %3627 = vst.msk [vmem:[%s5850_s24 + $0xe8] sm:$0xff] %vm2133_vm0, %v3555_v51  ;;  %v4150_v57 = vpop.f32.mrb[176].mxu1  ;;  %v3126_v62 = vpop.f32.mrb[104].mxu0 }
 0x2ca   : > { %v3376_v56 = vadd.f32 %v5833_v7, %v4150_v57  ;;  %v3367_v4 = vpop.f32.mrb[177].mxu1  ;;  %v6010_v47 = vadd.f32 %v3126_v62, %v2485_v14  ;;  %v3128_v6 = vpop.f32.mrb[105].mxu0 }
 0x2cb   : > { %v3368_v38 = vadd.f32 %v5821_v61, %v3367_v4  ;;  %v4151_v36 = vpop.f32.mrb[178].mxu1  ;;  %v3129_v31 = vpop.f32.mrb[106].mxu0  ;;  %v6214_v61 = vld [vmem:[#allocation6_spill] sm:$0xff] }
 0x2cc   : > { %v3560_v29 = vmax.f32 %v3376_v56, 0.0  ;;  %v3379_v44 = vadd.f32 %v5837_v15, %v4151_v36  ;;  %v3370_v11 = vpop.f32.mrb[179].mxu1  ;;  %v6014_v7 = vadd.f32 %v3129_v31, %v2488_v20  ;;  %v3131_v35 = vpop.f32.mrb[107].mxu0  ;;  %v4328_v54 = vadd.f32 %v5604_v9, %v6214_v61 }
 0x2cd   : > { %v3558_v55 = vmax.f32 %v3368_v38, 0.0  ;;  %v3371_v16 = vadd.f32 %v6213_v46, %v3370_v11 }
 0x2ce   : > { %3632 = vst.msk [vmem:[%s5850_s24 + $0x110] sm:$0xff] %vm2133_vm0, %v3560_v29  ;;  %v3561_v0 = vmax.f32 %v3379_v44, 0.0 }
 0x2cf   : > { %3630 = vst.msk [vmem:[%s5850_s24 + $0x100] sm:$0xff] %vm2133_vm0, %v3558_v55  ;;  %v3559_v41 = vmax.f32 %v3371_v16, 0.0 }
 0x2d0   : > { %3633 = vst.msk [vmem:[%s5850_s24 + $0x118] sm:$0xff] %vm2133_vm0, %v3561_v0  ;;  %v6219_v0 = vld [vmem:[#allocation11_spill] sm:$0xff] }
 0x2d1   : > { %3631 = vst.msk [vmem:[%s5850_s24 + $0x108] sm:$0xff] %vm2133_vm0, %v3559_v41  ;;  %v4154_v15 = vpop.f32.mrb[180].mxu1  ;;  %v3134_v13 = vpop.f32.mrb[108].mxu0 }
 0x2d2   : > { %v3392_v53 = vadd.f32 %v5870_v30, %v4154_v15  ;;  %v3383_v32 = vpop.f32.mrb[181].mxu1  ;;  %v6030_v10 = vadd.f32 %v4328_v54, %v3134_v13  ;;  %v3136_v28 = vpop.f32.mrb[109].mxu0 }
 0x2d3   : > { %v3384_v39 = vadd.f32 %v5845_v2, %v3383_v32  ;;  %v4155_v23 = vpop.f32.mrb[182].mxu1  ;;  %v3137_v12 = vpop.f32.mrb[110].mxu0  ;;  %v6216_v2 = vld [vmem:[#allocation8_spill] sm:$0xff] }
 0x2d4   : > { %v3564_v50 = vmax.f32 %v3392_v53, 0.0  ;;  %v3395_v42 = vadd.f32 %v5874_v17, %v4155_v23  ;;  %v3386_v5 = vpop.f32.mrb[183].mxu1  ;;  %v6034_v30 = vadd.f32 %v4330_v21, %v3137_v12  ;;  %v3139_v22 = vpop.f32.mrb[111].mxu0  ;;  %v4332_v48 = vadd.f32 %v5604_v9, %v6216_v2 }
 0x2d5   : > { %v3562_v24 = vmax.f32 %v3384_v39, 0.0  ;;  %v3387_v60 = vadd.f32 %v5854_v8, %v3386_v5  ;;  %v6217_v8 = vld [vmem:[#allocation9_spill] sm:$0xff] }
 0x2d6   : > { %3636 = vst.msk [vmem:[%s5850_s24 + $0x130] sm:$0xff] %vm2133_vm0, %v3564_v50  ;;  %v3565_v3 = vmax.f32 %v3395_v42, 0.0  ;;  %v4334_v57 = vadd.f32 %v5604_v9, %v6217_v8 }
 0x2d7   : > { %3634 = vst.msk [vmem:[%s5850_s24 + $0x120] sm:$0xff] %vm2133_vm0, %v3562_v24  ;;  %v3563_v27 = vmax.f32 %v3387_v60, 0.0 }
 0x2d8   : > { %3637 = vst.msk [vmem:[%s5850_s24 + $0x138] sm:$0xff] %vm2133_vm0, %v3565_v3 }
 0x2d9   : > { %3635 = vst.msk [vmem:[%s5850_s24 + $0x128] sm:$0xff] %vm2133_vm0, %v3563_v27  ;;  %v4158_v17 = vpop.f32.mrb[184].mxu1  ;;  %v3142_v51 = vpop.f32.mrb[112].mxu0 }
 0x2da   : > { %v3408_v18 = vadd.f32 %v5910_v25, %v4158_v17  ;;  %v3399_v14 = vpop.f32.mrb[185].mxu1  ;;  %v6050_v62 = vadd.f32 %v4332_v48, %v3142_v51  ;;  %v3144_v56 = vpop.f32.mrb[113].mxu0 }
 0x2db   : > { %v3400_v4 = vadd.f32 %v5890_v19, %v3399_v14  ;;  %v4159_v45 = vpop.f32.mrb[186].mxu1  ;;  %v3145_v6 = vpop.f32.mrb[114].mxu0  ;;  %v6066_v19 = vld [vmem:[%s6185_s2] ss:$0 sm:$0xff] }
 0x2dc   : > { %v3568_v20 = vmax.f32 %v3408_v18, 0.0  ;;  %v3411_v38 = vadd.f32 %v5914_v59, %v4159_v45  ;;  %v3402_v36 = vpop.f32.mrb[187].mxu1  ;;  %v6054_v25 = vadd.f32 %v4334_v57, %v3145_v6  ;;  %v3147_v31 = vpop.f32.mrb[115].mxu0  ;;  %v6218_v59 = vld [vmem:[#allocation10_spill] sm:$0xff]  ;;  %v4338_v41 = vadd.f32 %v6066_v19, %v6219_v0 }
 0x2dd   : > { %v3566_v29 = vmax.f32 %v3400_v4, 0.0  ;;  %v3403_v44 = vadd.f32 %v5894_v43, %v3402_v36  ;;  %v4336_v55 = vadd.f32 %v6066_v19, %v6218_v59 }
 0x2de   : > { %3640 = vst.msk [vmem:[%s5850_s24 + $0x150] sm:$0xff] %vm2133_vm0, %v3568_v20  ;;  %v3569_v9 = vmax.f32 %v3411_v38, 0.0 }
 0x2df   : > { %3638 = vst.msk [vmem:[%s5850_s24 + $0x140] sm:$0xff] %vm2133_vm0, %v3566_v29  ;;  %v3567_v11 = vmax.f32 %v3403_v44, 0.0 }
 0x2e0   : > { %3641 = vst.msk [vmem:[%s5850_s24 + $0x158] sm:$0xff] %vm2133_vm0, %v3569_v9 }
 0x2e1   : > { %3639 = vst.msk [vmem:[%s5850_s24 + $0x148] sm:$0xff] %vm2133_vm0, %v3567_v11  ;;  %v4162_v35 = vpop.f32.mrb[188].mxu1  ;;  %v3150_v43 = vpop.f32.mrb[116].mxu0 }
 0x2e2   : > { %v3424_v46 = vadd.f32 %v5950_v63, %v4162_v35  ;;  %v3415_v16 = vpop.f32.mrb[189].mxu1  ;;  %v6075_v61 = vadd.f32 %v4336_v55, %v3150_v43  ;;  %v3152_v54 = vpop.f32.mrb[117].mxu0 }
 0x2e3   : > { %v3416_v15 = vadd.f32 %v5930_v52, %v3415_v16  ;;  %v4163_v13 = vpop.f32.mrb[190].mxu1  ;;  %v3153_v32 = vpop.f32.mrb[118].mxu0  ;;  %v6220_v52 = vld [vmem:[#allocation12_spill] sm:$0xff] }
 0x2e4   : > { %v3572_v53 = vmax.f32 %v3424_v46, 0.0  ;;  %v3427_v1 = vadd.f32 %v5954_v34, %v4163_v13  ;;  %v3418_v21 = vpop.f32.mrb[191].mxu1  ;;  %v6079_v63 = vadd.f32 %v4338_v41, %v3153_v32  ;;  %v3155_v39 = vpop.f32.mrb[119].mxu0  ;;  %v4340_v42 = vadd.f32 %v6066_v19, %v6220_v52 }
 0x2e5   : > { %v3570_v28 = vmax.f32 %v3416_v15, 0.0  ;;  %v3419_v23 = vadd.f32 %v5934_v26, %v3418_v21  ;;  %v6221_v26 = vld [vmem:[#allocation13_spill] sm:$0xff] }
 0x2e6   : > { %3644 = vst.msk [vmem:[%s5850_s24 + $0x170] sm:$0xff] %vm2133_vm0, %v3572_v53  ;;  %v3573_v50 = vmax.f32 %v3427_v1, 0.0  ;;  %v4342_v60 = vadd.f32 %v6066_v19, %v6221_v26 }
 0x2e7   : > { %3642 = vst.msk [vmem:[%s5850_s24 + $0x160] sm:$0xff] %vm2133_vm0, %v3570_v28  ;;  %v3571_v12 = vmax.f32 %v3419_v23, 0.0 }
 0x2e8   : > { %3645 = vst.msk [vmem:[%s5850_s24 + $0x178] sm:$0xff] %vm2133_vm0, %v3573_v50 }
 0x2e9   : > { %3643 = vst.msk [vmem:[%s5850_s24 + $0x168] sm:$0xff] %vm2133_vm0, %v3571_v12  ;;  %v4166_v34 = vpop.f32.mrb[192].mxu1  ;;  %v3158_v5 = vpop.f32.mrb[120].mxu0 }
 0x2ea   : > { %v3440_v24 = vadd.f32 %v5990_v58, %v4166_v34  ;;  %v3431_v22 = vpop.f32.mrb[193].mxu1  ;;  %v6095_v3 = vadd.f32 %v4340_v42, %v3158_v5  ;;  %v3160_v27 = vpop.f32.mrb[121].mxu0 }
 0x2eb   : > { %v3432_v2 = vadd.f32 %v5970_v33, %v3431_v22  ;;  %v4167_v48 = vpop.f32.mrb[194].mxu1  ;;  %v3161_v51 = vpop.f32.mrb[122].mxu0  ;;  %v6222_v33 = vld [vmem:[#allocation14_spill] sm:$0xff] }
 0x2ec   : > { %v3576_v17 = vmax.f32 %v3440_v24, 0.0  ;;  %v3443_v18 = vadd.f32 %v5994_v49, %v4167_v48  ;;  %v3434_v14 = vpop.f32.mrb[195].mxu1  ;;  %v6099_v58 = vadd.f32 %v4342_v60, %v3161_v51  ;;  %v3163_v57 = vpop.f32.mrb[123].mxu0  ;;  %v4344_v20 = vadd.f32 %v6066_v19, %v6222_v33 }
 0x2ed   : > { %v3574_v8 = vmax.f32 %v3432_v2, 0.0  ;;  %v3435_v56 = vadd.f32 %v5974_v40, %v3434_v14  ;;  %v6223_v40 = vld [vmem:[#allocation15_spill] sm:$0xff] }
 0x2ee   : > { %3648 = vst.msk [vmem:[%s5850_s24 + $0x190] sm:$0xff] %vm2133_vm0, %v3576_v17  ;;  %v3577_v4 = vmax.f32 %v3443_v18, 0.0  ;;  %v4346_v29 = vadd.f32 %v6066_v19, %v6223_v40  ;;  %v6227_v17 = vld [vmem:[#allocation19_spill] sm:$0xff] }
 0x2ef   : > { %3646 = vst.msk [vmem:[%s5850_s24 + $0x180] sm:$0xff] %vm2133_vm0, %v3574_v8  ;;  %v3575_v45 = vmax.f32 %v3435_v56, 0.0 }
 0x2f0   : > { %3649 = vst.msk [vmem:[%s5850_s24 + $0x198] sm:$0xff] %vm2133_vm0, %v3577_v4 }
 0x2f1   : > { %3647 = vst.msk [vmem:[%s5850_s24 + $0x188] sm:$0xff] %vm2133_vm0, %v3575_v45  ;;  %v4170_v49 = vpop.f32.mrb[196].mxu1  ;;  %v3166_v6 = vpop.f32.mrb[124].mxu0 }
 0x2f2   : > { %v3456_v38 = vadd.f32 %v6030_v10, %v4170_v49  ;;  %v3447_v36 = vpop.f32.mrb[197].mxu1  ;;  %v4345_v31 = vadd.f32 %v4344_v20, %v3166_v6  ;;  %v3168_v44 = vpop.f32.mrb[125].mxu0 }
 0x2f3   : > { %v3448_v9 = vadd.f32 %v6010_v47, %v3447_v36  ;;  %v4171_v11 = vpop.f32.mrb[198].mxu1  ;;  %v3169_v55 = vpop.f32.mrb[126].mxu0  ;;  %v6224_v47 = vld [vmem:[#allocation16_spill] sm:$0xff] }
 0x2f4   : > { %v3580_v59 = vmax.f32 %v3456_v38, 0.0  ;;  %v3459_v35 = vadd.f32 %v6034_v30, %v4171_v11  ;;  %v3450_v43 = vpop.f32.mrb[199].mxu1  ;;  %v4347_v16 = vadd.f32 %v4346_v29, %v3169_v55  ;;  %v3171_v10 = vpop.f32.mrb[127].mxu0  ;;  %v4348_v15 = vadd.f32 %v6066_v19, %v6224_v47  ;;  %v6229_v11 = vld [vmem:[#allocation21_spill] sm:$0xff] }
 0x2f5   : > { %v3578_v46 = vmax.f32 %v3448_v9, 0.0  ;;  %v3451_v0 = vadd.f32 %v6014_v7, %v3450_v43  ;;  %v6225_v7 = vld [vmem:[#allocation17_spill] sm:$0xff] }
 0x2f6   : > { %3652 = vst.msk [vmem:[%s5850_s24 + $0x1b0] sm:$0xff] %vm2133_vm0, %v3580_v59  ;;  %v3581_v41 = vmax.f32 %v3459_v35, 0.0  ;;  %v4350_v1 = vadd.f32 %v6066_v19, %v6225_v7 }
 0x2f7   : > { %3650 = vst.msk [vmem:[%s5850_s24 + $0x1a0] sm:$0xff] %vm2133_vm0, %v3578_v46  ;;  %v3579_v54 = vmax.f32 %v3451_v0, 0.0 }
 0x2f8   : > { %3653 = vst.msk [vmem:[%s5850_s24 + $0x1b8] sm:$0xff] %vm2133_vm0, %v3581_v41 }
 0x2f9   : > { %3651 = vst.msk [vmem:[%s5850_s24 + $0x1a8] sm:$0xff] %vm2133_vm0, %v3579_v54  ;;  %v4174_v30 = vpop.f32.mrb[200].mxu1  ;;  %v3174_v13 = vpop.f32.mrb[128].mxu0 }
 0x2fa   : > { %v3472_v53 = vadd.f32 %v6075_v61, %v4174_v30  ;;  %v3463_v32 = vpop.f32.mrb[201].mxu1  ;;  %v4349_v21 = vadd.f32 %v4348_v15, %v3174_v13  ;;  %v3176_v28 = vpop.f32.mrb[129].mxu0 }
 0x2fb   : > { %v3464_v39 = vadd.f32 %v6050_v62, %v3463_v32  ;;  %v4175_v23 = vpop.f32.mrb[202].mxu1  ;;  %v3177_v12 = vpop.f32.mrb[130].mxu0  ;;  %v6226_v62 = vld [vmem:[#allocation18_spill] sm:$0xff]  ;;  %v4362_v28 = vadd.f32 %v6066_v19, %v5835_v37 }
 0x2fc   : > { %v3584_v50 = vmax.f32 %v3472_v53, 0.0  ;;  %v3475_v52 = vadd.f32 %v6079_v63, %v4175_v23  ;;  %v3466_v42 = vpop.f32.mrb[203].mxu1  ;;  %v4351_v5 = vadd.f32 %v4350_v1, %v3177_v12  ;;  %v3179_v61 = vpop.f32.mrb[131].mxu0  ;;  %v4352_v60 = vadd.f32 %v6066_v19, %v6226_v62  ;;  %v6230_v53 = vld [vmem:[#allocation23_spill] sm:$0xff] }
 0x2fd   : > { %v3582_v34 = vmax.f32 %v3464_v39, 0.0  ;;  %v3467_v24 = vadd.f32 %v6054_v25, %v3466_v42  ;;  %v4354_v25 = vadd.f32 %v6066_v19, %v6227_v17  ;;  %v4360_v32 = vadd.f32 %v6066_v19, %v6230_v53 }
 0x2fe   : > { %3656 = vst.msk [vmem:[%s5850_s24 + $0x1d0] sm:$0xff] %vm2133_vm0, %v3584_v50  ;;  %v3585_v22 = vmax.f32 %v3475_v52, 0.0 }
 0x2ff   : > { %3654 = vst.msk [vmem:[%s5850_s24 + $0x1c0] sm:$0xff] %vm2133_vm0, %v3582_v34  ;;  %v3583_v26 = vmax.f32 %v3467_v24, 0.0 }
 0x300   : > { %3657 = vst.msk [vmem:[%s5850_s24 + $0x1d8] sm:$0xff] %vm2133_vm0, %v3585_v22 }
 0x301   : > { %3655 = vst.msk [vmem:[%s5850_s24 + $0x1c8] sm:$0xff] %vm2133_vm0, %v3583_v26  ;;  %v4178_v63 = vpop.f32.mrb[204].mxu1  ;;  %v3182_v27 = vpop.f32.mrb[132].mxu0 }
 0x302   : > { %v3488_v2 = vadd.f32 %v4345_v31, %v4178_v63  ;;  %v3479_v48 = vpop.f32.mrb[205].mxu1  ;;  %v4353_v51 = vadd.f32 %v4352_v60, %v3182_v27  ;;  %v3184_v18 = vpop.f32.mrb[133].mxu0 }
 0x303   : > { %v3480_v14 = vadd.f32 %v6095_v3, %v3479_v48  ;;  %v4179_v8 = vpop.f32.mrb[206].mxu1  ;;  %v3185_v56 = vpop.f32.mrb[134].mxu0  ;;  %v6228_v3 = vld [vmem:[#allocation20_spill] sm:$0xff] }
 0x304   : > { %v3588_v57 = vmax.f32 %v3488_v2, 0.0  ;;  %v3491_v4 = vadd.f32 %v4347_v16, %v4179_v8  ;;  %v3482_v45 = vpop.f32.mrb[207].mxu1  ;;  %v4355_v20 = vadd.f32 %v4354_v25, %v3185_v56  ;;  %v3187_v49 = vpop.f32.mrb[135].mxu0  ;;  %v4356_v40 = vadd.f32 %v6066_v19, %v6228_v3 }
 0x305   : > { %v3586_v33 = vmax.f32 %v3480_v14, 0.0  ;;  %v3483_v6 = vadd.f32 %v6099_v58, %v3482_v45  ;;  %v4358_v58 = vadd.f32 %v6066_v19, %v6229_v11 }
 0x306   : > { %3660 = vst.msk [vmem:[%s5850_s24 + $0x1f0] sm:$0xff] %vm2133_vm0, %v3588_v57  ;;  %v3589_v38 = vmax.f32 %v3491_v4, 0.0 }
 0x307   : > { %3658 = vst.msk [vmem:[%s5850_s24 + $0x1e0] sm:$0xff] %vm2133_vm0, %v3586_v33  ;;  %v3587_v36 = vmax.f32 %v3483_v6, 0.0 }
 0x308   : > { %3661 = vst.msk [vmem:[%s5850_s24 + $0x1f8] sm:$0xff] %vm2133_vm0, %v3589_v38 }
 0x309   : > { %3659 = vst.msk [vmem:[%s5850_s24 + $0x1e8] sm:$0xff] %vm2133_vm0, %v3587_v36  ;;  %v4182_v29 = vpop.f32.mrb[208].mxu1  ;;  %v3190_v31 = vpop.f32.mrb[136].mxu0 }
 0x30a   : > { %v3504_v44 = vadd.f32 %v4353_v51, %v4182_v29  ;;  %v3495_v9 = vpop.f32.mrb[209].mxu1  ;;  %v4357_v59 = vadd.f32 %v4356_v40, %v3190_v31  ;;  %v3192_v55 = vpop.f32.mrb[137].mxu0 }
 0x30b   : > { %v3496_v35 = vadd.f32 %v4349_v21, %v3495_v9  ;;  %v4183_v43 = vpop.f32.mrb[210].mxu1  ;;  %v3193_v16 = vpop.f32.mrb[138].mxu0 }
 0x30c   : > { %v3592_v46 = vmax.f32 %v3504_v44, 0.0  ;;  %v3507_v10 = vadd.f32 %v4355_v20, %v4183_v43  ;;  %v3498_v0 = vpop.f32.mrb[211].mxu1  ;;  %v4359_v54 = vadd.f32 %v4358_v58, %v3193_v16  ;;  %v3195_v47 = vpop.f32.mrb[139].mxu0 }
 0x30d   : > { %v3590_v41 = vmax.f32 %v3496_v35, 0.0  ;;  %v3499_v15 = vadd.f32 %v4351_v5, %v3498_v0 }
 0x30e   : > { %3664 = vst.msk [vmem:[%s5850_s24 + $0x210] sm:$0xff] %vm2133_vm0, %v3592_v46  ;;  %v3593_v30 = vmax.f32 %v3507_v10, 0.0 }
 0x30f   : > { %3662 = vst.msk [vmem:[%s5850_s24 + $0x200] sm:$0xff] %vm2133_vm0, %v3590_v41  ;;  %v3591_v13 = vmax.f32 %v3499_v15, 0.0 }
 0x310   : > { %3665 = vst.msk [vmem:[%s5850_s24 + $0x218] sm:$0xff] %vm2133_vm0, %v3593_v30 }
 0x311   : > { %3663 = vst.msk [vmem:[%s5850_s24 + $0x208] sm:$0xff] %vm2133_vm0, %v3591_v13  ;;  %v4186_v7 = vpop.f32.mrb[212].mxu1  ;;  %v3198_v1 = vpop.f32.mrb[140].mxu0 }
 0x312   : > { %v3511_v21 = vpop.f32.mrb[213].mxu1  ;;  %v4361_v39 = vadd.f32 %v4360_v32, %v3198_v1  ;;  %v3200_v23 = vpop.f32.mrb[141].mxu0 }
 0x313   : > { %v3512_v50 = vadd.f32 %v4357_v59, %v3511_v21  ;;  %v4187_v12 = vpop.f32.mrb[214].mxu1  ;;  %v3201_v52 = vpop.f32.mrb[142].mxu0 }
 0x314   : > { %v3514_v42 = vpop.f32.mrb[215].mxu1  ;;  %v3520_v34 = vadd.f32 %v4361_v39, %v4186_v7  ;;  %v4363_v61 = vadd.f32 %v4362_v28, %v3201_v52  ;;  %v3203_v24 = vpop.f32.mrb[143].mxu0 }
 0x315   : > { %v3594_v5 = vmax.f32 %v3512_v50, 0.0  ;;  %v3515_v22 = vadd.f32 %v4359_v54, %v3514_v42 }
 0x316   : > { %v3596_v26 = vmax.f32 %v3520_v34, 0.0  ;;  %v3523_v62 = vadd.f32 %v4363_v61, %v4187_v12 }
 0x317   : > { %3666 = vst.msk [vmem:[%s5850_s24 + $0x220] sm:$0xff] %vm2133_vm0, %v3594_v5  ;;  %v3595_v60 = vmax.f32 %v3515_v22, 0.0 }
 0x318   : > { %3668 = vst.msk [vmem:[%s5850_s24 + $0x230] sm:$0xff] %vm2133_vm0, %v3596_v26  ;;  %v3597_v37 = vmax.f32 %v3523_v62, 0.0 }
 0x319   : > { %3667 = vst.msk [vmem:[%s5850_s24 + $0x228] sm:$0xff] %vm2133_vm0, %v3595_v60 }
 0x31a   : > { %3669 = vst.msk [vmem:[%s5850_s24 + $0x238] sm:$0xff] %vm2133_vm0, %v3597_v37 }
 0x31b PF: > { %s13_s12 = sadd.s32 1, %s4935_s12  }
 0x31c   : > { %p10_p4 = scmp.ge.s32.totalorder %s13_s12, 4  }
 0x31e   :  { %12 = sbr.rel (!%p10_p4) target bundleno = 1 (0x1), region = 62 }

// kernel: cifar_net_forward.10
= control target key start
LH: loop header
LB: loop body
LE: loop exit
PB: predicated region body
PF: predicated region fallthrough
CT: control target
= control target key end

     0   :  { %vm766_vm0 = vcmask 261120   ;;  %vm1195_vm1 = vcmask 523264   ;;  %s2178_s1 = inlined_call_operand.vmem [shape: bf16[800,64], index: 1, kind: input, shape index: {}]   ;;  %s2179_s0 = inlined_call_operand.vmem [shape: bf16[128,800], index: 0, kind: input, shape index: {}]   ;;  %s2180_s2 = inlined_call_operand.vmem [shape: f32[1,64], index: 2, kind: input, shape index: {}]   ;;  %s2181_s3 = inlined_call_operand.vmem [shape: f32[128,64], index: 3, kind: output, shape index: {}]  }
   0x1   :  { %v1569_v0 = vld [vmem:[%s2178_s1 + $0x40] sm:$0xff]   ;;  %v1573_v4 = vld [vmem:[%s2178_s1 + $0x48] sm:$0xff]   ;;  %v1577_v8 = vld [vmem:[%s2178_s1 + $0x50] sm:$0xff]  }
   0x2   :  { %v1570_v1 = vld [vmem:[%s2178_s1 + $0xc0] sm:$0xff]   ;;  %1331 = vmatprep.subr.bf16.mxu0 %v1569_v0  ;;  %v1574_v5 = vld [vmem:[%s2178_s1 + $0xc8] sm:$0xff]   ;;  %v1578_v9 = vld [vmem:[%s2178_s1 + $0xd0] sm:$0xff]  }
   0x3   :  { %v1571_v2 = vld [vmem:[%s2178_s1] sm:$0xff]   ;;  %1395 = vmatprep.subr.bf16.mxu1 %v1570_v1  ;;  %v1575_v6 = vld [vmem:[%s2178_s1 + $0x8] sm:$0xff]   ;;  %v1579_v10 = vld [vmem:[%s2178_s1 + $0x10] sm:$0xff]  }
   0x4   :  { %v1572_v3 = vld [vmem:[%s2178_s1 + $0x80] sm:$0xff]   ;;  %1332 = vmatpush3.bf16.msra.mxu0 %v1571_v2  ;;  %v1576_v7 = vld [vmem:[%s2178_s1 + $0x88] sm:$0xff]   ;;  %v1580_v11 = vld [vmem:[%s2178_s1 + $0x90] sm:$0xff]  }
   0x5   :  { %1396 = vmatpush3.bf16.msra.mxu1 %v1572_v3  ;;  %1333 = vmatprep.subr.bf16.mxu0 %v1573_v4  ;;  %v1581_v12 = vld [vmem:[%s2178_s1 + $0x58] sm:$0xff]   ;;  %v1585_v16 = vld [vmem:[%s2178_s1 + $0x60] sm:$0xff]   ;;  %v1589_v20 = vld [vmem:[%s2178_s1 + $0x68] sm:$0xff]  }
   0x6   :  { %1397 = vmatprep.subr.bf16.mxu1 %v1574_v5  ;;  %v1582_v13 = vld [vmem:[%s2178_s1 + $0xd8] sm:$0xff]   ;;  %v1586_v17 = vld [vmem:[%s2178_s1 + $0xe0] sm:$0xff]   ;;  %v1590_v21 = vld [vmem:[%s2178_s1 + $0xe8] sm:$0xff]  }
   0x7   :  { %v1583_v14 = vld [vmem:[%s2178_s1 + $0x18] sm:$0xff]   ;;  %v1587_v18 = vld [vmem:[%s2178_s1 + $0x20] sm:$0xff]   ;;  %v1591_v22 = vld [vmem:[%s2178_s1 + $0x28] sm:$0xff]  }
   0x8   :  { %1334 = vmatpush3.bf16.msra.mxu0 %v1575_v6  ;;  %v1584_v15 = vld [vmem:[%s2178_s1 + $0x98] sm:$0xff]   ;;  %v1588_v19 = vld [vmem:[%s2178_s1 + $0xa0] sm:$0xff]   ;;  %v1592_v23 = vld [vmem:[%s2178_s1 + $0xa8] sm:$0xff]  }
   0x9   :  { %1398 = vmatpush3.bf16.msra.mxu1 %v1576_v7  ;;  %1335 = vmatprep.subr.bf16.mxu0 %v1577_v8  ;;  %v1593_v24 = vld [vmem:[%s2178_s1 + $0x70] sm:$0xff]   ;;  %v1597_v28 = vld [vmem:[%s2178_s1 + $0x78] sm:$0xff]   ;;  %v1603_v33 = vld [vmem:[%s2179_s0 + $0x4] ss:$28 sps:$4 sm:$0xff]  }
   0xa   :  { %1399 = vmatprep.subr.bf16.mxu1 %v1578_v9  ;;  %v1594_v25 = vld [vmem:[%s2178_s1 + $0xf0] sm:$0xff]   ;;  %v1598_v29 = vld [vmem:[%s2178_s1 + $0xf8] sm:$0xff]   ;;  %v1604_v34 = vld [vmem:[%s2179_s0 + $0x8] ss:$28 sps:$4 sm:$0xff]   ;;  %823 = vmatprep.mubr.bf16.mxu0 %v1603_v33 }
   0xb   :  { %v1595_v26 = vld [vmem:[%s2178_s1 + $0x30] sm:$0xff]   ;;  %v1599_v30 = vld [vmem:[%s2178_s1 + $0x38] sm:$0xff]   ;;  %v1606_v35 = vld [vmem:[%s2179_s0 + $0xc] ss:$28 sps:$4 sm:$0xff]  }
   0xc   :  { %1336 = vmatpush3.bf16.msra.mxu0 %v1579_v10  ;;  %v1596_v27 = vld [vmem:[%s2178_s1 + $0xb0] sm:$0xff]   ;;  %v1600_v31 = vld [vmem:[%s2178_s1 + $0xb8] sm:$0xff]   ;;  %v1607_v36 = vld [vmem:[%s2178_s1 + $0x140] sm:$0xff]   ;;  %920 = vmatprep.mubr.bf16.mxu1 %v1606_v35 }
   0xd   :  { %1400 = vmatpush3.bf16.msra.mxu1 %v1580_v11  ;;  %1337 = vmatprep.subr.bf16.mxu0 %v1581_v12  ;;  %v1601_v32 = vld [vmem:[%s2179_s0] ss:$28 sps:$4 sm:$0xff]   ;;  %v1613_v40 = vld [vmem:[%s2179_s0 + $0x38] ss:$28 sps:$4 sm:$0xff]   ;;  %v1615_v42 = vld [vmem:[%s2178_s1 + $0x148] sm:$0xff]  }
   0xe   :  { %1401 = vmatprep.subr.bf16.mxu1 %v1582_v13  ;;  %v1608_v37 = vld [vmem:[%s2178_s1 + $0x100] sm:$0xff]   ;;  %v1609_v38 = vld [vmem:[%s2179_s0 + $0x3c] ss:$28 sps:$4 sm:$0xff]   ;;  %v1616_v43 = vld [vmem:[%s2178_s1 + $0x108] sm:$0xff]  }
   0xf   :  { %v1611_v39 = vld [vmem:[%s2179_s0 + $0x44] ss:$28 sps:$4 sm:$0xff]   ;;  %v1617_v44 = vld [vmem:[%s2179_s0 + $0x74] ss:$28 sps:$4 sm:$0xff]   ;;  %v1619_v45 = vld [vmem:[%s2179_s0 + $0x7c] ss:$28 sps:$4 sm:$0xff]  }
  0x10   :  { %1338 = vmatpush3.bf16.msra.mxu0 %v1583_v14  ;;  %v1614_v41 = vld [vmem:[%s2179_s0 + $0x40] ss:$28 sps:$4 sm:$0xff]   ;;  %v1623_v46 = vld [vmem:[%s2178_s1 + $0x150] sm:$0xff]   ;;  %v1625_v50 = vld [vmem:[%s2179_s0 + $0xac] ss:$28 sps:$4 sm:$0xff]  }
  0x11   :  { %1402 = vmatpush3.bf16.msra.mxu1 %v1584_v15  ;;  %1339 = vmatprep.subr.bf16.mxu0 %v1585_v16  ;;  %v1624_v47 = vld [vmem:[%s2178_s1 + $0x110] sm:$0xff]   ;;  %v1631_v52 = vld [vmem:[%s2178_s1 + $0x158] sm:$0xff]   ;;  %v1639_v54 = vld [vmem:[%s2178_s1 + $0x160] sm:$0xff]  }
  0x12   :  { %1403 = vmatprep.subr.bf16.mxu1 %v1586_v17  ;;  %v1621_v48 = vld [vmem:[%s2179_s0 + $0x70] ss:$28 sps:$4 sm:$0xff]   ;;  %v1622_v49 = vld [vmem:[%s2179_s0 + $0x78] ss:$28 sps:$4 sm:$0xff]   ;;  %v1640_v55 = vld [vmem:[%s2178_s1 + $0x120] sm:$0xff]  }
  0x13   :  { %v1627_v51 = vld [vmem:[%s2179_s0 + $0xb4] ss:$28 sps:$4 sm:$0xff]   ;;  %v1632_v53 = vld [vmem:[%s2178_s1 + $0x118] sm:$0xff]   ;;  %v1629_v56 = vld [vmem:[%s2179_s0 + $0xa8] ss:$28 sps:$4 sm:$0xff]  }
  0x14   :  { %1340 = vmatpush3.bf16.msra.mxu0 %v1587_v18  ;;  %v1630_v57 = vld [vmem:[%s2179_s0 + $0xb0] ss:$28 sps:$4 sm:$0xff]   ;;  %v1633_v58 = vld [vmem:[%s2179_s0 + $0xe4] ss:$28 sps:$4 sm:$0xff]   ;;  %v1641_v2 = vld [vmem:[%s2179_s0 + $0x11c] ss:$28 sps:$4 sm:$0xff]  }
  0x15   :  { %1404 = vmatpush3.bf16.msra.mxu1 %v1588_v19  ;;  %1341 = vmatprep.subr.bf16.mxu0 %v1589_v20  ;;  %v1635_v59 = vld [vmem:[%s2179_s0 + $0xec] ss:$28 sps:$4 sm:$0xff]   ;;  %v1637_v62 = vld [vmem:[%s2179_s0 + $0xe0] ss:$28 sps:$4 sm:$0xff]   ;;  %v1655_v0 = vld [vmem:[%s2178_s1 + $0x170] sm:$0xff]  }
  0x16   :  { %1405 = vmatprep.subr.bf16.mxu1 %v1590_v21  ;;  %v1647_v60 = vld [vmem:[%s2178_s1 + $0x168] sm:$0xff]   ;;  %v1656_v1 = vld [vmem:[%s2178_s1 + $0x130] sm:$0xff]   ;;  %v1643_v3 = vld [vmem:[%s2179_s0 + $0x124] ss:$28 sps:$4 sm:$0xff]  }
  0x17   :  { %v1648_v61 = vld [vmem:[%s2178_s1 + $0x128] sm:$0xff]   ;;  %v1663_v4 = vld [vmem:[%s2178_s1 + $0x178] sm:$0xff]   ;;  %v1671_v8 = vld [vmem:[%s2178_s1 + $0x180] sm:$0xff]  }
  0x18   :  { %1342 = vmatpush3.bf16.msra.mxu0 %v1591_v22  ;;  %v1638_v63 = vld [vmem:[%s2179_s0 + $0xe8] ss:$28 sps:$4 sm:$0xff]   ;;  %v1664_v5 = vld [vmem:[%s2178_s1 + $0x138] sm:$0xff]   ;;  %v1649_v9 = vld [vmem:[%s2179_s0 + $0x154] ss:$28 sps:$4 sm:$0xff]  }
  0x19   :  { %1406 = vmatpush3.bf16.msra.mxu1 %v1592_v23  ;;  %1343 = vmatprep.subr.bf16.mxu0 %v1593_v24  ;;  %v1645_v6 = vld [vmem:[%s2179_s0 + $0x118] ss:$28 sps:$4 sm:$0xff]   ;;  %v1646_v7 = vld [vmem:[%s2179_s0 + $0x120] ss:$28 sps:$4 sm:$0xff]   ;;  %v1653_v11 = vld [vmem:[%s2179_s0 + $0x150] ss:$28 sps:$4 sm:$0xff]  }
  0x1a   :  { %1407 = vmatprep.subr.bf16.mxu1 %v1594_v25  ;;  %v1651_v10 = vld [vmem:[%s2179_s0 + $0x15c] ss:$28 sps:$4 sm:$0xff]   ;;  %v1657_v13 = vld [vmem:[%s2179_s0 + $0x18c] ss:$28 sps:$4 sm:$0xff]   ;;  %v1659_v14 = vld [vmem:[%s2179_s0 + $0x194] ss:$28 sps:$4 sm:$0xff]  }
  0x1b   :  { %v1654_v12 = vld [vmem:[%s2179_s0 + $0x158] ss:$28 sps:$4 sm:$0xff]   ;;  %v1661_v15 = vld [vmem:[%s2179_s0 + $0x188] ss:$28 sps:$4 sm:$0xff]   ;;  %v1662_v16 = vld [vmem:[%s2179_s0 + $0x190] ss:$28 sps:$4 sm:$0xff]  }
  0x1c   :  { %1344 = vmatpush3.bf16.msra.mxu0 %v1595_v26  ;;  %v1667_v17 = vld [vmem:[%s2179_s0 + $0x14] ss:$28 sps:$4 sm:$0xff]   ;;  %v1670_v18 = vld [vmem:[%s2179_s0 + $0x164] ss:$28 sps:$4 sm:$0xff]   ;;  %v1672_v21 = vld [vmem:[%s2179_s0 + $0x4c] ss:$28 sps:$4 sm:$0xff]  }
  0x1d   :  { %1408 = vmatpush3.bf16.msra.mxu1 %v1596_v27  ;;  %1345 = vmatprep.subr.bf16.mxu0 %v1597_v28  ;;  %v1665_v19 = vld [vmem:[%s2179_s0 + $0x10] ss:$28 sps:$4 sm:$0xff]   ;;  %v1668_v20 = vld [vmem:[%s2179_s0 + $0x160] ss:$28 sps:$4 sm:$0xff]   ;;  %v1676_v24 = vld [vmem:[%s2179_s0 + $0x48] ss:$28 sps:$4 sm:$0xff]  }
  0x1e   :  { %1409 = vmatprep.subr.bf16.mxu1 %v1598_v29  ;;  %v1674_v22 = vld [vmem:[%s2179_s0 + $0x19c] ss:$28 sps:$4 sm:$0xff]   ;;  %v1678_v23 = vld [vmem:[%s2178_s1 + $0x188] sm:$0xff]   ;;  %v1679_v26 = vld [vmem:[%s2179_s0 + $0x84] ss:$28 sps:$4 sm:$0xff]  }
  0x1f   :  { %v1677_v25 = vld [vmem:[%s2179_s0 + $0x198] ss:$28 sps:$4 sm:$0xff]   ;;  %v1682_v28 = vld [vmem:[%s2179_s0 + $0x80] ss:$28 sps:$4 sm:$0xff]   ;;  %v1683_v29 = vld [vmem:[%s2179_s0 + $0x50] ss:$28 sps:$4 sm:$0xff]  }
  0x20   :  { %1346 = vmatpush3.bf16.msra.mxu0 %v1599_v30  ;;  %v1681_v27 = vld [vmem:[%s2179_s0 + $0x18] ss:$28 sps:$4 sm:$0xff]   ;;  %v1688_v33 = vld [vmem:[%s2179_s0 + $0xc0] ss:$28 sps:$4 sm:$0xff]  }
  0x21   :  { %1410 = vmatpush3.bf16.msra.mxu1 %v1600_v31  ;;  %1459 = vmatprep.subr.bf16.mxu0 %v1607_v36  ;;  %v1684_v30 = vld [vmem:[%s2179_s0 + $0xbc] ss:$28 sps:$4 sm:$0xff]   ;;  %v1686_v31 = vld [vmem:[%s2179_s0 + $0x88] ss:$28 sps:$4 sm:$0xff]  }
  0x22   :  { %1553 = vmatprep.subr.bf16.mxu1 %v1607_v36  ;;  %v1691_v35 = vld [vmem:[%s2179_s0 + $0xf8] ss:$28 sps:$4 sm:$0xff]   ;;  %v1692_v36 = vld [vmem:[%s2179_s0 + $0xf0] ss:$28 sps:$4 sm:$0xff]  }
  0x23   :  { %824 = vmatmul.mubr.bf16.vlgmr.msra.gmra.mrb[0].mxu0 %v1601_v32  ;;  %v1687_v32 = vld [vmem:[%s2179_s0 + $0xb8] ss:$28 sps:$4 sm:$0xff]  }
  0x24   :  { %921 = vmatmul.mubr.bf16.vlgmr.msra.gmra.mrb[0].mxu1 %v1604_v34  ;;  %1460 = vmatpush3.bf16.msra.mxu0 %v1608_v37  ;;  %v1689_v34 = vld [vmem:[%s2179_s0 + $0xf4] ss:$28 sps:$4 sm:$0xff]  }
  0x25   :  { %1561 = vmatpush3.bf16.msra.mxu1 %v1608_v37  ;;  %831 = vmatprep.mubr.bf16.mxu0 %v1609_v38  ;;  %v1693_v37 = vld [vmem:[%s2179_s0 + $0x130] ss:$28 sps:$4 sm:$0xff]  }
  0x26   :  { %928 = vmatprep.mubr.bf16.mxu1 %v1611_v39  ;;  %1461 = vmatprep.subr.bf16.mxu0 %v1615_v42  ;;  %v1694_v38 = vld [vmem:[%s2179_s0 + $0x12c] ss:$28 sps:$4 sm:$0xff]  }
  0x27   :  { %1554 = vmatprep.subr.bf16.mxu1 %v1615_v42  ;;  %v1696_v39 = vld [vmem:[%s2179_s0 + $0x168] ss:$28 sps:$4 sm:$0xff]  }
  0x28   :  { %1462 = vmatpush3.bf16.msra.mxu0 %v1616_v43 }
  0x29   :  { %1562 = vmatpush3.bf16.msra.mxu1 %v1616_v43  ;;  %1463 = vmatprep.subr.bf16.mxu0 %v1623_v46  ;;  %v2048_v43 = vld [vmem:[%s2180_s2] ss:$0 sm:$0xff] }
  0x2a   :  { %1555 = vmatprep.subr.bf16.mxu1 %v1623_v46 }
  0x2b   :  { %832 = vmatmul.mubr.bf16.gmra.mrb[4].mxu0 %v1613_v40  ;;  %v1697_v40 = vld [vmem:[%s2179_s0 + $0x128] ss:$28 sps:$4 sm:$0xff]  }
  0x2c   :  { %929 = vmatmul.mubr.bf16.gmra.mrb[4].mxu1 %v1614_v41  ;;  %839 = vmatprep.mubr.bf16.mxu0 %v1617_v44  ;;  %v1698_v41 = vld [vmem:[%s2179_s0 + $0x1a0] ss:$28 sps:$4 sm:$0xff]  }
  0x2d   :  { %936 = vmatprep.mubr.bf16.mxu1 %v1619_v45  ;;  %1464 = vmatpush3.bf16.msra.mxu0 %v1624_v47 }
  0x2e   :  { %1563 = vmatpush3.bf16.msra.mxu1 %v1624_v47  ;;  %1465 = vmatprep.subr.bf16.mxu0 %v1631_v52 }
  0x2f   :  { %1556 = vmatprep.subr.bf16.mxu1 %v1631_v52 }
  0x31   :  { %1466 = vmatpush3.bf16.msra.mxu0 %v1632_v53 }
  0x32   :  { %1564 = vmatpush3.bf16.msra.mxu1 %v1632_v53  ;;  %1467 = vmatprep.subr.bf16.mxu0 %v1639_v54 }
  0x33   :  { %840 = vmatmul.mubr.bf16.gmra.mrb[8].mxu0 %v1621_v48  ;;  %1557 = vmatprep.subr.bf16.mxu1 %v1639_v54 }
  0x34   :  { %937 = vmatmul.mubr.bf16.gmra.mrb[8].mxu1 %v1622_v49  ;;  %847 = vmatprep.mubr.bf16.mxu0 %v1625_v50 }
  0x35   :  { %944 = vmatprep.mubr.bf16.mxu1 %v1627_v51  ;;  %1468 = vmatpush3.bf16.msra.mxu0 %v1640_v55 }
  0x36   :  { %1565 = vmatpush3.bf16.msra.mxu1 %v1640_v55  ;;  %1469 = vmatprep.subr.bf16.mxu0 %v1647_v60 }
  0x37   :  { %1558 = vmatprep.subr.bf16.mxu1 %v1647_v60 }
  0x39   :  { %1470 = vmatpush3.bf16.msra.mxu0 %v1648_v61 }
  0x3a   :  { %1566 = vmatpush3.bf16.msra.mxu1 %v1648_v61  ;;  %1471 = vmatprep.subr.bf16.mxu0 %v1655_v0 }
  0x3b   :  { %848 = vmatmul.mubr.bf16.gmra.mrb[12].mxu0 %v1629_v56  ;;  %1559 = vmatprep.subr.bf16.mxu1 %v1655_v0 }
  0x3c   :  { %945 = vmatmul.mubr.bf16.gmra.mrb[12].mxu1 %v1630_v57  ;;  %855 = vmatprep.mubr.bf16.mxu0 %v1633_v58 }
  0x3d   :  { %952 = vmatprep.mubr.bf16.mxu1 %v1635_v59  ;;  %1472 = vmatpush3.bf16.msra.mxu0 %v1656_v1 }
  0x3e   :  { %1567 = vmatpush3.bf16.msra.mxu1 %v1656_v1  ;;  %1473 = vmatprep.subr.bf16.mxu0 %v1663_v4 }
  0x3f   :  { %1560 = vmatprep.subr.bf16.mxu1 %v1663_v4 }
  0x41   :  { %1474 = vmatpush3.bf16.msra.mxu0 %v1664_v5 }
  0x42   :  { %1568 = vmatpush3.bf16.msra.mxu1 %v1664_v5 }
  0x43   :  { %856 = vmatmul.mubr.bf16.gmra.mrb[16].mxu0 %v1637_v62  ;;  %1533 = vmatprep.subr.bf16.mxu1 %v1671_v8 }
  0x44   :  { %953 = vmatmul.mubr.bf16.gmra.mrb[16].mxu1 %v1638_v63  ;;  %863 = vmatprep.mubr.bf16.mxu0 %v1641_v2 }
  0x45   :  { %960 = vmatprep.mubr.bf16.mxu1 %v1643_v3 }
  0x4b   :  { %864 = vmatmul.mubr.bf16.gmra.mrb[20].mxu0 %v1645_v6 }
  0x4c   :  { %961 = vmatmul.mubr.bf16.gmra.mrb[20].mxu1 %v1646_v7  ;;  %871 = vmatprep.mubr.bf16.mxu0 %v1649_v9 }
  0x4d   :  { %968 = vmatprep.mubr.bf16.mxu1 %v1651_v10 }
  0x53   :  { %872 = vmatmul.mubr.bf16.gmra.mrb[24].mxu0 %v1653_v11 }
  0x54   :  { %969 = vmatmul.mubr.bf16.gmra.mrb[24].mxu1 %v1654_v12  ;;  %879 = vmatprep.mubr.bf16.mxu0 %v1657_v13 }
  0x55   :  { %976 = vmatprep.mubr.bf16.mxu1 %v1659_v14 }
  0x5b   :  { %880 = vmatmul.mubr.bf16.gmra.mrb[28].mxu0 %v1661_v15 }
  0x5c   :  { %977 = vmatmul.mubr.bf16.gmra.mrb[28].mxu1 %v1662_v16  ;;  %1017 = vmatprep.mubr.bf16.mxu0 %v1667_v17 }
  0x5d   :  { %1065 = vmatprep.mubr.bf16.mxu1 %v1670_v18 }
  0x63   :  { %1018 = vmatmul.mubr.bf16.vlgmr.msra.gmra.mrb[32].mxu0 %v1665_v19 }
  0x64   :  { %1066 = vmatmul.mubr.bf16.vlgmr.msra.gmra.mrb[32].mxu1 %v1668_v20  ;;  %1025 = vmatprep.mubr.bf16.mxu0 %v1672_v21 }
  0x65   :  { %1534 = vmatpush3.bf16.msra.mxu1 %v1671_v8  ;;  %1073 = vmatprep.mubr.bf16.mxu1 %v1674_v22 }
  0x66   :  { %1535 = vmatprep.subr.bf16.mxu1 %v1678_v23 }
  0x69   :  { %1536 = vmatpush3.bf16.msra.mxu1 %v1678_v23 }
  0x6b   :  { %1026 = vmatmul.mubr.bf16.gmra.mrb[36].mxu0 %v1676_v24 }
  0x6c   :  { %1074 = vmatmul.mubr.bf16.gmra.mrb[36].mxu1 %v1677_v25  ;;  %1033 = vmatprep.mubr.bf16.mxu0 %v1679_v26 }
  0x6d   :  { %1537 = vmatprep.mubr.msk.bf16.mxu1 %vm766_vm0, %v1681_v27 }
  0x73   :  { %1034 = vmatmul.mubr.bf16.gmra.mrb[40].mxu0 %v1682_v28 }
  0x74   :  { %1538 = vmatmul.mubr.msk.bf16.vlgmr.msra.gmra.mrb[40].mxu1 %vm766_vm0, %v1683_v29  ;;  %1041 = vmatprep.mubr.bf16.mxu0 %v1684_v30 }
  0x75   :  { %1541 = vmatprep.mubr.msk.bf16.mxu1 %vm766_vm0, %v1686_v31 }
  0x7b   :  { %1042 = vmatmul.mubr.bf16.gmra.mrb[44].mxu0 %v1687_v32 }
  0x7c   :  { %1542 = vmatmul.mubr.msk.bf16.gmra.mrb[44].mxu1 %vm766_vm0, %v1688_v33  ;;  %1049 = vmatprep.mubr.bf16.mxu0 %v1689_v34 }
  0x7d   :  { %1545 = vmatprep.mubr.msk.bf16.mxu1 %vm766_vm0, %v1691_v35 }
  0x83   :  { %1050 = vmatmul.mubr.bf16.gmra.mrb[48].mxu0 %v1692_v36 }
  0x84   :  { %1546 = vmatmul.mubr.msk.bf16.gmra.mrb[48].mxu1 %vm766_vm0, %v1693_v37  ;;  %1057 = vmatprep.mubr.bf16.mxu0 %v1694_v38 }
  0x85   :  { %1549 = vmatprep.mubr.msk.bf16.mxu1 %vm766_vm0, %v1696_v39 }
  0x8b   :  { %1058 = vmatmul.mubr.bf16.gmra.mrb[52].mxu0 %v1697_v40 }
  0x8c   :  { %1550 = vmatmul.mubr.msk.bf16.gmra.mrb[52].mxu1 %vm766_vm0, %v1698_v41 }
  0xf6   :  { %v1347_v42 = vpop.f32.mrb[0].mxu0 }
  0xf7   :  { %v1348_v44 = vpop.f32.mrb[1].mxu0  ;;  %v1411_v45 = vpop.f32.mrb[0].mxu1 }
  0xf8   :  { %v1349_v46 = vadd.f32 %v1348_v44, %v1347_v42  ;;  %v1350_v47 = vpop.f32.mrb[2].mxu0  ;;  %v1412_v48 = vpop.f32.mrb[1].mxu1 }
  0xf9   :  { %v1351_v49 = vpop.f32.mrb[3].mxu0  ;;  %v1413_v50 = vadd.f32 %v1412_v48, %v1411_v45  ;;  %v1414_v51 = vpop.f32.mrb[2].mxu1 }
  0xfa   :  { %v826_v52 = vadd.f32 %v1349_v46, %v2048_v43  ;;  %v1352_v53 = vadd.f32 %v1351_v49, %v1350_v47  ;;  %v1415_v54 = vpop.f32.mrb[3].mxu1 }
  0xfb   :  { %v1416_v55 = vadd.f32 %v1415_v54, %v1414_v51 }
  0xfc   :  { %v829_v56 = vadd.f32 %v1352_v53, %v2048_v43  ;;  %v2052_v57 = vadd.f32 %v1413_v50, %v826_v52 }
  0xfe   :  { %v2054_v58 = vadd.f32 %v1416_v55, %v829_v56  ;;  %v1353_v59 = vpop.f32.mrb[4].mxu0 }
  0xff   :  { %v1354_v60 = vpop.f32.mrb[5].mxu0  ;;  %v1417_v61 = vpop.f32.mrb[4].mxu1 }
 0x100   :  { %v1355_v62 = vadd.f32 %v1354_v60, %v1353_v59  ;;  %v1356_v63 = vpop.f32.mrb[6].mxu0  ;;  %v1418_v0 = vpop.f32.mrb[5].mxu1 }
 0x101   :  { %v1357_v1 = vpop.f32.mrb[7].mxu0  ;;  %v1419_v2 = vadd.f32 %v1418_v0, %v1417_v61  ;;  %v1420_v3 = vpop.f32.mrb[6].mxu1 }
 0x102   :  { %v834_v4 = vadd.f32 %v1355_v62, %v2048_v43  ;;  %v1358_v5 = vadd.f32 %v1357_v1, %v1356_v63  ;;  %v1421_v6 = vpop.f32.mrb[7].mxu1 }
 0x103   :  { %v1422_v7 = vadd.f32 %v1421_v6, %v1420_v3 }
 0x104   :  { %v837_v8 = vadd.f32 %v1358_v5, %v2048_v43  ;;  %v2058_v9 = vadd.f32 %v1419_v2, %v834_v4 }
 0x106   :  { %v2060_v10 = vadd.f32 %v1422_v7, %v837_v8  ;;  %v1359_v11 = vpop.f32.mrb[8].mxu0 }
 0x107   :  { %v1360_v12 = vpop.f32.mrb[9].mxu0  ;;  %v1423_v13 = vpop.f32.mrb[8].mxu1 }
 0x108   :  { %v1361_v14 = vadd.f32 %v1360_v12, %v1359_v11  ;;  %v1362_v15 = vpop.f32.mrb[10].mxu0  ;;  %v1424_v16 = vpop.f32.mrb[9].mxu1 }
 0x109   :  { %v1363_v17 = vpop.f32.mrb[11].mxu0  ;;  %v1425_v18 = vadd.f32 %v1424_v16, %v1423_v13  ;;  %v1426_v19 = vpop.f32.mrb[10].mxu1 }
 0x10a   :  { %v842_v20 = vadd.f32 %v1361_v14, %v2048_v43  ;;  %v1364_v21 = vadd.f32 %v1363_v17, %v1362_v15  ;;  %v1427_v22 = vpop.f32.mrb[11].mxu1 }
 0x10b   :  { %v1428_v23 = vadd.f32 %v1427_v22, %v1426_v19 }
 0x10c   :  { %v845_v24 = vadd.f32 %v1364_v21, %v2048_v43  ;;  %v2064_v25 = vadd.f32 %v1425_v18, %v842_v20 }
 0x10e   :  { %v2066_v26 = vadd.f32 %v1428_v23, %v845_v24  ;;  %v1365_v27 = vpop.f32.mrb[12].mxu0 }
 0x10f   :  { %v1366_v28 = vpop.f32.mrb[13].mxu0  ;;  %v1429_v29 = vpop.f32.mrb[12].mxu1 }
 0x110   :  { %v1367_v30 = vadd.f32 %v1366_v28, %v1365_v27  ;;  %v1368_v31 = vpop.f32.mrb[14].mxu0  ;;  %v1430_v32 = vpop.f32.mrb[13].mxu1 }
 0x111   :  { %v1369_v33 = vpop.f32.mrb[15].mxu0  ;;  %v1431_v34 = vadd.f32 %v1430_v32, %v1429_v29  ;;  %v1432_v35 = vpop.f32.mrb[14].mxu1 }
 0x112   :  { %v850_v36 = vadd.f32 %v1367_v30, %v2048_v43  ;;  %v1370_v37 = vadd.f32 %v1369_v33, %v1368_v31  ;;  %v1433_v38 = vpop.f32.mrb[15].mxu1 }
 0x113   :  { %v1434_v39 = vadd.f32 %v1433_v38, %v1432_v35 }
 0x114   :  { %v853_v40 = vadd.f32 %v1370_v37, %v2048_v43  ;;  %v2070_v41 = vadd.f32 %v1431_v34, %v850_v36 }
 0x116   :  { %v2072_v42 = vadd.f32 %v1434_v39, %v853_v40  ;;  %v1371_v44 = vpop.f32.mrb[16].mxu0 }
 0x117   :  { %v1372_v45 = vpop.f32.mrb[17].mxu0  ;;  %v1435_v46 = vpop.f32.mrb[16].mxu1 }
 0x118   :  { %v1373_v47 = vadd.f32 %v1372_v45, %v1371_v44  ;;  %v1374_v48 = vpop.f32.mrb[18].mxu0  ;;  %v1436_v49 = vpop.f32.mrb[17].mxu1 }
 0x119   :  { %v1375_v50 = vpop.f32.mrb[19].mxu0  ;;  %v1437_v51 = vadd.f32 %v1436_v49, %v1435_v46  ;;  %v1438_v52 = vpop.f32.mrb[18].mxu1 }
 0x11a   :  { %v858_v53 = vadd.f32 %v1373_v47, %v2048_v43  ;;  %v1376_v54 = vadd.f32 %v1375_v50, %v1374_v48  ;;  %v1439_v55 = vpop.f32.mrb[19].mxu1 }
 0x11b   :  { %v1440_v56 = vadd.f32 %v1439_v55, %v1438_v52 }
 0x11c   :  { %v861_v59 = vadd.f32 %v1376_v54, %v2048_v43  ;;  %v2076_v60 = vadd.f32 %v1437_v51, %v858_v53 }
 0x11e   :  { %v2078_v61 = vadd.f32 %v1440_v56, %v861_v59  ;;  %v1377_v62 = vpop.f32.mrb[20].mxu0 }
 0x11f   :  { %v1378_v63 = vpop.f32.mrb[21].mxu0  ;;  %v1441_v0 = vpop.f32.mrb[20].mxu1 }
 0x120   :  { %v1379_v1 = vadd.f32 %v1378_v63, %v1377_v62  ;;  %v1380_v2 = vpop.f32.mrb[22].mxu0  ;;  %v1442_v3 = vpop.f32.mrb[21].mxu1 }
 0x121   :  { %v1381_v4 = vpop.f32.mrb[23].mxu0  ;;  %v1443_v5 = vadd.f32 %v1442_v3, %v1441_v0  ;;  %v1444_v6 = vpop.f32.mrb[22].mxu1 }
 0x122   :  { %v866_v7 = vadd.f32 %v1379_v1, %v2048_v43  ;;  %v1382_v8 = vadd.f32 %v1381_v4, %v1380_v2  ;;  %v1445_v11 = vpop.f32.mrb[23].mxu1 }
 0x123   :  { %v1446_v12 = vadd.f32 %v1445_v11, %v1444_v6 }
 0x124   :  { %v869_v13 = vadd.f32 %v1382_v8, %v2048_v43  ;;  %v2082_v14 = vadd.f32 %v1443_v5, %v866_v7 }
 0x126   :  { %v2084_v15 = vadd.f32 %v1446_v12, %v869_v13  ;;  %v1383_v16 = vpop.f32.mrb[24].mxu0 }
 0x127   :  { %v1384_v17 = vpop.f32.mrb[25].mxu0  ;;  %v1447_v18 = vpop.f32.mrb[24].mxu1 }
 0x128   :  { %v1385_v19 = vadd.f32 %v1384_v17, %v1383_v16  ;;  %v1386_v20 = vpop.f32.mrb[26].mxu0  ;;  %v1448_v21 = vpop.f32.mrb[25].mxu1 }
 0x129   :  { %v1387_v22 = vpop.f32.mrb[27].mxu0  ;;  %v1449_v23 = vadd.f32 %v1448_v21, %v1447_v18  ;;  %v1450_v24 = vpop.f32.mrb[26].mxu1 }
 0x12a   :  { %v874_v27 = vadd.f32 %v1385_v19, %v2048_v43  ;;  %v1388_v28 = vadd.f32 %v1387_v22, %v1386_v20  ;;  %v1451_v29 = vpop.f32.mrb[27].mxu1 }
 0x12b   :  { %v1452_v30 = vadd.f32 %v1451_v29, %v1450_v24 }
 0x12c   :  { %v877_v31 = vadd.f32 %v1388_v28, %v2048_v43  ;;  %v971_v32 = vadd.f32 %v1449_v23, %v874_v27 }
 0x12e   :  { %v974_v33 = vadd.f32 %v1452_v30, %v877_v31  ;;  %v1389_v34 = vpop.f32.mrb[28].mxu0 }
 0x12f   :  { %v1390_v35 = vpop.f32.mrb[29].mxu0  ;;  %v1453_v36 = vpop.f32.mrb[28].mxu1 }
 0x130   :  { %v1391_v37 = vadd.f32 %v1390_v35, %v1389_v34  ;;  %v1392_v38 = vpop.f32.mrb[30].mxu0  ;;  %v1454_v39 = vpop.f32.mrb[29].mxu1 }
 0x131   :  { %v1393_v40 = vpop.f32.mrb[31].mxu0  ;;  %v1455_v44 = vadd.f32 %v1454_v39, %v1453_v36  ;;  %v1456_v45 = vpop.f32.mrb[30].mxu1 }
 0x132   :  { %v882_v46 = vadd.f32 %v1391_v37, %v2048_v43  ;;  %v1394_v47 = vadd.f32 %v1393_v40, %v1392_v38  ;;  %v1457_v48 = vpop.f32.mrb[31].mxu1 }
 0x133   :  { %v1458_v49 = vadd.f32 %v1457_v48, %v1456_v45 }
 0x134   :  { %v885_v50 = vadd.f32 %v1394_v47, %v2048_v43  ;;  %v979_v51 = vadd.f32 %v1455_v44, %v882_v46 }
 0x136   :  { %v982_v52 = vadd.f32 %v1458_v49, %v885_v50  ;;  %v1475_v53 = vpop.f32.mrb[32].mxu0 }
 0x137   :  { %v1511_v54 = vpop.f32.mrb[32].mxu1  ;;  %v1476_v55 = vpop.f32.mrb[33].mxu0 }
 0x138   :  { %v1477_v56 = vadd.f32 %v1476_v55, %v1475_v53  ;;  %v1512_v59 = vpop.f32.mrb[33].mxu1  ;;  %v1478_v62 = vpop.f32.mrb[34].mxu0 }
 0x139   :  { %v1513_v63 = vadd.f32 %v1512_v59, %v1511_v54  ;;  %v1514_v0 = vpop.f32.mrb[34].mxu1  ;;  %v1479_v1 = vpop.f32.mrb[35].mxu0 }
 0x13a   :  { %v1480_v2 = vadd.f32 %v1479_v1, %v1478_v62  ;;  %v1515_v3 = vpop.f32.mrb[35].mxu1  ;;  %v1020_v4 = vadd.f32 %v1477_v56, %v2052_v57 }
 0x13b   :  { %v1516_v5 = vadd.f32 %v1515_v3, %v1514_v0  ;;  %v2091_v6 = vadd.f32 %v1513_v63, %v971_v32 }
 0x13c   :  { %v1023_v43 = vadd.f32 %v1480_v2, %v2054_v58 }
 0x13d   :  { %v2094_v7 = vadd.f32 %v1516_v5, %v974_v33 }
 0x13e   :  { %v1481_v8 = vpop.f32.mrb[36].mxu0 }
 0x13f   :  { %v1517_v11 = vpop.f32.mrb[36].mxu1  ;;  %v1482_v12 = vpop.f32.mrb[37].mxu0 }
 0x140   :  { %v1483_v13 = vadd.f32 %v1482_v12, %v1481_v8  ;;  %v1518_v16 = vpop.f32.mrb[37].mxu1  ;;  %v1484_v17 = vpop.f32.mrb[38].mxu0 }
 0x141   :  { %v1519_v18 = vadd.f32 %v1518_v16, %v1517_v11  ;;  %v1520_v19 = vpop.f32.mrb[38].mxu1  ;;  %v1485_v20 = vpop.f32.mrb[39].mxu0 }
 0x142   :  { %v1486_v21 = vadd.f32 %v1485_v20, %v1484_v17  ;;  %v1521_v22 = vpop.f32.mrb[39].mxu1  ;;  %v1028_v57 = vadd.f32 %v1483_v13, %v2058_v9 }
 0x143   :  { %v1522_v23 = vadd.f32 %v1521_v22, %v1520_v19  ;;  %v2097_v24 = vadd.f32 %v1519_v18, %v979_v51 }
 0x144   :  { %v1031_v58 = vadd.f32 %v1486_v21, %v2060_v10 }
 0x145   :  { %v2100_v27 = vadd.f32 %v1522_v23, %v982_v52 }
 0x146   :  { %v1487_v28 = vpop.f32.mrb[40].mxu0 }
 0x147   :  { %v1539_v29 = vpop.f32.mrb[40].mxu1  ;;  %v1488_v30 = vpop.f32.mrb[41].mxu0 }
 0x148   :  { %v1125_v31 = vadd.f32 %v1539_v29, %v1028_v57  ;;  %v1489_v32 = vadd.f32 %v1488_v30, %v1487_v28  ;;  %v1116_v33 = vpop.f32.mrb[41].mxu1  ;;  %v1490_v34 = vpop.f32.mrb[42].mxu0 }
 0x149   :  { %v1117_v35 = vadd.f32 %v1116_v33, %v1020_v4  ;;  %v1540_v36 = vpop.f32.mrb[42].mxu1  ;;  %v1491_v37 = vpop.f32.mrb[43].mxu0 }
 0x14a   :  { %v1181_v38 = vmax.f32 %v1125_v31, 0.0  ;;  %v1128_v9 = vadd.f32 %v1540_v36, %v1031_v58  ;;  %v1492_v39 = vadd.f32 %v1491_v37, %v1490_v34  ;;  %v1119_v40 = vpop.f32.mrb[43].mxu1  ;;  %v1036_v44 = vadd.f32 %v1489_v32, %v2064_v25 }
 0x14b   :  { %v1179_v10 = vmax.f32 %v1117_v35, 0.0  ;;  %v1120_v45 = vadd.f32 %v1119_v40, %v1023_v43 }
 0x14c   :  { %1198 = vst.msk [vmem:[%s2181_s3 + $0x10] sm:$0xff] %vm1195_vm1, %v1181_v38  ;;  %v1182_v46 = vmax.f32 %v1128_v9, 0.0  ;;  %v1039_v47 = vadd.f32 %v1492_v39, %v2066_v26 }
 0x14d   :  { %1196 = vst.msk [vmem:[%s2181_s3] sm:$0xff] %vm1195_vm1, %v1179_v10  ;;  %v1180_v48 = vmax.f32 %v1120_v45, 0.0 }
 0x14e   :  { %1199 = vst.msk [vmem:[%s2181_s3 + $0x18] sm:$0xff] %vm1195_vm1, %v1182_v46  ;;  %v1493_v25 = vpop.f32.mrb[44].mxu0 }
 0x14f   :  { %1197 = vst.msk [vmem:[%s2181_s3 + $0x8] sm:$0xff] %vm1195_vm1, %v1180_v48  ;;  %v1543_v49 = vpop.f32.mrb[44].mxu1  ;;  %v1494_v50 = vpop.f32.mrb[45].mxu0 }
 0x150   :  { %v1495_v26 = vadd.f32 %v1494_v50, %v1493_v25  ;;  %v1132_v51 = vpop.f32.mrb[45].mxu1  ;;  %v1496_v52 = vpop.f32.mrb[46].mxu0 }
 0x151   :  { %v1133_v53 = vadd.f32 %v1132_v51, %v1036_v44  ;;  %v1544_v54 = vpop.f32.mrb[46].mxu1  ;;  %v1497_v55 = vpop.f32.mrb[47].mxu0 }
 0x152   :  { %v1044_v56 = vadd.f32 %v1495_v26, %v2070_v41  ;;  %v1498_v59 = vadd.f32 %v1497_v55, %v1496_v52  ;;  %v1135_v62 = vpop.f32.mrb[47].mxu1 }
 0x153   :  { %v1183_v63 = vmax.f32 %v1133_v53, 0.0  ;;  %v1136_v0 = vadd.f32 %v1135_v62, %v1039_v47 }
 0x154   :  { %v1141_v1 = vadd.f32 %v1543_v49, %v1044_v56  ;;  %v1047_v2 = vadd.f32 %v1498_v59, %v2072_v42 }
 0x155   :  { %1200 = vst.msk [vmem:[%s2181_s3 + $0x20] sm:$0xff] %vm1195_vm1, %v1183_v63  ;;  %v1184_v3 = vmax.f32 %v1136_v0, 0.0 }
 0x156   :  { %v1185_v4 = vmax.f32 %v1141_v1, 0.0  ;;  %v1144_v5 = vadd.f32 %v1544_v54, %v1047_v2  ;;  %v1499_v43 = vpop.f32.mrb[48].mxu0 }
 0x157   :  { %1201 = vst.msk [vmem:[%s2181_s3 + $0x28] sm:$0xff] %vm1195_vm1, %v1184_v3  ;;  %v1500_v41 = vpop.f32.mrb[49].mxu0  ;;  %v1547_v8 = vpop.f32.mrb[48].mxu1 }
 0x158   :  { %1202 = vst.msk [vmem:[%s2181_s3 + $0x30] sm:$0xff] %vm1195_vm1, %v1185_v4  ;;  %v1186_v42 = vmax.f32 %v1144_v5, 0.0  ;;  %v1501_v11 = vadd.f32 %v1500_v41, %v1499_v43  ;;  %v1502_v12 = vpop.f32.mrb[50].mxu0  ;;  %v1148_v13 = vpop.f32.mrb[49].mxu1 }
 0x159   :  { %v1503_v16 = vpop.f32.mrb[51].mxu0  ;;  %v1548_v17 = vpop.f32.mrb[50].mxu1 }
 0x15a   :  { %1203 = vst.msk [vmem:[%s2181_s3 + $0x38] sm:$0xff] %vm1195_vm1, %v1186_v42  ;;  %v1504_v18 = vadd.f32 %v1503_v16, %v1502_v12  ;;  %v1052_v19 = vadd.f32 %v1501_v11, %v2076_v60  ;;  %v1151_v20 = vpop.f32.mrb[51].mxu1 }
 0x15c   :  { %v1149_v21 = vadd.f32 %v1148_v13, %v1052_v19  ;;  %v1055_v22 = vadd.f32 %v1504_v18, %v2078_v61 }
 0x15e   :  { %v1187_v57 = vmax.f32 %v1149_v21, 0.0  ;;  %v1152_v23 = vadd.f32 %v1151_v20, %v1055_v22  ;;  %v1505_v58 = vpop.f32.mrb[52].mxu0 }
 0x15f   :  { %v1551_v28 = vpop.f32.mrb[52].mxu1  ;;  %v1506_v29 = vpop.f32.mrb[53].mxu0 }
 0x160   :  { %1204 = vst.msk [vmem:[%s2181_s3 + $0x40] sm:$0xff] %vm1195_vm1, %v1187_v57  ;;  %v1188_v30 = vmax.f32 %v1152_v23, 0.0  ;;  %v1173_v31 = vadd.f32 %v1551_v28, %v2097_v24  ;;  %v1507_v32 = vadd.f32 %v1506_v29, %v1505_v58  ;;  %v1164_v33 = vpop.f32.mrb[53].mxu1  ;;  %v1508_v60 = vpop.f32.mrb[54].mxu0 }
 0x161   :  { %v1165_v34 = vadd.f32 %v1164_v33, %v2091_v6  ;;  %v1552_v35 = vpop.f32.mrb[54].mxu1  ;;  %v1509_v61 = vpop.f32.mrb[55].mxu0 }
 0x162   :  { %1205 = vst.msk [vmem:[%s2181_s3 + $0x48] sm:$0xff] %vm1195_vm1, %v1188_v30  ;;  %v1193_v36 = vmax.f32 %v1173_v31, 0.0  ;;  %v1060_v37 = vadd.f32 %v1507_v32, %v2082_v14  ;;  %v1176_v38 = vadd.f32 %v1552_v35, %v2100_v27  ;;  %v1510_v9 = vadd.f32 %v1509_v61, %v1508_v60  ;;  %v1167_v39 = vpop.f32.mrb[55].mxu1 }
 0x163   :  { %v1191_v24 = vmax.f32 %v1165_v34, 0.0  ;;  %v1168_v40 = vadd.f32 %v1167_v39, %v2094_v7 }
 0x164   :  { %1210 = vst.msk [vmem:[%s2181_s3 + $0x70] sm:$0xff] %vm1195_vm1, %v1193_v36  ;;  %v1157_v6 = vadd.f32 %v1547_v8, %v1060_v37  ;;  %v1194_v44 = vmax.f32 %v1176_v38, 0.0  ;;  %v1063_v10 = vadd.f32 %v1510_v9, %v2084_v15 }
 0x165   :  { %1208 = vst.msk [vmem:[%s2181_s3 + $0x60] sm:$0xff] %vm1195_vm1, %v1191_v24  ;;  %v1192_v14 = vmax.f32 %v1168_v40, 0.0 }
 0x166   :  { %v1189_v27 = vmax.f32 %v1157_v6, 0.0  ;;  %1211 = vst.msk [vmem:[%s2181_s3 + $0x78] sm:$0xff] %vm1195_vm1, %v1194_v44  ;;  %v1160_v7 = vadd.f32 %v1548_v17, %v1063_v10 }
 0x167   :  { %1209 = vst.msk [vmem:[%s2181_s3 + $0x68] sm:$0xff] %vm1195_vm1, %v1192_v14 }
 0x168   :  { %1206 = vst.msk [vmem:[%s2181_s3 + $0x50] sm:$0xff] %vm1195_vm1, %v1189_v27  ;;  %v1190_v15 = vmax.f32 %v1160_v7, 0.0 }
 0x16a   :  { %1207 = vst.msk [vmem:[%s2181_s3 + $0x58] sm:$0xff] %vm1195_vm1, %v1190_v15 }

// kernel: cifar_net_forward.11
= control target key start
LH: loop header
LB: loop body
LE: loop exit
PB: predicated region body
PF: predicated region fallthrough
CT: control target
= control target key end

     0   :  { %vm980_vm0 = vcmask 523264   ;;  %s2214_s1 = inlined_call_operand.vmem [shape: bf16[1600,64], index: 1, kind: input, shape index: {}]   ;;  %s2215_s0 = inlined_call_operand.vmem [shape: bf16[32,1600], index: 0, kind: input, shape index: {}]   ;;  %s2216_s2 = inlined_call_operand.vmem [shape: f32[1,64], index: 2, kind: input, shape index: {}]   ;;  %s2217_s3 = inlined_call_operand.vmem [shape: f32[32,64], index: 3, kind: output, shape index: {}]  }
   0x1   :  { %v1657_v0 = vld [vmem:[%s2214_s1 + $0x40] sm:$0xff]   ;;  %v1661_v4 = vld [vmem:[%s2214_s1 + $0x48] sm:$0xff]   ;;  %v1665_v8 = vld [vmem:[%s2214_s1 + $0x50] sm:$0xff]  }
   0x2   :  { %v1658_v1 = vld [vmem:[%s2214_s1] sm:$0xff]   ;;  %1471 = vmatprep.subr.bf16.mxu0 %v1657_v0  ;;  %v1662_v5 = vld [vmem:[%s2214_s1 + $0x8] sm:$0xff]   ;;  %v1666_v9 = vld [vmem:[%s2214_s1 + $0x10] sm:$0xff]  }
   0x3   :  { %v1659_v2 = vld [vmem:[%s2214_s1 + $0xc0] sm:$0xff]   ;;  %1472 = vmatpush3.bf16.msra.mxu0 %v1658_v1  ;;  %v1663_v6 = vld [vmem:[%s2214_s1 + $0xc8] sm:$0xff]   ;;  %v1667_v10 = vld [vmem:[%s2214_s1 + $0xd0] sm:$0xff]  }
   0x4   :  { %v1660_v3 = vld [vmem:[%s2214_s1 + $0x80] sm:$0xff]   ;;  %1499 = vmatprep.subr.bf16.mxu1 %v1659_v2  ;;  %1473 = vmatprep.subr.bf16.mxu0 %v1661_v4  ;;  %v1664_v7 = vld [vmem:[%s2214_s1 + $0x88] sm:$0xff]   ;;  %v1668_v11 = vld [vmem:[%s2214_s1 + $0x90] sm:$0xff]  }
   0x5   :  { %1500 = vmatpush3.bf16.msra.mxu1 %v1660_v3  ;;  %v1669_v12 = vld [vmem:[%s2214_s1 + $0x58] sm:$0xff]   ;;  %v1673_v16 = vld [vmem:[%s2214_s1 + $0x60] sm:$0xff]   ;;  %v1677_v20 = vld [vmem:[%s2214_s1 + $0x68] sm:$0xff]  }
   0x6   :  { %1501 = vmatprep.subr.bf16.mxu1 %v1663_v6  ;;  %v1670_v13 = vld [vmem:[%s2214_s1 + $0x18] sm:$0xff]   ;;  %v1674_v17 = vld [vmem:[%s2214_s1 + $0x20] sm:$0xff]   ;;  %v1678_v21 = vld [vmem:[%s2214_s1 + $0x28] sm:$0xff]  }
   0x7   :  { %1474 = vmatpush3.bf16.msra.mxu0 %v1662_v5  ;;  %v1671_v14 = vld [vmem:[%s2214_s1 + $0xd8] sm:$0xff]   ;;  %v1675_v18 = vld [vmem:[%s2214_s1 + $0xe0] sm:$0xff]   ;;  %v1679_v22 = vld [vmem:[%s2214_s1 + $0xe8] sm:$0xff]  }
   0x8   :  { %1475 = vmatprep.subr.bf16.mxu0 %v1665_v8  ;;  %v1672_v15 = vld [vmem:[%s2214_s1 + $0x98] sm:$0xff]   ;;  %v1676_v19 = vld [vmem:[%s2214_s1 + $0xa0] sm:$0xff]   ;;  %v1680_v23 = vld [vmem:[%s2214_s1 + $0xa8] sm:$0xff]  }
   0x9   :  { %1502 = vmatpush3.bf16.msra.mxu1 %v1664_v7  ;;  %v1681_v24 = vld [vmem:[%s2214_s1 + $0x70] sm:$0xff]   ;;  %v1685_v28 = vld [vmem:[%s2214_s1 + $0x78] sm:$0xff]   ;;  %v1692_v34 = vld [vmem:[%s2214_s1 + $0x140] sm:$0xff]  }
   0xa   :  { %1503 = vmatprep.subr.bf16.mxu1 %v1667_v10  ;;  %v1682_v25 = vld [vmem:[%s2214_s1 + $0x30] sm:$0xff]   ;;  %v1686_v29 = vld [vmem:[%s2214_s1 + $0x38] sm:$0xff]   ;;  %v1695_v36 = vld [vmem:[%s2215_s0 + $0xc] ss:$52 sps:$4 sm:$0xff]  }
   0xb   :  { %1476 = vmatpush3.bf16.msra.mxu0 %v1666_v9  ;;  %v1683_v26 = vld [vmem:[%s2214_s1 + $0xf0] sm:$0xff]   ;;  %v1687_v30 = vld [vmem:[%s2214_s1 + $0xf8] sm:$0xff]   ;;  %v1696_v37 = vld [vmem:[%s2214_s1 + $0x100] sm:$0xff]   ;;  %1068 = vmatprep.mubr.bf16.mxu1 %v1695_v36 }
   0xc   :  { %1477 = vmatprep.subr.bf16.mxu0 %v1669_v12  ;;  %v1684_v27 = vld [vmem:[%s2214_s1 + $0xb0] sm:$0xff]   ;;  %v1690_v32 = vld [vmem:[%s2215_s0 + $0x4] ss:$52 sps:$4 sm:$0xff]   ;;  %v1693_v35 = vld [vmem:[%s2215_s0 + $0x8] ss:$52 sps:$4 sm:$0xff]  }
   0xd   :  { %1504 = vmatpush3.bf16.msra.mxu1 %v1668_v11  ;;  %v1688_v31 = vld [vmem:[%s2215_s0] ss:$52 sps:$4 sm:$0xff]   ;;  %v1691_v33 = vld [vmem:[%s2214_s1 + $0xb8] sm:$0xff]   ;;  %1019 = vmatprep.mubr.bf16.mxu0 %v1690_v32  ;;  %v1699_v40 = vld [vmem:[%s2214_s1 + $0x148] sm:$0xff]  }
   0xe   :  { %1505 = vmatprep.subr.bf16.mxu1 %v1671_v14  ;;  %v1697_v38 = vld [vmem:[%s2214_s1 + $0x1c0] sm:$0xff]   ;;  %v1700_v41 = vld [vmem:[%s2214_s1 + $0x108] sm:$0xff]   ;;  %v1703_v44 = vld [vmem:[%s2214_s1 + $0x150] sm:$0xff]  }
   0xf   :  { %1478 = vmatpush3.bf16.msra.mxu0 %v1670_v13  ;;  %v1698_v39 = vld [vmem:[%s2214_s1 + $0x180] sm:$0xff]   ;;  %v1701_v42 = vld [vmem:[%s2214_s1 + $0x1c8] sm:$0xff]   ;;  %v1704_v45 = vld [vmem:[%s2214_s1 + $0x110] sm:$0xff]  }
  0x10   :  { %1479 = vmatprep.subr.bf16.mxu0 %v1673_v16  ;;  %v1702_v43 = vld [vmem:[%s2214_s1 + $0x188] sm:$0xff]   ;;  %v1705_v46 = vld [vmem:[%s2214_s1 + $0x1d0] sm:$0xff]   ;;  %v1707_v48 = vld [vmem:[%s2214_s1 + $0x158] sm:$0xff]  }
  0x11   :  { %1506 = vmatpush3.bf16.msra.mxu1 %v1672_v15  ;;  %v1706_v47 = vld [vmem:[%s2214_s1 + $0x190] sm:$0xff]   ;;  %v1708_v49 = vld [vmem:[%s2214_s1 + $0x118] sm:$0xff]   ;;  %v1711_v52 = vld [vmem:[%s2214_s1 + $0x160] sm:$0xff]  }
  0x12   :  { %1507 = vmatprep.subr.bf16.mxu1 %v1675_v18  ;;  %v1709_v50 = vld [vmem:[%s2214_s1 + $0x1d8] sm:$0xff]   ;;  %v1712_v53 = vld [vmem:[%s2214_s1 + $0x120] sm:$0xff]   ;;  %v1715_v56 = vld [vmem:[%s2214_s1 + $0x168] sm:$0xff]  }
  0x13   :  { %1480 = vmatpush3.bf16.msra.mxu0 %v1674_v17  ;;  %v1710_v51 = vld [vmem:[%s2214_s1 + $0x198] sm:$0xff]   ;;  %v1713_v54 = vld [vmem:[%s2214_s1 + $0x1e0] sm:$0xff]   ;;  %v1718_v58 = vld [vmem:[%s2214_s1 + $0x128] sm:$0xff]  }
  0x14   :  { %1481 = vmatprep.subr.bf16.mxu0 %v1677_v20  ;;  %v1714_v55 = vld [vmem:[%s2214_s1 + $0x1a0] sm:$0xff]   ;;  %v1719_v59 = vld [vmem:[%s2215_s0 + $0x68] ss:$52 sps:$4 sm:$0xff]   ;;  %v1725_v0 = vld [vmem:[%s2214_s1 + $0x170] sm:$0xff]  }
  0x15   :  { %1508 = vmatpush3.bf16.msra.mxu1 %v1676_v19  ;;  %v1716_v57 = vld [vmem:[%s2215_s0 + $0x6c] ss:$52 sps:$4 sm:$0xff]   ;;  %v1721_v61 = vld [vmem:[%s2215_s0 + $0x74] ss:$52 sps:$4 sm:$0xff]   ;;  %v1724_v63 = vld [vmem:[%s2215_s0 + $0x70] ss:$52 sps:$4 sm:$0xff]  }
  0x16   :  { %1509 = vmatprep.subr.bf16.mxu1 %v1679_v22  ;;  %v1720_v60 = vld [vmem:[%s2214_s1 + $0x1e8] sm:$0xff]   ;;  %v1726_v1 = vld [vmem:[%s2214_s1 + $0x130] sm:$0xff]   ;;  %v1729_v4 = vld [vmem:[%s2214_s1 + $0x178] sm:$0xff]  }
  0x17   :  { %1482 = vmatpush3.bf16.msra.mxu0 %v1678_v21  ;;  %v1723_v62 = vld [vmem:[%s2214_s1 + $0x1a8] sm:$0xff]   ;;  %v1727_v2 = vld [vmem:[%s2214_s1 + $0x1f0] sm:$0xff]   ;;  %v1730_v5 = vld [vmem:[%s2214_s1 + $0x138] sm:$0xff]  }
  0x18   :  { %1483 = vmatprep.subr.bf16.mxu0 %v1681_v24  ;;  %v1728_v3 = vld [vmem:[%s2214_s1 + $0x1b0] sm:$0xff]   ;;  %v1731_v6 = vld [vmem:[%s2214_s1 + $0x1f8] sm:$0xff]   ;;  %v1736_v10 = vld [vmem:[%s2214_s1 + $0x240] sm:$0xff]  }
  0x19   :  { %1510 = vmatpush3.bf16.msra.mxu1 %v1680_v23  ;;  %v1732_v7 = vld [vmem:[%s2215_s0 + $0x10] ss:$52 sps:$4 sm:$0xff]   ;;  %v1734_v8 = vld [vmem:[%s2215_s0 + $0x14] ss:$52 sps:$4 sm:$0xff]   ;;  %v1735_v9 = vld [vmem:[%s2214_s1 + $0x1b8] sm:$0xff]  }
  0x1a   :  { %1511 = vmatprep.subr.bf16.mxu1 %v1683_v26  ;;  %v1737_v11 = vld [vmem:[%s2215_s0 + $0x18] ss:$52 sps:$4 sm:$0xff]   ;;  %v1739_v12 = vld [vmem:[%s2215_s0 + $0x1c] ss:$52 sps:$4 sm:$0xff]   ;;  %v1740_v13 = vld [vmem:[%s2214_s1 + $0x200] sm:$0xff]  }
  0x1b   :  { %1484 = vmatpush3.bf16.msra.mxu0 %v1682_v25  ;;  %v1741_v14 = vld [vmem:[%s2214_s1 + $0x2c0] sm:$0xff]   ;;  %v1743_v16 = vld [vmem:[%s2214_s1 + $0x248] sm:$0xff]   ;;  %v1746_v19 = vld [vmem:[%s2215_s0 + $0x7c] ss:$52 sps:$4 sm:$0xff]  }
  0x1c   :  { %1485 = vmatprep.subr.bf16.mxu0 %v1685_v28  ;;  %v1742_v15 = vld [vmem:[%s2214_s1 + $0x280] sm:$0xff]   ;;  %v1744_v17 = vld [vmem:[%s2214_s1 + $0x208] sm:$0xff]   ;;  %v1750_v22 = vld [vmem:[%s2214_s1 + $0x250] sm:$0xff]  }
  0x1d   :  { %1512 = vmatpush3.bf16.msra.mxu1 %v1684_v27  ;;  %v1745_v18 = vld [vmem:[%s2214_s1 + $0x2c8] sm:$0xff]   ;;  %v1751_v23 = vld [vmem:[%s2215_s0 + $0x84] ss:$52 sps:$4 sm:$0xff]   ;;  %v1753_v24 = vld [vmem:[%s2214_s1 + $0x210] sm:$0xff]  }
  0x1e   :  { %1513 = vmatprep.subr.bf16.mxu1 %v1687_v30  ;;  %v1748_v20 = vld [vmem:[%s2214_s1 + $0x288] sm:$0xff]   ;;  %v1754_v25 = vld [vmem:[%s2215_s0 + $0x80] ss:$52 sps:$4 sm:$0xff]   ;;  %v1757_v28 = vld [vmem:[%s2214_s1 + $0x258] sm:$0xff]  }
  0x1f   :  { %1486 = vmatpush3.bf16.msra.mxu0 %v1686_v29  ;;  %v1749_v21 = vld [vmem:[%s2215_s0 + $0x78] ss:$52 sps:$4 sm:$0xff]   ;;  %v1755_v26 = vld [vmem:[%s2214_s1 + $0x2d0] sm:$0xff]   ;;  %v1761_v32 = vld [vmem:[%s2214_s1 + $0x260] sm:$0xff]  }
  0x20   :  { %1527 = vmatprep.subr.bf16.mxu0 %v1692_v34  ;;  %v1756_v27 = vld [vmem:[%s2214_s1 + $0x290] sm:$0xff]   ;;  %v1758_v29 = vld [vmem:[%s2214_s1 + $0x218] sm:$0xff]   ;;  %v1763_v34 = vld [vmem:[%s2214_s1 + $0x2e0] sm:$0xff]  }
  0x21   :  { %1514 = vmatpush3.bf16.msra.mxu1 %v1691_v33  ;;  %v1759_v30 = vld [vmem:[%s2214_s1 + $0x2d8] sm:$0xff]   ;;  %v1762_v33 = vld [vmem:[%s2214_s1 + $0x220] sm:$0xff]   ;;  %v1765_v36 = vld [vmem:[%s2214_s1 + $0x268] sm:$0xff]  }
  0x22   :  { %1020 = vmatmul.mubr.bf16.vlgmr.msra.gmra.mrb[0].mxu0 %v1688_v31  ;;  %1555 = vmatprep.subr.bf16.mxu1 %v1697_v38  ;;  %v1760_v31 = vld [vmem:[%s2214_s1 + $0x298] sm:$0xff]   ;;  %v1767_v38 = vld [vmem:[%s2214_s1 + $0x2e8] sm:$0xff]  }
  0x23   :  { %1528 = vmatpush3.bf16.msra.mxu0 %v1696_v37  ;;  %1027 = vmatprep.mubr.bf16.mxu0 %v1716_v57  ;;  %v1766_v37 = vld [vmem:[%s2214_s1 + $0x228] sm:$0xff]  }
  0x24   :  { %1069 = vmatmul.mubr.bf16.vlgmr.msra.gmra.mrb[0].mxu1 %v1693_v35  ;;  %1529 = vmatprep.subr.bf16.mxu0 %v1699_v40  ;;  %v1764_v35 = vld [vmem:[%s2214_s1 + $0x2a0] sm:$0xff]   ;;  %v1769_v40 = vld [vmem:[%s2214_s1 + $0x270] sm:$0xff]  }
  0x25   :  { %1556 = vmatpush3.bf16.msra.mxu1 %v1698_v39  ;;  %1076 = vmatprep.mubr.bf16.mxu1 %v1721_v61  ;;  %v1768_v39 = vld [vmem:[%s2214_s1 + $0x2a8] sm:$0xff]  }
  0x26   :  { %1557 = vmatprep.subr.bf16.mxu1 %v1701_v42  ;;  %v1771_v42 = vld [vmem:[%s2214_s1 + $0x2f0] sm:$0xff]   ;;  %v1794_v61 = vld [vmem:[%s2215_s0 + $0x98] ss:$52 sps:$4 sm:$0xff]  }
  0x27   :  { %1530 = vmatpush3.bf16.msra.mxu0 %v1700_v41  ;;  %v1770_v41 = vld [vmem:[%s2214_s1 + $0x230] sm:$0xff]  }
  0x28   :  { %1531 = vmatprep.subr.bf16.mxu0 %v1703_v44  ;;  %v1773_v44 = vld [vmem:[%s2214_s1 + $0x278] sm:$0xff]   ;;  %v1789_v57 = vld [vmem:[%s2215_s0 + $0x94] ss:$52 sps:$4 sm:$0xff]  }
  0x29   :  { %1558 = vmatpush3.bf16.msra.mxu1 %v1702_v43  ;;  %v1772_v43 = vld [vmem:[%s2214_s1 + $0x2b0] sm:$0xff]  }
  0x2a   :  { %1559 = vmatprep.subr.bf16.mxu1 %v1705_v46  ;;  %1028 = vmatmul.mubr.bf16.gmra.mrb[4].mxu0 %v1719_v59  ;;  %v1775_v46 = vld [vmem:[%s2214_s1 + $0x2f8] sm:$0xff]   ;;  %v1793_v59 = vld [vmem:[%s2215_s0 + $0x30] ss:$52 sps:$4 sm:$0xff]  }
  0x2b   :  { %1532 = vmatpush3.bf16.msra.mxu0 %v1704_v45  ;;  %1117 = vmatprep.mubr.bf16.mxu0 %v1734_v8  ;;  %v1774_v45 = vld [vmem:[%s2214_s1 + $0x238] sm:$0xff]  }
  0x2c   :  { %1533 = vmatprep.subr.bf16.mxu0 %v1707_v48  ;;  %1077 = vmatmul.mubr.bf16.gmra.mrb[4].mxu1 %v1724_v63  ;;  %v1778_v48 = vld [vmem:[%s2215_s0 + $0x24] ss:$52 sps:$4 sm:$0xff]   ;;  %v1342_v63 = vld [vmem:[%s2216_s2] ss:$0 sm:$0xff] }
  0x2d   :  { %1560 = vmatpush3.bf16.msra.mxu1 %v1706_v47  ;;  %1166 = vmatprep.mubr.bf16.mxu1 %v1739_v12  ;;  %v1776_v47 = vld [vmem:[%s2215_s0 + $0x20] ss:$52 sps:$4 sm:$0xff]  }
  0x2e   :  { %1561 = vmatprep.subr.bf16.mxu1 %v1709_v50  ;;  %v1780_v50 = vld [vmem:[%s2214_s1 + $0x300] sm:$0xff]  }
  0x2f   :  { %1534 = vmatpush3.bf16.msra.mxu0 %v1708_v49  ;;  %v1779_v49 = vld [vmem:[%s2214_s1 + $0x2b8] sm:$0xff]  }
  0x30   :  { %1535 = vmatprep.subr.bf16.mxu0 %v1711_v52  ;;  %v1783_v52 = vld [vmem:[%s2215_s0 + $0x2c] ss:$52 sps:$4 sm:$0xff]  }
  0x31   :  { %1562 = vmatpush3.bf16.msra.mxu1 %v1710_v51  ;;  %v1781_v51 = vld [vmem:[%s2215_s0 + $0x28] ss:$52 sps:$4 sm:$0xff]  }
  0x32   :  { %1563 = vmatprep.subr.bf16.mxu1 %v1713_v54  ;;  %v1785_v54 = vld [vmem:[%s2215_s0 + $0x8c] ss:$52 sps:$4 sm:$0xff]  }
  0x33   :  { %1536 = vmatpush3.bf16.msra.mxu0 %v1712_v53  ;;  %v1784_v53 = vld [vmem:[%s2214_s1 + $0x308] sm:$0xff]  }
  0x34   :  { %1537 = vmatprep.subr.bf16.mxu0 %v1715_v56  ;;  %v1788_v56 = vld [vmem:[%s2214_s1 + $0x310] sm:$0xff]  }
  0x35   :  { %1564 = vmatpush3.bf16.msra.mxu1 %v1714_v55  ;;  %v1787_v55 = vld [vmem:[%s2215_s0 + $0x88] ss:$52 sps:$4 sm:$0xff]  }
  0x36   :  { %1565 = vmatprep.subr.bf16.mxu1 %v1720_v60  ;;  %v1791_v60 = vld [vmem:[%s2215_s0 + $0x90] ss:$52 sps:$4 sm:$0xff]  }
  0x37   :  { %1538 = vmatpush3.bf16.msra.mxu0 %v1718_v58  ;;  %v1792_v58 = vld [vmem:[%s2214_s1 + $0x318] sm:$0xff]  }
  0x38   :  { %1539 = vmatprep.subr.bf16.mxu0 %v1725_v0 }
  0x39   :  { %1566 = vmatpush3.bf16.msra.mxu1 %v1723_v62 }
  0x3a   :  { %1567 = vmatprep.subr.bf16.mxu1 %v1727_v2 }
  0x3b   :  { %1540 = vmatpush3.bf16.msra.mxu0 %v1726_v1 }
  0x3c   :  { %1541 = vmatprep.subr.bf16.mxu0 %v1729_v4 }
  0x3d   :  { %1568 = vmatpush3.bf16.msra.mxu1 %v1728_v3 }
  0x3e   :  { %1569 = vmatprep.subr.bf16.mxu1 %v1731_v6 }
  0x3f   :  { %1542 = vmatpush3.bf16.msra.mxu0 %v1730_v5 }
  0x40   :  { %1583 = vmatprep.subr.bf16.mxu0 %v1736_v10 }
  0x41   :  { %1570 = vmatpush3.bf16.msra.mxu1 %v1735_v9 }
  0x42   :  { %1118 = vmatmul.mubr.bf16.vlgmr.msra.gmra.mrb[8].mxu0 %v1732_v7  ;;  %1611 = vmatprep.subr.bf16.mxu1 %v1741_v14 }
  0x43   :  { %1584 = vmatpush3.bf16.msra.mxu0 %v1740_v13  ;;  %1125 = vmatprep.mubr.bf16.mxu0 %v1746_v19 }
  0x44   :  { %1167 = vmatmul.mubr.bf16.vlgmr.msra.gmra.mrb[8].mxu1 %v1737_v11  ;;  %1585 = vmatprep.subr.bf16.mxu0 %v1743_v16 }
  0x45   :  { %1612 = vmatpush3.bf16.msra.mxu1 %v1742_v15  ;;  %1174 = vmatprep.mubr.bf16.mxu1 %v1751_v23 }
  0x46   :  { %1613 = vmatprep.subr.bf16.mxu1 %v1745_v18 }
  0x47   :  { %1586 = vmatpush3.bf16.msra.mxu0 %v1744_v17 }
  0x48   :  { %1587 = vmatprep.subr.bf16.mxu0 %v1750_v22 }
  0x49   :  { %1614 = vmatpush3.bf16.msra.mxu1 %v1748_v20 }
  0x4a   :  { %1126 = vmatmul.mubr.bf16.gmra.mrb[12].mxu0 %v1749_v21  ;;  %1615 = vmatprep.subr.bf16.mxu1 %v1755_v26 }
  0x4b   :  { %1588 = vmatpush3.bf16.msra.mxu0 %v1753_v24  ;;  %1215 = vmatprep.mubr.bf16.mxu0 %v1778_v48 }
  0x4c   :  { %1175 = vmatmul.mubr.bf16.gmra.mrb[12].mxu1 %v1754_v25  ;;  %1589 = vmatprep.subr.bf16.mxu0 %v1757_v28 }
  0x4d   :  { %1616 = vmatpush3.bf16.msra.mxu1 %v1756_v27  ;;  %1264 = vmatprep.mubr.bf16.mxu1 %v1783_v52 }
  0x4e   :  { %1617 = vmatprep.subr.bf16.mxu1 %v1759_v30 }
  0x4f   :  { %1590 = vmatpush3.bf16.msra.mxu0 %v1758_v29 }
  0x50   :  { %1591 = vmatprep.subr.bf16.mxu0 %v1761_v32 }
  0x51   :  { %1618 = vmatpush3.bf16.msra.mxu1 %v1760_v31 }
  0x52   :  { %1619 = vmatprep.subr.bf16.mxu1 %v1763_v34 }
  0x53   :  { %1592 = vmatpush3.bf16.msra.mxu0 %v1762_v33 }
  0x54   :  { %1593 = vmatprep.subr.bf16.mxu0 %v1765_v36 }
  0x55   :  { %1620 = vmatpush3.bf16.msra.mxu1 %v1764_v35 }
  0x56   :  { %1621 = vmatprep.subr.bf16.mxu1 %v1767_v38 }
  0x57   :  { %1594 = vmatpush3.bf16.msra.mxu0 %v1766_v37 }
  0x58   :  { %1595 = vmatprep.subr.bf16.mxu0 %v1769_v40 }
  0x59   :  { %1622 = vmatpush3.bf16.msra.mxu1 %v1768_v39 }
  0x5a   :  { %1623 = vmatprep.subr.bf16.mxu1 %v1771_v42 }
  0x5b   :  { %1596 = vmatpush3.bf16.msra.mxu0 %v1770_v41 }
  0x5c   :  { %1597 = vmatprep.subr.bf16.mxu0 %v1773_v44 }
  0x5d   :  { %1624 = vmatpush3.bf16.msra.mxu1 %v1772_v43 }
  0x5e   :  { %1625 = vmatprep.subr.bf16.mxu1 %v1775_v46 }
  0x5f   :  { %1598 = vmatpush3.bf16.msra.mxu0 %v1774_v45 }
  0x60   :  { %1645 = vmatprep.subr.bf16.mxu0 %v1780_v50 }
  0x61   :  { %1626 = vmatpush3.bf16.msra.mxu1 %v1779_v49 }
  0x62   :  { %1216 = vmatmul.mubr.bf16.vlgmr.msra.gmra.mrb[16].mxu0 %v1776_v47 }
  0x63   :  { %1646 = vmatpush3.bf16.msra.mxu0 %v1780_v50  ;;  %1223 = vmatprep.mubr.bf16.mxu0 %v1785_v54 }
  0x64   :  { %1265 = vmatmul.mubr.bf16.vlgmr.msra.gmra.mrb[16].mxu1 %v1781_v51  ;;  %1647 = vmatprep.subr.bf16.mxu0 %v1784_v53 }
  0x65   :  { %1272 = vmatprep.mubr.bf16.mxu1 %v1789_v57 }
  0x67   :  { %1648 = vmatpush3.bf16.msra.mxu0 %v1784_v53 }
  0x68   :  { %1649 = vmatprep.subr.bf16.mxu0 %v1788_v56 }
  0x6a   :  { %1224 = vmatmul.mubr.bf16.gmra.mrb[20].mxu0 %v1787_v55 }
  0x6b   :  { %1653 = vmatprep.mubr.msk.bf16.mxu0 %vm980_vm0, %v1793_v59  ;;  %1650 = vmatpush3.bf16.msra.mxu0 %v1788_v56 }
  0x6c   :  { %1651 = vmatprep.subr.bf16.mxu0 %v1792_v58  ;;  %1273 = vmatmul.mubr.bf16.gmra.mrb[20].mxu1 %v1791_v60 }
  0x6f   :  { %1652 = vmatpush3.bf16.msra.mxu0 %v1792_v58 }
  0x72   :  { %1654 = vmatmul.mubr.msk.bf16.vlgmr.msra.gmra.mrb[24].mxu0 %vm980_vm0, %v1794_v61 }
  0xf5   :  { %v1487_v62 = vpop.f32.mrb[0].mxu0 }
  0xf6   :  { %v1488_v0 = vpop.f32.mrb[1].mxu0 }
  0xf7   :  { %v1489_v1 = vadd.f32 %v1488_v0, %v1487_v62  ;;  %v1490_v2 = vpop.f32.mrb[2].mxu0  ;;  %v1515_v3 = vpop.f32.mrb[0].mxu1 }
  0xf8   :  { %v1491_v4 = vpop.f32.mrb[3].mxu0  ;;  %v1516_v7 = vpop.f32.mrb[1].mxu1 }
  0xf9   :  { %v1022_v5 = vadd.f32 %v1489_v1, %v1342_v63  ;;  %v1492_v6 = vadd.f32 %v1491_v4, %v1490_v2  ;;  %v1517_v8 = vadd.f32 %v1516_v7, %v1515_v3  ;;  %v1518_v9 = vpop.f32.mrb[2].mxu1 }
  0xfa   :  { %v1519_v11 = vpop.f32.mrb[3].mxu1 }
  0xfb   :  { %v1025_v10 = vadd.f32 %v1492_v6, %v1342_v63  ;;  %v1071_v12 = vadd.f32 %v1517_v8, %v1022_v5  ;;  %v1520_v13 = vadd.f32 %v1519_v11, %v1518_v9 }
  0xfd   :  { %v1074_v14 = vadd.f32 %v1520_v13, %v1025_v10  ;;  %v1493_v15 = vpop.f32.mrb[4].mxu0 }
  0xfe   :  { %v1494_v16 = vpop.f32.mrb[5].mxu0 }
  0xff   :  { %v1495_v17 = vadd.f32 %v1494_v16, %v1493_v15  ;;  %v1496_v18 = vpop.f32.mrb[6].mxu0  ;;  %v1521_v19 = vpop.f32.mrb[4].mxu1 }
 0x100   :  { %v1497_v20 = vpop.f32.mrb[7].mxu0  ;;  %v1522_v23 = vpop.f32.mrb[5].mxu1 }
 0x101   :  { %v1030_v21 = vadd.f32 %v1495_v17, %v1342_v63  ;;  %v1498_v22 = vadd.f32 %v1497_v20, %v1496_v18  ;;  %v1523_v24 = vadd.f32 %v1522_v23, %v1521_v19  ;;  %v1524_v25 = vpop.f32.mrb[6].mxu1 }
 0x102   :  { %v1525_v27 = vpop.f32.mrb[7].mxu1 }
 0x103   :  { %v1033_v26 = vadd.f32 %v1498_v22, %v1342_v63  ;;  %v1079_v28 = vadd.f32 %v1523_v24, %v1030_v21  ;;  %v1526_v29 = vadd.f32 %v1525_v27, %v1524_v25 }
 0x105   :  { %v1082_v30 = vadd.f32 %v1526_v29, %v1033_v26 }
 0x115   :  { %v1543_v31 = vpop.f32.mrb[8].mxu0 }
 0x116   :  { %v1544_v32 = vpop.f32.mrb[9].mxu0 }
 0x117   :  { %v1545_v33 = vadd.f32 %v1544_v32, %v1543_v31  ;;  %v1546_v34 = vpop.f32.mrb[10].mxu0  ;;  %v1571_v35 = vpop.f32.mrb[8].mxu1 }
 0x118   :  { %v1547_v36 = vpop.f32.mrb[11].mxu0  ;;  %v1572_v39 = vpop.f32.mrb[9].mxu1 }
 0x119   :  { %v1120_v37 = vadd.f32 %v1545_v33, %v1071_v12  ;;  %v1548_v38 = vadd.f32 %v1547_v36, %v1546_v34  ;;  %v1573_v40 = vadd.f32 %v1572_v39, %v1571_v35  ;;  %v1574_v41 = vpop.f32.mrb[10].mxu1 }
 0x11a   :  { %v1575_v43 = vpop.f32.mrb[11].mxu1 }
 0x11b   :  { %v1123_v42 = vadd.f32 %v1548_v38, %v1074_v14  ;;  %v1169_v44 = vadd.f32 %v1573_v40, %v1120_v37  ;;  %v1576_v45 = vadd.f32 %v1575_v43, %v1574_v41 }
 0x11d   :  { %v1172_v46 = vadd.f32 %v1576_v45, %v1123_v42  ;;  %v1549_v47 = vpop.f32.mrb[12].mxu0 }
 0x11e   :  { %v1550_v48 = vpop.f32.mrb[13].mxu0 }
 0x11f   :  { %v1551_v49 = vadd.f32 %v1550_v48, %v1549_v47  ;;  %v1552_v50 = vpop.f32.mrb[14].mxu0  ;;  %v1577_v51 = vpop.f32.mrb[12].mxu1 }
 0x120   :  { %v1553_v52 = vpop.f32.mrb[15].mxu0  ;;  %v1578_v55 = vpop.f32.mrb[13].mxu1 }
 0x121   :  { %v1128_v53 = vadd.f32 %v1551_v49, %v1079_v28  ;;  %v1554_v54 = vadd.f32 %v1553_v52, %v1552_v50  ;;  %v1579_v56 = vadd.f32 %v1578_v55, %v1577_v51  ;;  %v1580_v57 = vpop.f32.mrb[14].mxu1 }
 0x122   :  { %v1581_v59 = vpop.f32.mrb[15].mxu1 }
 0x123   :  { %v1131_v58 = vadd.f32 %v1554_v54, %v1082_v30  ;;  %v1177_v60 = vadd.f32 %v1579_v56, %v1128_v53  ;;  %v1582_v61 = vadd.f32 %v1581_v59, %v1580_v57 }
 0x125   :  { %v1180_v62 = vadd.f32 %v1582_v61, %v1131_v58 }
 0x135   :  { %v1599_v63 = vpop.f32.mrb[16].mxu0 }
 0x136   :  { %v1600_v0 = vpop.f32.mrb[17].mxu0 }
 0x137   :  { %v1601_v1 = vadd.f32 %v1600_v0, %v1599_v63  ;;  %v1602_v2 = vpop.f32.mrb[18].mxu0  ;;  %v1627_v5 = vpop.f32.mrb[16].mxu1 }
 0x138   :  { %v1603_v3 = vpop.f32.mrb[19].mxu0  ;;  %v1628_v7 = vpop.f32.mrb[17].mxu1 }
 0x139   :  { %v1218_v4 = vadd.f32 %v1601_v1, %v1169_v44  ;;  %v1604_v6 = vadd.f32 %v1603_v3, %v1602_v2  ;;  %v1629_v9 = vadd.f32 %v1628_v7, %v1627_v5  ;;  %v1630_v10 = vpop.f32.mrb[18].mxu1 }
 0x13a   :  { %v1631_v11 = vpop.f32.mrb[19].mxu1 }
 0x13b   :  { %v1221_v8 = vadd.f32 %v1604_v6, %v1172_v46  ;;  %v1632_v12 = vadd.f32 %v1631_v11, %v1630_v10  ;;  %v1267_v14 = vadd.f32 %v1629_v9, %v1218_v4 }
 0x13d   :  { %v1605_v13 = vpop.f32.mrb[20].mxu0  ;;  %v1270_v18 = vadd.f32 %v1632_v12, %v1221_v8 }
 0x13e   :  { %v1606_v15 = vpop.f32.mrb[21].mxu0 }
 0x13f   :  { %v1607_v16 = vadd.f32 %v1606_v15, %v1605_v13  ;;  %v1608_v17 = vpop.f32.mrb[22].mxu0  ;;  %v1633_v21 = vpop.f32.mrb[20].mxu1 }
 0x140   :  { %v1609_v19 = vpop.f32.mrb[23].mxu0  ;;  %v1634_v23 = vpop.f32.mrb[21].mxu1 }
 0x141   :  { %v1226_v20 = vadd.f32 %v1607_v16, %v1177_v60  ;;  %v1610_v22 = vadd.f32 %v1609_v19, %v1608_v17  ;;  %v1635_v25 = vadd.f32 %v1634_v23, %v1633_v21  ;;  %v1636_v26 = vpop.f32.mrb[22].mxu1 }
 0x142   :  { %v1637_v27 = vpop.f32.mrb[23].mxu1 }
 0x143   :  { %v1229_v24 = vadd.f32 %v1610_v22, %v1180_v62  ;;  %v1638_v28 = vadd.f32 %v1637_v27, %v1636_v26  ;;  %v1275_v29 = vadd.f32 %v1635_v25, %v1226_v20 }
 0x145   :  { %v1655_v30 = vpop.f32.mrb[24].mxu0  ;;  %v1278_v33 = vadd.f32 %v1638_v28, %v1229_v24 }
 0x146   :  { %v1324_v31 = vadd.f32 %v1655_v30, %v1275_v29  ;;  %v1315_v32 = vpop.f32.mrb[25].mxu0 }
 0x147   :  { %v1316_v34 = vadd.f32 %v1315_v32, %v1267_v14  ;;  %v1656_v35 = vpop.f32.mrb[26].mxu0 }
 0x148   :  { %v1332_v36 = vmax.f32 %v1324_v31, 0.0  ;;  %v1327_v37 = vadd.f32 %v1656_v35, %v1278_v33  ;;  %v1318_v38 = vpop.f32.mrb[27].mxu0 }
 0x149   :  { %v1330_v39 = vmax.f32 %v1316_v34, 0.0  ;;  %v1319_v40 = vadd.f32 %v1318_v38, %v1270_v18 }
 0x14a   :  { %1336 = vst.msk [vmem:[%s2217_s3 + $0x10] sm:$0xff] %vm980_vm0, %v1332_v36  ;;  %v1333_v41 = vmax.f32 %v1327_v37, 0.0 }
 0x14b   :  { %1334 = vst.msk [vmem:[%s2217_s3] sm:$0xff] %vm980_vm0, %v1330_v39  ;;  %v1331_v42 = vmax.f32 %v1319_v40, 0.0 }
 0x14c   :  { %1337 = vst.msk [vmem:[%s2217_s3 + $0x18] sm:$0xff] %vm980_vm0, %v1333_v41 }
 0x14d   :  { %1335 = vst.msk [vmem:[%s2217_s3 + $0x8] sm:$0xff] %vm980_vm0, %v1331_v42 }

// kernel: cifar_net_forward.12
= control target key start
LH: loop header
LB: loop body
LE: loop exit
PB: predicated region body
PF: predicated region fallthrough
CT: control target
= control target key end

     0   :  { %s55_s22 = smov 64   ;;  %vm41_vm0 = vcmask 517120   ;;  %s102_s0 = inlined_call_operand.vmem [shape: f32[4,2,2,128], index: 0, kind: input, shape index: {}]   ;;  %s103_s1 = inlined_call_operand.vmem [shape: f32[4,2,64], index: 1, kind: output, shape index: {}]  }
   0x1   :  { %v10_v0 = vld [vmem:[%s102_s0 + $0x8] sm:$0x3]  ;;  %v52_v1 = vld [vmem:[%s102_s0 + $0xa] sm:$0x3]  ;;  %v8_v2 = vld [vmem:[%s102_s0] sm:$0x3] }
   0x2   :  { %v19_v3 = vmax.f32 %v10_v0, %v52_v1  ;;  %v50_v4 = vld [vmem:[%s102_s0 + $0x2] sm:$0x3]  ;;  %v11_v5 = vld [vmem:[%s102_s0 + $0xc] sm:$0x3]  ;;  %v53_v6 = vld [vmem:[%s102_s0 + $0xe] sm:$0x3] }
   0x3   :  { %v17_v7 = vmax.f32 %v8_v2, %v50_v4  ;;  %v9_v8 = vld [vmem:[%s102_s0 + $0x4] sm:$0x3]  ;;  %v51_v9 = vld [vmem:[%s102_s0 + $0x6] sm:$0x3]  ;;  %v20_v10 = vmax.f32 %v11_v5, %v53_v6 }
   0x4   :  { %29 = vrot.lane.b32.xlu1 %v19_v3, %s55_s22  ;;  %v18_v11 = vmax.f32 %v9_v8, %v51_v9 }
   0x5   :  { %25 = vrot.lane.b32.xlu0 %v17_v7, %s55_s22 }
   0x8   :  { %31 = vrot.lane.b32.xlu1 %v20_v10, %s55_s22 }
   0x9   :  { %27 = vrot.lane.b32.xlu0 %v18_v11, %s55_s22 }
  0x76   :  { %v30_v12 = vpop.permute.xlu1 %29 }
  0x77   :  { %v39_v13 = vmax.f32 %v19_v3, %v30_v12  ;;  %v26_v14 = vpop.permute.xlu0 %25 }
  0x78   :  { %v37_v15 = vmax.f32 %v17_v7, %v26_v14 }
  0x79   :  { %44 = vst.msk [vmem:[%s103_s1 + $0x4] sm:$0x3] %vm41_vm0, %v39_v13 }
  0x7a   :  { %42 = vst.msk [vmem:[%s103_s1] sm:$0x3] %vm41_vm0, %v37_v15  ;;  %v32_v16 = vpop.permute.xlu1 %31 }
  0x7b   :  { %v40_v17 = vmax.f32 %v20_v10, %v32_v16  ;;  %v28_v18 = vpop.permute.xlu0 %27 }
  0x7c   :  { %v38_v19 = vmax.f32 %v18_v11, %v28_v18 }
  0x7d   :  { %45 = vst.msk [vmem:[%s103_s1 + $0x6] sm:$0x3] %vm41_vm0, %v40_v17 }
  0x7e   :  { %43 = vst.msk [vmem:[%s103_s1 + $0x2] sm:$0x3] %vm41_vm0, %v38_v19 }

// kernel: cifar_net_forward.13
= control target key start
LH: loop header
LB: loop body
LE: loop exit
PB: predicated region body
PF: predicated region fallthrough
CT: control target
= control target key end

     0   :  { %v95_v38 = vlaneseq  ;;  %v1366_v39 = vmov 1966171168   ;;  %s1753_s0 = inlined_call_operand.vmem [shape: bf16[2,256], index: 0, kind: input, shape index: {}]   ;;  %s1754_s1 = inlined_call_operand.vmem [shape: bf16[256,512], index: 1, kind: input, shape index: {}]   ;;  %s1755_s2 = inlined_call_operand.vmem [shape: f32[1,512], index: 2, kind: input, shape index: {}]   ;;  %s1756_s3 = inlined_call_operand.vmem [shape: bf16[512,128], index: 3, kind: input, shape index: {}]   ;;  %s1757_s4 = inlined_call_operand.vmem [shape: f32[1,128], index: 4, kind: input, shape index: {}]   ;;  %s1758_s5 = inlined_call_operand.vmem [shape: bf16[128,10], index: 5, kind: input, shape index: {}]   ;;  %s1759_s6 = inlined_call_operand.vmem [shape: f32[1,10], index: 6, kind: input, shape index: {}]   ;;  %s1760_s7 = inlined_call_operand.hbm [shape: f32[2,10], index: 7, kind: output, shape index: {}]  }
   0x1   :  { %v1206_v0 = vld [vmem:[%s1754_s1 + $0x4] ss:$16 sps:$4 sm:$0xff]   ;;  %v1208_v1 = vld [vmem:[%s1754_s1 + $0xc] ss:$16 sps:$4 sm:$0xff]   ;;  %v1210_v2 = vld [vmem:[%s1754_s1] ss:$16 sps:$4 sm:$0xff]   ;;  %v125_v40 = vunpack.c.l.s4 %v1366_v39 }
   0x2   :  { %460 = vmatprep.subr.bf16.mxu0 %v1206_v0  ;;  %v1211_v3 = vld [vmem:[%s1754_s1 + $0x8] ss:$16 sps:$4 sm:$0xff]   ;;  %501 = vmatprep.subr.bf16.mxu1 %v1208_v1  ;;  %v1212_v4 = vld [vmem:[%s1754_s1 + $0x24] ss:$16 sps:$4 sm:$0xff]   ;;  %v1214_v5 = vld [vmem:[%s1754_s1 + $0x2c] ss:$16 sps:$4 sm:$0xff]  }
   0x3   :  { %461 = vmatpush1.bf16.msra.mxu0 %v1210_v2  ;;  %502 = vmatpush1.bf16.msra.mxu1 %v1211_v3  ;;  %v1216_v6 = vld [vmem:[%s1754_s1 + $0x20] ss:$16 sps:$4 sm:$0xff]   ;;  %v1217_v7 = vld [vmem:[%s1754_s1 + $0x28] ss:$16 sps:$4 sm:$0xff]   ;;  %v1218_v8 = vld [vmem:[%s1754_s1 + $0x44] ss:$16 sps:$4 sm:$0xff]   ;;  %v126_v46 = vunpack.c.0.s8 %v125_v40 }
   0x4   :  { %462 = vmatprep.subr.bf16.mxu0 %v1212_v4  ;;  %503 = vmatprep.subr.bf16.mxu1 %v1214_v5  ;;  %v1220_v9 = vld [vmem:[%s1754_s1 + $0x4c] ss:$16 sps:$4 sm:$0xff]   ;;  %v1222_v10 = vld [vmem:[%s1754_s1 + $0x40] ss:$16 sps:$4 sm:$0xff]   ;;  %v1223_v11 = vld [vmem:[%s1754_s1 + $0x48] ss:$16 sps:$4 sm:$0xff]  }
   0x5   :  { %v1224_v12 = vld [vmem:[%s1754_s1 + $0x64] ss:$16 sps:$4 sm:$0xff]   ;;  %v1226_v13 = vld [vmem:[%s1754_s1 + $0x6c] ss:$16 sps:$4 sm:$0xff]   ;;  %v1228_v14 = vld [vmem:[%s1754_s1 + $0x60] ss:$16 sps:$4 sm:$0xff]  }
   0x6   :  { %v1229_v15 = vld [vmem:[%s1754_s1 + $0x68] ss:$16 sps:$4 sm:$0xff]   ;;  %v1230_v16 = vld [vmem:[%s1754_s1 + $0x84] ss:$16 sps:$4 sm:$0xff]   ;;  %v1232_v17 = vld [vmem:[%s1754_s1 + $0x8c] ss:$16 sps:$4 sm:$0xff]  }
   0x7   :  { %463 = vmatpush1.bf16.msra.mxu0 %v1216_v6  ;;  %504 = vmatpush1.bf16.msra.mxu1 %v1217_v7  ;;  %v1234_v18 = vld [vmem:[%s1754_s1 + $0x80] ss:$16 sps:$4 sm:$0xff]   ;;  %v1235_v19 = vld [vmem:[%s1754_s1 + $0x88] ss:$16 sps:$4 sm:$0xff]   ;;  %v1236_v20 = vld [vmem:[%s1754_s1 + $0xa4] ss:$16 sps:$4 sm:$0xff]  }
   0x8   :  { %464 = vmatprep.subr.bf16.mxu0 %v1218_v8  ;;  %505 = vmatprep.subr.bf16.mxu1 %v1220_v9  ;;  %v1238_v21 = vld [vmem:[%s1754_s1 + $0xac] ss:$16 sps:$4 sm:$0xff]   ;;  %v1240_v22 = vld [vmem:[%s1754_s1 + $0xa0] ss:$16 sps:$4 sm:$0xff]   ;;  %v1241_v23 = vld [vmem:[%s1754_s1 + $0xa8] ss:$16 sps:$4 sm:$0xff]  }
   0x9   :  { %v1242_v24 = vld [vmem:[%s1754_s1 + $0xc4] ss:$16 sps:$4 sm:$0xff]   ;;  %v1244_v25 = vld [vmem:[%s1754_s1 + $0xcc] ss:$16 sps:$4 sm:$0xff]   ;;  %v1246_v26 = vld [vmem:[%s1754_s1 + $0xc0] ss:$16 sps:$4 sm:$0xff]  }
   0xa   :  { %v1247_v27 = vld [vmem:[%s1754_s1 + $0xc8] ss:$16 sps:$4 sm:$0xff]   ;;  %v1248_v28 = vld [vmem:[%s1754_s1 + $0xe4] ss:$16 sps:$4 sm:$0xff]   ;;  %v1250_v29 = vld [vmem:[%s1754_s1 + $0xec] ss:$16 sps:$4 sm:$0xff]  }
   0xb   :  { %465 = vmatpush1.bf16.msra.mxu0 %v1222_v10  ;;  %506 = vmatpush1.bf16.msra.mxu1 %v1223_v11  ;;  %v1252_v30 = vld [vmem:[%s1754_s1 + $0xe0] ss:$16 sps:$4 sm:$0xff]   ;;  %v1253_v31 = vld [vmem:[%s1754_s1 + $0xe8] ss:$16 sps:$4 sm:$0xff]   ;;  %v1254_v32 = vld [vmem:[%s1754_s1 + $0x104] ss:$16 sps:$4 sm:$0xff]  }
   0xc   :  { %466 = vmatprep.subr.bf16.mxu0 %v1224_v12  ;;  %507 = vmatprep.subr.bf16.mxu1 %v1226_v13  ;;  %v1256_v33 = vld [vmem:[%s1754_s1 + $0x10c] ss:$16 sps:$4 sm:$0xff]   ;;  %v1258_v34 = vld [vmem:[%s1754_s1 + $0x100] ss:$16 sps:$4 sm:$0xff]   ;;  %v1259_v35 = vld [vmem:[%s1754_s1 + $0x108] ss:$16 sps:$4 sm:$0xff]  }
   0xd   :  { %v1260_v36 = vld [vmem:[%s1754_s1 + $0x124] ss:$16 sps:$4 sm:$0xff]   ;;  %v1262_v37 = vld [vmem:[%s1754_s1 + $0x12c] ss:$16 sps:$4 sm:$0xff]   ;;  %v1264_v41 = vld [vmem:[%s1754_s1 + $0x120] ss:$16 sps:$4 sm:$0xff]  }
   0xe   :  { %v1265_v42 = vld [vmem:[%s1754_s1 + $0x128] ss:$16 sps:$4 sm:$0xff]   ;;  %v1266_v43 = vld [vmem:[%s1754_s1 + $0x144] ss:$16 sps:$4 sm:$0xff]   ;;  %v1268_v44 = vld [vmem:[%s1754_s1 + $0x14c] ss:$16 sps:$4 sm:$0xff]  }
   0xf   :  { %467 = vmatpush1.bf16.msra.mxu0 %v1228_v14  ;;  %508 = vmatpush1.bf16.msra.mxu1 %v1229_v15  ;;  %v1536_v45 = vshrl.u32 %v95_v38, 7  ;;  %v1270_v47 = vld [vmem:[%s1754_s1 + $0x140] ss:$16 sps:$4 sm:$0xff]   ;;  %v1271_v48 = vld [vmem:[%s1754_s1 + $0x148] ss:$16 sps:$4 sm:$0xff]  }
  0x10   :  { %468 = vmatprep.subr.bf16.mxu0 %v1230_v16  ;;  %509 = vmatprep.subr.bf16.mxu1 %v1232_v17  ;;  %v1272_v49 = vld [vmem:[%s1754_s1 + $0x164] ss:$16 sps:$4 sm:$0xff]   ;;  %v1274_v50 = vld [vmem:[%s1754_s1 + $0x16c] ss:$16 sps:$4 sm:$0xff]   ;;  %v1276_v51 = vld [vmem:[%s1754_s1 + $0x160] ss:$16 sps:$4 sm:$0xff]  }
  0x11   :  { %v1277_v52 = vld [vmem:[%s1754_s1 + $0x168] ss:$16 sps:$4 sm:$0xff]   ;;  %v129_v53 = vsub.s32 %v126_v46, %v1536_v45  ;;  %v1022_v54 = vld.sshfl [vmem:[%s1753_s0] sm:$0x11 pattern:$0x75316420] }
  0x12   :  { %v1278_v55 = vld [vmem:[%s1754_s1 + $0x184] ss:$16 sps:$4 sm:$0xff]   ;;  %v123_v56 = vcombine.high %v1022_v54, %v1022_v54  ;;  %v1280_v57 = vld [vmem:[%s1754_s1 + $0x18c] ss:$16 sps:$4 sm:$0xff]   ;;  %v1282_v58 = vld [vmem:[%s1754_s1 + $0x180] ss:$16 sps:$4 sm:$0xff]  }
  0x13   :  { %469 = vmatpush1.bf16.msra.mxu0 %v1234_v18  ;;  %510 = vmatpush1.bf16.msra.mxu1 %v1235_v19  ;;  %v1283_v60 = vld [vmem:[%s1754_s1 + $0x188] ss:$16 sps:$4 sm:$0xff]   ;;  %v1284_v61 = vld [vmem:[%s1754_s1 + $0x1a4] ss:$16 sps:$4 sm:$0xff]   ;;  %v1286_v62 = vld [vmem:[%s1754_s1 + $0x1ac] ss:$16 sps:$4 sm:$0xff]   ;;  %v130_v12 = vrot.slane %v1022_v54, %v129_v53 }
  0x14   :  { %470 = vmatprep.subr.bf16.mxu0 %v1236_v20  ;;  %511 = vmatprep.subr.bf16.mxu1 %v1238_v21  ;;  %v137_v59 = vrot.slane %v123_v56, %v129_v53  ;;  %v1288_v63 = vld [vmem:[%s1754_s1 + $0x1a0] ss:$16 sps:$4 sm:$0xff]   ;;  %v1289_v0 = vld [vmem:[%s1754_s1 + $0x1a8] ss:$16 sps:$4 sm:$0xff]   ;;  %v1290_v1 = vld [vmem:[%s1754_s1 + $0x1c4] ss:$16 sps:$4 sm:$0xff]  }
  0x15   :  { %v1292_v2 = vld [vmem:[%s1754_s1 + $0x1cc] ss:$16 sps:$4 sm:$0xff]   ;;  %v1294_v3 = vld [vmem:[%s1754_s1 + $0x1c0] ss:$16 sps:$4 sm:$0xff]   ;;  %v1295_v4 = vld [vmem:[%s1754_s1 + $0x1c8] ss:$16 sps:$4 sm:$0xff]  }
  0x16   :  { %492 = vmatprep.mubr.bf16.mxu0 %v137_v59  ;;  %533 = vmatprep.mubr.bf16.mxu1 %v137_v59  ;;  %v1296_v5 = vld [vmem:[%s1754_s1 + $0x1e4] ss:$16 sps:$4 sm:$0xff]   ;;  %v1298_v6 = vld [vmem:[%s1754_s1 + $0x1ec] ss:$16 sps:$4 sm:$0xff]   ;;  %v1300_v7 = vld [vmem:[%s1754_s1 + $0x1e0] ss:$16 sps:$4 sm:$0xff]  }
  0x17   :  { %471 = vmatpush1.bf16.msra.mxu0 %v1240_v22  ;;  %512 = vmatpush1.bf16.msra.mxu1 %v1241_v23  ;;  %v1301_v8 = vld [vmem:[%s1754_s1 + $0x1e8] ss:$16 sps:$4 sm:$0xff]   ;;  %v1302_v9 = vld [vmem:[%s1756_s3 + $0x40] sm:$0xff]   ;;  %v1310_v18 = vld [vmem:[%s1756_s3 + $0x50] sm:$0xff]  }
  0x18   :  { %472 = vmatprep.subr.bf16.mxu0 %v1242_v24  ;;  %513 = vmatprep.subr.bf16.mxu1 %v1244_v25  ;;  %v1303_v10 = vld [vmem:[%s1756_s3 + $0xc0] sm:$0xff]   ;;  %v1306_v14 = vld [vmem:[%s1756_s3 + $0x48] sm:$0xff]   ;;  %v1311_v19 = vld [vmem:[%s1756_s3 + $0xd0] sm:$0xff]  }
  0x19   :  { %v1304_v11 = vld [vmem:[%s1756_s3] sm:$0xff]   ;;  %v1307_v15 = vld [vmem:[%s1756_s3 + $0xc8] sm:$0xff]   ;;  %v1312_v20 = vld [vmem:[%s1756_s3 + $0x10] sm:$0xff]  }
  0x1a   :  { %v1305_v13 = vld [vmem:[%s1756_s3 + $0x80] sm:$0xff]   ;;  %v1308_v16 = vld [vmem:[%s1756_s3 + $0x8] sm:$0xff]   ;;  %v1313_v21 = vld [vmem:[%s1756_s3 + $0x90] sm:$0xff]  }
  0x1b   :  { %473 = vmatpush1.bf16.msra.mxu0 %v1246_v26  ;;  %514 = vmatpush1.bf16.msra.mxu1 %v1247_v27  ;;  %v1309_v17 = vld [vmem:[%s1756_s3 + $0x88] sm:$0xff]   ;;  %v1314_v22 = vld [vmem:[%s1756_s3 + $0x58] sm:$0xff]   ;;  %v1318_v26 = vld [vmem:[%s1756_s3 + $0x60] sm:$0xff]  }
  0x1c   :  { %474 = vmatprep.subr.bf16.mxu0 %v1248_v28  ;;  %515 = vmatprep.subr.bf16.mxu1 %v1250_v29  ;;  %v1315_v23 = vld [vmem:[%s1756_s3 + $0xd8] sm:$0xff]   ;;  %v1319_v27 = vld [vmem:[%s1756_s3 + $0xe0] sm:$0xff]  }
  0x1d   :  { %v1316_v24 = vld [vmem:[%s1756_s3 + $0x18] sm:$0xff]  }
  0x1e   :  { %v1317_v25 = vld [vmem:[%s1756_s3 + $0x98] sm:$0xff]  }
  0x1f   :  { %475 = vmatpush1.bf16.msra.mxu0 %v1252_v30  ;;  %516 = vmatpush1.bf16.msra.mxu1 %v1253_v31 }
  0x20   :  { %476 = vmatprep.subr.bf16.mxu0 %v1254_v32  ;;  %517 = vmatprep.subr.bf16.mxu1 %v1256_v33 }
  0x23   :  { %477 = vmatpush1.bf16.msra.mxu0 %v1258_v34  ;;  %518 = vmatpush1.bf16.msra.mxu1 %v1259_v35 }
  0x24   :  { %478 = vmatprep.subr.bf16.mxu0 %v1260_v36  ;;  %519 = vmatprep.subr.bf16.mxu1 %v1262_v37 }
  0x27   :  { %479 = vmatpush1.bf16.msra.mxu0 %v1264_v41  ;;  %520 = vmatpush1.bf16.msra.mxu1 %v1265_v42 }
  0x28   :  { %480 = vmatprep.subr.bf16.mxu0 %v1266_v43  ;;  %521 = vmatprep.subr.bf16.mxu1 %v1268_v44 }
  0x2b   :  { %481 = vmatpush1.bf16.msra.mxu0 %v1270_v47  ;;  %522 = vmatpush1.bf16.msra.mxu1 %v1271_v48 }
  0x2c   :  { %482 = vmatprep.subr.bf16.mxu0 %v1272_v49  ;;  %523 = vmatprep.subr.bf16.mxu1 %v1274_v50 }
  0x2f   :  { %483 = vmatpush1.bf16.msra.mxu0 %v1276_v51  ;;  %524 = vmatpush1.bf16.msra.mxu1 %v1277_v52 }
  0x30   :  { %484 = vmatprep.subr.bf16.mxu0 %v1278_v55  ;;  %525 = vmatprep.subr.bf16.mxu1 %v1280_v57 }
  0x33   :  { %485 = vmatpush1.bf16.msra.mxu0 %v1282_v58  ;;  %526 = vmatpush1.bf16.msra.mxu1 %v1283_v60 }
  0x34   :  { %486 = vmatprep.subr.bf16.mxu0 %v1284_v61  ;;  %527 = vmatprep.subr.bf16.mxu1 %v1286_v62 }
  0x37   :  { %487 = vmatpush1.bf16.msra.mxu0 %v1288_v63  ;;  %528 = vmatpush1.bf16.msra.mxu1 %v1289_v0 }
  0x38   :  { %488 = vmatprep.subr.bf16.mxu0 %v1290_v1  ;;  %529 = vmatprep.subr.bf16.mxu1 %v1292_v2 }
  0x3b   :  { %489 = vmatpush1.bf16.msra.mxu0 %v1294_v3  ;;  %530 = vmatpush1.bf16.msra.mxu1 %v1295_v4 }
  0x3c   :  { %490 = vmatprep.subr.bf16.mxu0 %v1296_v5  ;;  %531 = vmatprep.subr.bf16.mxu1 %v1298_v6 }
  0x3f   :  { %491 = vmatpush1.bf16.msra.mxu0 %v1300_v7  ;;  %532 = vmatpush1.bf16.msra.mxu1 %v1301_v8 }
  0x40   :  { %1129 = vmatprep.subr.bf16.mxu0 %v1302_v9  ;;  %1151 = vmatprep.subr.bf16.mxu1 %v1303_v10 }
  0x42   :  { %493 = vmatmul.mubr.bf16.vlgmr.msra.gmra.mrb[0].mxu0 %v130_v12  ;;  %534 = vmatmul.mubr.bf16.vlgmr.msra.gmra.mrb[0].mxu1 %v130_v12 }
  0x43   :  { %1130 = vmatpush3.bf16.msra.mxu0 %v1304_v11  ;;  %1152 = vmatpush3.bf16.msra.mxu1 %v1305_v13 }
  0x44   :  { %1131 = vmatprep.subr.bf16.mxu0 %v1306_v14  ;;  %1153 = vmatprep.subr.bf16.mxu1 %v1307_v15 }
  0x47   :  { %1132 = vmatpush3.bf16.msra.mxu0 %v1308_v16  ;;  %1154 = vmatpush3.bf16.msra.mxu1 %v1309_v17 }
  0x48   :  { %1133 = vmatprep.subr.bf16.mxu0 %v1310_v18  ;;  %1155 = vmatprep.subr.bf16.mxu1 %v1311_v19 }
  0x4b   :  { %1134 = vmatpush3.bf16.msra.mxu0 %v1312_v20  ;;  %1156 = vmatpush3.bf16.msra.mxu1 %v1313_v21 }
  0x4c   :  { %1135 = vmatprep.subr.bf16.mxu0 %v1314_v22  ;;  %1157 = vmatprep.subr.bf16.mxu1 %v1315_v23 }
  0x4d   :  { %12 = vsyncpa [#allocation3], 0  ;;  %v1320_v28 = vld [vmem:[%s1756_s3 + $0x20] sm:$0xff]   ;;  %v1322_v30 = vld [vmem:[%s1756_s3 + $0x68] sm:$0xff]   ;;  %v1367_v42 = vmov 0.0   ;;  %v97_v43 = vsub.s32 0, %v1536_v45 }
  0x4e   :  { %v1321_v29 = vld [vmem:[%s1756_s3 + $0xa0] sm:$0xff]   ;;  %v1323_v31 = vld [vmem:[%s1756_s3 + $0xe8] sm:$0xff]   ;;  %v1326_v34 = vld [vmem:[%s1756_s3 + $0x70] sm:$0xff]   ;;  %v105_v44 = vsub.s32 2, %v1536_v45  ;;  %v101_v47 = vsub.s32 1, %v1536_v45  ;;  %v109_v48 = vsub.s32 3, %v1536_v45 }
  0x4f   :  { %1136 = vmatpush3.bf16.msra.mxu0 %v1316_v24  ;;  %1158 = vmatpush3.bf16.msra.mxu1 %v1317_v25  ;;  %v1324_v32 = vld [vmem:[%s1756_s3 + $0x28] sm:$0xff]   ;;  %v1327_v35 = vld [vmem:[%s1756_s3 + $0xf0] sm:$0xff]   ;;  %v1330_v38 = vld [vmem:[%s1756_s3 + $0x78] sm:$0xff]   ;;  %vm1368_vm0 = vmmov 0   ;;  %s1369_s1 = smov [#allocation2]   ;;  %vm1006_vm1 = vcmask 74752  }
  0x50   :  { %1137 = vmatprep.subr.bf16.mxu0 %v1318_v26  ;;  %1159 = vmatprep.subr.bf16.mxu1 %v1319_v27  ;;  %v1325_v33 = vld [vmem:[%s1756_s3 + $0xa8] sm:$0xff]   ;;  %v1328_v36 = vld [vmem:[%s1756_s3 + $0x30] sm:$0xff]   ;;  %v1331_v39 = vld [vmem:[%s1756_s3 + $0xf8] sm:$0xff]   ;;  %s1014_s22 = sshll.u32 %s1369_s1, 4  ;;  %s1015_s22 = int_to_ptr.vmem [resolvable:$true] %s1014_s22 }
  0x51   :  { %v1329_v37 = vld [vmem:[%s1756_s3 + $0xb0] sm:$0xff]   ;;  %v1332_v40 = vld [vmem:[%s1756_s3 + $0x38] sm:$0xff]   ;;  %v93_v46 = vld [vmem:[%s1755_s2] sm:$0xf]  ;;  %p1347_p1 = scmp.lt.s32.totalorder %s1015_s22, %s1015_s22 }
  0x52   :  { %v1333_v41 = vld [vmem:[%s1756_s3 + $0xb8] sm:$0xff]   ;;  %v98_v49 = vrot.slane %v93_v46, %v97_v43  ;;  %v106_v50 = vrot.slane %v93_v46, %v105_v44  ;;  %v102_v51 = vrot.slane %v93_v46, %v101_v47  ;;  %v110_v52 = vrot.slane %v93_v46, %v109_v48  ;;  %v1334_v7 = vld [vmem:[%s1758_s5] sm:$0xff]   ;;  %v1335_v9 = vld [vmem:[%s1758_s5 + $0x8] sm:$0xff]  }
  0x53   :  { %1138 = vmatpush3.bf16.msra.mxu0 %v1320_v28  ;;  %1160 = vmatpush3.bf16.msra.mxu1 %v1321_v29  ;;  %v1336_v10 = vld [vmem:[%s1758_s5 + $0x10] sm:$0xff]   ;;  %v1337_v11 = vld [vmem:[%s1758_s5 + $0x18] sm:$0xff]   ;;  %v1338_v12 = vld [vmem:[%s1758_s5 + $0x20] sm:$0xff]  }
  0x54   :  { %1139 = vmatprep.subr.bf16.mxu0 %v1322_v30  ;;  %1161 = vmatprep.subr.bf16.mxu1 %v1323_v31  ;;  %v1339_v13 = vld [vmem:[%s1758_s5 + $0x28] sm:$0xff]   ;;  %v1340_v14 = vld [vmem:[%s1758_s5 + $0x30] sm:$0xff]   ;;  %v1341_v15 = vld [vmem:[%s1758_s5 + $0x38] sm:$0xff]  }
  0x55   :  { %v1087_v18 = vld [vmem:[%s1757_s4] ss:$0 sm:$0xff]  ;;  %s1342_s4 = scalar_lea.vmem %s1015_s22, 32 }
  0x56   :  { %v1120_v31 = vld [vmem:[%s1759_s6] ss:$0 sm:$0xff]  ;;  %p1343_p0 = scmp.ne.s32.totalorder %s1015_s22, %s1342_s4  ;;  %p1348_p2 = scmp.lt.s32.totalorder %s1342_s4, %s1342_s4 }
  0x57   :  { %1140 = vmatpush3.bf16.msra.mxu0 %v1324_v32  ;;  %1162 = vmatpush3.bf16.msra.mxu1 %v1325_v33 }
  0x58   :  { %1141 = vmatprep.subr.bf16.mxu0 %v1326_v34  ;;  %1163 = vmatprep.subr.bf16.mxu1 %v1327_v35  ;;  %p1349_p3 = por %p1348_p2, %p1347_p1 }
  0x5a   :  { %p1350_p4 = pnand %p1349_p3, %p1343_p0 }
  0x5b   :  { %1142 = vmatpush3.bf16.msra.mxu0 %v1328_v36  ;;  %1164 = vmatpush3.bf16.msra.mxu1 %v1329_v37 }
  0x5c   :  { %1143 = vmatprep.subr.bf16.mxu0 %v1330_v38  ;;  %1165 = vmatprep.subr.bf16.mxu1 %v1331_v39 }
  0x5f   :  { %1144 = vmatpush3.bf16.msra.mxu0 %v1332_v40  ;;  %1166 = vmatpush3.bf16.msra.mxu1 %v1333_v41 }
  0x60   :  { %1182 = vmatprep.subr.bf16.mxu0 %v1367_v42 }
 0x115   :  { %v494_v53 = vpop.f32.mrb[0].mxu0  ;;  %v535_v54 = vpop.f32.mrb[0].mxu1 }
 0x116   :  { %v495_v55 = vadd.f32 %v494_v53, %v98_v49  ;;  %v536_v56 = vadd.f32 %v535_v54, %v106_v50  ;;  %v496_v57 = vpop.f32.mrb[1].mxu0  ;;  %v537_v58 = vpop.f32.mrb[1].mxu1 }
 0x117   :  { %v497_v59 = vadd.f32 %v496_v57, %v102_v51  ;;  %v538_v60 = vadd.f32 %v537_v58, %v110_v52  ;;  %v498_v61 = vpop.f32.mrb[2].mxu0  ;;  %v539_v62 = vpop.f32.mrb[2].mxu1 }
 0x118   :  { %v542_v63 = vmax.f32 %v495_v55, 0.0  ;;  %v544_v0 = vmax.f32 %v536_v56, 0.0  ;;  %v499_v1 = vpop.f32.mrb[3].mxu0  ;;  %v540_v2 = vpop.f32.mrb[3].mxu1 }
 0x119   :  { %v543_v3 = vmax.f32 %v497_v59, 0.0  ;;  %v545_v45 = vmax.f32 %v538_v60, 0.0 }
 0x11a   :  { %v548_v4 = vpack.c.bf16 %v544_v0, %v544_v0  ;;  %v546_v8 = vpack.c.bf16 %v542_v63, %v542_v63 }
 0x11b   :  { %v547_v5 = vpack.c.bf16 %v543_v3, %v543_v3  ;;  %v549_v6 = vpack.c.bf16 %v545_v45, %v545_v45 }
 0x11d   :  { %845 = vmatprep.mubr.bf16.mxu0 %v547_v5  ;;  %885 = vmatprep.mubr.bf16.mxu1 %v549_v6 }
 0x11e   :  { %846 = vmatmul.mubr.bf16.vlgmr.msra.gmra.mrb[4].mxu0 %v546_v8  ;;  %886 = vmatmul.mubr.bf16.vlgmr.msra.gmra.mrb[4].mxu1 %v548_v4 }
 0x11f   :  { %1183 = vmatpush3.bf16.msra.mxu0 %v1334_v7  ;;  %1198 = vmatprep.mubr.msk.bf16.mxu0 %vm1368_vm0, %v1367_v42 }
 0x120   :  { %1184 = vmatprep.subr.bf16.mxu0 %v1367_v42 }
 0x123   :  { %1185 = vmatpush3.bf16.msra.mxu0 %v1335_v9 }
 0x124   :  { %1186 = vmatprep.subr.bf16.mxu0 %v1367_v42 }
 0x127   :  { %1187 = vmatpush3.bf16.msra.mxu0 %v1336_v10 }
 0x128   :  { %1188 = vmatprep.subr.bf16.mxu0 %v1367_v42 }
 0x12b   :  { %1189 = vmatpush3.bf16.msra.mxu0 %v1337_v11 }
 0x12c   :  { %1190 = vmatprep.subr.bf16.mxu0 %v1367_v42 }
 0x12f   :  { %1191 = vmatpush3.bf16.msra.mxu0 %v1338_v12 }
 0x130   :  { %1192 = vmatprep.subr.bf16.mxu0 %v1367_v42 }
 0x133   :  { %1193 = vmatpush3.bf16.msra.mxu0 %v1339_v13 }
 0x134   :  { %1194 = vmatprep.subr.bf16.mxu0 %v1367_v42 }
 0x137   :  { %1195 = vmatpush3.bf16.msra.mxu0 %v1340_v14 }
 0x138   :  { %1196 = vmatprep.subr.bf16.mxu0 %v1367_v42 }
 0x13b   :  { %1197 = vmatpush3.bf16.msra.mxu0 %v1341_v15 }
 0x1f1   :  { %v1145_v16 = vpop.f32.mrb[4].mxu0  ;;  %v1167_v17 = vpop.f32.mrb[4].mxu1 }
 0x1f2   :  { %v1146_v19 = vpop.f32.mrb[5].mxu0  ;;  %v1168_v20 = vpop.f32.mrb[5].mxu1 }
 0x1f3   :  { %v1147_v21 = vadd.f32 %v1146_v19, %v1145_v16  ;;  %v1169_v22 = vadd.f32 %v1168_v20, %v1167_v17  ;;  %v1148_v23 = vpop.f32.mrb[6].mxu0  ;;  %v1170_v24 = vpop.f32.mrb[6].mxu1 }
 0x1f4   :  { %v1149_v25 = vpop.f32.mrb[7].mxu0  ;;  %v1171_v26 = vpop.f32.mrb[7].mxu1 }
 0x1f5   :  { %v848_v27 = vadd.f32 %v1147_v21, %v1087_v18 }
 0x1f7   :  { %v888_v28 = vadd.f32 %v1169_v22, %v848_v27 }
 0x1f9   :  { %v893_v29 = vmax.f32 %v888_v28, 0.0 }
 0x1fb   :  { %v894_v30 = vpack.c.bf16 %v893_v29, %v893_v29 }
 0x1fd   :  { %1199 = vmatmul.mubr.bf16.vlgmr.msra.gmra.mrb[8].mxu0 %v894_v30 }
 0x2d0   :  { %v1000_v32 = vpop.f32.mrb[8].mxu0 }
 0x2d1   :  { %v1001_v33 = vadd.f32 %v1120_v31, %v1000_v32  ;;  %v1200_v34 = vpop.f32.mrb[9].mxu0 }
 0x2d2   :  { %v1003_v35 = vpop.f32.mrb[10].mxu0 }
 0x2d3   :  { %v1201_v36 = vpop.f32.mrb[11].mxu0  ;;  %1007 = vst.msk [vmem:[#allocation2] sm:$0x3] %vm1006_vm1, %v1001_v33 }
 0x2d4   :  { %1353 = shalt.err (!%p1350_p4)
}
 0x2d5   :  { %s1354_s6 = scalar_lea.hbm %s1760_s7, 32 }
 0x2d6   :  { %p1355_p5 = scmp.ne.s32.totalorder %s1760_s7, %s1354_s6  ;;  %p1358_p6 = scmp.lt.u32.totalorder %s1354_s6, %s1760_s7 }
 0x2d8   :  { %p1360_p7 = pnand %p1358_p6, %p1355_p5 }
 0x2da   :  { %1363 = shalt.err (!%p1360_p7)
}
 0x2db   :  { %1017 = dma.vmem_to_hbm [thread:$0]  %s1015_s22, 32, %s1760_s7, [#allocation3]  }
 0x2dc   :  { %1364 = dma.done.wait [#allocation3], 32  }
 0x2dd   :  { %1365 = vsyncadd [#allocation3], 4294967264 }
 0x2de   :  { %1021 = vsyncpa [#allocation3], 1 }

</bundles_post_ra>
